<compile_context>
chip_gen: v7x
topology: tpu7x:2x2x1
jax: 0.10.0
libtpu: 0.0.40
codegen_flags: <defaults>
</compile_context>

<pallas_src>
import jax
import jax.numpy as jnp
from jax import lax
from jax.experimental import pallas as pl
from jax.experimental.pallas import tpu as pltpu

EPS1 = 1e-3
EPS2 = 1e-3


def _bn_conv_bn_kernel(x_ref, p1_ref, p2_ref, w_hbm_ref, o_ref, w_vmem, w_sem):
    # x_ref     : (C_in, NHW)  f32   channels-major activations (in VMEM)
    # p1_ref    : (C_in, 2)    [:,0]=gamma1, [:,1]=beta1
    # p2_ref    : (C_out, 2)   [:,0]=gamma2, [:,1]=beta2
    # w_hbm_ref : (C_out, C_in) raw ref (memory_space=pl.ANY), DMA'd manually
    # o_ref     : (C_out, NHW) -- for N=1 this is already NCHW
    # w_vmem    : (C_out, C_in) VMEM scratch ; w_sem : DMA semaphore

    # Kick off the big weight DMA immediately and hide it behind BN1.
    w_copy = pltpu.make_async_copy(w_hbm_ref, w_vmem, w_sem)
    w_copy.start()

    x = x_ref[...]                                   # (C_in, NHW)
    inv_n = 1.0 / x.shape[1]

    g1 = p1_ref[:, 0:1]                              # (C_in, 1)
    b1 = p1_ref[:, 1:2]                              # (C_in, 1)

    # ---- BatchNorm2d #1 (batch stats, biased variance, gamma folded) ----
    mean1 = jnp.sum(x, axis=1, keepdims=True) * inv_n
    xc = x - mean1
    var1 = jnp.sum(xc * xc, axis=1, keepdims=True) * inv_n
    s1 = g1 * lax.rsqrt(var1 + EPS1)                 # row-level
    xh = xc * s1 + b1                                # (C_in, NHW)

    # ---- Conv2d 1x1 (no bias): y = W @ xh on the MXU ----
    w_copy.wait()
    w = w_vmem[...]                                  # (C_out, C_in)
    y = lax.dot_general(
        w, xh,
        dimension_numbers=(((1,), (0,)), ((), ())),
        preferred_element_type=jnp.float32,
    )                                                # (C_out, NHW)

    # ---- BatchNorm2d #2 (batch stats, biased variance, gamma folded) ----
    # Analytic batch mean: mean(xh, axis=1) == beta1 exactly, conv is linear,
    # so mean(y, axis=1) == W @ beta1 (tiny MXU matvec, no reduce pass over y).
    mean2 = lax.dot_general(
        w, b1,
        dimension_numbers=(((1,), (0,)), ((), ())),
        preferred_element_type=jnp.float32,
    )                                                # (C_out, 1)
    yc = y - mean2
    var2 = jnp.sum(yc * yc, axis=1, keepdims=True) * inv_n
    g2 = p2_ref[:, 0:1]
    b2 = p2_ref[:, 1:2]
    s2 = g2 * lax.rsqrt(var2 + EPS2)
    o_ref[...] = yc * s2 + b2


def prepare_params(conv_w, gamma1, beta1, gamma2, beta2):
    """One-time parameter prep (module __init__, NOT per forward call):
    OIHW -> (C_out, C_in) reshape, pack (gamma, beta) pairs, cast to f32."""
    c_out, c_in = conv_w.shape[0], conv_w.shape[1]
    w2d = conv_w.reshape(c_out, c_in).astype(jnp.float32)          # (C_out, C_in)
    p1 = jnp.stack([gamma1, beta1], axis=1).astype(jnp.float32)    # (C_in, 2)
    p2 = jnp.stack([gamma2, beta2], axis=1).astype(jnp.float32)    # (C_out, 2)
    return w2d, p1, p2


@jax.jit
def bn_conv_bn(x_nchw, w2d, p1, p2):
    """x_nchw: (N, C_in, H, W) -> (N, C_out, H, W)."""
    N, C_in, H, W = x_nchw.shape
    C_out = w2d.shape[0]
    nhw = N * H * W

    # NCHW -> (C_in, N*H*W).  For N == 1 this is a free reshape.
    if N == 1:
        x_cm = x_nchw.reshape(C_in, nhw)
    else:
        x_cm = jnp.transpose(x_nchw, (1, 0, 2, 3)).reshape(C_in, nhw)

    vmem = pl.BlockSpec(memory_space=pltpu.MemorySpace.VMEM)
    cost = pl.CostEstimate(
        flops=2 * nhw * C_in * C_out,
        transcendentals=C_in + C_out,
        bytes_accessed=4 * (C_in * nhw + C_out * C_in + 2 * C_in
                            + 2 * C_out + C_out * nhw),
    )

    out2d = pl.pallas_call(
        _bn_conv_bn_kernel,
        out_shape=jax.ShapeDtypeStruct((C_out, nhw), jnp.float32),
        in_specs=[vmem, vmem, vmem, pl.BlockSpec(memory_space=pl.ANY)],
        out_specs=vmem,
        scratch_shapes=[pltpu.VMEM((C_out, C_in), jnp.float32),
                        pltpu.SemaphoreType.DMA],
        cost_estimate=cost,
    )(x_cm.astype(jnp.float32), p1, p2, w2d)

    # (C_out, N*H*W) -> NCHW.  For N == 1 this is a free reshape (no transpose).
    if N == 1:
        return out2d.reshape(1, C_out, H, W)
    return jnp.transpose(out2d.reshape(C_out, N, H, W), (1, 0, 2, 3))


def _reference(x_nchw, gamma1, beta1, conv_w, gamma2, beta2):
    """Pure-JAX reference (PyTorch training-mode BN) for sanity checking."""
    def bn(x, g, b, eps):
        mean = jnp.mean(x, axis=(0, 2, 3), keepdims=True)
        var = jnp.mean((x - mean) ** 2, axis=(0, 2, 3), keepdims=True)
        return (x - mean) * lax.rsqrt(var + eps) * g[None, :, None, None] \
            + b[None, :, None, None]

    h = bn(x_nchw, gamma1, beta1, EPS1)
    y = lax.conv_general_dilated(
        h, conv_w, window_strides=(1, 1), padding="VALID",
        dimension_numbers=("NCHW", "OIHW", "NCHW"))
    return bn(y, gamma2, beta2, EPS2)


if __name__ == "__main__":
    key = jax.random.PRNGKey(0)
    k_x, k_g1, k_b1, k_w, k_g2, k_b2 = jax.random.split(key, 6)

    N, C_IN, H, W = 1, 184, 7, 7
    C_OUT = 1104

    x = jax.random.normal(k_x, (N, C_IN, H, W), dtype=jnp.float32)
    gamma1 = 1.0 + 0.1 * jax.random.normal(k_g1, (C_IN,), dtype=jnp.float32)
    beta1 = 0.1 * jax.random.normal(k_b1, (C_IN,), dtype=jnp.float32)
    conv_w = 0.05 * jax.random.normal(k_w, (C_OUT, C_IN, 1, 1), dtype=jnp.float32)
    gamma2 = 1.0 + 0.1 * jax.random.normal(k_g2, (C_OUT,), dtype=jnp.float32)
    beta2 = 0.1 * jax.random.normal(k_b2, (C_OUT,), dtype=jnp.float32)

    # One-time parameter preparation (analogous to module __init__).
    w2d, p1, p2 = prepare_params(conv_w, gamma1, beta1, gamma2, beta2)

    out = bn_conv_bn(x, w2d, p1, p2)
    out = jax.block_until_ready(out)
    assert out.shape == (N, C_OUT, H, W), out.shape

    ref = jax.block_until_ready(_reference(x, gamma1, beta1, conv_w, gamma2, beta2))
    max_err = float(jnp.max(jnp.abs(out - ref)))
    assert jnp.allclose(out, ref, atol=2e-4, rtol=2e-4), max_err

    # TODO(synk): running-stats (momentum) buffer updates of the two BatchNorms
    # are a training-time side effect and are not produced by this kernel.
    print("KERNEL_OK")
</pallas_src>

<mosaic_0001>
module attributes {stable_mosaic.version = 11 : i64} {
  func.func @_bn_conv_bn_kernel(%arg0: memref<184x49xf32, #tpu.memory_space<vmem>>, %arg1: memref<184x2xf32, #tpu.memory_space<vmem>>, %arg2: memref<1104x2xf32, #tpu.memory_space<vmem>>, %arg3: memref<1104x184xf32, #tpu.memory_space<any>>, %arg4: memref<1104x49xf32, #tpu.memory_space<vmem>>, %arg5: memref<1104x184xf32, #tpu.memory_space<vmem>>, %arg6: memref<!tpu.dma_semaphore, #tpu.memory_space<semaphore_mem>>) attributes {dimension_semantics = [], scalar_prefetch = 0 : i64, scratch_operands = 2 : i64, tpu.core_type = #tpu.core_type<tc>} {
    tpu.enqueue_dma source(%arg3 : memref<1104x184xf32, #tpu.memory_space<any>>) target(%arg5 : memref<1104x184xf32, #tpu.memory_space<vmem>>) target_semaphore(%arg6 : memref<!tpu.dma_semaphore, #tpu.memory_space<semaphore_mem>>)
    %c0 = arith.constant 0 : index
    %c0_0 = arith.constant 0 : index
    %0 = vector.load %arg0[%c0, %c0_0] : memref<184x49xf32, #tpu.memory_space<vmem>>, vector<184x49xf32>
    %c0_1 = arith.constant 0 : index
    %c0_2 = arith.constant 0 : index
    %1 = vector.load %arg1[%c0_1, %c0_2] : memref<184x2xf32, #tpu.memory_space<vmem>>, vector<184x1xf32>
    %c0_3 = arith.constant 0 : index
    %c1 = arith.constant 1 : index
    %2 = vector.load %arg1[%c0_3, %c1] : memref<184x2xf32, #tpu.memory_space<vmem>>, vector<184x1xf32>
    %cst = arith.constant dense<0.000000e+00> : vector<184xf32>
    %3 = vector.multi_reduction <add>, %0, %cst [1] : vector<184x49xf32> to vector<184xf32>
    %4 = vector.shape_cast %3 : vector<184xf32> to vector<184x1xf32>
    %cst_4 = arith.constant 0.0204081628 : f32
    %5 = vector.broadcast %cst_4 : f32 to vector<184x1xf32>
    %6 = arith.mulf %4, %5 : vector<184x1xf32>
    %7 = vector.broadcast %6 : vector<184x1xf32> to vector<184x49xf32>
    %8 = arith.subf %0, %7 : vector<184x49xf32>
    %9 = arith.mulf %8, %8 : vector<184x49xf32>
    %cst_5 = arith.constant dense<0.000000e+00> : vector<184xf32>
    %10 = vector.multi_reduction <add>, %9, %cst_5 [1] : vector<184x49xf32> to vector<184xf32>
    %11 = vector.shape_cast %10 : vector<184xf32> to vector<184x1xf32>
    %cst_6 = arith.constant 0.0204081628 : f32
    %12 = vector.broadcast %cst_6 : f32 to vector<184x1xf32>
    %13 = arith.mulf %11, %12 : vector<184x1xf32>
    %cst_7 = arith.constant 1.000000e-03 : f32
    %14 = vector.broadcast %cst_7 : f32 to vector<184x1xf32>
    %15 = arith.addf %13, %14 : vector<184x1xf32>
    %16 = math.rsqrt %15 : vector<184x1xf32>
    %17 = arith.mulf %1, %16 : vector<184x1xf32>
    %18 = vector.broadcast %17 : vector<184x1xf32> to vector<184x49xf32>
    %19 = arith.mulf %8, %18 : vector<184x49xf32>
    %20 = vector.broadcast %2 : vector<184x1xf32> to vector<184x49xf32>
    %21 = arith.addf %19, %20 : vector<184x49xf32>
    tpu.wait_dma2 semaphore(%arg6 : memref<!tpu.dma_semaphore, #tpu.memory_space<semaphore_mem>>) src(%arg3 : memref<1104x184xf32, #tpu.memory_space<any>>) dst(%arg5 : memref<1104x184xf32, #tpu.memory_space<vmem>>)
    %c0_8 = arith.constant 0 : index
    %c0_9 = arith.constant 0 : index
    %22 = vector.load %arg5[%c0_8, %c0_9] : memref<1104x184xf32, #tpu.memory_space<vmem>>, vector<1104x184xf32>
    %cst_10 = arith.constant dense<0.000000e+00> : vector<1104x49xf32>
    %23 = tpu.matmul %22, %21, %cst_10 {dimension_numbers = #tpu.dot_dimension_numbers<[1], [0], [0], [1], [0, 0, 1, 1], [], []>} : vector<1104x184xf32>, vector<184x49xf32>, vector<1104x49xf32> -> vector<1104x49xf32>
    %cst_11 = arith.constant dense<0.000000e+00> : vector<1104x1xf32>
    %24 = tpu.matmul %22, %2, %cst_11 {dimension_numbers = #tpu.dot_dimension_numbers<[1], [0], [0], [1], [0, 0, 1, 1], [], []>} : vector<1104x184xf32>, vector<184x1xf32>, vector<1104x1xf32> -> vector<1104x1xf32>
    %25 = vector.broadcast %24 : vector<1104x1xf32> to vector<1104x49xf32>
    %26 = arith.subf %23, %25 : vector<1104x49xf32>
    %27 = arith.mulf %26, %26 : vector<1104x49xf32>
    %cst_12 = arith.constant dense<0.000000e+00> : vector<1104xf32>
    %28 = vector.multi_reduction <add>, %27, %cst_12 [1] : vector<1104x49xf32> to vector<1104xf32>
    %29 = vector.shape_cast %28 : vector<1104xf32> to vector<1104x1xf32>
    %cst_13 = arith.constant 0.0204081628 : f32
    %30 = vector.broadcast %cst_13 : f32 to vector<1104x1xf32>
    %31 = arith.mulf %29, %30 : vector<1104x1xf32>
    %c0_14 = arith.constant 0 : index
    %c0_15 = arith.constant 0 : index
    %32 = vector.load %arg2[%c0_14, %c0_15] : memref<1104x2xf32, #tpu.memory_space<vmem>>, vector<1104x1xf32>
    %c0_16 = arith.constant 0 : index
    %c1_17 = arith.constant 1 : index
    %33 = vector.load %arg2[%c0_16, %c1_17] : memref<1104x2xf32, #tpu.memory_space<vmem>>, vector<1104x1xf32>
    %cst_18 = arith.constant 1.000000e-03 : f32
    %34 = vector.broadcast %cst_18 : f32 to vector<1104x1xf32>
    %35 = arith.addf %31, %34 : vector<1104x1xf32>
    %36 = math.rsqrt %35 : vector<1104x1xf32>
    %37 = arith.mulf %32, %36 : vector<1104x1xf32>
    %38 = vector.broadcast %37 : vector<1104x1xf32> to vector<1104x49xf32>
    %39 = arith.mulf %26, %38 : vector<1104x49xf32>
    %40 = vector.broadcast %33 : vector<1104x1xf32> to vector<1104x49xf32>
    %41 = arith.addf %39, %40 : vector<1104x49xf32>
    %c0_19 = arith.constant 0 : index
    %c0_20 = arith.constant 0 : index
    %42 = vector.load %arg4[%c0_19, %c0_20] : memref<1104x49xf32, #tpu.memory_space<vmem>>, vector<1104x49xf32>
    tpu.vector_store %arg4[%c0_19, %c0_20], %41 {strides = array<i32>} : memref<1104x49xf32, #tpu.memory_space<vmem>>, vector<1104x49xf32>,
    return
  }
}

</mosaic_0001>

<bundles_post_ra>
// kernel: bn_conv_bn.1
= control target key start
LH: loop header
LB: loop body
LE: loop exit
PB: predicated region body
PF: predicated region fallthrough
CT: control target
= control target key end

     0   :  { %vm653_vm0 = vcmask 400384   ;;  %s14961_s0 = inlined_call_operand.vmem [shape: f32[184,49], index: 0, kind: input, shape index: {}]   ;;  %s14962_s1 = inlined_call_operand.vmem [shape: f32[184,2], index: 1, kind: input, shape index: {}]   ;;  %s14963_s2 = inlined_call_operand.vmem [shape: f32[1104,2], index: 2, kind: input, shape index: {}]   ;;  %s14964_s3 = inlined_call_operand.vmem [shape: f32[1104,184], index: 3, kind: input, shape index: {}]   ;;  %s14965_s4 = inlined_call_operand.vmem [shape: f32[1104,49], index: 4, kind: output, shape index: {}]  }
   0x1   :  { %v8304_v0 = vld [vmem:[%s14964_s3] sm:$0xff]  ;;  %v8309_v1 = vld [vmem:[%s14964_s3 + $0x8] sm:$0xff]  ;;  %v8314_v2 = vld [vmem:[%s14964_s3 + $0x10] sm:$0xff] }
   0x2   :  { %15361 = vst [vmem:[#allocation6_spill] sm:$0xff] %v8304_v0  ;;  %15362 = vst [vmem:[#allocation7_spill] sm:$0xff] %v8309_v1  ;;  %v8319_v3 = vld [vmem:[%s14964_s3 + $0x18] sm:$0xff]  ;;  %v8324_v4 = vld [vmem:[%s14964_s3 + $0x20] sm:$0xff] }
   0x3   :  { %15363 = vst [vmem:[#allocation8_spill] sm:$0xff] %v8314_v2  ;;  %15364 = vst [vmem:[#allocation9_spill] sm:$0xff] %v8319_v3  ;;  %v8329_v5 = vld [vmem:[%s14964_s3 + $0x28] sm:$0xff]  ;;  %v8334_v6 = vld [vmem:[%s14964_s3 + $0x30] sm:$0xff] }
   0x4   :  { %15365 = vst [vmem:[#allocation10_spill] sm:$0xff] %v8324_v4  ;;  %15366 = vst [vmem:[#allocation11_spill] sm:$0xff] %v8329_v5  ;;  %v8339_v7 = vld [vmem:[%s14964_s3 + $0x38] sm:$0xff]  ;;  %v8344_v8 = vld [vmem:[%s14964_s3 + $0x40] sm:$0xff] }
   0x5   :  { %15367 = vst [vmem:[#allocation12_spill] sm:$0xff] %v8334_v6  ;;  %15368 = vst [vmem:[#allocation13_spill] sm:$0xff] %v8339_v7  ;;  %v8349_v9 = vld [vmem:[%s14964_s3 + $0x48] sm:$0xff]  ;;  %v8354_v10 = vld [vmem:[%s14964_s3 + $0x50] sm:$0xff] }
   0x6   :  { %15369 = vst [vmem:[#allocation14_spill] sm:$0xff] %v8344_v8  ;;  %15370 = vst [vmem:[#allocation15_spill] sm:$0xff] %v8349_v9  ;;  %v8359_v11 = vld [vmem:[%s14964_s3 + $0x58] sm:$0xff]  ;;  %v8364_v12 = vld [vmem:[%s14964_s3 + $0x60] sm:$0xff] }
   0x7   :  { %15371 = vst [vmem:[#allocation16_spill] sm:$0xff] %v8354_v10  ;;  %15372 = vst [vmem:[#allocation17_spill] sm:$0xff] %v8359_v11  ;;  %v8369_v13 = vld [vmem:[%s14964_s3 + $0x68] sm:$0xff]  ;;  %v8374_v14 = vld [vmem:[%s14964_s3 + $0x70] sm:$0xff] }
   0x8   :  { %15373 = vst [vmem:[#allocation18_spill] sm:$0xff] %v8364_v12  ;;  %15374 = vst [vmem:[#allocation19_spill] sm:$0xff] %v8369_v13  ;;  %v8379_v15 = vld [vmem:[%s14964_s3 + $0x78] sm:$0xff]  ;;  %v8384_v16 = vld [vmem:[%s14964_s3 + $0x80] sm:$0xff] }
   0x9   :  { %15375 = vst [vmem:[#allocation20_spill] sm:$0xff] %v8374_v14  ;;  %15376 = vst [vmem:[#allocation21_spill] sm:$0xff] %v8379_v15  ;;  %v8389_v17 = vld [vmem:[%s14964_s3 + $0x88] sm:$0xff]  ;;  %v8394_v18 = vld [vmem:[%s14964_s3 + $0x90] sm:$0xff] }
   0xa   :  { %15377 = vst [vmem:[#allocation22_spill] sm:$0xff] %v8384_v16  ;;  %15378 = vst [vmem:[#allocation23_spill] sm:$0xff] %v8389_v17  ;;  %v8399_v19 = vld [vmem:[%s14964_s3 + $0x98] sm:$0xff]  ;;  %v8404_v20 = vld [vmem:[%s14964_s3 + $0xa0] sm:$0xff] }
   0xb   :  { %15379 = vst [vmem:[#allocation24_spill] sm:$0xff] %v8394_v18  ;;  %15380 = vst [vmem:[#allocation25_spill] sm:$0xff] %v8399_v19  ;;  %v8409_v21 = vld [vmem:[%s14964_s3 + $0xa8] sm:$0xff]  ;;  %v8414_v22 = vld [vmem:[%s14964_s3 + $0xb0] sm:$0xff] }
   0xc   :  { %15381 = vst [vmem:[#allocation26_spill] sm:$0xff] %v8404_v20  ;;  %15382 = vst [vmem:[#allocation27_spill] sm:$0xff] %v8409_v21  ;;  %v8419_v23 = vld [vmem:[%s14964_s3 + $0xb8] sm:$0xff]  ;;  %v8424_v24 = vld [vmem:[%s14964_s3 + $0xc0] sm:$0xff] }
   0xd   :  { %15383 = vst [vmem:[#allocation28_spill] sm:$0xff] %v8414_v22  ;;  %15384 = vst [vmem:[#allocation29_spill] sm:$0xff] %v8419_v23  ;;  %v8429_v25 = vld [vmem:[%s14964_s3 + $0xc8] sm:$0xff]  ;;  %v8434_v26 = vld [vmem:[%s14964_s3 + $0xd0] sm:$0xff] }
   0xe   :  { %15385 = vst [vmem:[#allocation30_spill] sm:$0xff] %v8424_v24  ;;  %15386 = vst [vmem:[#allocation31_spill] sm:$0xff] %v8429_v25  ;;  %v8439_v27 = vld [vmem:[%s14964_s3 + $0xd8] sm:$0xff]  ;;  %v8444_v28 = vld [vmem:[%s14964_s3 + $0xe0] sm:$0xff] }
   0xf   :  { %15387 = vst [vmem:[#allocation32_spill] sm:$0xff] %v8434_v26  ;;  %15388 = vst [vmem:[#allocation33_spill] sm:$0xff] %v8439_v27  ;;  %v8449_v29 = vld [vmem:[%s14964_s3 + $0xe8] sm:$0xff]  ;;  %v8454_v30 = vld [vmem:[%s14964_s3 + $0xf0] sm:$0xff] }
  0x10   :  { %15389 = vst [vmem:[#allocation34_spill] sm:$0xff] %v8444_v28  ;;  %15390 = vst [vmem:[#allocation35_spill] sm:$0xff] %v8449_v29  ;;  %v8459_v31 = vld [vmem:[%s14964_s3 + $0xf8] sm:$0xff]  ;;  %v8464_v32 = vld [vmem:[%s14964_s3 + $0x100] sm:$0xff] }
  0x11   :  { %15391 = vst [vmem:[#allocation36_spill] sm:$0xff] %v8454_v30  ;;  %15392 = vst [vmem:[#allocation37_spill] sm:$0xff] %v8459_v31  ;;  %v8469_v33 = vld [vmem:[%s14964_s3 + $0x108] sm:$0xff]  ;;  %v8474_v34 = vld [vmem:[%s14964_s3 + $0x110] sm:$0xff] }
  0x12   :  { %15393 = vst [vmem:[#allocation38_spill] sm:$0xff] %v8464_v32  ;;  %15394 = vst [vmem:[#allocation39_spill] sm:$0xff] %v8469_v33  ;;  %v8479_v35 = vld [vmem:[%s14964_s3 + $0x118] sm:$0xff]  ;;  %v8484_v36 = vld [vmem:[%s14964_s3 + $0x120] sm:$0xff] }
  0x13   :  { %15395 = vst [vmem:[#allocation40_spill] sm:$0xff] %v8474_v34  ;;  %15396 = vst [vmem:[#allocation41_spill] sm:$0xff] %v8479_v35  ;;  %v8489_v37 = vld [vmem:[%s14964_s3 + $0x128] sm:$0xff]  ;;  %v8494_v38 = vld [vmem:[%s14964_s3 + $0x130] sm:$0xff] }
  0x14   :  { %15397 = vst [vmem:[#allocation42_spill] sm:$0xff] %v8484_v36  ;;  %15398 = vst [vmem:[#allocation43_spill] sm:$0xff] %v8489_v37  ;;  %v8499_v39 = vld [vmem:[%s14964_s3 + $0x138] sm:$0xff]  ;;  %v8504_v40 = vld [vmem:[%s14964_s3 + $0x140] sm:$0xff] }
  0x15   :  { %15399 = vst [vmem:[#allocation44_spill] sm:$0xff] %v8494_v38  ;;  %15400 = vst [vmem:[#allocation45_spill] sm:$0xff] %v8499_v39  ;;  %v8509_v41 = vld [vmem:[%s14964_s3 + $0x148] sm:$0xff]  ;;  %v8514_v42 = vld [vmem:[%s14964_s3 + $0x150] sm:$0xff] }
  0x16   :  { %15401 = vst [vmem:[#allocation46_spill] sm:$0xff] %v8504_v40  ;;  %15402 = vst [vmem:[#allocation47_spill] sm:$0xff] %v8509_v41  ;;  %v8519_v43 = vld [vmem:[%s14964_s3 + $0x158] sm:$0xff]  ;;  %v8524_v44 = vld [vmem:[%s14964_s3 + $0x160] sm:$0xff] }
  0x17   :  { %15403 = vst [vmem:[#allocation48_spill] sm:$0xff] %v8514_v42  ;;  %15404 = vst [vmem:[#allocation49_spill] sm:$0xff] %v8519_v43  ;;  %v8529_v45 = vld [vmem:[%s14964_s3 + $0x168] sm:$0xff]  ;;  %v8534_v46 = vld [vmem:[%s14964_s3 + $0x170] sm:$0xff] }
  0x18   :  { %15405 = vst [vmem:[#allocation50_spill] sm:$0xff] %v8524_v44  ;;  %15406 = vst [vmem:[#allocation51_spill] sm:$0xff] %v8529_v45  ;;  %v8539_v47 = vld [vmem:[%s14964_s3 + $0x178] sm:$0xff]  ;;  %v8544_v48 = vld [vmem:[%s14964_s3 + $0x180] sm:$0xff] }
  0x19   :  { %15407 = vst [vmem:[#allocation52_spill] sm:$0xff] %v8534_v46  ;;  %15408 = vst [vmem:[#allocation53_spill] sm:$0xff] %v8539_v47  ;;  %v8549_v49 = vld [vmem:[%s14964_s3 + $0x188] sm:$0xff]  ;;  %v8554_v50 = vld [vmem:[%s14964_s3 + $0x190] sm:$0xff] }
  0x1a   :  { %15409 = vst [vmem:[#allocation54_spill] sm:$0xff] %v8544_v48  ;;  %15410 = vst [vmem:[#allocation55_spill] sm:$0xff] %v8549_v49  ;;  %v8559_v51 = vld [vmem:[%s14964_s3 + $0x198] sm:$0xff]  ;;  %v8564_v52 = vld [vmem:[%s14964_s3 + $0x1a0] sm:$0xff] }
  0x1b   :  { %15411 = vst [vmem:[#allocation56_spill] sm:$0xff] %v8554_v50  ;;  %15412 = vst [vmem:[#allocation57_spill] sm:$0xff] %v8559_v51  ;;  %v8569_v53 = vld [vmem:[%s14964_s3 + $0x1a8] sm:$0xff]  ;;  %v8574_v54 = vld [vmem:[%s14964_s3 + $0x1b0] sm:$0xff] }
  0x1c   :  { %15413 = vst [vmem:[#allocation58_spill] sm:$0xff] %v8564_v52  ;;  %15414 = vst [vmem:[#allocation59_spill] sm:$0xff] %v8569_v53  ;;  %v8579_v55 = vld [vmem:[%s14964_s3 + $0x1b8] sm:$0xff]  ;;  %v8584_v56 = vld [vmem:[%s14964_s3 + $0x1c0] sm:$0xff] }
  0x1d   :  { %15415 = vst [vmem:[#allocation60_spill] sm:$0xff] %v8574_v54  ;;  %15416 = vst [vmem:[#allocation61_spill] sm:$0xff] %v8579_v55  ;;  %v8589_v57 = vld [vmem:[%s14964_s3 + $0x1c8] sm:$0xff]  ;;  %v8594_v58 = vld [vmem:[%s14964_s3 + $0x1d0] sm:$0xff] }
  0x1e   :  { %15417 = vst [vmem:[#allocation62_spill] sm:$0xff] %v8584_v56  ;;  %15418 = vst [vmem:[#allocation63_spill] sm:$0xff] %v8589_v57  ;;  %v8599_v59 = vld [vmem:[%s14964_s3 + $0x1d8] sm:$0xff]  ;;  %v8604_v60 = vld [vmem:[%s14964_s3 + $0x1e0] sm:$0xff]  ;;  %v15189_v56 = vmov 1  }
  0x1f   :  { %15419 = vst [vmem:[#allocation64_spill] sm:$0xff] %v8594_v58  ;;  %15420 = vst [vmem:[#allocation65_spill] sm:$0xff] %v8599_v59  ;;  %v8609_v61 = vld [vmem:[%s14964_s3 + $0x1e8] sm:$0xff]  ;;  %v8614_v62 = vld [vmem:[%s14964_s3 + $0x1f0] sm:$0xff]  ;;  %7734 = vset.pattern.permute.xlu1 %v15189_v56  ;;  %7733 = vset.pattern.permute.xlu0 %v15189_v56 }
  0x20   :  { %15421 = vst [vmem:[#allocation66_spill] sm:$0xff] %v8604_v60  ;;  %15422 = vst [vmem:[#allocation67_spill] sm:$0xff] %v8609_v61  ;;  %v8619_v63 = vld [vmem:[%s14964_s3 + $0x1f8] sm:$0xff]  ;;  %v8624_v58 = vld [vmem:[%s14964_s3 + $0x200] sm:$0xff] }
  0x21   :  { %15423 = vst [vmem:[#allocation68_spill] sm:$0xff] %v8614_v62  ;;  %15424 = vst [vmem:[#allocation69_spill] sm:$0xff] %v8619_v63  ;;  %v8629_v60 = vld [vmem:[%s14964_s3 + $0x208] sm:$0xff]  ;;  %v8634_v61 = vld [vmem:[%s14964_s3 + $0x210] sm:$0xff] }
  0x22   :  { %15425 = vst [vmem:[#allocation70_spill] sm:$0xff] %v8624_v58  ;;  %15426 = vst [vmem:[#allocation71_spill] sm:$0xff] %v8629_v60  ;;  %v8639_v62 = vld [vmem:[%s14964_s3 + $0x218] sm:$0xff]  ;;  %v8644_v63 = vld [vmem:[%s14964_s3 + $0x220] sm:$0xff] }
  0x23   :  { %15427 = vst [vmem:[#allocation72_spill] sm:$0xff] %v8634_v61  ;;  %15428 = vst [vmem:[#allocation73_spill] sm:$0xff] %v8639_v62  ;;  %v8649_v58 = vld [vmem:[%s14964_s3 + $0x228] sm:$0xff]  ;;  %v8654_v60 = vld [vmem:[%s14964_s3 + $0x230] sm:$0xff] }
  0x24   :  { %15429 = vst [vmem:[#allocation74_spill] sm:$0xff] %v8644_v63  ;;  %15430 = vst [vmem:[#allocation75_spill] sm:$0xff] %v8649_v58  ;;  %v8659_v61 = vld [vmem:[%s14964_s3 + $0x238] sm:$0xff]  ;;  %v8664_v62 = vld [vmem:[%s14964_s3 + $0x240] sm:$0xff] }
  0x25   :  { %15431 = vst [vmem:[#allocation76_spill] sm:$0xff] %v8654_v60  ;;  %15432 = vst [vmem:[#allocation77_spill] sm:$0xff] %v8659_v61  ;;  %v8669_v63 = vld [vmem:[%s14964_s3 + $0x248] sm:$0xff]  ;;  %v8674_v58 = vld [vmem:[%s14964_s3 + $0x250] sm:$0xff] }
  0x26   :  { %15433 = vst [vmem:[#allocation78_spill] sm:$0xff] %v8664_v62  ;;  %15434 = vst [vmem:[#allocation79_spill] sm:$0xff] %v8669_v63  ;;  %v8679_v60 = vld [vmem:[%s14964_s3 + $0x258] sm:$0xff]  ;;  %v8684_v61 = vld [vmem:[%s14964_s3 + $0x260] sm:$0xff] }
  0x27   :  { %15435 = vst [vmem:[#allocation80_spill] sm:$0xff] %v8674_v58  ;;  %15436 = vst [vmem:[#allocation81_spill] sm:$0xff] %v8679_v60  ;;  %v8689_v62 = vld [vmem:[%s14964_s3 + $0x268] sm:$0xff]  ;;  %v8694_v63 = vld [vmem:[%s14964_s3 + $0x270] sm:$0xff] }
  0x28   :  { %15437 = vst [vmem:[#allocation82_spill] sm:$0xff] %v8684_v61  ;;  %15438 = vst [vmem:[#allocation83_spill] sm:$0xff] %v8689_v62  ;;  %v8699_v58 = vld [vmem:[%s14964_s3 + $0x278] sm:$0xff]  ;;  %v8704_v60 = vld [vmem:[%s14964_s3 + $0x280] sm:$0xff] }
  0x29   :  { %15439 = vst [vmem:[#allocation84_spill] sm:$0xff] %v8694_v63  ;;  %15440 = vst [vmem:[#allocation85_spill] sm:$0xff] %v8699_v58  ;;  %v8709_v61 = vld [vmem:[%s14964_s3 + $0x288] sm:$0xff]  ;;  %v8714_v62 = vld [vmem:[%s14964_s3 + $0x290] sm:$0xff] }
  0x2a   :  { %15441 = vst [vmem:[#allocation86_spill] sm:$0xff] %v8704_v60  ;;  %15442 = vst [vmem:[#allocation87_spill] sm:$0xff] %v8709_v61  ;;  %v8719_v63 = vld [vmem:[%s14964_s3 + $0x298] sm:$0xff]  ;;  %v8724_v58 = vld [vmem:[%s14964_s3 + $0x2a0] sm:$0xff] }
  0x2b   :  { %15443 = vst [vmem:[#allocation88_spill] sm:$0xff] %v8714_v62  ;;  %15444 = vst [vmem:[#allocation89_spill] sm:$0xff] %v8719_v63  ;;  %v8729_v60 = vld [vmem:[%s14964_s3 + $0x2a8] sm:$0xff]  ;;  %v8734_v61 = vld [vmem:[%s14964_s3 + $0x2b0] sm:$0xff] }
  0x2c   :  { %15445 = vst [vmem:[#allocation90_spill] sm:$0xff] %v8724_v58  ;;  %15446 = vst [vmem:[#allocation91_spill] sm:$0xff] %v8729_v60  ;;  %v8739_v62 = vld [vmem:[%s14964_s3 + $0x2b8] sm:$0xff]  ;;  %v8744_v63 = vld [vmem:[%s14964_s3 + $0x2c0] sm:$0xff] }
  0x2d   :  { %15447 = vst [vmem:[#allocation92_spill] sm:$0xff] %v8734_v61  ;;  %15448 = vst [vmem:[#allocation93_spill] sm:$0xff] %v8739_v62  ;;  %v8749_v58 = vld [vmem:[%s14964_s3 + $0x2c8] sm:$0xff]  ;;  %v8754_v60 = vld [vmem:[%s14964_s3 + $0x2d0] sm:$0xff] }
  0x2e   :  { %15449 = vst [vmem:[#allocation94_spill] sm:$0xff] %v8744_v63  ;;  %15450 = vst [vmem:[#allocation95_spill] sm:$0xff] %v8749_v58  ;;  %v8759_v61 = vld [vmem:[%s14964_s3 + $0x2d8] sm:$0xff]  ;;  %v8764_v62 = vld [vmem:[%s14964_s3 + $0x2e0] sm:$0xff] }
  0x2f   :  { %15451 = vst [vmem:[#allocation96_spill] sm:$0xff] %v8754_v60  ;;  %15452 = vst [vmem:[#allocation97_spill] sm:$0xff] %v8759_v61  ;;  %v8769_v63 = vld [vmem:[%s14964_s3 + $0x2e8] sm:$0xff]  ;;  %v8774_v58 = vld [vmem:[%s14964_s3 + $0x2f0] sm:$0xff] }
  0x30   :  { %15453 = vst [vmem:[#allocation98_spill] sm:$0xff] %v8764_v62  ;;  %15454 = vst [vmem:[#allocation99_spill] sm:$0xff] %v8769_v63  ;;  %v8779_v60 = vld [vmem:[%s14964_s3 + $0x2f8] sm:$0xff]  ;;  %v8784_v61 = vld [vmem:[%s14964_s3 + $0x300] sm:$0xff] }
  0x31   :  { %15455 = vst [vmem:[#allocation100_spill] sm:$0xff] %v8774_v58  ;;  %15456 = vst [vmem:[#allocation101_spill] sm:$0xff] %v8779_v60  ;;  %v8789_v62 = vld [vmem:[%s14964_s3 + $0x308] sm:$0xff]  ;;  %v8794_v63 = vld [vmem:[%s14964_s3 + $0x310] sm:$0xff] }
  0x32   :  { %15457 = vst [vmem:[#allocation102_spill] sm:$0xff] %v8784_v61  ;;  %15458 = vst [vmem:[#allocation103_spill] sm:$0xff] %v8789_v62  ;;  %v8799_v58 = vld [vmem:[%s14964_s3 + $0x318] sm:$0xff]  ;;  %v8804_v60 = vld [vmem:[%s14964_s3 + $0x320] sm:$0xff] }
  0x33   :  { %15459 = vst [vmem:[#allocation104_spill] sm:$0xff] %v8794_v63  ;;  %15460 = vst [vmem:[#allocation105_spill] sm:$0xff] %v8799_v58  ;;  %v8809_v61 = vld [vmem:[%s14964_s3 + $0x328] sm:$0xff]  ;;  %v8814_v62 = vld [vmem:[%s14964_s3 + $0x330] sm:$0xff] }
  0x34   :  { %15461 = vst [vmem:[#allocation106_spill] sm:$0xff] %v8804_v60  ;;  %15462 = vst [vmem:[#allocation107_spill] sm:$0xff] %v8809_v61  ;;  %v8819_v63 = vld [vmem:[%s14964_s3 + $0x338] sm:$0xff]  ;;  %v8824_v58 = vld [vmem:[%s14964_s3 + $0x340] sm:$0xff] }
  0x35   :  { %15463 = vst [vmem:[#allocation108_spill] sm:$0xff] %v8814_v62  ;;  %15464 = vst [vmem:[#allocation109_spill] sm:$0xff] %v8819_v63  ;;  %v8829_v60 = vld [vmem:[%s14964_s3 + $0x348] sm:$0xff]  ;;  %v8834_v61 = vld [vmem:[%s14964_s3 + $0x350] sm:$0xff] }
  0x36   :  { %15465 = vst [vmem:[#allocation110_spill] sm:$0xff] %v8824_v58  ;;  %15466 = vst [vmem:[#allocation111_spill] sm:$0xff] %v8829_v60  ;;  %v8839_v62 = vld [vmem:[%s14964_s3 + $0x358] sm:$0xff]  ;;  %v8844_v63 = vld [vmem:[%s14964_s3 + $0x360] sm:$0xff] }
  0x37   :  { %15467 = vst [vmem:[#allocation112_spill] sm:$0xff] %v8834_v61  ;;  %15468 = vst [vmem:[#allocation113_spill] sm:$0xff] %v8839_v62  ;;  %v8849_v58 = vld [vmem:[%s14964_s3 + $0x368] sm:$0xff]  ;;  %v8854_v60 = vld [vmem:[%s14964_s3 + $0x370] sm:$0xff] }
  0x38   :  { %15469 = vst [vmem:[#allocation114_spill] sm:$0xff] %v8844_v63  ;;  %15470 = vst [vmem:[#allocation115_spill] sm:$0xff] %v8849_v58  ;;  %v8859_v61 = vld [vmem:[%s14964_s3 + $0x378] sm:$0xff]  ;;  %v8864_v62 = vld [vmem:[%s14964_s3 + $0x380] sm:$0xff] }
  0x39   :  { %15471 = vst [vmem:[#allocation116_spill] sm:$0xff] %v8854_v60  ;;  %15472 = vst [vmem:[#allocation117_spill] sm:$0xff] %v8859_v61  ;;  %v8869_v63 = vld [vmem:[%s14964_s3 + $0x388] sm:$0xff]  ;;  %v8874_v58 = vld [vmem:[%s14964_s3 + $0x390] sm:$0xff] }
  0x3a   :  { %15473 = vst [vmem:[#allocation118_spill] sm:$0xff] %v8864_v62  ;;  %15474 = vst [vmem:[#allocation119_spill] sm:$0xff] %v8869_v63  ;;  %v8879_v60 = vld [vmem:[%s14964_s3 + $0x398] sm:$0xff]  ;;  %v8884_v61 = vld [vmem:[%s14964_s3 + $0x3a0] sm:$0xff] }
  0x3b   :  { %15475 = vst [vmem:[#allocation120_spill] sm:$0xff] %v8874_v58  ;;  %15476 = vst [vmem:[#allocation121_spill] sm:$0xff] %v8879_v60  ;;  %v8889_v62 = vld [vmem:[%s14964_s3 + $0x3a8] sm:$0xff]  ;;  %v8894_v63 = vld [vmem:[%s14964_s3 + $0x3b0] sm:$0xff] }
  0x3c   :  { %15477 = vst [vmem:[#allocation122_spill] sm:$0xff] %v8884_v61  ;;  %15478 = vst [vmem:[#allocation123_spill] sm:$0xff] %v8889_v62  ;;  %v8899_v58 = vld [vmem:[%s14964_s3 + $0x3b8] sm:$0xff]  ;;  %v8904_v60 = vld [vmem:[%s14964_s3 + $0x3c0] sm:$0xff] }
  0x3d   :  { %15479 = vst [vmem:[#allocation124_spill] sm:$0xff] %v8894_v63  ;;  %15480 = vst [vmem:[#allocation125_spill] sm:$0xff] %v8899_v58  ;;  %v8909_v61 = vld [vmem:[%s14964_s3 + $0x3c8] sm:$0xff]  ;;  %v8914_v62 = vld [vmem:[%s14964_s3 + $0x3d0] sm:$0xff] }
  0x3e   :  { %15481 = vst [vmem:[#allocation126_spill] sm:$0xff] %v8904_v60  ;;  %15482 = vst [vmem:[#allocation127_spill] sm:$0xff] %v8909_v61  ;;  %v8919_v63 = vld [vmem:[%s14964_s3 + $0x3d8] sm:$0xff]  ;;  %v8924_v58 = vld [vmem:[%s14964_s3 + $0x3e0] sm:$0xff] }
  0x3f   :  { %15483 = vst [vmem:[#allocation128_spill] sm:$0xff] %v8914_v62  ;;  %15484 = vst [vmem:[#allocation129_spill] sm:$0xff] %v8919_v63  ;;  %v8929_v60 = vld [vmem:[%s14964_s3 + $0x3e8] sm:$0xff]  ;;  %v8934_v61 = vld [vmem:[%s14964_s3 + $0x3f0] sm:$0xff] }
  0x40   :  { %15485 = vst [vmem:[#allocation130_spill] sm:$0xff] %v8924_v58  ;;  %15486 = vst [vmem:[#allocation131_spill] sm:$0xff] %v8929_v60  ;;  %v8939_v62 = vld [vmem:[%s14964_s3 + $0x3f8] sm:$0xff]  ;;  %v8944_v63 = vld [vmem:[%s14964_s3 + $0x400] sm:$0xff] }
  0x41   :  { %15487 = vst [vmem:[#allocation132_spill] sm:$0xff] %v8934_v61  ;;  %15488 = vst [vmem:[#allocation133_spill] sm:$0xff] %v8939_v62  ;;  %v8949_v58 = vld [vmem:[%s14964_s3 + $0x408] sm:$0xff]  ;;  %v8954_v60 = vld [vmem:[%s14964_s3 + $0x410] sm:$0xff] }
  0x42   :  { %15489 = vst [vmem:[#allocation134_spill] sm:$0xff] %v8944_v63  ;;  %15490 = vst [vmem:[#allocation135_spill] sm:$0xff] %v8949_v58  ;;  %v8959_v61 = vld [vmem:[%s14964_s3 + $0x418] sm:$0xff]  ;;  %v8964_v62 = vld [vmem:[%s14964_s3 + $0x420] sm:$0xff] }
  0x43   :  { %15491 = vst [vmem:[#allocation136_spill] sm:$0xff] %v8954_v60  ;;  %15492 = vst [vmem:[#allocation137_spill] sm:$0xff] %v8959_v61  ;;  %v8969_v63 = vld [vmem:[%s14964_s3 + $0x428] sm:$0xff]  ;;  %v8974_v58 = vld [vmem:[%s14964_s3 + $0x430] sm:$0xff] }
  0x44   :  { %15493 = vst [vmem:[#allocation138_spill] sm:$0xff] %v8964_v62  ;;  %15494 = vst [vmem:[#allocation139_spill] sm:$0xff] %v8969_v63  ;;  %v8979_v60 = vld [vmem:[%s14964_s3 + $0x438] sm:$0xff]  ;;  %v8984_v61 = vld [vmem:[%s14964_s3 + $0x440] sm:$0xff] }
  0x45   :  { %15495 = vst [vmem:[#allocation140_spill] sm:$0xff] %v8974_v58  ;;  %15496 = vst [vmem:[#allocation141_spill] sm:$0xff] %v8979_v60  ;;  %v8989_v62 = vld [vmem:[%s14964_s3 + $0x448] sm:$0xff]  ;;  %v8994_v63 = vld [vmem:[%s14964_s3 + $0x450] sm:$0xff] }
  0x46   :  { %15497 = vst [vmem:[#allocation142_spill] sm:$0xff] %v8984_v61  ;;  %15498 = vst [vmem:[#allocation143_spill] sm:$0xff] %v8989_v62  ;;  %v8999_v58 = vld [vmem:[%s14964_s3 + $0x458] sm:$0xff]  ;;  %v9004_v60 = vld [vmem:[%s14964_s3 + $0x460] sm:$0xff] }
  0x47   :  { %15499 = vst [vmem:[#allocation144_spill] sm:$0xff] %v8994_v63  ;;  %15500 = vst [vmem:[#allocation145_spill] sm:$0xff] %v8999_v58  ;;  %v9009_v61 = vld [vmem:[%s14964_s3 + $0x468] sm:$0xff]  ;;  %v9014_v62 = vld [vmem:[%s14964_s3 + $0x470] sm:$0xff] }
  0x48   :  { %15501 = vst [vmem:[#allocation146_spill] sm:$0xff] %v9004_v60  ;;  %15502 = vst [vmem:[#allocation147_spill] sm:$0xff] %v9009_v61  ;;  %v9019_v63 = vld [vmem:[%s14964_s3 + $0x478] sm:$0xff]  ;;  %v9024_v58 = vld [vmem:[%s14964_s3 + $0x480] sm:$0xff] }
  0x49   :  { %15503 = vst [vmem:[#allocation148_spill] sm:$0xff] %v9014_v62  ;;  %15504 = vst [vmem:[#allocation149_spill] sm:$0xff] %v9019_v63  ;;  %v9029_v60 = vld [vmem:[%s14964_s3 + $0x488] sm:$0xff]  ;;  %v9034_v61 = vld [vmem:[%s14964_s3 + $0x490] sm:$0xff] }
  0x4a   :  { %15505 = vst [vmem:[#allocation150_spill] sm:$0xff] %v9024_v58  ;;  %15506 = vst [vmem:[#allocation151_spill] sm:$0xff] %v9029_v60  ;;  %v9039_v62 = vld [vmem:[%s14964_s3 + $0x498] sm:$0xff]  ;;  %v9044_v63 = vld [vmem:[%s14964_s3 + $0x4a0] sm:$0xff] }
  0x4b   :  { %15507 = vst [vmem:[#allocation152_spill] sm:$0xff] %v9034_v61  ;;  %15508 = vst [vmem:[#allocation153_spill] sm:$0xff] %v9039_v62  ;;  %v9049_v58 = vld [vmem:[%s14964_s3 + $0x4a8] sm:$0xff]  ;;  %v9054_v60 = vld [vmem:[%s14964_s3 + $0x4b0] sm:$0xff] }
  0x4c   :  { %15509 = vst [vmem:[#allocation154_spill] sm:$0xff] %v9044_v63  ;;  %15510 = vst [vmem:[#allocation155_spill] sm:$0xff] %v9049_v58  ;;  %v9059_v61 = vld [vmem:[%s14964_s3 + $0x4b8] sm:$0xff]  ;;  %v9064_v62 = vld [vmem:[%s14964_s3 + $0x4c0] sm:$0xff] }
  0x4d   :  { %15511 = vst [vmem:[#allocation156_spill] sm:$0xff] %v9054_v60  ;;  %15512 = vst [vmem:[#allocation157_spill] sm:$0xff] %v9059_v61  ;;  %v9069_v63 = vld [vmem:[%s14964_s3 + $0x4c8] sm:$0xff]  ;;  %v9074_v58 = vld [vmem:[%s14964_s3 + $0x4d0] sm:$0xff] }
  0x4e   :  { %15513 = vst [vmem:[#allocation158_spill] sm:$0xff] %v9064_v62  ;;  %15514 = vst [vmem:[#allocation159_spill] sm:$0xff] %v9069_v63  ;;  %v9079_v60 = vld [vmem:[%s14964_s3 + $0x4d8] sm:$0xff]  ;;  %v9084_v61 = vld [vmem:[%s14964_s3 + $0x4e0] sm:$0xff] }
  0x4f   :  { %15515 = vst [vmem:[#allocation160_spill] sm:$0xff] %v9074_v58  ;;  %15516 = vst [vmem:[#allocation161_spill] sm:$0xff] %v9079_v60  ;;  %v9089_v62 = vld [vmem:[%s14964_s3 + $0x4e8] sm:$0xff]  ;;  %v9094_v63 = vld [vmem:[%s14964_s3 + $0x4f0] sm:$0xff] }
  0x50   :  { %15517 = vst [vmem:[#allocation162_spill] sm:$0xff] %v9084_v61  ;;  %15518 = vst [vmem:[#allocation163_spill] sm:$0xff] %v9089_v62  ;;  %v9099_v58 = vld [vmem:[%s14964_s3 + $0x4f8] sm:$0xff]  ;;  %v9104_v60 = vld [vmem:[%s14964_s3 + $0x500] sm:$0xff] }
  0x51   :  { %15519 = vst [vmem:[#allocation164_spill] sm:$0xff] %v9094_v63  ;;  %15520 = vst [vmem:[#allocation165_spill] sm:$0xff] %v9099_v58  ;;  %v9109_v61 = vld [vmem:[%s14964_s3 + $0x508] sm:$0xff]  ;;  %v9114_v62 = vld [vmem:[%s14964_s3 + $0x510] sm:$0xff] }
  0x52   :  { %15521 = vst [vmem:[#allocation166_spill] sm:$0xff] %v9104_v60  ;;  %15522 = vst [vmem:[#allocation167_spill] sm:$0xff] %v9109_v61  ;;  %v9119_v63 = vld [vmem:[%s14964_s3 + $0x518] sm:$0xff]  ;;  %v9124_v58 = vld [vmem:[%s14964_s3 + $0x520] sm:$0xff] }
  0x53   :  { %15523 = vst [vmem:[#allocation168_spill] sm:$0xff] %v9114_v62  ;;  %15524 = vst [vmem:[#allocation169_spill] sm:$0xff] %v9119_v63  ;;  %v9129_v60 = vld [vmem:[%s14964_s3 + $0x528] sm:$0xff]  ;;  %v9134_v61 = vld [vmem:[%s14964_s3 + $0x530] sm:$0xff] }
  0x54   :  { %15525 = vst [vmem:[#allocation170_spill] sm:$0xff] %v9124_v58  ;;  %15526 = vst [vmem:[#allocation171_spill] sm:$0xff] %v9129_v60  ;;  %v9139_v62 = vld [vmem:[%s14964_s3 + $0x538] sm:$0xff]  ;;  %v9144_v63 = vld [vmem:[%s14964_s3 + $0x540] sm:$0xff] }
  0x55   :  { %15527 = vst [vmem:[#allocation172_spill] sm:$0xff] %v9134_v61  ;;  %15528 = vst [vmem:[#allocation173_spill] sm:$0xff] %v9139_v62  ;;  %v9149_v58 = vld [vmem:[%s14964_s3 + $0x548] sm:$0xff]  ;;  %v9154_v60 = vld [vmem:[%s14964_s3 + $0x550] sm:$0xff] }
  0x56   :  { %15529 = vst [vmem:[#allocation174_spill] sm:$0xff] %v9144_v63  ;;  %15530 = vst [vmem:[#allocation175_spill] sm:$0xff] %v9149_v58  ;;  %v9159_v61 = vld [vmem:[%s14964_s3 + $0x558] sm:$0xff]  ;;  %v9164_v62 = vld [vmem:[%s14964_s3 + $0x560] sm:$0xff] }
  0x57   :  { %15531 = vst [vmem:[#allocation176_spill] sm:$0xff] %v9154_v60  ;;  %15532 = vst [vmem:[#allocation177_spill] sm:$0xff] %v9159_v61  ;;  %v9169_v63 = vld [vmem:[%s14964_s3 + $0x568] sm:$0xff]  ;;  %v9174_v58 = vld [vmem:[%s14964_s3 + $0x570] sm:$0xff] }
  0x58   :  { %15533 = vst [vmem:[#allocation178_spill] sm:$0xff] %v9164_v62  ;;  %15534 = vst [vmem:[#allocation179_spill] sm:$0xff] %v9169_v63  ;;  %v9179_v60 = vld [vmem:[%s14964_s3 + $0x578] sm:$0xff]  ;;  %v9184_v61 = vld [vmem:[%s14964_s3 + $0x580] sm:$0xff] }
  0x59   :  { %15535 = vst [vmem:[#allocation180_spill] sm:$0xff] %v9174_v58  ;;  %15536 = vst [vmem:[#allocation181_spill] sm:$0xff] %v9179_v60  ;;  %v9189_v62 = vld [vmem:[%s14964_s3 + $0x588] sm:$0xff]  ;;  %v9194_v63 = vld [vmem:[%s14964_s3 + $0x590] sm:$0xff] }
  0x5a   :  { %15537 = vst [vmem:[#allocation182_spill] sm:$0xff] %v9184_v61  ;;  %15538 = vst [vmem:[#allocation183_spill] sm:$0xff] %v9189_v62  ;;  %v9199_v58 = vld [vmem:[%s14964_s3 + $0x598] sm:$0xff]  ;;  %v9204_v60 = vld [vmem:[%s14964_s3 + $0x5a0] sm:$0xff] }
  0x5b   :  { %15539 = vst [vmem:[#allocation184_spill] sm:$0xff] %v9194_v63  ;;  %15540 = vst [vmem:[#allocation185_spill] sm:$0xff] %v9199_v58  ;;  %v9209_v61 = vld [vmem:[%s14964_s3 + $0x5a8] sm:$0xff]  ;;  %v9214_v62 = vld [vmem:[%s14964_s3 + $0x5b0] sm:$0xff] }
  0x5c   :  { %15541 = vst [vmem:[#allocation186_spill] sm:$0xff] %v9204_v60  ;;  %15542 = vst [vmem:[#allocation187_spill] sm:$0xff] %v9209_v61  ;;  %v9219_v63 = vld [vmem:[%s14964_s3 + $0x5b8] sm:$0xff]  ;;  %v9224_v58 = vld [vmem:[%s14964_s3 + $0x5c0] sm:$0xff] }
  0x5d   :  { %15543 = vst [vmem:[#allocation188_spill] sm:$0xff] %v9214_v62  ;;  %15544 = vst [vmem:[#allocation189_spill] sm:$0xff] %v9219_v63  ;;  %v9229_v60 = vld [vmem:[%s14964_s3 + $0x5c8] sm:$0xff]  ;;  %v9234_v61 = vld [vmem:[%s14964_s3 + $0x5d0] sm:$0xff] }
  0x5e   :  { %15545 = vst [vmem:[#allocation190_spill] sm:$0xff] %v9224_v58  ;;  %15546 = vst [vmem:[#allocation191_spill] sm:$0xff] %v9229_v60  ;;  %v9239_v62 = vld [vmem:[%s14964_s3 + $0x5d8] sm:$0xff]  ;;  %v9244_v63 = vld [vmem:[%s14964_s3 + $0x5e0] sm:$0xff] }
  0x5f   :  { %15547 = vst [vmem:[#allocation192_spill] sm:$0xff] %v9234_v61  ;;  %15548 = vst [vmem:[#allocation193_spill] sm:$0xff] %v9239_v62  ;;  %v9249_v58 = vld [vmem:[%s14964_s3 + $0x5e8] sm:$0xff]  ;;  %v9254_v60 = vld [vmem:[%s14964_s3 + $0x5f0] sm:$0xff] }
  0x60   :  { %15549 = vst [vmem:[#allocation194_spill] sm:$0xff] %v9244_v63  ;;  %15550 = vst [vmem:[#allocation195_spill] sm:$0xff] %v9249_v58  ;;  %v9259_v61 = vld [vmem:[%s14964_s3 + $0x5f8] sm:$0xff]  ;;  %v9264_v62 = vld [vmem:[%s14964_s3 + $0x600] sm:$0xff] }
  0x61   :  { %15551 = vst [vmem:[#allocation196_spill] sm:$0xff] %v9254_v60  ;;  %15552 = vst [vmem:[#allocation197_spill] sm:$0xff] %v9259_v61  ;;  %v9269_v63 = vld [vmem:[%s14964_s3 + $0x608] sm:$0xff]  ;;  %v9274_v58 = vld [vmem:[%s14964_s3 + $0x610] sm:$0xff] }
  0x62   :  { %15553 = vst [vmem:[#allocation198_spill] sm:$0xff] %v9264_v62  ;;  %15554 = vst [vmem:[#allocation199_spill] sm:$0xff] %v9269_v63  ;;  %v9279_v60 = vld [vmem:[%s14964_s3 + $0x618] sm:$0xff]  ;;  %v9284_v61 = vld [vmem:[%s14964_s3 + $0x620] sm:$0xff] }
  0x63   :  { %15555 = vst [vmem:[#allocation200_spill] sm:$0xff] %v9274_v58  ;;  %15556 = vst [vmem:[#allocation201_spill] sm:$0xff] %v9279_v60  ;;  %v9289_v62 = vld [vmem:[%s14964_s3 + $0x628] sm:$0xff]  ;;  %v9294_v63 = vld [vmem:[%s14964_s3 + $0x630] sm:$0xff] }
  0x64   :  { %15557 = vst [vmem:[#allocation202_spill] sm:$0xff] %v9284_v61  ;;  %15558 = vst [vmem:[#allocation203_spill] sm:$0xff] %v9289_v62  ;;  %v9299_v58 = vld [vmem:[%s14964_s3 + $0x638] sm:$0xff]  ;;  %v9304_v60 = vld [vmem:[%s14964_s3 + $0x640] sm:$0xff] }
  0x65   :  { %15559 = vst [vmem:[#allocation204_spill] sm:$0xff] %v9294_v63  ;;  %15560 = vst [vmem:[#allocation205_spill] sm:$0xff] %v9299_v58  ;;  %v9309_v61 = vld [vmem:[%s14964_s3 + $0x648] sm:$0xff]  ;;  %v9314_v62 = vld [vmem:[%s14964_s3 + $0x650] sm:$0xff] }
  0x66   :  { %15561 = vst [vmem:[#allocation206_spill] sm:$0xff] %v9304_v60  ;;  %15562 = vst [vmem:[#allocation207_spill] sm:$0xff] %v9309_v61  ;;  %v9319_v63 = vld [vmem:[%s14964_s3 + $0x658] sm:$0xff]  ;;  %v9324_v58 = vld [vmem:[%s14964_s3 + $0x660] sm:$0xff] }
  0x67   :  { %15563 = vst [vmem:[#allocation208_spill] sm:$0xff] %v9314_v62  ;;  %15564 = vst [vmem:[#allocation209_spill] sm:$0xff] %v9319_v63  ;;  %v9329_v60 = vld [vmem:[%s14964_s3 + $0x668] sm:$0xff]  ;;  %v9334_v61 = vld [vmem:[%s14964_s3 + $0x670] sm:$0xff] }
  0x68   :  { %15565 = vst [vmem:[#allocation210_spill] sm:$0xff] %v9324_v58  ;;  %15566 = vst [vmem:[#allocation211_spill] sm:$0xff] %v9329_v60  ;;  %v9339_v62 = vld [vmem:[%s14964_s3 + $0x678] sm:$0xff]  ;;  %v9344_v63 = vld [vmem:[%s14964_s3 + $0x680] sm:$0xff] }
  0x69   :  { %15567 = vst [vmem:[#allocation212_spill] sm:$0xff] %v9334_v61  ;;  %15568 = vst [vmem:[#allocation213_spill] sm:$0xff] %v9339_v62  ;;  %v9349_v58 = vld [vmem:[%s14964_s3 + $0x688] sm:$0xff]  ;;  %v9354_v60 = vld [vmem:[%s14964_s3 + $0x690] sm:$0xff] }
  0x6a   :  { %15569 = vst [vmem:[#allocation214_spill] sm:$0xff] %v9344_v63  ;;  %15570 = vst [vmem:[#allocation215_spill] sm:$0xff] %v9349_v58  ;;  %v9359_v61 = vld [vmem:[%s14964_s3 + $0x698] sm:$0xff]  ;;  %v9364_v62 = vld [vmem:[%s14964_s3 + $0x6a0] sm:$0xff] }
  0x6b   :  { %15571 = vst [vmem:[#allocation216_spill] sm:$0xff] %v9354_v60  ;;  %15572 = vst [vmem:[#allocation217_spill] sm:$0xff] %v9359_v61  ;;  %v9369_v63 = vld [vmem:[%s14964_s3 + $0x6a8] sm:$0xff]  ;;  %v9374_v58 = vld [vmem:[%s14964_s3 + $0x6b0] sm:$0xff] }
  0x6c   :  { %15573 = vst [vmem:[#allocation218_spill] sm:$0xff] %v9364_v62  ;;  %15574 = vst [vmem:[#allocation219_spill] sm:$0xff] %v9369_v63  ;;  %v9379_v60 = vld [vmem:[%s14964_s3 + $0x6b8] sm:$0xff]  ;;  %v9384_v61 = vld [vmem:[%s14964_s3 + $0x6c0] sm:$0xff] }
  0x6d   :  { %15575 = vst [vmem:[#allocation220_spill] sm:$0xff] %v9374_v58  ;;  %15576 = vst [vmem:[#allocation221_spill] sm:$0xff] %v9379_v60  ;;  %v9389_v62 = vld [vmem:[%s14964_s3 + $0x6c8] sm:$0xff]  ;;  %v9394_v63 = vld [vmem:[%s14964_s3 + $0x6d0] sm:$0xff] }
  0x6e   :  { %15577 = vst [vmem:[#allocation222_spill] sm:$0xff] %v9384_v61  ;;  %15578 = vst [vmem:[#allocation223_spill] sm:$0xff] %v9389_v62  ;;  %v9399_v58 = vld [vmem:[%s14964_s3 + $0x6d8] sm:$0xff]  ;;  %v9404_v60 = vld [vmem:[%s14964_s3 + $0x6e0] sm:$0xff] }
  0x6f   :  { %15579 = vst [vmem:[#allocation224_spill] sm:$0xff] %v9394_v63  ;;  %15580 = vst [vmem:[#allocation225_spill] sm:$0xff] %v9399_v58  ;;  %v9409_v61 = vld [vmem:[%s14964_s3 + $0x6e8] sm:$0xff]  ;;  %v9414_v62 = vld [vmem:[%s14964_s3 + $0x6f0] sm:$0xff] }
  0x70   :  { %15581 = vst [vmem:[#allocation226_spill] sm:$0xff] %v9404_v60  ;;  %15582 = vst [vmem:[#allocation227_spill] sm:$0xff] %v9409_v61  ;;  %v9419_v63 = vld [vmem:[%s14964_s3 + $0x6f8] sm:$0xff]  ;;  %v9424_v58 = vld [vmem:[%s14964_s3 + $0x700] sm:$0xff] }
  0x71   :  { %15583 = vst [vmem:[#allocation228_spill] sm:$0xff] %v9414_v62  ;;  %15584 = vst [vmem:[#allocation229_spill] sm:$0xff] %v9419_v63  ;;  %v9429_v60 = vld [vmem:[%s14964_s3 + $0x708] sm:$0xff]  ;;  %v9434_v61 = vld [vmem:[%s14964_s3 + $0x710] sm:$0xff] }
  0x72   :  { %15585 = vst [vmem:[#allocation230_spill] sm:$0xff] %v9424_v58  ;;  %15586 = vst [vmem:[#allocation231_spill] sm:$0xff] %v9429_v60  ;;  %v9439_v62 = vld [vmem:[%s14964_s3 + $0x718] sm:$0xff]  ;;  %v9444_v63 = vld [vmem:[%s14964_s3 + $0x720] sm:$0xff] }
  0x73   :  { %15587 = vst [vmem:[#allocation232_spill] sm:$0xff] %v9434_v61  ;;  %15588 = vst [vmem:[#allocation233_spill] sm:$0xff] %v9439_v62  ;;  %v9449_v58 = vld [vmem:[%s14964_s3 + $0x728] sm:$0xff]  ;;  %v9454_v60 = vld [vmem:[%s14964_s3 + $0x730] sm:$0xff] }
  0x74   :  { %15589 = vst [vmem:[#allocation234_spill] sm:$0xff] %v9444_v63  ;;  %15590 = vst [vmem:[#allocation235_spill] sm:$0xff] %v9449_v58  ;;  %v9459_v61 = vld [vmem:[%s14964_s3 + $0x738] sm:$0xff]  ;;  %v9464_v62 = vld [vmem:[%s14964_s3 + $0x740] sm:$0xff] }
  0x75   :  { %15591 = vst [vmem:[#allocation236_spill] sm:$0xff] %v9454_v60  ;;  %15592 = vst [vmem:[#allocation237_spill] sm:$0xff] %v9459_v61  ;;  %v9469_v63 = vld [vmem:[%s14964_s3 + $0x748] sm:$0xff]  ;;  %v9474_v58 = vld [vmem:[%s14964_s3 + $0x750] sm:$0xff] }
  0x76   :  { %15593 = vst [vmem:[#allocation238_spill] sm:$0xff] %v9464_v62  ;;  %15594 = vst [vmem:[#allocation239_spill] sm:$0xff] %v9469_v63  ;;  %v9479_v60 = vld [vmem:[%s14964_s3 + $0x758] sm:$0xff]  ;;  %v9484_v61 = vld [vmem:[%s14964_s3 + $0x760] sm:$0xff] }
  0x77   :  { %15595 = vst [vmem:[#allocation240_spill] sm:$0xff] %v9474_v58  ;;  %15596 = vst [vmem:[#allocation241_spill] sm:$0xff] %v9479_v60  ;;  %v9489_v62 = vld [vmem:[%s14964_s3 + $0x768] sm:$0xff]  ;;  %v9494_v63 = vld [vmem:[%s14964_s3 + $0x770] sm:$0xff] }
  0x78   :  { %15597 = vst [vmem:[#allocation242_spill] sm:$0xff] %v9484_v61  ;;  %15598 = vst [vmem:[#allocation243_spill] sm:$0xff] %v9489_v62  ;;  %v9499_v58 = vld [vmem:[%s14964_s3 + $0x778] sm:$0xff]  ;;  %v9504_v60 = vld [vmem:[%s14964_s3 + $0x780] sm:$0xff] }
  0x79   :  { %15599 = vst [vmem:[#allocation244_spill] sm:$0xff] %v9494_v63  ;;  %15600 = vst [vmem:[#allocation245_spill] sm:$0xff] %v9499_v58  ;;  %v9509_v61 = vld [vmem:[%s14964_s3 + $0x788] sm:$0xff]  ;;  %v9514_v62 = vld [vmem:[%s14964_s3 + $0x790] sm:$0xff] }
  0x7a   :  { %15601 = vst [vmem:[#allocation246_spill] sm:$0xff] %v9504_v60  ;;  %15602 = vst [vmem:[#allocation247_spill] sm:$0xff] %v9509_v61  ;;  %v9519_v63 = vld [vmem:[%s14964_s3 + $0x798] sm:$0xff]  ;;  %v9524_v58 = vld [vmem:[%s14964_s3 + $0x7a0] sm:$0xff] }
  0x7b   :  { %15603 = vst [vmem:[#allocation248_spill] sm:$0xff] %v9514_v62  ;;  %15604 = vst [vmem:[#allocation249_spill] sm:$0xff] %v9519_v63  ;;  %v9529_v60 = vld [vmem:[%s14964_s3 + $0x7a8] sm:$0xff]  ;;  %v9534_v61 = vld [vmem:[%s14964_s3 + $0x7b0] sm:$0xff] }
  0x7c   :  { %15605 = vst [vmem:[#allocation250_spill] sm:$0xff] %v9524_v58  ;;  %15606 = vst [vmem:[#allocation251_spill] sm:$0xff] %v9529_v60  ;;  %v9539_v62 = vld [vmem:[%s14964_s3 + $0x7b8] sm:$0xff]  ;;  %v9544_v63 = vld [vmem:[%s14964_s3 + $0x7c0] sm:$0xff] }
  0x7d   :  { %15607 = vst [vmem:[#allocation252_spill] sm:$0xff] %v9534_v61  ;;  %15608 = vst [vmem:[#allocation253_spill] sm:$0xff] %v9539_v62  ;;  %v9549_v58 = vld [vmem:[%s14964_s3 + $0x7c8] sm:$0xff]  ;;  %v9554_v60 = vld [vmem:[%s14964_s3 + $0x7d0] sm:$0xff] }
  0x7e   :  { %15609 = vst [vmem:[#allocation254_spill] sm:$0xff] %v9544_v63  ;;  %15610 = vst [vmem:[#allocation255_spill] sm:$0xff] %v9549_v58  ;;  %v9559_v61 = vld [vmem:[%s14964_s3 + $0x7d8] sm:$0xff]  ;;  %v9564_v62 = vld [vmem:[%s14964_s3 + $0x7e0] sm:$0xff] }
  0x7f   :  { %15611 = vst [vmem:[#allocation256_spill] sm:$0xff] %v9554_v60  ;;  %15612 = vst [vmem:[#allocation257_spill] sm:$0xff] %v9559_v61  ;;  %v9569_v63 = vld [vmem:[%s14964_s3 + $0x7e8] sm:$0xff]  ;;  %v9574_v58 = vld [vmem:[%s14964_s3 + $0x7f0] sm:$0xff] }
  0x80   :  { %15613 = vst [vmem:[#allocation258_spill] sm:$0xff] %v9564_v62  ;;  %15614 = vst [vmem:[#allocation259_spill] sm:$0xff] %v9569_v63  ;;  %v9579_v60 = vld [vmem:[%s14964_s3 + $0x7f8] sm:$0xff]  ;;  %v9584_v61 = vld [vmem:[%s14964_s3 + $0x800] sm:$0xff] }
  0x81   :  { %15615 = vst [vmem:[#allocation260_spill] sm:$0xff] %v9574_v58  ;;  %15616 = vst [vmem:[#allocation261_spill] sm:$0xff] %v9579_v60  ;;  %v9589_v62 = vld [vmem:[%s14964_s3 + $0x808] sm:$0xff]  ;;  %v9594_v63 = vld [vmem:[%s14964_s3 + $0x810] sm:$0xff] }
  0x82   :  { %15617 = vst [vmem:[#allocation262_spill] sm:$0xff] %v9584_v61  ;;  %15618 = vst [vmem:[#allocation263_spill] sm:$0xff] %v9589_v62  ;;  %v9599_v58 = vld [vmem:[%s14964_s3 + $0x818] sm:$0xff]  ;;  %v9604_v60 = vld [vmem:[%s14964_s3 + $0x820] sm:$0xff] }
  0x83   :  { %15619 = vst [vmem:[#allocation264_spill] sm:$0xff] %v9594_v63  ;;  %15620 = vst [vmem:[#allocation265_spill] sm:$0xff] %v9599_v58  ;;  %v9609_v61 = vld [vmem:[%s14964_s3 + $0x828] sm:$0xff]  ;;  %v9614_v62 = vld [vmem:[%s14964_s3 + $0x830] sm:$0xff] }
  0x84   :  { %15621 = vst [vmem:[#allocation266_spill] sm:$0xff] %v9604_v60  ;;  %15622 = vst [vmem:[#allocation267_spill] sm:$0xff] %v9609_v61  ;;  %v9619_v63 = vld [vmem:[%s14964_s3 + $0x838] sm:$0xff]  ;;  %v9624_v58 = vld [vmem:[%s14964_s3 + $0x840] sm:$0xff] }
  0x85   :  { %15623 = vst [vmem:[#allocation268_spill] sm:$0xff] %v9614_v62  ;;  %15624 = vst [vmem:[#allocation269_spill] sm:$0xff] %v9619_v63  ;;  %v9629_v60 = vld [vmem:[%s14964_s3 + $0x848] sm:$0xff]  ;;  %v9634_v61 = vld [vmem:[%s14964_s3 + $0x850] sm:$0xff] }
  0x86   :  { %15625 = vst [vmem:[#allocation270_spill] sm:$0xff] %v9624_v58  ;;  %15626 = vst [vmem:[#allocation271_spill] sm:$0xff] %v9629_v60  ;;  %v9639_v62 = vld [vmem:[%s14964_s3 + $0x858] sm:$0xff]  ;;  %v9644_v63 = vld [vmem:[%s14964_s3 + $0x860] sm:$0xff] }
  0x87   :  { %15627 = vst [vmem:[#allocation272_spill] sm:$0xff] %v9634_v61  ;;  %15628 = vst [vmem:[#allocation273_spill] sm:$0xff] %v9639_v62  ;;  %v9649_v58 = vld [vmem:[%s14964_s3 + $0x868] sm:$0xff]  ;;  %v9654_v60 = vld [vmem:[%s14964_s3 + $0x870] sm:$0xff] }
  0x88   :  { %15629 = vst [vmem:[#allocation274_spill] sm:$0xff] %v9644_v63  ;;  %15630 = vst [vmem:[#allocation275_spill] sm:$0xff] %v9649_v58  ;;  %v9659_v61 = vld [vmem:[%s14964_s3 + $0x878] sm:$0xff]  ;;  %v9664_v62 = vld [vmem:[%s14964_s3 + $0x880] sm:$0xff] }
  0x89   :  { %15631 = vst [vmem:[#allocation276_spill] sm:$0xff] %v9654_v60  ;;  %15632 = vst [vmem:[#allocation277_spill] sm:$0xff] %v9659_v61  ;;  %v9669_v63 = vld [vmem:[%s14964_s3 + $0x888] sm:$0xff]  ;;  %v9674_v58 = vld [vmem:[%s14964_s3 + $0x890] sm:$0xff] }
  0x8a   :  { %15633 = vst [vmem:[#allocation278_spill] sm:$0xff] %v9664_v62  ;;  %15634 = vst [vmem:[#allocation279_spill] sm:$0xff] %v9669_v63  ;;  %v9679_v60 = vld [vmem:[%s14964_s3 + $0x898] sm:$0xff]  ;;  %v9684_v61 = vld [vmem:[%s14961_s0] sm:$0xff] }
  0x8b   :  { %15635 = vst [vmem:[#allocation280_spill] sm:$0xff] %v9674_v58  ;;  %15636 = vst [vmem:[#allocation281_spill] sm:$0xff] %v9679_v60  ;;  %v9689_v62 = vld [vmem:[%s14961_s0 + $0x10] sm:$0xff]  ;;  %v9694_v58 = vld [vmem:[%s14961_s0 + $0x8] sm:$0xff]  ;;  %v654_v63 = vsel %vm653_vm0, %v9684_v61, 0.0 }
  0x8c   :  { %v660_v60 = vsel %vm653_vm0, %v9689_v62, 0.0  ;;  %v9703_v59 = vld [vmem:[%s14961_s0 + $0x18] sm:$0xff]  ;;  %655 = vadd.xlane.f32.xlu0 %v654_v63  ;;  %v657_v57 = vsel %vm653_vm0, %v9694_v58, 0.0  ;;  %v9714_v55 = vld [vmem:[%s14961_s0 + $0x20] sm:$0xff]  ;;  %v9719_v52 = vld [vmem:[%s14961_s0 + $0x28] sm:$0xff] }
  0x8d   :  { %661 = vadd.xlane.f32.xlu1 %v660_v60  ;;  %v663_v54 = vsel %vm653_vm0, %v9703_v59, 0.0  ;;  %v666_v60 = vsel %vm653_vm0, %v9714_v55, 0.0  ;;  %v669_v63 = vsel %vm653_vm0, %v9719_v52, 0.0  ;;  %v9728_v56 = vld [vmem:[%s14961_s0 + $0x30] sm:$0xff]  ;;  %v9733_v53 = vld [vmem:[%s14961_s0 + $0x38] sm:$0xff] }
  0x90   :  { %658 = vadd.xlane.f32.xlu0 %v657_v57  ;;  %v675_v57 = vsel %vm653_vm0, %v9733_v53, 0.0 }
  0x91   :  { %664 = vadd.xlane.f32.xlu1 %v663_v54  ;;  %v672_v54 = vsel %vm653_vm0, %v9728_v56, 0.0 }
  0x94   :  { %667 = vadd.xlane.f32.xlu0 %v666_v60 }
  0x95   :  { %670 = vadd.xlane.f32.xlu1 %v669_v63 }
  0x96   :  { %606 = vsyncadd [#allocation3], 35328  ;;  %v9742_v50 = vld [vmem:[%s14961_s0 + $0x40] sm:$0xff]  ;;  %v9747_v51 = vld [vmem:[%s14961_s0 + $0x48] sm:$0xff] }
  0x97   :  { %v678_v60 = vsel %vm653_vm0, %v9742_v50, 0.0  ;;  %v681_v63 = vsel %vm653_vm0, %v9747_v51, 0.0  ;;  %v9756_v48 = vld [vmem:[%s14961_s0 + $0x50] sm:$0xff]  ;;  %v9761_v49 = vld [vmem:[%s14961_s0 + $0x58] sm:$0xff]  ;;  %v9770_v46 = vld [vmem:[%s14961_s0 + $0x60] sm:$0xff] }
  0x98   :  { %673 = vadd.xlane.f32.xlu0 %v672_v54  ;;  %v684_v54 = vsel %vm653_vm0, %v9756_v48, 0.0  ;;  %v9775_v47 = vld [vmem:[%s14961_s0 + $0x68] sm:$0xff]  ;;  %v9784_v44 = vld [vmem:[%s14961_s0 + $0x70] sm:$0xff]  ;;  %v9789_v45 = vld [vmem:[%s14961_s0 + $0x78] sm:$0xff] }
  0x99   :  { %676 = vadd.xlane.f32.xlu1 %v675_v57  ;;  %v687_v57 = vsel %vm653_vm0, %v9761_v49, 0.0  ;;  %v9798_v42 = vld [vmem:[%s14961_s0 + $0x80] sm:$0xff]  ;;  %v9803_v43 = vld [vmem:[%s14961_s0 + $0x88] sm:$0xff]  ;;  %v9812_v40 = vld [vmem:[%s14961_s0 + $0x90] sm:$0xff] }
  0x9a   :  { %v9817_v41 = vld [vmem:[%s14961_s0 + $0x98] sm:$0xff]  ;;  %v9826_v38 = vld [vmem:[%s14961_s0 + $0xa0] sm:$0xff]  ;;  %v9831_v39 = vld [vmem:[%s14961_s0 + $0xa8] sm:$0xff] }
  0x9b   :  { %v9840_v36 = vld [vmem:[%s14961_s0 + $0xb0] sm:$0xff]  ;;  %v9876_v34 = vld [vmem:[%s14962_s1 + $0x18] sm:$0xff]  ;;  %v9882_v35 = vld [vmem:[%s14962_s1 + $0x40] sm:$0xff] }
  0x9c   :  { %679 = vadd.xlane.f32.xlu0 %v678_v60  ;;  %v690_v60 = vsel %vm653_vm0, %v9770_v46, 0.0  ;;  %v720_v37 = vsel %vm653_vm0, %v9840_v36, 0.0  ;;  %v9888_v32 = vld [vmem:[%s14962_s1 + $0x28] sm:$0xff]  ;;  %v9894_v33 = vld [vmem:[%s14962_s1 + $0x50] sm:$0xff]  ;;  %v9900_v30 = vld [vmem:[%s14962_s1 + $0x38] sm:$0xff] }
  0x9d   :  { %682 = vadd.xlane.f32.xlu1 %v681_v63  ;;  %v693_v63 = vsel %vm653_vm0, %v9775_v47, 0.0  ;;  %v9907_v31 = vld [vmem:[%s14962_s1 + $0x48] sm:$0xff] }
  0xa0   :  { %685 = vadd.xlane.f32.xlu0 %v684_v54  ;;  %v696_v54 = vsel %vm653_vm0, %v9784_v44, 0.0 }
  0xa1   :  { %688 = vadd.xlane.f32.xlu1 %v687_v57  ;;  %v699_v57 = vsel %vm653_vm0, %v9789_v45, 0.0 }
  0xa4   :  { %691 = vadd.xlane.f32.xlu0 %v690_v60  ;;  %v702_v60 = vsel %vm653_vm0, %v9798_v42, 0.0 }
  0xa5   :  { %694 = vadd.xlane.f32.xlu1 %v693_v63  ;;  %v705_v63 = vsel %vm653_vm0, %v9803_v43, 0.0 }
  0xa8   :  { %697 = vadd.xlane.f32.xlu0 %v696_v54  ;;  %v708_v54 = vsel %vm653_vm0, %v9812_v40, 0.0 }
  0xa9   :  { %700 = vadd.xlane.f32.xlu1 %v699_v57  ;;  %v711_v57 = vsel %vm653_vm0, %v9817_v41, 0.0 }
  0xac   :  { %703 = vadd.xlane.f32.xlu0 %v702_v60  ;;  %v714_v60 = vsel %vm653_vm0, %v9826_v38, 0.0 }
  0xad   :  { %706 = vadd.xlane.f32.xlu1 %v705_v63  ;;  %v717_v63 = vsel %vm653_vm0, %v9831_v39, 0.0 }
  0xb0   :  { %709 = vadd.xlane.f32.xlu0 %v708_v54  ;;  %v9847_v54 = vld [vmem:[%s14962_s1 + $0x8] sm:$0xff] }
  0xb1   :  { %712 = vadd.xlane.f32.xlu1 %v711_v57  ;;  %15637 = vst [vmem:[#allocation282_spill] sm:$0xff] %v9847_v54  ;;  %v9853_v57 = vld [vmem:[%s14962_s1 + $0x10] sm:$0xff] }
  0xb4   :  { %715 = vadd.xlane.f32.xlu0 %v714_v60  ;;  %v9859_v60 = vld [vmem:[%s14962_s1 + $0x20] sm:$0xff] }
  0xb5   :  { %718 = vadd.xlane.f32.xlu1 %v717_v63  ;;  %v9870_v63 = vld [vmem:[%s14962_s1 + $0x30] sm:$0xff] }
  0xb8   :  { %721 = vadd.xlane.f32.xlu0 %v720_v37  ;;  %v9864_v37 = vld [vmem:[%s14962_s1] sm:$0xff] }
  0xc6   :  { %1098 = vperm.xlu1 %7734, %v9847_v54  }
  0xca   :  { %1103 = vperm.xlu1 %7734, %v9853_v57  }
  0xce   :  { %1113 = vperm.xlu1 %7734, %v9859_v60   ;;  %1093 = vperm.xlu0 %7733, %v9864_v37  }
  0xd2   :  { %1123 = vperm.xlu1 %7734, %v9870_v63   ;;  %1108 = vperm.xlu0 %7733, %v9876_v34  }
  0xd6   :  { %1133 = vperm.xlu1 %7734, %v9882_v35   ;;  %1118 = vperm.xlu0 %7733, %v9888_v32  }
  0xda   :  { %1143 = vperm.xlu1 %7734, %v9894_v33   ;;  %1128 = vperm.xlu0 %7733, %v9900_v30  }
  0xde   :  { %1138 = vperm.xlu0 %7733, %v9907_v31  }
 0x119   :  { %v656_v28 = vpop.xlane.xlu0 %655 }
 0x11a   :  { %v662_v29 = vpop.xlane.xlu1 %661  ;;  %v723_v26 = vmul.f32 0.020408163, %v656_v28 }
 0x11b   :  { %v725_v27 = vmul.f32 0.020408163, %v662_v29 }
 0x11c   :  { %v9911_v24 = vsub.f32 %v9684_v61, %v723_v26 }
 0x11d   :  { %v9914_v25 = vsub.f32 %v9689_v62, %v725_v27  ;;  %v659_v22 = vpop.xlane.xlu0 %658 }
 0x11e   :  { %v665_v23 = vpop.xlane.xlu1 %664  ;;  %v724_v20 = vmul.f32 0.020408163, %v659_v22  ;;  %v769_v18 = vmul.f32 %v9911_v24, %v9911_v24 }
 0x11f   :  { %v726_v21 = vmul.f32 0.020408163, %v665_v23  ;;  %v771_v19 = vmul.f32 %v9914_v25, %v9914_v25 }
 0x120   :  { %v9921_v16 = vsub.f32 %v9694_v58, %v724_v20  ;;  %v792_v26 = vsel %vm653_vm0, %v769_v18, 0.0 }
 0x121   :  { %v9924_v28 = vsub.f32 %v9703_v59, %v726_v21  ;;  %793 = vadd.xlane.f32.xlu1 %v792_v26  ;;  %v668_v27 = vpop.xlane.xlu0 %667  ;;  %v798_v22 = vsel %vm653_vm0, %v771_v19, 0.0 }
 0x122   :  { %v671_v29 = vpop.xlane.xlu1 %670  ;;  %v727_v23 = vmul.f32 0.020408163, %v668_v27  ;;  %v770_v62 = vmul.f32 %v9921_v16, %v9921_v16 }
 0x123   :  { %v728_v61 = vmul.f32 0.020408163, %v671_v29  ;;  %v772_v17 = vmul.f32 %v9924_v28, %v9924_v28 }
 0x124   :  { %v9933_v20 = vsub.f32 %v9714_v55, %v727_v23  ;;  %v795_v18 = vsel %vm653_vm0, %v770_v62, 0.0 }
 0x125   :  { %v9936_v21 = vsub.f32 %v9719_v52, %v728_v61  ;;  %799 = vadd.xlane.f32.xlu1 %v798_v22  ;;  %796 = vadd.xlane.f32.xlu0 %v795_v18  ;;  %v674_v58 = vpop.xlane.xlu0 %673  ;;  %v801_v59 = vsel %vm653_vm0, %v772_v17, 0.0 }
 0x126   :  { %v677_v19 = vpop.xlane.xlu1 %676  ;;  %v729_v26 = vmul.f32 0.020408163, %v674_v58  ;;  %v773_v29 = vmul.f32 %v9933_v20, %v9933_v20 }
 0x127   :  { %v730_v27 = vmul.f32 0.020408163, %v677_v19  ;;  %v774_v55 = vmul.f32 %v9936_v21, %v9936_v21 }
 0x128   :  { %v9945_v23 = vsub.f32 %v9728_v56, %v729_v26  ;;  %v804_v22 = vsel %vm653_vm0, %v773_v29, 0.0 }
 0x129   :  { %v9948_v52 = vsub.f32 %v9733_v53, %v730_v27  ;;  %802 = vadd.xlane.f32.xlu0 %v801_v59  ;;  %805 = vadd.xlane.f32.xlu1 %v804_v22  ;;  %v680_v61 = vpop.xlane.xlu0 %679  ;;  %v807_v62 = vsel %vm653_vm0, %v774_v55, 0.0 }
 0x12a   :  { %v683_v17 = vpop.xlane.xlu1 %682  ;;  %v731_v18 = vmul.f32 0.020408163, %v680_v61  ;;  %v775_v19 = vmul.f32 %v9945_v23, %v9945_v23 }
 0x12b   :  { %v732_v58 = vmul.f32 0.020408163, %v683_v17  ;;  %v776_v56 = vmul.f32 %v9948_v52, %v9948_v52 }
 0x12c   :  { %v9957_v26 = vsub.f32 %v9742_v50, %v731_v18  ;;  %v810_v59 = vsel %vm653_vm0, %v775_v19, 0.0 }
 0x12d   :  { %v9960_v53 = vsub.f32 %v9747_v51, %v732_v58  ;;  %808 = vadd.xlane.f32.xlu0 %v807_v62  ;;  %811 = vadd.xlane.f32.xlu1 %v810_v59  ;;  %v686_v27 = vpop.xlane.xlu0 %685  ;;  %v813_v55 = vsel %vm653_vm0, %v776_v56, 0.0 }
 0x12e   :  { %v689_v29 = vpop.xlane.xlu1 %688  ;;  %v733_v22 = vmul.f32 0.020408163, %v686_v27  ;;  %v777_v17 = vmul.f32 %v9957_v26, %v9957_v26 }
 0x12f   :  { %v734_v61 = vmul.f32 0.020408163, %v689_v29  ;;  %v778_v50 = vmul.f32 %v9960_v53, %v9960_v53 }
 0x130   :  { %v9969_v18 = vsub.f32 %v9756_v48, %v733_v22  ;;  %v816_v62 = vsel %vm653_vm0, %v777_v17, 0.0 }
 0x131   :  { %v9972_v51 = vsub.f32 %v9761_v49, %v734_v61  ;;  %814 = vadd.xlane.f32.xlu0 %v813_v55  ;;  %817 = vadd.xlane.f32.xlu1 %v816_v62  ;;  %v692_v58 = vpop.xlane.xlu0 %691  ;;  %v819_v56 = vsel %vm653_vm0, %v778_v50, 0.0 }
 0x132   :  { %15638 = vst [vmem:[#allocation283_spill] sm:$0xff] %v9969_v18  ;;  %v695_v19 = vpop.xlane.xlu1 %694  ;;  %v735_v59 = vmul.f32 0.020408163, %v692_v58  ;;  %v779_v29 = vmul.f32 %v9969_v18, %v9969_v18 }
 0x133   :  { %v736_v27 = vmul.f32 0.020408163, %v695_v19  ;;  %v780_v48 = vmul.f32 %v9972_v51, %v9972_v51 }
 0x134   :  { %v9981_v22 = vsub.f32 %v9770_v46, %v735_v59  ;;  %v822_v55 = vsel %vm653_vm0, %v779_v29, 0.0 }
 0x135   :  { %v9984_v49 = vsub.f32 %v9775_v47, %v736_v27  ;;  %820 = vadd.xlane.f32.xlu0 %v819_v56  ;;  %823 = vadd.xlane.f32.xlu1 %v822_v55  ;;  %v698_v61 = vpop.xlane.xlu0 %697  ;;  %v825_v50 = vsel %vm653_vm0, %v780_v48, 0.0 }
 0x136   :  { %15639 = vst [vmem:[#allocation284_spill] sm:$0xff] %v9981_v22  ;;  %v701_v17 = vpop.xlane.xlu1 %700  ;;  %v737_v62 = vmul.f32 0.020408163, %v698_v61  ;;  %v781_v19 = vmul.f32 %v9981_v22, %v9981_v22 }
 0x137   :  { %v738_v58 = vmul.f32 0.020408163, %v701_v17  ;;  %v782_v46 = vmul.f32 %v9984_v49, %v9984_v49 }
 0x138   :  { %v9993_v59 = vsub.f32 %v9784_v44, %v737_v62  ;;  %v828_v56 = vsel %vm653_vm0, %v781_v19, 0.0 }
 0x139   :  { %v9996_v47 = vsub.f32 %v9789_v45, %v738_v58  ;;  %826 = vadd.xlane.f32.xlu0 %v825_v50  ;;  %829 = vadd.xlane.f32.xlu1 %v828_v56  ;;  %v704_v27 = vpop.xlane.xlu0 %703  ;;  %v831_v48 = vsel %vm653_vm0, %v782_v46, 0.0 }
 0x13a   :  { %15640 = vst [vmem:[#allocation285_spill] sm:$0xff] %v9993_v59  ;;  %v707_v29 = vpop.xlane.xlu1 %706  ;;  %v739_v55 = vmul.f32 0.020408163, %v704_v27  ;;  %v783_v17 = vmul.f32 %v9993_v59, %v9993_v59 }
 0x13b   :  { %v740_v61 = vmul.f32 0.020408163, %v707_v29  ;;  %v784_v44 = vmul.f32 %v9996_v47, %v9996_v47 }
 0x13c   :  { %v10005_v62 = vsub.f32 %v9798_v42, %v739_v55  ;;  %v834_v50 = vsel %vm653_vm0, %v783_v17, 0.0 }
 0x13d   :  { %v10008_v45 = vsub.f32 %v9803_v43, %v740_v61  ;;  %832 = vadd.xlane.f32.xlu0 %v831_v48  ;;  %835 = vadd.xlane.f32.xlu1 %v834_v50  ;;  %v710_v58 = vpop.xlane.xlu0 %709  ;;  %v837_v46 = vsel %vm653_vm0, %v784_v44, 0.0 }
 0x13e   :  { %15641 = vst [vmem:[#allocation286_spill] sm:$0xff] %v10005_v62  ;;  %v713_v19 = vpop.xlane.xlu1 %712  ;;  %v741_v56 = vmul.f32 0.020408163, %v710_v58  ;;  %v785_v29 = vmul.f32 %v10005_v62, %v10005_v62 }
 0x13f   :  { %15642 = vst [vmem:[#allocation287_spill] sm:$0xff] %v10008_v45  ;;  %v742_v27 = vmul.f32 0.020408163, %v713_v19  ;;  %v786_v42 = vmul.f32 %v10008_v45, %v10008_v45 }
 0x140   :  { %v10017_v55 = vsub.f32 %v9812_v40, %v741_v56  ;;  %v840_v48 = vsel %vm653_vm0, %v785_v29, 0.0 }
 0x141   :  { %v10020_v43 = vsub.f32 %v9817_v41, %v742_v27  ;;  %838 = vadd.xlane.f32.xlu0 %v837_v46  ;;  %841 = vadd.xlane.f32.xlu1 %v840_v48  ;;  %v716_v61 = vpop.xlane.xlu0 %715  ;;  %v843_v44 = vsel %vm653_vm0, %v786_v42, 0.0 }
 0x142   :  { %15643 = vst [vmem:[#allocation288_spill] sm:$0xff] %v10017_v55  ;;  %v719_v17 = vpop.xlane.xlu1 %718  ;;  %v743_v50 = vmul.f32 0.020408163, %v716_v61  ;;  %v787_v19 = vmul.f32 %v10017_v55, %v10017_v55  ;;  %v10051_v61 = vld [vmem:[%s14962_s1 + $0x70] sm:$0xff] }
 0x143   :  { %15644 = vst [vmem:[#allocation289_spill] sm:$0xff] %v10020_v43  ;;  %v744_v58 = vmul.f32 0.020408163, %v719_v17  ;;  %v788_v40 = vmul.f32 %v10020_v43, %v10020_v43  ;;  %v10057_v17 = vld [vmem:[%s14962_s1 + $0x80] sm:$0xff] }
 0x144   :  { %v10029_v56 = vsub.f32 %v9826_v38, %v743_v50  ;;  %v846_v46 = vsel %vm653_vm0, %v787_v19, 0.0  ;;  %v10069_v50 = vld [vmem:[%s14962_s1 + $0x90] sm:$0xff]  ;;  %v10081_v19 = vld [vmem:[%s14962_s1 + $0xa0] sm:$0xff] }
 0x145   :  { %v10032_v41 = vsub.f32 %v9831_v39, %v744_v58  ;;  %844 = vadd.xlane.f32.xlu0 %v843_v44  ;;  %847 = vadd.xlane.f32.xlu1 %v846_v46  ;;  %v849_v27 = vsel %vm653_vm0, %v788_v40, 0.0  ;;  %v10045_v39 = vld [vmem:[%s14962_s1 + $0x60] sm:$0xff]  ;;  %v10062_v44 = vld [vmem:[%s14962_s1 + $0x58] sm:$0xff]  ;;  %v10074_v58 = vld [vmem:[%s14962_s1 + $0x68] sm:$0xff] }
 0x146   :  { %15645 = vst [vmem:[#allocation290_spill] sm:$0xff] %v10029_v56  ;;  %v789_v29 = vmul.f32 %v10029_v56, %v10029_v56  ;;  %v10086_v40 = vld [vmem:[%s14962_s1 + $0x78] sm:$0xff]  ;;  %v10093_v46 = vld [vmem:[%s14962_s1 + $0x88] sm:$0xff]  ;;  %v10110_v12 = vpop.permute.xlu1 %1098 }
 0x147   :  { %15646 = vst [vmem:[#allocation291_spill] sm:$0xff] %v10032_v41  ;;  %v790_v42 = vmul.f32 %v10032_v41, %v10032_v41 }
 0x148   :  { %v852_v48 = vsel %vm653_vm0, %v789_v29, 0.0  ;;  %v10100_v29 = vld [vmem:[%s14962_s1 + $0x98] sm:$0xff] }
 0x149   :  { %850 = vadd.xlane.f32.xlu0 %v849_v27  ;;  %853 = vadd.xlane.f32.xlu1 %v852_v48  ;;  %v855_v38 = vsel %vm653_vm0, %v790_v42, 0.0  ;;  %v15234_v27 = vmov 0   ;;  %v722_v42 = vpop.xlane.xlu0 %721 }
 0x14a   :  { %v745_v48 = vmul.f32 0.020408163, %v722_v42  ;;  %v10112_v13 = vpop.permute.xlu1 %1103 }
 0x14d   :  { %856 = vadd.xlane.f32.xlu0 %v855_v38  ;;  %v10105_v38 = vsub.f32 %v9840_v36, %v745_v48  ;;  %v10114_v10 = vpop.permute.xlu0 %1093 }
 0x14e   :  { %v10116_v11 = vpop.permute.xlu1 %1113 }
 0x14f   :  { %15647 = vst [vmem:[#allocation292_spill] sm:$0xff] %v10105_v38  ;;  %v791_v14 = vmul.f32 %v10105_v38, %v10105_v38 }
 0x151   :  { %v858_v15 = vsel %vm653_vm0, %v791_v14, 0.0 }
 0x152   :  { %v10120_v42 = vpop.permute.xlu1 %1123 }
 0x156   :  { %v10124_v48 = vpop.permute.xlu1 %1133 }
 0x157   :  { %15648 = vst [vmem:[#allocation293_spill] sm:$0xff] %v10124_v48 }
 0x15a   :  { %1153 = vperm.xlu1 %7734, %v10045_v39   ;;  %v10128_v14 = vpop.permute.xlu1 %1143 }
 0x15b   :  { %15649 = vst [vmem:[#allocation294_spill] sm:$0xff] %v10128_v14 }
 0x15e   :  { %1163 = vperm.xlu1 %7734, %v10051_v61  }
 0x162   :  { %1173 = vperm.xlu1 %7734, %v10057_v17  }
 0x163   :  { %1148 = vperm.xlu0 %7733, %v10062_v44  }
 0x166   :  { %1183 = vperm.xlu1 %7734, %v10069_v50  }
 0x167   :  { %1158 = vperm.xlu0 %7733, %v10074_v58  }
 0x16a   :  { %1193 = vperm.xlu1 %7734, %v10081_v19  }
 0x16b   :  { %1168 = vperm.xlu0 %7733, %v10086_v40  }
 0x16e   :  { %7736 = vset.pattern.permute.xlu1 %v15234_v27 }
 0x16f   :  { %1178 = vperm.xlu0 %7733, %v10093_v46  }
 0x173   :  { %1188 = vperm.xlu0 %7733, %v10100_v29  }
 0x177   :  { %7735 = vset.pattern.permute.xlu0 %v15234_v27  ;;  %v10118_v27 = vpop.permute.xlu0 %1108 }
 0x17b   :  { %v10122_v36 = vpop.permute.xlu0 %1118 }
 0x17f   :  { %v10126_v8 = vpop.permute.xlu0 %1128 }
 0x183   :  { %v10130_v9 = vpop.permute.xlu0 %1138 }
 0x18e   :  { %859 = vadd.xlane.f32.xlu1 %v858_v15 }
 0x1ae   :  { %v794_v15 = vpop.xlane.xlu1 %793 }
 0x1af   :  { %v861_v6 = vmul.f32 0.020408163, %v794_v15 }
 0x1b1   :  { %v884_v7 = vadd.f32 0.001, %v861_v6 }
 0x1b2   :  { %v800_v4 = vpop.xlane.xlu1 %799  ;;  %v797_v5 = vpop.xlane.xlu0 %796 }
 0x1b3   :  { %7739 = vrsqrt.f32 %v884_v7  ;;  %v863_v2 = vmul.f32 0.020408163, %v800_v4  ;;  %v862_v3 = vmul.f32 0.020408163, %v797_v5 }
 0x1b5   :  { %v885_v0 = vadd.f32 0.001, %v862_v3  ;;  %v886_v1 = vadd.f32 0.001, %v863_v2 }
 0x1b6   :  { %v806_v38 = vpop.xlane.xlu1 %805  ;;  %v803_v56 = vpop.xlane.xlu0 %802 }
 0x1b7   :  { %v864_v55 = vmul.f32 0.020408163, %v803_v56  ;;  %7741 = vrsqrt.f32 %v885_v0  ;;  %v865_v41 = vmul.f32 0.020408163, %v806_v38 }
 0x1b8   :  { %7743 = vrsqrt.f32 %v886_v1 }
 0x1b9   :  { %v887_v62 = vadd.f32 0.001, %v864_v55  ;;  %v888_v6 = vadd.f32 0.001, %v865_v41 }
 0x1ba   :  { %v812_v59 = vpop.xlane.xlu1 %811  ;;  %v809_v43 = vpop.xlane.xlu0 %808 }
 0x1bb   :  { %7745 = vrsqrt.f32 %v887_v62  ;;  %v866_v22 = vmul.f32 0.020408163, %v809_v43  ;;  %v867_v3 = vmul.f32 0.020408163, %v812_v59 }
 0x1bc   :  { %7747 = vrsqrt.f32 %v888_v6 }
 0x1bd   :  { %v7740_v15 = vpop.eup %7739  ;;  %v889_v5 = vadd.f32 0.001, %v866_v22  ;;  %v890_v41 = vadd.f32 0.001, %v867_v3 }
 0x1be   :  { %v818_v14 = vpop.xlane.xlu1 %817  ;;  %v815_v45 = vpop.xlane.xlu0 %814  ;;  %v930_v4 = vmul.f32 %v7740_v15, %v9864_v37 }
 0x1bf   :  { %v868_v55 = vmul.f32 0.020408163, %v815_v45  ;;  %7749 = vrsqrt.f32 %v889_v5  ;;  %v869_v6 = vmul.f32 0.020408163, %v818_v14 }
 0x1c0   :  { %955 = vperm.xlu0 %7735, %v930_v4  }
 0x1c1   :  { %v7742_v2 = vpop.eup %7741  ;;  %v891_v48 = vadd.f32 0.001, %v868_v55 }
 0x1c2   :  { %v824_v7 = vpop.xlane.xlu1 %823  ;;  %v821_v0 = vpop.xlane.xlu0 %820  ;;  %v931_v56 = vmul.f32 %v7742_v2, %v9847_v54 }
 0x1c3   :  { %v870_v1 = vmul.f32 0.020408163, %v821_v0  ;;  %v7744_v38 = vpop.eup %7743 }
 0x1c4   :  { %960 = vperm.xlu1 %7736, %v931_v56   ;;  %v932_v4 = vmul.f32 %v7744_v38, %v9853_v57  ;;  %v892_v56 = vadd.f32 0.001, %v869_v6 }
 0x1c5   :  { %v893_v62 = vadd.f32 0.001, %v870_v1  ;;  %v7746_v43 = vpop.eup %7745 }
 0x1c6   :  { %v827_v18 = vpop.xlane.xlu0 %826  ;;  %v830_v15 = vpop.xlane.xlu1 %829  ;;  %v933_v45 = vmul.f32 %v7746_v43, %v9876_v34 }
 0x1c7   :  { %v872_v22 = vmul.f32 0.020408163, %v827_v18  ;;  %7751 = vrsqrt.f32 %v893_v62  ;;  %v7748_v0 = vpop.eup %7747  ;;  %v871_v18 = vmul.f32 0.020408163, %v824_v7 }
 0x1c8   :  { %965 = vperm.xlu1 %7736, %v932_v4   ;;  %7753 = vrsqrt.f32 %v890_v41  ;;  %v934_v62 = vmul.f32 %v7748_v0, %v9859_v60  ;;  %v873_v41 = vmul.f32 0.020408163, %v830_v15 }
 0x1c9   :  { %v895_v59 = vadd.f32 0.001, %v872_v22  ;;  %7755 = vrsqrt.f32 %v891_v48  ;;  %v7750_v55 = vpop.eup %7749  ;;  %v894_v48 = vadd.f32 0.001, %v871_v18 }
 0x1ca   :  { %v833_v2 = vpop.xlane.xlu0 %832  ;;  %v836_v1 = vpop.xlane.xlu1 %835  ;;  %v935_v14 = vmul.f32 %v7750_v55, %v9888_v32  ;;  %v896_v0 = vadd.f32 0.001, %v873_v41 }
 0x1cb   :  { %v874_v5 = vmul.f32 0.020408163, %v833_v2  ;;  %7757 = vrsqrt.f32 %v895_v59 }
 0x1cc   :  { %970 = vperm.xlu1 %7736, %v933_v45  }
 0x1cd   :  { %v897_v3 = vadd.f32 0.001, %v874_v5 }
 0x1ce   :  { %v839_v54 = vpop.xlane.xlu0 %838  ;;  %v842_v59 = vpop.xlane.xlu1 %841 }
 0x1cf   :  { %v876_v38 = vmul.f32 0.020408163, %v839_v54  ;;  %7759 = vrsqrt.f32 %v897_v3  ;;  %v875_v3 = vmul.f32 0.020408163, %v836_v1 }
 0x1d0   :  { %975 = vperm.xlu1 %7736, %v934_v62   ;;  %7761 = vrsqrt.f32 %v892_v56 }
 0x1d1   :  { %v899_v22 = vadd.f32 0.001, %v876_v38  ;;  %v7752_v43 = vpop.eup %7751 }
 0x1d2   :  { %v845_v4 = vpop.xlane.xlu0 %844  ;;  %v939_v45 = vmul.f32 %v7752_v43, %v9907_v31  ;;  %v7754_v6 = vpop.eup %7753 }
 0x1d3   :  { %v878_v2 = vmul.f32 0.020408163, %v845_v4  ;;  %7763 = vrsqrt.f32 %v899_v22  ;;  %v7756_v7 = vpop.eup %7755  ;;  %v936_v56 = vmul.f32 %v7754_v6, %v9870_v63  ;;  %v848_v18 = vpop.xlane.xlu1 %847  ;;  %v877_v4 = vmul.f32 0.020408163, %v842_v59 }
 0x1d4   :  { %980 = vperm.xlu1 %7736, %v935_v14   ;;  %1000 = vperm.xlu0 %7735, %v939_v45   ;;  %7765 = vrsqrt.f32 %v894_v48  ;;  %v937_v22 = vmul.f32 %v7756_v7, %v9900_v30  ;;  %v898_v14 = vadd.f32 0.001, %v875_v3 }
 0x1d5   :  { %v901_v54 = vadd.f32 0.001, %v878_v2  ;;  %v7758_v5 = vpop.eup %7757 }
 0x1d6   :  { %v851_v55 = vpop.xlane.xlu0 %850  ;;  %v941_v15 = vmul.f32 %v7758_v5, %v10062_v44  ;;  %v879_v5 = vmul.f32 0.020408163, %v848_v18 }
 0x1d7   :  { %v880_v38 = vmul.f32 0.020408163, %v851_v55  ;;  %7767 = vrsqrt.f32 %v901_v54  ;;  %v900_v54 = vadd.f32 0.001, %v877_v4  ;;  %v854_v55 = vpop.xlane.xlu1 %853 }
 0x1d8   :  { %985 = vperm.xlu1 %7736, %v936_v56   ;;  %1010 = vperm.xlu0 %7735, %v941_v15   ;;  %7769 = vrsqrt.f32 %v896_v0  ;;  %v881_v56 = vmul.f32 0.020408163, %v854_v55  ;;  %v15651_v55 = vmov 1  }
 0x1d9   :  { %v903_v62 = vadd.f32 0.001, %v880_v38  ;;  %v7760_v43 = vpop.eup %7759  ;;  %v902_v38 = vadd.f32 0.001, %v879_v5 }
 0x1da   :  { %v857_v48 = vpop.xlane.xlu0 %856  ;;  %v943_v1 = vmul.f32 %v7760_v43, %v10074_v58  ;;  %v7762_v2 = vpop.eup %7761  ;;  %v904_v43 = vadd.f32 0.001, %v881_v56 }
 0x1db   :  { %v882_v41 = vmul.f32 0.020408163, %v857_v48  ;;  %7771 = vrsqrt.f32 %v903_v62  ;;  %v938_v7 = vmul.f32 %v7762_v2, %v9882_v35  ;;  %v10152_v48 = vld [vmem:[%s14962_s1 + $0xa8] sm:$0xff] }
 0x1dc   :  { %990 = vperm.xlu1 %7736, %v937_v22   ;;  %1020 = vperm.xlu0 %7735, %v943_v1   ;;  %7773 = vrsqrt.f32 %v898_v14  ;;  %15650 = vst [vmem:[#allocation295_spill] sm:$0xff] %v10152_v48 }
 0x1dd   :  { %v905_v45 = vadd.f32 0.001, %v882_v41  ;;  %v7764_v6 = vpop.eup %7763 }
 0x1de   :  { %v945_v0 = vmul.f32 %v7764_v6, %v10086_v40  ;;  %v7766_v59 = vpop.eup %7765 }
 0x1df   :  { %7775 = vrsqrt.f32 %v905_v45  ;;  %v940_v15 = vmul.f32 %v7766_v59, %v9894_v33 }
 0x1e0   :  { %995 = vperm.xlu1 %7736, %v938_v7   ;;  %1030 = vperm.xlu0 %7735, %v945_v0   ;;  %7777 = vrsqrt.f32 %v900_v54 }
 0x1e1   :  { %v7768_v3 = vpop.eup %7767  ;;  %7779 = vrsqrt.f32 %v902_v38 }
 0x1e2   :  { %v947_v62 = vmul.f32 %v7768_v3, %v10093_v46  ;;  %v7770_v22 = vpop.eup %7769  ;;  %7781 = vrsqrt.f32 %v904_v43  ;;  %v10161_v3 = vpop.permute.xlu1 %1153 }
 0x1e3   :  { %v942_v14 = vmul.f32 %v7770_v22, %v10045_v39 }
 0x1e4   :  { %1005 = vperm.xlu1 %7736, %v940_v15   ;;  %1040 = vperm.xlu0 %7735, %v947_v62  }
 0x1e5   :  { %v7772_v18 = vpop.eup %7771 }
 0x1e6   :  { %v949_v4 = vmul.f32 %v7772_v18, %v10100_v29  ;;  %v7774_v41 = vpop.eup %7773  ;;  %v10163_v38 = vpop.permute.xlu1 %1163 }
 0x1e7   :  { %v944_v45 = vmul.f32 %v7774_v41, %v10051_v61 }
 0x1e8   :  { %1015 = vperm.xlu1 %7736, %v942_v14   ;;  %1050 = vperm.xlu0 %7735, %v949_v4   ;;  %v1149_v14 = vpop.permute.xlu0 %1148  ;;  %v10174_v4 = vld [vmem:[%s14962_s1 + $0xb0] sm:$0xff] }
 0x1e9   :  { %v7776_v1 = vpop.eup %7775  ;;  %15652 = vst [vmem:[#allocation296_spill] sm:$0xff] %v10174_v4 }
 0x1ea   :  { %v951_v2 = vmul.f32 %v7776_v1, %v10152_v48  ;;  %v7778_v6 = vpop.eup %7777  ;;  %v10165_v56 = vpop.permute.xlu1 %1173 }
 0x1eb   :  { %v946_v54 = vmul.f32 %v7778_v6, %v10057_v17  ;;  %v7780_v5 = vpop.eup %7779 }
 0x1ec   :  { %1025 = vperm.xlu1 %7736, %v944_v45   ;;  %1060 = vperm.xlu0 %7735, %v951_v2   ;;  %v948_v7 = vmul.f32 %v7780_v5, %v10069_v50  ;;  %v7782_v0 = vpop.eup %7781  ;;  %v1159_v41 = vpop.permute.xlu0 %1158 }
 0x1ed   :  { %v950_v59 = vmul.f32 %v7782_v0, %v10081_v19 }
 0x1ee   :  { %v10167_v15 = vpop.permute.xlu1 %1183 }
 0x1f0   :  { %1035 = vperm.xlu1 %7736, %v946_v54   ;;  %7737 = vset.pattern.permute.xlu0 %v15651_v55  ;;  %v1169_v45 = vpop.permute.xlu0 %1168 }
 0x1f1   :  { %1198 = vperm.xlu0 %7737, %v10152_v48  }
 0x1f2   :  { %v10169_v62 = vpop.permute.xlu1 %1193 }
 0x1f4   :  { %1045 = vperm.xlu1 %7736, %v948_v7   ;;  %v1179_v6 = vpop.permute.xlu0 %1178 }
 0x1f8   :  { %1055 = vperm.xlu1 %7736, %v950_v59   ;;  %v1189_v54 = vpop.permute.xlu0 %1188 }
 0x21b   :  { %v860_v22 = vpop.xlane.xlu1 %859 }
 0x21c   :  { %v883_v18 = vmul.f32 0.020408163, %v860_v22 }
 0x21e   :  { %v906_v43 = vadd.f32 0.001, %v883_v18 }
 0x220   :  { %7783 = vrsqrt.f32 %v906_v43 }
 0x22a   :  { %v7784_v1 = vpop.eup %7783 }
 0x22b   :  { %v952_v2 = vmul.f32 %v7784_v1, %v10174_v4 }
 0x22d   :  { %1065 = vperm.xlu1 %7736, %v952_v2  }
 0x231   :  { %7738 = vset.pattern.permute.xlu1 %v15651_v55 }
 0x232   :  { %1203 = vperm.xlu1 %7738, %v10174_v4  }
 0x23f   :  { %v956_v5 = vpop.permute.xlu0 %955 }
 0x240   :  { %v1068_v7 = vmul.f32 %v956_v5, %v9911_v24 }
 0x242   :  { %v10181_v0 = vadd.f32 %v10114_v10, %v1068_v7 }
 0x243   :  { %v961_v59 = vpop.permute.xlu1 %960 }
 0x244   :  { %v1069_v22 = vmul.f32 %v961_v59, %v9921_v16 }
 0x246   :  { %v10185_v18 = vadd.f32 %v10110_v12, %v1069_v22 }
 0x247   :  { %v966_v43 = vpop.permute.xlu1 %965 }
 0x248   :  { %v1070_v1 = vmul.f32 %v966_v43, %v9914_v25 }
 0x24a   :  { %v10189_v2 = vadd.f32 %v10112_v13, %v1070_v1 }
 0x24b   :  { %v971_v4 = vpop.permute.xlu1 %970 }
 0x24c   :  { %v1071_v48 = vmul.f32 %v971_v4, %v9924_v28 }
 0x24e   :  { %v10193_v24 = vadd.f32 %v10118_v27, %v1071_v48 }
 0x24f   :  { %v976_v10 = vpop.permute.xlu1 %975 }
 0x250   :  { %v1072_v5 = vmul.f32 %v976_v10, %v9933_v20 }
 0x252   :  { %v10197_v16 = vadd.f32 %v10116_v11, %v1072_v5  ;;  %v15653_v5 = vld [vmem:[#allocation293_spill] sm:$0xff] }
 0x253   :  { %v981_v12 = vpop.permute.xlu1 %980  ;;  %v1001_v7 = vpop.permute.xlu0 %1000 }
 0x254   :  { %v1073_v59 = vmul.f32 %v981_v12, %v9936_v21  ;;  %v1077_v25 = vmul.f32 %v1001_v7, %v9960_v53 }
 0x256   :  { %v10202_v13 = vadd.f32 %v10122_v36, %v1073_v59  ;;  %v10205_v28 = vadd.f32 %v10130_v9, %v1077_v25  ;;  %v15654_v59 = vld [vmem:[#allocation283_spill] sm:$0xff] }
 0x257   :  { %v986_v27 = vpop.permute.xlu1 %985  ;;  %v1011_v48 = vpop.permute.xlu0 %1010  ;;  %v15655_v25 = vld [vmem:[#allocation287_spill] sm:$0xff] }
 0x258   :  { %v1074_v4 = vmul.f32 %v986_v27, %v9945_v23  ;;  %v1079_v20 = vmul.f32 %v1011_v48, %v9972_v51  ;;  %v15656_v27 = vld [vmem:[#allocation294_spill] sm:$0xff] }
 0x25a   :  { %v10210_v11 = vadd.f32 %v10120_v42, %v1074_v4  ;;  %v10212_v22 = vadd.f32 %v1149_v14, %v1079_v20  ;;  %v15657_v20 = vld [vmem:[#allocation284_spill] sm:$0xff] }
 0x25b   :  { %v991_v21 = vpop.permute.xlu1 %990  ;;  %v1021_v43 = vpop.permute.xlu0 %1020 }
 0x25c   :  { %v1075_v53 = vmul.f32 %v991_v21, %v9948_v52  ;;  %v1081_v36 = vmul.f32 %v1021_v43, %v9984_v49  ;;  %v15658_v21 = vld [vmem:[#allocation289_spill] sm:$0xff] }
 0x25e   :  { %v10217_v9 = vadd.f32 %v10126_v8, %v1075_v53  ;;  %v10219_v1 = vadd.f32 %v1159_v41, %v1081_v36 }
 0x25f   :  { %v996_v10 = vpop.permute.xlu1 %995  ;;  %v1031_v23 = vpop.permute.xlu0 %1030 }
 0x260   :  { %v1076_v51 = vmul.f32 %v996_v10, %v9957_v26  ;;  %v1083_v42 = vmul.f32 %v1031_v23, %v9996_v47  ;;  %v15659_v23 = vld [vmem:[#allocation285_spill] sm:$0xff] }
 0x262   :  { %v10224_v14 = vadd.f32 %v15653_v5, %v1076_v51  ;;  %v10226_v12 = vadd.f32 %v1169_v45, %v1083_v42 }
 0x263   :  { %v1006_v7 = vpop.permute.xlu1 %1005  ;;  %v1041_v52 = vpop.permute.xlu0 %1040 }
 0x264   :  { %v1078_v49 = vmul.f32 %v1006_v7, %v15654_v59  ;;  %v1085_v8 = vmul.f32 %v1041_v52, %v15655_v25  ;;  %v15661_v52 = vld [vmem:[#allocation286_spill] sm:$0xff] }
 0x266   :  { %v10231_v41 = vadd.f32 %v15656_v27, %v1078_v49  ;;  %v10233_v48 = vadd.f32 %v1179_v6, %v1085_v8  ;;  %v15660_v6 = vld [vmem:[#allocation291_spill] sm:$0xff]  ;;  %v15662_v8 = vld [vmem:[#allocation288_spill] sm:$0xff] }
 0x267   :  { %v1016_v4 = vpop.permute.xlu1 %1015  ;;  %v1051_v26 = vpop.permute.xlu0 %1050 }
 0x268   :  { %v1080_v47 = vmul.f32 %v1016_v4, %v15657_v20  ;;  %v1087_v43 = vmul.f32 %v1051_v26, %v15658_v21 }
 0x26a   :  { %v10238_v45 = vadd.f32 %v10161_v3, %v1080_v47  ;;  %v10240_v53 = vadd.f32 %v1189_v54, %v1087_v43  ;;  %v15664_v43 = vld [vmem:[#allocation292_spill] sm:$0xff] }
 0x26b   :  { %v1026_v36 = vpop.permute.xlu1 %1025  ;;  %v1061_v10 = vpop.permute.xlu0 %1060 }
 0x26c   :  { %v1082_v51 = vmul.f32 %v1026_v36, %v15659_v23  ;;  %v1089_v5 = vmul.f32 %v1061_v10, %v15660_v6 }
 0x26e   :  { %v10244_v42 = vadd.f32 %v10163_v38, %v1082_v51  ;;  %v15663_v38 = vld [vmem:[#allocation290_spill] sm:$0xff] }
 0x26f   :  { %v1036_v7 = vpop.permute.xlu1 %1035  ;;  %v15665_v51 = vld [vmem:[#allocation282_spill] sm:$0xff] }
 0x270   :  { %v1084_v59 = vmul.f32 %v1036_v7, %v15661_v52  ;;  %v1199_v49 = vpop.permute.xlu0 %1198  ;;  %v7785_v6 = vpack.i.bf16 %v15665_v51, %v9864_v37 }
 0x271   :  { %v10248_v25 = vadd.f32 %v1199_v49, %v1089_v5 }
 0x272   :  { %v10251_v3 = vadd.f32 %v10165_v56, %v1084_v59  ;;  %v7795_v56 = vpack.i.bf16 %v9888_v32, %v9859_v60 }
 0x273   :  { %v1046_v54 = vpop.permute.xlu1 %1045 }
 0x274   :  { %v1086_v27 = vmul.f32 %v1046_v54, %v15662_v8 }
 0x276   :  { %v10255_v4 = vadd.f32 %v10167_v15, %v1086_v27 }
 0x277   :  { %v1056_v26 = vpop.permute.xlu1 %1055 }
 0x278   :  { %v1088_v20 = vmul.f32 %v1056_v26, %v15663_v38 }
 0x27a   :  { %v10259_v47 = vadd.f32 %v10169_v62, %v1088_v20 }
 0x2ac   :  { %v1066_v21 = vpop.permute.xlu1 %1065 }
 0x2ad   :  { %v1090_v36 = vmul.f32 %v1066_v21, %v15664_v43 }
 0x2b1   :  { %v1204_v10 = vpop.permute.xlu1 %1203 }
 0x2b2   :  { %v10262_v23 = vadd.f32 %v1204_v10, %v1090_v36 }
 0x2b3   :  { %8269 = dma.done.wait [#allocation3], 35328 }
 0x2b4   :  { %8270 = vsyncadd [#allocation3], 4294931968  ;;  %7841 = vset.pattern.permute.xlu0 %v15651_v55  ;;  %7840 = vset.pattern.permute.xlu1 %v15651_v55  ;;  %s8273_s1 = smov 127   ;;  %v7800_v15 = vpack.i.bf16 %v9900_v30, %v9870_v63  ;;  %v7790_v62 = vpack.i.bf16 %v9876_v34, %v9853_v57  ;;  %v8274_v5 = vmov 0.0|0.0   ;;  %v7810_v32 = vpack.i.bf16 %v10062_v44, %v9894_v33  ;;  %v5022_v63 = vld [vmem:[%s14963_s2 + $0x8] sm:$0xff]  ;;  %v5027_v44 = vld [vmem:[%s14963_s2 + $0x30] sm:$0xff] }
 0x2b5   :  { %7796 = vrot.lane.b32.xlu1 %v7795_v56, %s8273_s1  ;;  %7786 = vrot.lane.b32.xlu0 %v7785_v6, %s8273_s1  ;;  %v7805_v60 = vpack.i.bf16 %v9907_v31, %v9882_v35  ;;  %v7820_v30 = vpack.i.bf16 %v10086_v40, %v10051_v61  ;;  %v7815_v34 = vpack.i.bf16 %v10074_v58, %v10045_v39  ;;  %v15666_v31 = vld [vmem:[#allocation295_spill] sm:$0xff]  ;;  %v15667_v35 = vld [vmem:[#allocation296_spill] sm:$0xff]  ;;  %v5021_v39 = vld [vmem:[%s14963_s2] sm:$0xff]  ;;  %vm1509_vm1 = vcmask 457728  }
 0x2b6   :  { %7695 = vmatprep.subr.bf16.mxu1 %v8274_v5  ;;  %7662 = vmatprep.subr.bf16.mxu0 %v8274_v5  ;;  %v7830_v57 = vpack.i.bf16 %v10100_v29, %v10069_v50  ;;  %v7825_v37 = vpack.i.bf16 %v10093_v46, %v10057_v17  ;;  %v7835_v33 = vpack.i.bf16 %v15666_v31, %v10081_v19  ;;  %v5025_v61 = vld [vmem:[%s14963_s2 + $0x20] sm:$0xff]  ;;  %v5023_v17 = vld [vmem:[%s14963_s2 + $0x10] sm:$0xff]  ;;  %v5024_v50 = vld [vmem:[%s14963_s2 + $0x18] sm:$0xff] }
 0x2b7   :  { %v5029_v58 = vld [vmem:[%s14963_s2 + $0x40] sm:$0xff]  ;;  %v5026_v19 = vld [vmem:[%s14963_s2 + $0x28] sm:$0xff]  ;;  %v5031_v46 = vld [vmem:[%s14963_s2 + $0x50] sm:$0xff] }
 0x2b8   :  { %v15668_v40 = vld [vmem:[#allocation7_spill] sm:$0xff]  ;;  %v5028_v29 = vld [vmem:[%s14963_s2 + $0x38] sm:$0xff]  ;;  %v5033_v7 = vld [vmem:[%s14963_s2 + $0x60] sm:$0xff] }
 0x2b9   :  { %7801 = vrot.lane.b32.xlu1 %v7800_v15, %s8273_s1  ;;  %7791 = vrot.lane.b32.xlu0 %v7790_v62, %s8273_s1  ;;  %v5030_v52 = vld [vmem:[%s14963_s2 + $0x48] sm:$0xff]  ;;  %v5035_v59 = vld [vmem:[%s14963_s2 + $0x70] sm:$0xff] }
 0x2ba   :  { %7523 = vmatprep.mubr.msk.f32.mxu1 %vm1509_vm1, %v15668_v40  ;;  %7385 = vmatprep.mubr.msk.f32.mxu0 %vm1509_vm1, %v15668_v40  ;;  %v5032_v49 = vld [vmem:[%s14963_s2 + $0x58] sm:$0xff]  ;;  %v5037_v54 = vld [vmem:[%s14963_s2 + $0x80] sm:$0xff]  ;;  %v5034_v8 = vld [vmem:[%s14963_s2 + $0x68] sm:$0xff] }
 0x2bb   :  { %v5039_v27 = vld [vmem:[%s14963_s2 + $0x90] sm:$0xff]  ;;  %v5036_v26 = vld [vmem:[%s14963_s2 + $0x78] sm:$0xff]  ;;  %v5041_v38 = vld [vmem:[%s14963_s2 + $0xa0] sm:$0xff] }
 0x2bc   :  { %v5038_v20 = vld [vmem:[%s14963_s2 + $0x88] sm:$0xff]  ;;  %v5043_v21 = vld [vmem:[%s14963_s2 + $0xb0] sm:$0xff]  ;;  %v5040_v43 = vld [vmem:[%s14963_s2 + $0x98] sm:$0xff] }
 0x2bd   :  { %7811 = vrot.lane.b32.xlu1 %v7810_v32, %s8273_s1  ;;  %7806 = vrot.lane.b32.xlu0 %v7805_v60, %s8273_s1  ;;  %v5045_v36 = vld [vmem:[%s14963_s2 + $0xc0] sm:$0xff]  ;;  %v5042_v10 = vld [vmem:[%s14963_s2 + $0xa8] sm:$0xff] }
 0x2be   :  { %v5047_v56 = vld [vmem:[%s14963_s2 + $0xd0] sm:$0xff]  ;;  %v5044_v51 = vld [vmem:[%s14963_s2 + $0xb8] sm:$0xff]  ;;  %v5049_v6 = vld [vmem:[%s14963_s2 + $0xe0] sm:$0xff] }
 0x2bf   :  { %v5046_v15 = vld [vmem:[%s14963_s2 + $0xc8] sm:$0xff]  ;;  %v5051_v62 = vld [vmem:[%s14963_s2 + $0xf0] sm:$0xff]  ;;  %v5048_v32 = vld [vmem:[%s14963_s2 + $0xd8] sm:$0xff] }
 0x2c0   :  { %v5053_v60 = vld [vmem:[%s14963_s2 + $0x100] sm:$0xff]  ;;  %v5054_v31 = vld [vmem:[%s14963_s2 + $0x108] sm:$0xff] }
 0x2c1   :  { %7821 = vrot.lane.b32.xlu1 %v7820_v30, %s8273_s1  ;;  %7816 = vrot.lane.b32.xlu0 %v7815_v34, %s8273_s1  ;;  %v5050_v30 = vld [vmem:[%s14963_s2 + $0xe8] sm:$0xff]  ;;  %v5055_v34 = vld [vmem:[%s14963_s2 + $0x110] sm:$0xff] }
 0x2c2   :  { %v5069_v40 = vld [vmem:[%s14963_s2 + $0x180] sm:$0xff] }
 0x2c5   :  { %7831 = vrot.lane.b32.xlu1 %v7830_v57, %s8273_s1  ;;  %7826 = vrot.lane.b32.xlu0 %v7825_v37, %s8273_s1  ;;  %v5052_v57 = vld [vmem:[%s14963_s2 + $0xf8] sm:$0xff]  ;;  %v5057_v37 = vld [vmem:[%s14963_s2 + $0x120] sm:$0xff] }
 0x2c9   :  { %2723 = vrot.lane.b32.xlu1 %v15667_v35, %s8273_s1  ;;  %7836 = vrot.lane.b32.xlu0 %v7835_v33, %s8273_s1  ;;  %v5059_v33 = vld [vmem:[%s14963_s2 + $0x130] sm:$0xff]  ;;  %v5056_v35 = vld [vmem:[%s14963_s2 + $0x118] sm:$0xff] }
 0x2cd   :  { %6408 = vperm.xlu0 %7841, %v5022_v63   ;;  %6403 = vperm.xlu1 %7840, %v5021_v39   ;;  %v5061_v63 = vld [vmem:[%s14963_s2 + $0x140] sm:$0xff]  ;;  %v5058_v39 = vld [vmem:[%s14963_s2 + $0x128] sm:$0xff] }
 0x2d1   :  { %6423 = vperm.xlu0 %7841, %v5025_v61   ;;  %6413 = vperm.xlu1 %7840, %v5023_v17   ;;  %v5063_v61 = vld [vmem:[%s14963_s2 + $0x150] sm:$0xff]  ;;  %v5060_v17 = vld [vmem:[%s14963_s2 + $0x138] sm:$0xff] }
 0x2d5   :  { %6433 = vperm.xlu0 %7841, %v5027_v44   ;;  %6418 = vperm.xlu1 %7840, %v5024_v50   ;;  %v5065_v44 = vld [vmem:[%s14963_s2 + $0x160] sm:$0xff]  ;;  %v5062_v50 = vld [vmem:[%s14963_s2 + $0x148] sm:$0xff] }
 0x2d9   :  { %6443 = vperm.xlu0 %7841, %v5029_v58   ;;  %6428 = vperm.xlu1 %7840, %v5026_v19   ;;  %v5067_v58 = vld [vmem:[%s14963_s2 + $0x170] sm:$0xff]  ;;  %v5064_v19 = vld [vmem:[%s14963_s2 + $0x158] sm:$0xff] }
 0x2dd   :  { %6453 = vperm.xlu0 %7841, %v5031_v46   ;;  %6438 = vperm.xlu1 %7840, %v5028_v29   ;;  %v5066_v46 = vld [vmem:[%s14963_s2 + $0x168] sm:$0xff] }
 0x2e1   :  { %6463 = vperm.xlu0 %7841, %v5033_v7   ;;  %6448 = vperm.xlu1 %7840, %v5030_v52  }
 0x2e5   :  { %6473 = vperm.xlu0 %7841, %v5035_v59   ;;  %6458 = vperm.xlu1 %7840, %v5032_v49  }
 0x2e9   :  { %6483 = vperm.xlu0 %7841, %v5037_v54   ;;  %6468 = vperm.xlu1 %7840, %v5034_v8   ;;  %v5071_v54 = vld [vmem:[%s14963_s2 + $0x190] sm:$0xff]  ;;  %v5068_v8 = vld [vmem:[%s14963_s2 + $0x178] sm:$0xff] }
 0x2ed   :  { %6493 = vperm.xlu0 %7841, %v5039_v27   ;;  %6478 = vperm.xlu1 %7840, %v5036_v26   ;;  %v7663_v27 = vpack.c.bf16 %v10185_v18, %v10181_v0  ;;  %v5070_v0 = vld [vmem:[%s14963_s2 + $0x188] sm:$0xff]  ;;  %v7666_v18 = vpack.c.bf16 %v10193_v24, %v10189_v2  ;;  %v7669_v2 = vpack.c.bf16 %v10202_v13, %v10197_v16 }
 0x2ee   :  { %v7672_v16 = vpack.c.bf16 %v10217_v9, %v10210_v11  ;;  %v7675_v11 = vpack.c.bf16 %v10205_v28, %v10224_v14  ;;  %v5078_v28 = vld [vmem:[%s14963_s2 + $0x1c8] sm:$0xff] }
 0x2ef   :  { %7664 = vmatpush1.bf16.msra.mxu0 %v7663_v27 }
 0x2f0   :  { %7665 = vmatprep.subr.bf16.mxu0 %v8274_v5 }
 0x2f1   :  { %6503 = vperm.xlu0 %7841, %v5041_v38   ;;  %6488 = vperm.xlu1 %7840, %v5038_v20  }
 0x2f3   :  { %7667 = vmatpush1.bf16.msra.mxu0 %v7666_v18  ;;  %v5088_v18 = vld [vmem:[%s14963_s2 + $0x218] sm:$0xff] }
 0x2f4   :  { %7668 = vmatprep.subr.bf16.mxu0 %v8274_v5 }
 0x2f5   :  { %6513 = vperm.xlu0 %7841, %v5043_v21   ;;  %6498 = vperm.xlu1 %7840, %v5040_v43  }
 0x2f7   :  { %7670 = vmatpush1.bf16.msra.mxu0 %v7669_v2  ;;  %v15673_v2 = vld [vmem:[#allocation11_spill] sm:$0xff] }
 0x2f8   :  { %7671 = vmatprep.subr.bf16.mxu0 %v8274_v5 }
 0x2f9   :  { %6523 = vperm.xlu0 %7841, %v5045_v36   ;;  %6508 = vperm.xlu1 %7840, %v5042_v10  }
 0x2fb   :  { %7673 = vmatpush1.bf16.msra.mxu0 %v7672_v16 }
 0x2fc   :  { %7674 = vmatprep.subr.bf16.mxu0 %v8274_v5 }
 0x2fd   :  { %6533 = vperm.xlu0 %7841, %v5047_v56   ;;  %6518 = vperm.xlu1 %7840, %v5044_v51   ;;  %v5073_v56 = vld [vmem:[%s14963_s2 + $0x1a0] sm:$0xff] }
 0x2ff   :  { %7676 = vmatpush1.bf16.msra.mxu0 %v7675_v11 }
 0x300   :  { %7677 = vmatprep.subr.bf16.mxu0 %v8274_v5 }
 0x301   :  { %6543 = vperm.xlu0 %7841, %v5049_v6   ;;  %6528 = vperm.xlu1 %7840, %v5046_v15  }
 0x305   :  { %6553 = vperm.xlu0 %7841, %v5051_v62   ;;  %6538 = vperm.xlu1 %7840, %v5048_v32   ;;  %v5075_v32 = vld [vmem:[%s14963_s2 + $0x1b0] sm:$0xff] }
 0x309   :  { %6563 = vperm.xlu0 %7841, %v5053_v60   ;;  %6548 = vperm.xlu1 %7840, %v5050_v30   ;;  %v5072_v60 = vld [vmem:[%s14963_s2 + $0x198] sm:$0xff] }
 0x30d   :  { %6573 = vperm.xlu0 %7841, %v5055_v34   ;;  %6558 = vperm.xlu1 %7840, %v5052_v57  }
 0x311   :  { %6583 = vperm.xlu0 %7841, %v5057_v37   ;;  %6568 = vperm.xlu1 %7840, %v5054_v31   ;;  %v5077_v37 = vld [vmem:[%s14963_s2 + $0x1c0] sm:$0xff]  ;;  %v5074_v31 = vld [vmem:[%s14963_s2 + $0x1a8] sm:$0xff] }
 0x315   :  { %6593 = vperm.xlu0 %7841, %v5059_v33   ;;  %6578 = vperm.xlu1 %7840, %v5056_v35  }
 0x319   :  { %6603 = vperm.xlu0 %7841, %v5061_v63   ;;  %6588 = vperm.xlu1 %7840, %v5058_v39   ;;  %v5079_v39 = vld [vmem:[%s14963_s2 + $0x1d0] sm:$0xff] }
 0x31d   :  { %6613 = vperm.xlu0 %7841, %v5063_v61   ;;  %6598 = vperm.xlu1 %7840, %v5060_v17   ;;  %v5076_v61 = vld [vmem:[%s14963_s2 + $0x1b8] sm:$0xff] }
 0x321   :  { %6623 = vperm.xlu0 %7841, %v5065_v44   ;;  %6608 = vperm.xlu1 %7840, %v5062_v50   ;;  %v7678_v50 = vpack.c.bf16 %v10212_v22, %v10231_v41  ;;  %v7681_v22 = vpack.c.bf16 %v10219_v1, %v10238_v45  ;;  %v5083_v41 = vld [vmem:[%s14963_s2 + $0x1f0] sm:$0xff]  ;;  %v7684_v1 = vpack.c.bf16 %v10226_v12, %v10244_v42  ;;  %v5085_v45 = vld [vmem:[%s14963_s2 + $0x200] sm:$0xff] }
 0x322   :  { %v7687_v12 = vpack.c.bf16 %v10233_v48, %v10251_v3  ;;  %v5087_v42 = vld [vmem:[%s14963_s2 + $0x210] sm:$0xff]  ;;  %v7690_v48 = vpack.c.bf16 %v10240_v53, %v10255_v4  ;;  %v5089_v3 = vld [vmem:[%s14963_s2 + $0x220] sm:$0xff]  ;;  %v7693_v53 = vpack.c.bf16 %v10248_v25, %v10259_v47 }
 0x323   :  { %7679 = vmatpush1.bf16.msra.mxu0 %v7678_v50  ;;  %v5091_v4 = vld [vmem:[%s14963_s2 + $0x230] sm:$0xff]  ;;  %v5093_v25 = vld [vmem:[%s14963_s2 + $0x240] sm:$0xff]  ;;  %v5100_v50 = vld [vmem:[%s14963_s2 + $0x278] sm:$0xff] }
 0x324   :  { %7680 = vmatprep.subr.bf16.mxu0 %v8274_v5 }
 0x325   :  { %6633 = vperm.xlu0 %7841, %v5067_v58   ;;  %6618 = vperm.xlu1 %7840, %v5064_v19   ;;  %v5081_v58 = vld [vmem:[%s14963_s2 + $0x1e0] sm:$0xff] }
 0x327   :  { %v7787_v29 = vpop.permute.xlu0 %7786  ;;  %v7797_v7 = vpop.permute.xlu1 %7796  ;;  %7682 = vmatpush1.bf16.msra.mxu0 %v7681_v22  ;;  %v15684_v22 = vld [vmem:[#allocation18_spill] sm:$0xff] }
 0x328   :  { %v7789_v52 = vunpack.i.h.bf16 %v7787_v29  ;;  %v7788_v59 = vunpack.i.l.bf16 %v7787_v29  ;;  %v7799_v21 = vunpack.i.h.bf16 %v7797_v7  ;;  %v7798_v43 = vunpack.i.l.bf16 %v7797_v7  ;;  %v5080_v29 = vld [vmem:[%s14963_s2 + $0x1d8] sm:$0xff]  ;;  %7683 = vmatprep.subr.bf16.mxu0 %v8274_v5 }
 0x329   :  { %6643 = vperm.xlu0 %7841, %v5069_v40   ;;  %6628 = vperm.xlu1 %7840, %v5066_v46  }
 0x32a   :  { %v7696_v49 = vpack.c.bf16 %v7789_v52, %v7788_v59  ;;  %v7702_v15 = vpack.c.bf16 %v7799_v21, %v7798_v43 }
 0x32b   :  { %v7792_v26 = vpop.permute.xlu0 %7791  ;;  %v7802_v36 = vpop.permute.xlu1 %7801  ;;  %7685 = vmatpush1.bf16.msra.mxu0 %v7684_v1  ;;  %v5109_v1 = vld [vmem:[%s14963_s2 + $0x2c0] sm:$0xff] }
 0x32c   :  { %v7794_v38 = vunpack.i.h.bf16 %v7792_v26  ;;  %v7793_v20 = vunpack.i.l.bf16 %v7792_v26  ;;  %7697 = vmatpush1.bf16.msra.mxu1 %v7696_v49  ;;  %v7804_v51 = vunpack.i.h.bf16 %v7802_v36  ;;  %v7803_v6 = vunpack.i.l.bf16 %v7802_v36  ;;  %7686 = vmatprep.subr.bf16.mxu0 %v8274_v5 }
 0x32d   :  { %6653 = vperm.xlu0 %7841, %v5071_v54   ;;  %6638 = vperm.xlu1 %7840, %v5068_v8   ;;  %v5082_v54 = vld [vmem:[%s14963_s2 + $0x1e8] sm:$0xff] }
 0x32e   :  { %7698 = vmatprep.subr.bf16.mxu1 %v8274_v5  ;;  %v7699_v10 = vpack.c.bf16 %v7794_v38, %v7793_v20  ;;  %v7705_v34 = vpack.c.bf16 %v7804_v51, %v7803_v6  ;;  %v5084_v20 = vld [vmem:[%s14963_s2 + $0x1f8] sm:$0xff]  ;;  %v8275_v51 = vmov 0.0   ;;  %v5090_v6 = vld [vmem:[%s14963_s2 + $0x228] sm:$0xff] }
 0x32f   :  { %v7807_v62 = vpop.permute.xlu0 %7806  ;;  %v7812_v57 = vpop.permute.xlu1 %7811  ;;  %7688 = vmatpush1.bf16.msra.mxu0 %v7687_v12 }
 0x330   :  { %7700 = vmatpush1.bf16.msra.mxu1 %v7699_v10  ;;  %v7809_v24 = vunpack.i.h.bf16 %v7807_v62  ;;  %v7808_v30 = vunpack.i.l.bf16 %v7807_v62  ;;  %v7814_v13 = vunpack.i.h.bf16 %v7812_v57  ;;  %v7813_v33 = vunpack.i.l.bf16 %v7812_v57  ;;  %7689 = vmatprep.subr.bf16.mxu0 %v8274_v5  ;;  %v5095_v62 = vld [vmem:[%s14963_s2 + $0x250] sm:$0xff]  ;;  %v15675_v57 = vld [vmem:[#allocation13_spill] sm:$0xff] }
 0x331   :  { %6663 = vperm.xlu0 %7841, %v5073_v56   ;;  %6648 = vperm.xlu1 %7840, %v5070_v0   ;;  %v5086_v56 = vld [vmem:[%s14963_s2 + $0x208] sm:$0xff] }
 0x332   :  { %7701 = vmatprep.subr.bf16.mxu1 %v8274_v5  ;;  %v7708_v35 = vpack.c.bf16 %v7809_v24, %v7808_v30  ;;  %v7711_v44 = vpack.c.bf16 %v7814_v13, %v7813_v33  ;;  %v5097_v24 = vld [vmem:[%s14963_s2 + $0x260] sm:$0xff]  ;;  %v5094_v30 = vld [vmem:[%s14963_s2 + $0x248] sm:$0xff]  ;;  %v15676_v33 = vld [vmem:[#allocation12_spill] sm:$0xff] }
 0x333   :  { %v7817_v63 = vpop.permute.xlu0 %7816  ;;  %v7822_v14 = vpop.permute.xlu1 %7821  ;;  %7691 = vmatpush1.bf16.msra.mxu0 %v7690_v48 }
 0x334   :  { %7703 = vmatpush1.bf16.msra.mxu1 %v7702_v15  ;;  %v7819_v9 = vunpack.i.h.bf16 %v7817_v63  ;;  %v7818_v17 = vunpack.i.l.bf16 %v7817_v63  ;;  %v7824_v19 = vunpack.i.h.bf16 %v7822_v14  ;;  %v7823_v40 = vunpack.i.l.bf16 %v7822_v14  ;;  %7692 = vmatprep.subr.bf16.mxu0 %v8274_v5  ;;  %v15670_v15 = vld [vmem:[#allocation9_spill] sm:$0xff]  ;;  %v5101_v63 = vld [vmem:[%s14963_s2 + $0x280] sm:$0xff] }
 0x335   :  { %6673 = vperm.xlu0 %7841, %v5075_v32   ;;  %6658 = vperm.xlu1 %7840, %v5072_v60   ;;  %v5092_v32 = vld [vmem:[%s14963_s2 + $0x238] sm:$0xff]  ;;  %v5105_v14 = vld [vmem:[%s14963_s2 + $0x2a0] sm:$0xff] }
 0x336   :  { %7704 = vmatprep.subr.bf16.mxu1 %v8274_v5  ;;  %v7714_v46 = vpack.c.bf16 %v7819_v9, %v7818_v17  ;;  %v7717_v49 = vpack.c.bf16 %v7824_v19, %v7823_v40  ;;  %v15680_v9 = vld [vmem:[#allocation17_spill] sm:$0xff]  ;;  %v5103_v17 = vld [vmem:[%s14963_s2 + $0x290] sm:$0xff]  ;;  %v5102_v19 = vld [vmem:[%s14963_s2 + $0x288] sm:$0xff] }
 0x337   :  { %v7827_v7 = vpop.permute.xlu0 %7826  ;;  %v7832_v8 = vpop.permute.xlu1 %7831  ;;  %7694 = vmatpush1.bf16.msra.mxu0 %v7693_v53  ;;  %v5112_v53 = vld [vmem:[%s14963_s2 + $0x2d8] sm:$0xff] }
 0x338   :  { %7706 = vmatpush1.bf16.msra.mxu1 %v7705_v34  ;;  %v7829_v52 = vunpack.i.h.bf16 %v7827_v7  ;;  %v7828_v59 = vunpack.i.l.bf16 %v7827_v7  ;;  %v7834_v27 = vunpack.i.h.bf16 %v7832_v8  ;;  %v7833_v26 = vunpack.i.l.bf16 %v7832_v8  ;;  %1968 = vmatprep.subr.mxu0 %v8275_v51  ;;  %v15674_v34 = vld [vmem:[#allocation10_spill] sm:$0xff]  ;;  %v5104_v7 = vld [vmem:[%s14963_s2 + $0x298] sm:$0xff] }
 0x339   :  { %6683 = vperm.xlu0 %7841, %v5077_v37   ;;  %6668 = vperm.xlu1 %7840, %v5074_v31   ;;  %v5099_v37 = vld [vmem:[%s14963_s2 + $0x270] sm:$0xff]  ;;  %v5096_v31 = vld [vmem:[%s14963_s2 + $0x258] sm:$0xff]  ;;  %v15689_v8 = vld [vmem:[#allocation22_spill] sm:$0xff] }
 0x33a   :  { %7707 = vmatprep.subr.bf16.mxu1 %v8274_v5  ;;  %v7720_v38 = vpack.c.bf16 %v7829_v52, %v7828_v59  ;;  %v7723_v10 = vpack.c.bf16 %v7834_v27, %v7833_v26  ;;  %v15686_v52 = vld [vmem:[#allocation20_spill] sm:$0xff]  ;;  %v15690_v27 = vld [vmem:[#allocation25_spill] sm:$0xff] }
 0x33b   :  { %v7837_v21 = vpop.permute.xlu0 %7836  ;;  %v2724_v47 = vpop.permute.xlu1 %2723  ;;  %1969 = vmatpush1.msra.mxu0 %v10262_v23  ;;  %v15671_v23 = vld [vmem:[#allocation8_spill] sm:$0xff] }
 0x33c   :  { %7709 = vmatpush1.bf16.msra.mxu1 %v7708_v35  ;;  %v7839_v43 = vunpack.i.h.bf16 %v7837_v21  ;;  %v7838_v36 = vunpack.i.l.bf16 %v7837_v21  ;;  %v15677_v35 = vld [vmem:[#allocation15_spill] sm:$0xff]  ;;  %v5111_v26 = vld [vmem:[%s14963_s2 + $0x2d0] sm:$0xff] }
 0x33d   :  { %6693 = vperm.xlu0 %7841, %v5079_v39   ;;  %6678 = vperm.xlu1 %7840, %v5076_v61   ;;  %v5098_v39 = vld [vmem:[%s14963_s2 + $0x268] sm:$0xff]  ;;  %v15678_v61 = vld [vmem:[#allocation14_spill] sm:$0xff] }
 0x33e   :  { %7710 = vmatprep.subr.bf16.mxu1 %v8274_v5  ;;  %v7726_v0 = vpack.c.bf16 %v7839_v43, %v7838_v36  ;;  %v15693_v21 = vld [vmem:[#allocation27_spill] sm:$0xff]  ;;  %v5113_v43 = vld [vmem:[%s14963_s2 + $0x2e0] sm:$0xff] }
 0x33f   :  { %v5110_v36 = vld [vmem:[%s14963_s2 + $0x2c8] sm:$0xff] }
 0x340   :  { %7712 = vmatpush1.bf16.msra.mxu1 %v7711_v44 }
 0x341   :  { %6703 = vperm.xlu0 %7841, %v5081_v58   ;;  %6688 = vperm.xlu1 %7840, %v5078_v28   ;;  %v15681_v58 = vld [vmem:[#allocation16_spill] sm:$0xff]  ;;  %v15682_v28 = vld [vmem:[#allocation19_spill] sm:$0xff] }
 0x342   :  { %7713 = vmatprep.subr.bf16.mxu1 %v8274_v5 }
 0x344   :  { %7715 = vmatpush1.bf16.msra.mxu1 %v7714_v46 }
 0x345   :  { %6713 = vperm.xlu0 %7841, %v5083_v41   ;;  %6698 = vperm.xlu1 %7840, %v5080_v29   ;;  %v15685_v41 = vld [vmem:[#allocation21_spill] sm:$0xff]  ;;  %v5107_v29 = vld [vmem:[%s14963_s2 + $0x2b0] sm:$0xff] }
 0x346   :  { %7716 = vmatprep.subr.bf16.mxu1 %v8274_v5 }
 0x348   :  { %7718 = vmatpush1.bf16.msra.mxu1 %v7717_v49  ;;  %v15688_v49 = vld [vmem:[#allocation23_spill] sm:$0xff] }
 0x349   :  { %6723 = vperm.xlu0 %7841, %v5085_v45   ;;  %6708 = vperm.xlu1 %7840, %v5082_v54   ;;  %v5106_v54 = vld [vmem:[%s14963_s2 + $0x2a8] sm:$0xff] }
 0x34a   :  { %7719 = vmatprep.subr.bf16.mxu1 %v8274_v5 }
 0x34c   :  { %7721 = vmatpush1.bf16.msra.mxu1 %v7720_v38  ;;  %v10567_v60 = vpop.permute.xlu1 %6403  ;;  %v10594_v13 = vpop.permute.xlu0 %6408  ;;  %v5108_v38 = vld [vmem:[%s14963_s2 + $0x2b8] sm:$0xff] }
 0x34d   :  { %6733 = vperm.xlu0 %7841, %v5087_v42   ;;  %6718 = vperm.xlu1 %7840, %v5084_v20   ;;  %15672 = vst [vmem:[#allocation293_spill] sm:$0xff] %v10567_v60  ;;  %v15692_v20 = vld [vmem:[#allocation24_spill] sm:$0xff] }
 0x34e   :  { %7722 = vmatprep.subr.bf16.mxu1 %v8274_v5 }
 0x350   :  { %7724 = vmatpush1.bf16.msra.mxu1 %v7723_v10  ;;  %v10590_v16 = vpop.permute.xlu1 %6413  ;;  %v10616_v44 = vpop.permute.xlu0 %6423  ;;  %v15694_v10 = vld [vmem:[#allocation26_spill] sm:$0xff] }
 0x351   :  { %6743 = vperm.xlu0 %7841, %v5089_v3   ;;  %6728 = vperm.xlu1 %7840, %v5086_v56   ;;  %v15696_v3 = vld [vmem:[#allocation29_spill] sm:$0xff]  ;;  %v5115_v56 = vld [vmem:[%s14963_s2 + $0x2f0] sm:$0xff] }
 0x352   :  { %7725 = vmatprep.subr.bf16.mxu1 %v8274_v5  ;;  %v15669_v5 = vld [vmem:[#allocation6_spill] sm:$0xff] }
 0x353   :  { %1989 = vmatmul.mubr.f32.vlgmr.msra.gmra.mrb[0].mxu0 %v15669_v5 }
 0x354   :  { %7727 = vmatpush1.bf16.msra.mxu1 %v7726_v0  ;;  %7386 = vmatprep.mubr.msk.f32.mxu0 %vm1509_vm1, %v15670_v15  ;;  %v10609_v11 = vpop.permute.xlu1 %6418  ;;  %v10638_v46 = vpop.permute.xlu0 %6433 }
 0x355   :  { %6753 = vperm.xlu0 %7841, %v5091_v4   ;;  %6738 = vperm.xlu1 %7840, %v5088_v18   ;;  %15679 = vst [vmem:[#allocation283_spill] sm:$0xff] %v10609_v11  ;;  %v15698_v4 = vld [vmem:[#allocation28_spill] sm:$0xff]  ;;  %v15699_v18 = vld [vmem:[#allocation31_spill] sm:$0xff] }
 0x356   :  { %2792 = vmatprep.subr.mxu1 %v8275_v51  ;;  %v5117_v51 = vld [vmem:[%s14963_s2 + $0x300] sm:$0xff]  ;;  %v15894_v11 = vld [vmem:[#allocation147_spill] sm:$0xff] }
 0x357   :  { %1994 = vmatmul.mubr.f32.gmra.mrb[2].mxu0 %v15671_v23 }
 0x358   :  { %2793 = vmatpush1.msra.mxu1 %v2724_v47  ;;  %7387 = vmatprep.mubr.msk.f32.mxu0 %vm1509_vm1, %v15673_v2  ;;  %v10634_v40 = vpop.permute.xlu1 %6428  ;;  %v10660_v45 = vpop.permute.xlu0 %6443 }
 0x359   :  { %2813 = vmatmul.mubr.f32.vlgmr.msra.gmra.mrb[0].mxu1 %v15669_v5  ;;  %6763 = vperm.xlu0 %7841, %v5093_v25   ;;  %15683 = vst [vmem:[#allocation287_spill] sm:$0xff] %v10634_v40  ;;  %v5114_v25 = vld [vmem:[%s14963_s2 + $0x2e8] sm:$0xff]  ;;  %v15702_v5 = vld [vmem:[#allocation30_spill] sm:$0xff] }
 0x35a   :  { %6748 = vperm.xlu1 %7840, %v5090_v6   ;;  %7524 = vmatprep.mubr.msk.f32.mxu1 %vm1509_vm1, %v15670_v15  ;;  %v15703_v15 = vld [vmem:[#allocation33_spill] sm:$0xff] }
 0x35b   :  { %1999 = vmatmul.mubr.f32.gmra.mrb[4].mxu0 %v15674_v34 }
 0x35c   :  { %7388 = vmatprep.mubr.msk.f32.mxu0 %vm1509_vm1, %v15675_v57  ;;  %v10653_v59 = vpop.permute.xlu1 %6438  ;;  %v10682_v42 = vpop.permute.xlu0 %6453 }
 0x35d   :  { %2818 = vmatmul.mubr.f32.gmra.mrb[2].mxu1 %v15671_v23  ;;  %6773 = vperm.xlu0 %7841, %v5095_v62   ;;  %15687 = vst [vmem:[#allocation294_spill] sm:$0xff] %v10653_v59  ;;  %v5119_v62 = vld [vmem:[%s14963_s2 + $0x310] sm:$0xff] }
 0x35e   :  { %6758 = vperm.xlu1 %7840, %v5092_v32   ;;  %7525 = vmatprep.mubr.msk.f32.mxu1 %vm1509_vm1, %v15673_v2  ;;  %v5116_v32 = vld [vmem:[%s14963_s2 + $0x2f8] sm:$0xff]  ;;  %v15704_v23 = vld [vmem:[#allocation32_spill] sm:$0xff] }
 0x35f   :  { %2004 = vmatmul.mubr.f32.gmra.mrb[6].mxu0 %v15676_v33 }
 0x360   :  { %7389 = vmatprep.mubr.msk.f32.mxu0 %vm1509_vm1, %v15677_v35  ;;  %v10678_v12 = vpop.permute.xlu1 %6448  ;;  %v10704_v0 = vpop.permute.xlu0 %6463 }
 0x361   :  { %2823 = vmatmul.mubr.f32.gmra.mrb[4].mxu1 %v15674_v34  ;;  %6783 = vperm.xlu0 %7841, %v5097_v24   ;;  %15691 = vst [vmem:[#allocation284_spill] sm:$0xff] %v10678_v12  ;;  %15697 = vst [vmem:[#allocation285_spill] sm:$0xff] %v10704_v0  ;;  %v15706_v24 = vld [vmem:[#allocation35_spill] sm:$0xff]  ;;  %v15884_v12 = vld [vmem:[#allocation141_spill] sm:$0xff] }
 0x362   :  { %6768 = vperm.xlu1 %7840, %v5094_v30   ;;  %7526 = vmatprep.mubr.msk.f32.mxu1 %vm1509_vm1, %v15675_v57  ;;  %v5121_v30 = vld [vmem:[%s14963_s2 + $0x320] sm:$0xff]  ;;  %v5118_v57 = vld [vmem:[%s14963_s2 + $0x308] sm:$0xff] }
 0x363   :  { %2009 = vmatmul.mubr.f32.gmra.mrb[8].mxu0 %v15678_v61 }
 0x364   :  { %7390 = vmatprep.mubr.msk.f32.mxu0 %vm1509_vm1, %v15680_v9  ;;  %v10697_v48 = vpop.permute.xlu1 %6458  ;;  %v10726_v6 = vpop.permute.xlu0 %6473 }
 0x365   :  { %2828 = vmatmul.mubr.f32.gmra.mrb[6].mxu1 %v15676_v33  ;;  %6793 = vperm.xlu0 %7841, %v5099_v37   ;;  %15695 = vst [vmem:[#allocation289_spill] sm:$0xff] %v10697_v48  ;;  %15701 = vst [vmem:[#allocation286_spill] sm:$0xff] %v10726_v6  ;;  %v15708_v37 = vld [vmem:[#allocation34_spill] sm:$0xff]  ;;  %v5123_v33 = vld [vmem:[%s14963_s2 + $0x330] sm:$0xff] }
 0x366   :  { %6778 = vperm.xlu1 %7840, %v5096_v31   ;;  %7527 = vmatprep.mubr.msk.f32.mxu1 %vm1509_vm1, %v15677_v35  ;;  %v15709_v31 = vld [vmem:[#allocation37_spill] sm:$0xff] }
 0x367   :  { %2014 = vmatmul.mubr.f32.gmra.mrb[10].mxu0 %v15681_v58  ;;  %v5120_v35 = vld [vmem:[%s14963_s2 + $0x318] sm:$0xff] }
 0x368   :  { %7391 = vmatprep.mubr.msk.f32.mxu0 %vm1509_vm1, %v15682_v28  ;;  %v10722_v47 = vpop.permute.xlu1 %6468  ;;  %v10748_v34 = vpop.permute.xlu0 %6483 }
 0x369   :  { %2833 = vmatmul.mubr.f32.gmra.mrb[8].mxu1 %v15678_v61  ;;  %6803 = vperm.xlu0 %7841, %v5101_v63   ;;  %15700 = vst [vmem:[#allocation291_spill] sm:$0xff] %v10722_v47  ;;  %15707 = vst [vmem:[#allocation290_spill] sm:$0xff] %v10748_v34  ;;  %v15712_v61 = vld [vmem:[#allocation36_spill] sm:$0xff] }
 0x36a   :  { %6788 = vperm.xlu1 %7840, %v5098_v39   ;;  %7528 = vmatprep.mubr.msk.f32.mxu1 %vm1509_vm1, %v15680_v9  ;;  %v15713_v9 = vld [vmem:[#allocation39_spill] sm:$0xff] }
 0x36b   :  { %2019 = vmatmul.mubr.f32.gmra.mrb[12].mxu0 %v15684_v22 }
 0x36c   :  { %7392 = vmatprep.mubr.msk.f32.mxu0 %vm1509_vm1, %v15685_v41  ;;  %v10741_v2 = vpop.permute.xlu1 %6478  ;;  %v10770_v39 = vpop.permute.xlu0 %6493 }
 0x36d   :  { %2838 = vmatmul.mubr.f32.gmra.mrb[10].mxu1 %v15681_v58  ;;  %6813 = vperm.xlu0 %7841, %v5103_v17   ;;  %15705 = vst [vmem:[#allocation288_spill] sm:$0xff] %v10741_v2  ;;  %15711 = vst [vmem:[#allocation282_spill] sm:$0xff] %v10770_v39  ;;  %v5125_v17 = vld [vmem:[%s14963_s2 + $0x340] sm:$0xff] }
 0x36e   :  { %6798 = vperm.xlu1 %7840, %v5100_v50   ;;  %7529 = vmatprep.mubr.msk.f32.mxu1 %vm1509_vm1, %v15682_v28  ;;  %v5122_v50 = vld [vmem:[%s14963_s2 + $0x328] sm:$0xff]  ;;  %v15714_v58 = vld [vmem:[#allocation38_spill] sm:$0xff] }
 0x36f   :  { %2024 = vmatmul.mubr.f32.gmra.mrb[14].mxu0 %v15686_v52 }
 0x370   :  { %7393 = vmatprep.mubr.msk.f32.mxu0 %vm1509_vm1, %v15688_v49  ;;  %v10766_v63 = vpop.permute.xlu1 %6488 }
 0x371   :  { %2843 = vmatmul.mubr.f32.gmra.mrb[12].mxu1 %v15684_v22  ;;  %6823 = vperm.xlu0 %7841, %v5105_v14   ;;  %15710 = vst [vmem:[#allocation292_spill] sm:$0xff] %v10766_v63  ;;  %v15716_v14 = vld [vmem:[#allocation41_spill] sm:$0xff]  ;;  %v10792_v22 = vpop.permute.xlu0 %6503 }
 0x372   :  { %6808 = vperm.xlu1 %7840, %v5102_v19   ;;  %7530 = vmatprep.mubr.msk.f32.mxu1 %vm1509_vm1, %v15685_v41  ;;  %v5127_v19 = vld [vmem:[%s14963_s2 + $0x350] sm:$0xff]  ;;  %15717 = vst [vmem:[#allocation296_spill] sm:$0xff] %v10792_v22  ;;  %v5124_v41 = vld [vmem:[%s14963_s2 + $0x338] sm:$0xff] }
 0x373   :  { %2029 = vmatmul.mubr.f32.gmra.mrb[16].mxu0 %v15689_v8  ;;  %v16051_v22 = vld [vmem:[#allocation273_spill] sm:$0xff] }
 0x374   :  { %7394 = vmatprep.mubr.msk.f32.mxu0 %vm1509_vm1, %v15690_v27  ;;  %v10785_v28 = vpop.permute.xlu1 %6498 }
 0x375   :  { %2848 = vmatmul.mubr.f32.gmra.mrb[14].mxu1 %v15686_v52  ;;  %6833 = vperm.xlu0 %7841, %v5107_v29   ;;  %15715 = vst [vmem:[#allocation295_spill] sm:$0xff] %v10785_v28  ;;  %v15718_v29 = vld [vmem:[#allocation40_spill] sm:$0xff]  ;;  %v5129_v52 = vld [vmem:[%s14963_s2 + $0x360] sm:$0xff]  ;;  %v15864_v28 = vld [vmem:[#allocation129_spill] sm:$0xff] }
 0x376   :  { %6818 = vperm.xlu1 %7840, %v5104_v7   ;;  %7531 = vmatprep.mubr.msk.f32.mxu1 %vm1509_vm1, %v15688_v49  ;;  %v15719_v7 = vld [vmem:[#allocation43_spill] sm:$0xff] }
 0x377   :  { %2034 = vmatmul.mubr.f32.gmra.mrb[18].mxu0 %v15692_v20  ;;  %v5126_v49 = vld [vmem:[%s14963_s2 + $0x348] sm:$0xff] }
 0x378   :  { %7395 = vmatprep.mubr.msk.f32.mxu0 %vm1509_vm1, %v15693_v21 }
 0x379   :  { %2853 = vmatmul.mubr.f32.gmra.mrb[16].mxu1 %v15689_v8  ;;  %6843 = vperm.xlu0 %7841, %v5109_v1   ;;  %v10810_v1 = vpop.permute.xlu1 %6508  ;;  %v15722_v8 = vld [vmem:[#allocation42_spill] sm:$0xff] }
 0x37a   :  { %6828 = vperm.xlu1 %7840, %v5106_v54   ;;  %7532 = vmatprep.mubr.msk.f32.mxu1 %vm1509_vm1, %v15690_v27  ;;  %15720 = vst [vmem:[#allocation7_spill] sm:$0xff] %v10810_v1  ;;  %v10814_v54 = vpop.permute.xlu0 %6513  ;;  %v15723_v27 = vld [vmem:[#allocation45_spill] sm:$0xff] }
 0x37b   :  { %2039 = vmatmul.mubr.f32.gmra.mrb[20].mxu0 %v15694_v10  ;;  %15721 = vst [vmem:[#allocation6_spill] sm:$0xff] %v10814_v54  ;;  %v16048_v54 = vld [vmem:[#allocation268_spill] sm:$0xff] }
 0x37c   :  { %7396 = vmatprep.mubr.msk.f32.mxu0 %vm1509_vm1, %v15696_v3 }
 0x37d   :  { %2858 = vmatmul.mubr.f32.gmra.mrb[18].mxu1 %v15692_v20  ;;  %6853 = vperm.xlu0 %7841, %v5111_v26   ;;  %v5131_v26 = vld [vmem:[%s14963_s2 + $0x370] sm:$0xff] }
 0x37e   :  { %6838 = vperm.xlu1 %7840, %v5108_v38   ;;  %7533 = vmatprep.mubr.msk.f32.mxu1 %vm1509_vm1, %v15693_v21  ;;  %v5128_v38 = vld [vmem:[%s14963_s2 + $0x358] sm:$0xff]  ;;  %v15724_v20 = vld [vmem:[#allocation44_spill] sm:$0xff]  ;;  %v10829_v21 = vpop.permute.xlu1 %6518 }
 0x37f   :  { %2044 = vmatmul.mubr.f32.gmra.mrb[22].mxu0 %v15698_v4  ;;  %15725 = vst [vmem:[#allocation9_spill] sm:$0xff] %v10829_v21 }
 0x380   :  { %7397 = vmatprep.mubr.msk.f32.mxu0 %vm1509_vm1, %v15699_v18 }
 0x381   :  { %2863 = vmatmul.mubr.f32.gmra.mrb[20].mxu1 %v15694_v10  ;;  %6863 = vperm.xlu0 %7841, %v5113_v43   ;;  %v15726_v43 = vld [vmem:[#allocation47_spill] sm:$0xff]  ;;  %v10836_v10 = vpop.permute.xlu0 %6523 }
 0x382   :  { %6848 = vperm.xlu1 %7840, %v5110_v36   ;;  %7534 = vmatprep.mubr.msk.f32.mxu1 %vm1509_vm1, %v15696_v3  ;;  %v5133_v36 = vld [vmem:[%s14963_s2 + $0x380] sm:$0xff]  ;;  %15727 = vst [vmem:[#allocation8_spill] sm:$0xff] %v10836_v10  ;;  %v5130_v3 = vld [vmem:[%s14963_s2 + $0x368] sm:$0xff]  ;;  %v16023_v10 = vld [vmem:[#allocation244_spill] sm:$0xff] }
 0x383   :  { %2049 = vmatmul.mubr.f32.gmra.mrb[24].mxu0 %v15702_v5 }
 0x384   :  { %7398 = vmatprep.mubr.msk.f32.mxu0 %vm1509_vm1, %v15703_v15 }
 0x385   :  { %2868 = vmatmul.mubr.f32.gmra.mrb[22].mxu1 %v15698_v4  ;;  %6873 = vperm.xlu0 %7841, %v5115_v56   ;;  %v15728_v56 = vld [vmem:[#allocation46_spill] sm:$0xff]  ;;  %v5135_v4 = vld [vmem:[%s14963_s2 + $0x390] sm:$0xff] }
 0x386   :  { %6858 = vperm.xlu1 %7840, %v5112_v53   ;;  %7535 = vmatprep.mubr.msk.f32.mxu1 %vm1509_vm1, %v15699_v18  ;;  %v15729_v53 = vld [vmem:[#allocation49_spill] sm:$0xff] }
 0x387   :  { %2054 = vmatmul.mubr.f32.gmra.mrb[26].mxu0 %v15704_v23  ;;  %v5132_v18 = vld [vmem:[%s14963_s2 + $0x378] sm:$0xff] }
 0x388   :  { %7399 = vmatprep.mubr.msk.f32.mxu0 %vm1509_vm1, %v15706_v24 }
 0x389   :  { %2873 = vmatmul.mubr.f32.gmra.mrb[24].mxu1 %v15702_v5  ;;  %6883 = vperm.xlu0 %7841, %v5117_v51   ;;  %v10854_v51 = vpop.permute.xlu1 %6528  ;;  %v15732_v5 = vld [vmem:[#allocation48_spill] sm:$0xff] }
 0x38a   :  { %6868 = vperm.xlu1 %7840, %v5114_v25   ;;  %7536 = vmatprep.mubr.msk.f32.mxu1 %vm1509_vm1, %v15703_v15  ;;  %15730 = vst [vmem:[#allocation11_spill] sm:$0xff] %v10854_v51  ;;  %v10858_v25 = vpop.permute.xlu0 %6533  ;;  %v15733_v15 = vld [vmem:[#allocation51_spill] sm:$0xff] }
 0x38b   :  { %2059 = vmatmul.mubr.f32.gmra.mrb[28].mxu0 %v15708_v37  ;;  %15731 = vst [vmem:[#allocation10_spill] sm:$0xff] %v10858_v25  ;;  %v15854_v51 = vld [vmem:[#allocation123_spill] sm:$0xff] }
 0x38c   :  { %7400 = vmatprep.mubr.msk.f32.mxu0 %vm1509_vm1, %v15709_v31  ;;  %v16020_v25 = vld [vmem:[#allocation243_spill] sm:$0xff] }
 0x38d   :  { %2878 = vmatmul.mubr.f32.gmra.mrb[26].mxu1 %v15704_v23  ;;  %6893 = vperm.xlu0 %7841, %v5119_v62   ;;  %v5137_v62 = vld [vmem:[%s14963_s2 + $0x3a0] sm:$0xff] }
 0x38e   :  { %6878 = vperm.xlu1 %7840, %v5116_v32   ;;  %7537 = vmatprep.mubr.msk.f32.mxu1 %vm1509_vm1, %v15706_v24  ;;  %v5134_v32 = vld [vmem:[%s14963_s2 + $0x388] sm:$0xff]  ;;  %v15734_v23 = vld [vmem:[#allocation50_spill] sm:$0xff]  ;;  %v10873_v24 = vpop.permute.xlu1 %6538 }
 0x38f   :  { %2064 = vmatmul.mubr.f32.gmra.mrb[30].mxu0 %v15712_v61  ;;  %15735 = vst [vmem:[#allocation13_spill] sm:$0xff] %v10873_v24 }
 0x390   :  { %7401 = vmatprep.mubr.msk.f32.mxu0 %vm1509_vm1, %v15713_v9 }
 0x391   :  { %2883 = vmatmul.mubr.f32.gmra.mrb[28].mxu1 %v15708_v37  ;;  %6903 = vperm.xlu0 %7841, %v5121_v30   ;;  %v15736_v30 = vld [vmem:[#allocation53_spill] sm:$0xff]  ;;  %v10880_v37 = vpop.permute.xlu0 %6543 }
 0x392   :  { %6888 = vperm.xlu1 %7840, %v5118_v57   ;;  %7538 = vmatprep.mubr.msk.f32.mxu1 %vm1509_vm1, %v15709_v31  ;;  %v5139_v57 = vld [vmem:[%s14963_s2 + $0x3b0] sm:$0xff]  ;;  %15737 = vst [vmem:[#allocation12_spill] sm:$0xff] %v10880_v37  ;;  %v5136_v31 = vld [vmem:[%s14963_s2 + $0x398] sm:$0xff] }
 0x393   :  { %2069 = vmatmul.mubr.f32.gmra.mrb[32].mxu0 %v15714_v58  ;;  %v15993_v37 = vld [vmem:[#allocation217_spill] sm:$0xff] }
 0x394   :  { %7402 = vmatprep.mubr.msk.f32.mxu0 %vm1509_vm1, %v15716_v14 }
 0x395   :  { %2888 = vmatmul.mubr.f32.gmra.mrb[30].mxu1 %v15712_v61  ;;  %6913 = vperm.xlu0 %7841, %v5123_v33   ;;  %v15738_v33 = vld [vmem:[#allocation52_spill] sm:$0xff]  ;;  %v5138_v61 = vld [vmem:[%s14963_s2 + $0x3a8] sm:$0xff] }
 0x396   :  { %6898 = vperm.xlu1 %7840, %v5120_v35   ;;  %7539 = vmatprep.mubr.msk.f32.mxu1 %vm1509_vm1, %v15713_v9  ;;  %v15739_v35 = vld [vmem:[#allocation55_spill] sm:$0xff]  ;;  %v10895_v9 = vpop.permute.xlu1 %6548 }
 0x397   :  { %2074 = vmatmul.mubr.f32.gmra.mrb[34].mxu0 %v15718_v29  ;;  %15740 = vst [vmem:[#allocation15_spill] sm:$0xff] %v10895_v9 }
 0x398   :  { %7403 = vmatprep.mubr.msk.f32.mxu0 %vm1509_vm1, %v15719_v7 }
 0x399   :  { %2893 = vmatmul.mubr.f32.gmra.mrb[32].mxu1 %v15714_v58  ;;  %6923 = vperm.xlu0 %7841, %v5125_v17   ;;  %v10899_v17 = vpop.permute.xlu0 %6553  ;;  %v15743_v58 = vmov 0  }
 0x39a   :  { %6908 = vperm.xlu1 %7840, %v5122_v50   ;;  %7540 = vmatprep.mubr.msk.f32.mxu1 %vm1509_vm1, %v15716_v14  ;;  %15741 = vst [vmem:[#allocation14_spill] sm:$0xff] %v10899_v17  ;;  %v15742_v50 = vld [vmem:[#allocation54_spill] sm:$0xff]  ;;  %v15744_v14 = vld [vmem:[#allocation57_spill] sm:$0xff] }
 0x39b   :  { %2079 = vmatmul.mubr.f32.gmra.mrb[36].mxu0 %v15722_v8  ;;  %v15969_v17 = vld [vmem:[#allocation193_spill] sm:$0xff] }
 0x39c   :  { %7404 = vmatprep.mubr.msk.f32.mxu0 %vm1509_vm1, %v15723_v27 }
 0x39d   :  { %2898 = vmatmul.mubr.f32.gmra.mrb[34].mxu1 %v15718_v29  ;;  %6933 = vperm.xlu0 %7841, %v5127_v19   ;;  %v15745_v19 = vld [vmem:[#allocation56_spill] sm:$0xff]  ;;  %v15747_v29 = vld [vmem:[#allocation59_spill] sm:$0xff] }
 0x39e   :  { %6918 = vperm.xlu1 %7840, %v5124_v41   ;;  %7541 = vmatprep.mubr.msk.f32.mxu1 %vm1509_vm1, %v15719_v7  ;;  %v10909_v41 = vpop.permute.xlu1 %6558  ;;  %v10914_v7 = vpop.permute.xlu0 %6563 }
 0x39f   :  { %2084 = vmatmul.mubr.f32.gmra.mrb[38].mxu0 %v15724_v20  ;;  %15746 = vst [vmem:[#allocation17_spill] sm:$0xff] %v10909_v41  ;;  %15748 = vst [vmem:[#allocation16_spill] sm:$0xff] %v10914_v7  ;;  %v15847_v41 = vld [vmem:[#allocation119_spill] sm:$0xff]  ;;  %v15965_v7 = vld [vmem:[#allocation188_spill] sm:$0xff] }
 0x3a0   :  { %7405 = vmatprep.mubr.msk.f32.mxu0 %vm1509_vm1, %v15726_v43 }
 0x3a1   :  { %2903 = vmatmul.mubr.f32.gmra.mrb[36].mxu1 %v15722_v8  ;;  %6943 = vperm.xlu0 %7841, %v5129_v52   ;;  %v15749_v52 = vld [vmem:[#allocation58_spill] sm:$0xff] }
 0x3a2   :  { %6928 = vperm.xlu1 %7840, %v5126_v49   ;;  %7542 = vmatprep.mubr.msk.f32.mxu1 %vm1509_vm1, %v15723_v27  ;;  %v15750_v49 = vld [vmem:[#allocation61_spill] sm:$0xff]  ;;  %v10923_v8 = vpop.permute.xlu1 %6568  ;;  %v10927_v27 = vpop.permute.xlu0 %6573 }
 0x3a3   :  { %2089 = vmatmul.mubr.f32.gmra.mrb[40].mxu0 %v15728_v56  ;;  %15751 = vst [vmem:[#allocation19_spill] sm:$0xff] %v10923_v8  ;;  %15752 = vst [vmem:[#allocation18_spill] sm:$0xff] %v10927_v27  ;;  %v15844_v8 = vld [vmem:[#allocation117_spill] sm:$0xff] }
 0x3a4   :  { %7406 = vmatprep.mubr.msk.f32.mxu0 %vm1509_vm1, %v15729_v53 }
 0x3a5   :  { %2908 = vmatmul.mubr.f32.gmra.mrb[38].mxu1 %v15724_v20  ;;  %6953 = vperm.xlu0 %7841, %v5131_v26   ;;  %v15753_v26 = vld [vmem:[#allocation60_spill] sm:$0xff]  ;;  %v15755_v20 = vld [vmem:[#allocation62_spill] sm:$0xff] }
 0x3a6   :  { %6938 = vperm.xlu1 %7840, %v5128_v38   ;;  %7543 = vmatprep.mubr.msk.f32.mxu1 %vm1509_vm1, %v15726_v43  ;;  %v15754_v38 = vld [vmem:[#allocation63_spill] sm:$0xff]  ;;  %v10936_v43 = vpop.permute.xlu1 %6578 }
 0x3a7   :  { %2094 = vmatmul.mubr.f32.gmra.mrb[42].mxu0 %v15732_v5  ;;  %15756 = vst [vmem:[#allocation21_spill] sm:$0xff] %v10936_v43 }
 0x3a8   :  { %7407 = vmatprep.mubr.msk.f32.mxu0 %vm1509_vm1, %v15733_v15 }
 0x3a9   :  { %2913 = vmatmul.mubr.f32.gmra.mrb[40].mxu1 %v15728_v56  ;;  %6963 = vperm.xlu0 %7841, %v5133_v36   ;;  %v15757_v36 = vld [vmem:[#allocation65_spill] sm:$0xff]  ;;  %v15759_v56 = vld [vmem:[#allocation64_spill] sm:$0xff] }
 0x3aa   :  { %6948 = vperm.xlu1 %7840, %v5130_v3   ;;  %7544 = vmatprep.mubr.msk.f32.mxu1 %vm1509_vm1, %v15729_v53  ;;  %v10940_v3 = vpop.permute.xlu0 %6583  ;;  %v15760_v53 = vld [vmem:[#allocation67_spill] sm:$0xff] }
 0x3ab   :  { %2099 = vmatmul.mubr.f32.gmra.mrb[44].mxu0 %v15734_v23  ;;  %15758 = vst [vmem:[#allocation20_spill] sm:$0xff] %v10940_v3  ;;  %v15963_v3 = vld [vmem:[#allocation186_spill] sm:$0xff] }
 0x3ac   :  { %7408 = vmatprep.mubr.msk.f32.mxu0 %vm1509_vm1, %v15736_v30 }
 0x3ad   :  { %2918 = vmatmul.mubr.f32.gmra.mrb[42].mxu1 %v15732_v5  ;;  %6973 = vperm.xlu0 %7841, %v5135_v4   ;;  %v10949_v4 = vpop.permute.xlu1 %6588  ;;  %v15763_v5 = vld [vmem:[#allocation66_spill] sm:$0xff] }
 0x3ae   :  { %6958 = vperm.xlu1 %7840, %v5132_v18   ;;  %7545 = vmatprep.mubr.msk.f32.mxu1 %vm1509_vm1, %v15733_v15  ;;  %15761 = vst [vmem:[#allocation23_spill] sm:$0xff] %v10949_v4  ;;  %v10953_v18 = vpop.permute.xlu0 %6593  ;;  %v15764_v15 = vld [vmem:[#allocation69_spill] sm:$0xff] }
 0x3af   :  { %2104 = vmatmul.mubr.f32.gmra.mrb[46].mxu0 %v15738_v33  ;;  %15762 = vst [vmem:[#allocation22_spill] sm:$0xff] %v10953_v18  ;;  %v15959_v18 = vld [vmem:[#allocation184_spill] sm:$0xff] }
 0x3b0   :  { %7409 = vmatprep.mubr.msk.f32.mxu0 %vm1509_vm1, %v15739_v35 }
 0x3b1   :  { %2923 = vmatmul.mubr.f32.gmra.mrb[44].mxu1 %v15734_v23  ;;  %6983 = vperm.xlu0 %7841, %v5137_v62   ;;  %v15765_v62 = vld [vmem:[#allocation68_spill] sm:$0xff]  ;;  %v15767_v23 = vld [vmem:[#allocation71_spill] sm:$0xff] }
 0x3b2   :  { %6968 = vperm.xlu1 %7840, %v5134_v32   ;;  %7546 = vmatprep.mubr.msk.f32.mxu1 %vm1509_vm1, %v15736_v30  ;;  %v10962_v32 = vpop.permute.xlu1 %6598  ;;  %v10966_v30 = vpop.permute.xlu0 %6603 }
 0x3b3   :  { %2109 = vmatmul.mubr.f32.gmra.mrb[48].mxu0 %v15742_v50  ;;  %15766 = vst [vmem:[#allocation25_spill] sm:$0xff] %v10962_v32  ;;  %15768 = vst [vmem:[#allocation24_spill] sm:$0xff] %v10966_v30  ;;  %v15840_v32 = vld [vmem:[#allocation115_spill] sm:$0xff] }
 0x3b4   :  { %7410 = vmatprep.mubr.msk.f32.mxu0 %vm1509_vm1, %v15744_v14 }
 0x3b5   :  { %2928 = vmatmul.mubr.f32.gmra.mrb[46].mxu1 %v15738_v33  ;;  %6993 = vperm.xlu0 %7841, %v5139_v57   ;;  %v15769_v57 = vld [vmem:[#allocation70_spill] sm:$0xff] }
 0x3b6   :  { %6978 = vperm.xlu1 %7840, %v5136_v31   ;;  %7547 = vmatprep.mubr.msk.f32.mxu1 %vm1509_vm1, %v15739_v35  ;;  %v15770_v31 = vld [vmem:[#allocation73_spill] sm:$0xff]  ;;  %v10975_v33 = vpop.permute.xlu1 %6608  ;;  %v10979_v35 = vpop.permute.xlu0 %6613 }
 0x3b7   :  { %2114 = vmatmul.mubr.f32.gmra.mrb[50].mxu0 %v15745_v19  ;;  %15771 = vst [vmem:[#allocation27_spill] sm:$0xff] %v10975_v33  ;;  %15772 = vst [vmem:[#allocation26_spill] sm:$0xff] %v10979_v35 }
 0x3b8   :  { %7411 = vmatprep.mubr.msk.f32.mxu0 %vm1509_vm1, %v15747_v29 }
 0x3b9   :  { %2933 = vmatmul.mubr.f32.gmra.mrb[48].mxu1 %v15742_v50  ;;  %7842 = vset.pattern.permute.xlu0 %v15743_v58  ;;  %v15774_v50 = vld [vmem:[#allocation75_spill] sm:$0xff] }
 0x3ba   :  { %6988 = vperm.xlu1 %7840, %v5138_v61   ;;  %7548 = vmatprep.mubr.msk.f32.mxu1 %vm1509_vm1, %v15744_v14  ;;  %v15773_v61 = vld [vmem:[#allocation72_spill] sm:$0xff]  ;;  %v15775_v14 = vld [vmem:[#allocation74_spill] sm:$0xff] }
 0x3bb   :  { %2119 = vmatmul.mubr.f32.gmra.mrb[52].mxu0 %v15749_v52 }
 0x3bc   :  { %7412 = vmatprep.mubr.msk.f32.mxu0 %vm1509_vm1, %v15750_v49 }
 0x3bd   :  { %2938 = vmatmul.mubr.f32.gmra.mrb[50].mxu1 %v15745_v19  ;;  %v10988_v19 = vpop.permute.xlu1 %6618 }
 0x3be   :  { %7549 = vmatprep.mubr.msk.f32.mxu1 %vm1509_vm1, %v15747_v29  ;;  %7843 = vset.pattern.permute.xlu1 %v15743_v58  ;;  %15776 = vst [vmem:[#allocation29_spill] sm:$0xff] %v10988_v19  ;;  %v15777_v29 = vld [vmem:[#allocation77_spill] sm:$0xff] }
 0x3bf   :  { %2124 = vmatmul.mubr.f32.gmra.mrb[54].mxu0 %v15753_v26 }
 0x3c0   :  { %7413 = vmatprep.mubr.msk.f32.mxu0 %vm1509_vm1, %v15754_v38 }
 0x3c1   :  { %2943 = vmatmul.mubr.f32.gmra.mrb[52].mxu1 %v15749_v52  ;;  %v10992_v52 = vpop.permute.xlu0 %6623 }
 0x3c2   :  { %7550 = vmatprep.mubr.msk.f32.mxu1 %vm1509_vm1, %v15750_v49  ;;  %15778 = vst [vmem:[#allocation28_spill] sm:$0xff] %v10992_v52  ;;  %v15779_v49 = vld [vmem:[#allocation76_spill] sm:$0xff] }
 0x3c3   :  { %2129 = vmatmul.mubr.f32.gmra.mrb[56].mxu0 %v15755_v20 }
 0x3c4   :  { %7414 = vmatprep.mubr.msk.f32.mxu0 %vm1509_vm1, %v15757_v36 }
 0x3c5   :  { %2948 = vmatmul.mubr.f32.gmra.mrb[54].mxu1 %v15753_v26  ;;  %v15780_v26 = vld [vmem:[#allocation79_spill] sm:$0xff] }
 0x3c6   :  { %7551 = vmatprep.mubr.msk.f32.mxu1 %vm1509_vm1, %v15754_v38  ;;  %v11001_v38 = vpop.permute.xlu1 %6628 }
 0x3c7   :  { %2134 = vmatmul.mubr.f32.gmra.mrb[58].mxu0 %v15759_v56  ;;  %15781 = vst [vmem:[#allocation31_spill] sm:$0xff] %v11001_v38  ;;  %v15833_v38 = vld [vmem:[#allocation108_spill] sm:$0xff] }
 0x3c8   :  { %7415 = vmatprep.mubr.msk.f32.mxu0 %vm1509_vm1, %v15760_v53 }
 0x3c9   :  { %2953 = vmatmul.mubr.f32.gmra.mrb[56].mxu1 %v15755_v20  ;;  %v11005_v20 = vpop.permute.xlu0 %6633 }
 0x3ca   :  { %7552 = vmatprep.mubr.msk.f32.mxu1 %vm1509_vm1, %v15757_v36  ;;  %15782 = vst [vmem:[#allocation30_spill] sm:$0xff] %v11005_v20  ;;  %v15783_v36 = vld [vmem:[#allocation78_spill] sm:$0xff]  ;;  %v15944_v20 = vld [vmem:[#allocation177_spill] sm:$0xff] }
 0x3cb   :  { %2139 = vmatmul.mubr.f32.gmra.mrb[60].mxu0 %v15763_v5 }
 0x3cc   :  { %7416 = vmatprep.mubr.msk.f32.mxu0 %vm1509_vm1, %v15764_v15 }
 0x3cd   :  { %2958 = vmatmul.mubr.f32.gmra.mrb[58].mxu1 %v15759_v56  ;;  %v15784_v56 = vld [vmem:[#allocation81_spill] sm:$0xff] }
 0x3ce   :  { %7553 = vmatprep.mubr.msk.f32.mxu1 %vm1509_vm1, %v15760_v53  ;;  %v15785_v53 = vld [vmem:[#allocation80_spill] sm:$0xff] }
 0x3cf   :  { %2144 = vmatmul.mubr.f32.gmra.mrb[62].mxu0 %v15765_v62 }
 0x3d0   :  { %7417 = vmatprep.mubr.msk.f32.mxu0 %vm1509_vm1, %v15767_v23 }
 0x3d1   :  { %2963 = vmatmul.mubr.f32.gmra.mrb[60].mxu1 %v15763_v5  ;;  %v11014_v5 = vpop.permute.xlu1 %6638 }
 0x3d2   :  { %7554 = vmatprep.mubr.msk.f32.mxu1 %vm1509_vm1, %v15764_v15  ;;  %15786 = vst [vmem:[#allocation33_spill] sm:$0xff] %v11014_v5  ;;  %v15787_v15 = vld [vmem:[#allocation83_spill] sm:$0xff]  ;;  %v15829_v5 = vld [vmem:[#allocation106_spill] sm:$0xff] }
 0x3d3   :  { %2149 = vmatmul.mubr.f32.gmra.mrb[64].mxu0 %v15769_v57 }
 0x3d4   :  { %7418 = vmatprep.mubr.msk.f32.mxu0 %vm1509_vm1, %v15770_v31 }
 0x3d5   :  { %2968 = vmatmul.mubr.f32.gmra.mrb[62].mxu1 %v15765_v62  ;;  %v11018_v62 = vpop.permute.xlu0 %6643 }
 0x3d6   :  { %7555 = vmatprep.mubr.msk.f32.mxu1 %vm1509_vm1, %v15767_v23  ;;  %15788 = vst [vmem:[#allocation32_spill] sm:$0xff] %v11018_v62  ;;  %v15789_v23 = vld [vmem:[#allocation82_spill] sm:$0xff] }
 0x3d7   :  { %2154 = vmatmul.mubr.f32.gmra.mrb[66].mxu0 %v15773_v61 }
 0x3d8   :  { %7419 = vmatprep.mubr.msk.f32.mxu0 %vm1509_vm1, %v15774_v50 }
 0x3d9   :  { %2973 = vmatmul.mubr.f32.gmra.mrb[64].mxu1 %v15769_v57  ;;  %v15790_v57 = vld [vmem:[#allocation85_spill] sm:$0xff] }
 0x3da   :  { %7556 = vmatprep.mubr.msk.f32.mxu1 %vm1509_vm1, %v15770_v31  ;;  %v11027_v31 = vpop.permute.xlu1 %6648 }
 0x3db   :  { %2159 = vmatmul.mubr.f32.gmra.mrb[68].mxu0 %v15775_v14  ;;  %15791 = vst [vmem:[#allocation35_spill] sm:$0xff] %v11027_v31  ;;  %v15823_v31 = vld [vmem:[#allocation102_spill] sm:$0xff] }
 0x3dc   :  { %7420 = vmatprep.mubr.msk.f32.mxu0 %vm1509_vm1, %v15777_v29 }
 0x3dd   :  { %2978 = vmatmul.mubr.f32.gmra.mrb[66].mxu1 %v15773_v61  ;;  %v11031_v61 = vpop.permute.xlu0 %6653 }
 0x3de   :  { %7557 = vmatprep.mubr.msk.f32.mxu1 %vm1509_vm1, %v15774_v50  ;;  %15792 = vst [vmem:[#allocation34_spill] sm:$0xff] %v11031_v61  ;;  %v15793_v50 = vld [vmem:[#allocation84_spill] sm:$0xff] }
 0x3df   :  { %2164 = vmatmul.mubr.f32.gmra.mrb[70].mxu0 %v15779_v49 }
 0x3e0   :  { %7421 = vmatprep.mubr.msk.f32.mxu0 %vm1509_vm1, %v15780_v26 }
 0x3e1   :  { %2983 = vmatmul.mubr.f32.gmra.mrb[68].mxu1 %v15775_v14  ;;  %v15794_v14 = vld [vmem:[#allocation87_spill] sm:$0xff] }
 0x3e2   :  { %7558 = vmatprep.mubr.msk.f32.mxu1 %vm1509_vm1, %v15777_v29  ;;  %v15795_v29 = vld [vmem:[#allocation86_spill] sm:$0xff] }
 0x3e3   :  { %2169 = vmatmul.mubr.f32.gmra.mrb[72].mxu0 %v15783_v36 }
 0x3e4   :  { %7422 = vmatprep.mubr.msk.f32.mxu0 %vm1509_vm1, %v15784_v56 }
 0x3e5   :  { %2988 = vmatmul.mubr.f32.gmra.mrb[70].mxu1 %v15779_v49  ;;  %v11040_v49 = vpop.permute.xlu1 %6658 }
 0x3e6   :  { %7559 = vmatprep.mubr.msk.f32.mxu1 %vm1509_vm1, %v15780_v26  ;;  %15796 = vst [vmem:[#allocation37_spill] sm:$0xff] %v11040_v49  ;;  %v15797_v26 = vld [vmem:[#allocation89_spill] sm:$0xff]  ;;  %v15819_v49 = vld [vmem:[#allocation100_spill] sm:$0xff] }
 0x3e7   :  { %2174 = vmatmul.mubr.f32.gmra.mrb[74].mxu0 %v15785_v53 }
 0x3e8   :  { %7423 = vmatprep.mubr.msk.f32.mxu0 %vm1509_vm1, %v15787_v15 }
 0x3e9   :  { %2993 = vmatmul.mubr.f32.gmra.mrb[72].mxu1 %v15783_v36  ;;  %v11044_v36 = vpop.permute.xlu0 %6663 }
 0x3ea   :  { %7560 = vmatprep.mubr.msk.f32.mxu1 %vm1509_vm1, %v15784_v56  ;;  %15798 = vst [vmem:[#allocation36_spill] sm:$0xff] %v11044_v36  ;;  %v15799_v56 = vld [vmem:[#allocation88_spill] sm:$0xff]  ;;  %v15934_v36 = vld [vmem:[#allocation171_spill] sm:$0xff] }
 0x3eb   :  { %2179 = vmatmul.mubr.f32.gmra.mrb[76].mxu0 %v15789_v23 }
 0x3ec   :  { %7424 = vmatprep.mubr.msk.f32.mxu0 %vm1509_vm1, %v15790_v57 }
 0x3ed   :  { %2998 = vmatmul.mubr.f32.gmra.mrb[74].mxu1 %v15785_v53  ;;  %v15800_v53 = vld [vmem:[#allocation91_spill] sm:$0xff] }
 0x3ee   :  { %7561 = vmatprep.mubr.msk.f32.mxu1 %vm1509_vm1, %v15787_v15  ;;  %v11053_v15 = vpop.permute.xlu1 %6668 }
 0x3ef   :  { %2184 = vmatmul.mubr.f32.gmra.mrb[78].mxu0 %v15793_v50  ;;  %15801 = vst [vmem:[#allocation39_spill] sm:$0xff] %v11053_v15  ;;  %v15813_v15 = vld [vmem:[#allocation96_spill] sm:$0xff] }
 0x3f0   :  { %7425 = vmatprep.mubr.msk.f32.mxu0 %vm1509_vm1, %v15794_v14 }
 0x3f1   :  { %3003 = vmatmul.mubr.f32.gmra.mrb[76].mxu1 %v15789_v23  ;;  %v11057_v23 = vpop.permute.xlu0 %6673 }
 0x3f2   :  { %7562 = vmatprep.mubr.msk.f32.mxu1 %vm1509_vm1, %v15790_v57  ;;  %15802 = vst [vmem:[#allocation38_spill] sm:$0xff] %v11057_v23  ;;  %v15803_v57 = vld [vmem:[#allocation90_spill] sm:$0xff] }
 0x3f3   :  { %2189 = vmatmul.mubr.f32.gmra.mrb[80].mxu0 %v15795_v29 }
 0x3f4   :  { %7426 = vmatprep.mubr.msk.f32.mxu0 %vm1509_vm1, %v15797_v26 }
 0x3f5   :  { %3008 = vmatmul.mubr.f32.gmra.mrb[78].mxu1 %v15793_v50  ;;  %v15804_v50 = vld [vmem:[#allocation93_spill] sm:$0xff] }
 0x3f6   :  { %7563 = vmatprep.mubr.msk.f32.mxu1 %vm1509_vm1, %v15794_v14  ;;  %v15805_v14 = vld [vmem:[#allocation92_spill] sm:$0xff] }
 0x3f7   :  { %2194 = vmatmul.mubr.f32.gmra.mrb[82].mxu0 %v15799_v56 }
 0x3f8   :  { %7427 = vmatprep.mubr.msk.f32.mxu0 %vm1509_vm1, %v15800_v53 }
 0x3f9   :  { %3013 = vmatmul.mubr.f32.gmra.mrb[80].mxu1 %v15795_v29  ;;  %v11066_v29 = vpop.permute.xlu1 %6678 }
 0x3fa   :  { %7564 = vmatprep.mubr.msk.f32.mxu1 %vm1509_vm1, %v15797_v26  ;;  %15806 = vst [vmem:[#allocation41_spill] sm:$0xff] %v11066_v29  ;;  %v15807_v26 = vld [vmem:[#allocation95_spill] sm:$0xff] }
 0x3fb   :  { %2199 = vmatmul.mubr.f32.gmra.mrb[84].mxu0 %v15803_v57 }
 0x3fc   :  { %7428 = vmatprep.mubr.msk.f32.mxu0 %vm1509_vm1, %v15804_v50 }
 0x3fd   :  { %3018 = vmatmul.mubr.f32.gmra.mrb[82].mxu1 %v15799_v56  ;;  %v11070_v56 = vpop.permute.xlu0 %6683 }
 0x3fe   :  { %7565 = vmatprep.mubr.msk.f32.mxu1 %vm1509_vm1, %v15800_v53  ;;  %15808 = vst [vmem:[#allocation40_spill] sm:$0xff] %v11070_v56  ;;  %v15809_v53 = vld [vmem:[#allocation94_spill] sm:$0xff]  ;;  %v15924_v56 = vld [vmem:[#allocation165_spill] sm:$0xff] }
 0x3ff   :  { %2204 = vmatmul.mubr.f32.gmra.mrb[86].mxu0 %v15805_v14 }
 0x400   :  { %7429 = vmatprep.mubr.msk.f32.mxu0 %vm1509_vm1, %v15807_v26 }
 0x401   :  { %3023 = vmatmul.mubr.f32.gmra.mrb[84].mxu1 %v15803_v57  ;;  %v15810_v57 = vld [vmem:[#allocation97_spill] sm:$0xff]  ;;  %v11083_v29 = vpop.permute.xlu0 %6693 }
 0x402   :  { %7566 = vmatprep.mubr.msk.f32.mxu1 %vm1509_vm1, %v15804_v50  ;;  %v11079_v50 = vpop.permute.xlu1 %6688  ;;  %15812 = vst [vmem:[#allocation42_spill] sm:$0xff] %v11083_v29 }
 0x403   :  { %2209 = vmatmul.mubr.f32.gmra.mrb[88].mxu0 %v15809_v53  ;;  %15811 = vst [vmem:[#allocation43_spill] sm:$0xff] %v11079_v50  ;;  %v15817_v50 = vld [vmem:[#allocation101_spill] sm:$0xff] }
 0x404   :  { %7430 = vmatprep.mubr.msk.f32.mxu0 %vm1509_vm1, %v15810_v57 }
 0x405   :  { %3028 = vmatmul.mubr.f32.gmra.mrb[86].mxu1 %v15805_v14  ;;  %v15814_v14 = vld [vmem:[#allocation99_spill] sm:$0xff] }
 0x406   :  { %7567 = vmatprep.mubr.msk.f32.mxu1 %vm1509_vm1, %v15807_v26  ;;  %v15815_v26 = vld [vmem:[#allocation98_spill] sm:$0xff] }
 0x407   :  { %2214 = vmatmul.mubr.f32.gmra.mrb[90].mxu0 %v15813_v15 }
 0x408   :  { %7431 = vmatprep.mubr.msk.f32.mxu0 %vm1509_vm1, %v15814_v14 }
 0x409   :  { %3033 = vmatmul.mubr.f32.gmra.mrb[88].mxu1 %v15809_v53  ;;  %v11092_v53 = vpop.permute.xlu1 %6698 }
 0x40a   :  { %7568 = vmatprep.mubr.msk.f32.mxu1 %vm1509_vm1, %v15810_v57  ;;  %15816 = vst [vmem:[#allocation45_spill] sm:$0xff] %v11092_v53  ;;  %v11096_v57 = vpop.permute.xlu0 %6703 }
 0x40b   :  { %15818 = vst [vmem:[#allocation44_spill] sm:$0xff] %v11096_v57  ;;  %2219 = vmatmul.mubr.f32.gmra.mrb[92].mxu0 %v15815_v26 }
 0x40c   :  { %7432 = vmatprep.mubr.msk.f32.mxu0 %vm1509_vm1, %v15817_v50 }
 0x40d   :  { %3038 = vmatmul.mubr.f32.gmra.mrb[90].mxu1 %v15813_v15  ;;  %v15820_v15 = vld [vmem:[#allocation103_spill] sm:$0xff] }
 0x40e   :  { %7569 = vmatprep.mubr.msk.f32.mxu1 %vm1509_vm1, %v15814_v14  ;;  %v11105_v14 = vpop.permute.xlu1 %6708  ;;  %v11109_v53 = vpop.permute.xlu0 %6713 }
 0x40f   :  { %2224 = vmatmul.mubr.f32.gmra.mrb[94].mxu0 %v15819_v49  ;;  %15821 = vst [vmem:[#allocation47_spill] sm:$0xff] %v11105_v14  ;;  %15822 = vst [vmem:[#allocation46_spill] sm:$0xff] %v11109_v53  ;;  %v15827_v14 = vld [vmem:[#allocation107_spill] sm:$0xff] }
 0x410   :  { %7433 = vmatprep.mubr.msk.f32.mxu0 %vm1509_vm1, %v15820_v15  ;;  %v15914_v53 = vld [vmem:[#allocation159_spill] sm:$0xff] }
 0x411   :  { %3043 = vmatmul.mubr.f32.gmra.mrb[92].mxu1 %v15815_v26  ;;  %v15824_v26 = vld [vmem:[#allocation105_spill] sm:$0xff] }
 0x412   :  { %7570 = vmatprep.mubr.msk.f32.mxu1 %vm1509_vm1, %v15817_v50  ;;  %v15825_v50 = vld [vmem:[#allocation104_spill] sm:$0xff] }
 0x413   :  { %2229 = vmatmul.mubr.f32.gmra.mrb[96].mxu0 %v15823_v31 }
 0x414   :  { %7434 = vmatprep.mubr.msk.f32.mxu0 %vm1509_vm1, %v15824_v26 }
 0x415   :  { %3048 = vmatmul.mubr.f32.gmra.mrb[94].mxu1 %v15819_v49  ;;  %v11118_v49 = vpop.permute.xlu1 %6718 }
 0x416   :  { %7571 = vmatprep.mubr.msk.f32.mxu1 %vm1509_vm1, %v15820_v15  ;;  %15826 = vst [vmem:[#allocation49_spill] sm:$0xff] %v11118_v49  ;;  %v11122_v15 = vpop.permute.xlu0 %6723 }
 0x417   :  { %15828 = vst [vmem:[#allocation48_spill] sm:$0xff] %v11122_v15  ;;  %2234 = vmatmul.mubr.f32.gmra.mrb[98].mxu0 %v15825_v50 }
 0x418   :  { %7435 = vmatprep.mubr.msk.f32.mxu0 %vm1509_vm1, %v15827_v14 }
 0x419   :  { %3053 = vmatmul.mubr.f32.gmra.mrb[96].mxu1 %v15823_v31  ;;  %v15830_v31 = vld [vmem:[#allocation109_spill] sm:$0xff] }
 0x41a   :  { %7572 = vmatprep.mubr.msk.f32.mxu1 %vm1509_vm1, %v15824_v26  ;;  %v11131_v26 = vpop.permute.xlu1 %6728  ;;  %v11135_v49 = vpop.permute.xlu0 %6733 }
 0x41b   :  { %2239 = vmatmul.mubr.f32.gmra.mrb[100].mxu0 %v15829_v5  ;;  %15831 = vst [vmem:[#allocation51_spill] sm:$0xff] %v11131_v26  ;;  %15832 = vst [vmem:[#allocation50_spill] sm:$0xff] %v11135_v49  ;;  %v15837_v26 = vld [vmem:[#allocation113_spill] sm:$0xff] }
 0x41c   :  { %7436 = vmatprep.mubr.msk.f32.mxu0 %vm1509_vm1, %v15830_v31  ;;  %v15904_v49 = vld [vmem:[#allocation153_spill] sm:$0xff] }
 0x41d   :  { %3058 = vmatmul.mubr.f32.gmra.mrb[98].mxu1 %v15825_v50  ;;  %v15834_v50 = vld [vmem:[#allocation111_spill] sm:$0xff] }
 0x41e   :  { %7573 = vmatprep.mubr.msk.f32.mxu1 %vm1509_vm1, %v15827_v14  ;;  %v15835_v14 = vld [vmem:[#allocation110_spill] sm:$0xff] }
 0x41f   :  { %2244 = vmatmul.mubr.f32.gmra.mrb[102].mxu0 %v15833_v38 }
 0x420   :  { %7437 = vmatprep.mubr.msk.f32.mxu0 %vm1509_vm1, %v15834_v50 }
 0x421   :  { %3063 = vmatmul.mubr.f32.gmra.mrb[100].mxu1 %v15829_v5  ;;  %v11144_v5 = vpop.permute.xlu1 %6738 }
 0x422   :  { %7574 = vmatprep.mubr.msk.f32.mxu1 %vm1509_vm1, %v15830_v31  ;;  %15836 = vst [vmem:[#allocation53_spill] sm:$0xff] %v11144_v5  ;;  %v11148_v31 = vpop.permute.xlu0 %6743 }
 0x423   :  { %15838 = vst [vmem:[#allocation52_spill] sm:$0xff] %v11148_v31  ;;  %2249 = vmatmul.mubr.f32.gmra.mrb[104].mxu0 %v15835_v14 }
 0x424   :  { %7438 = vmatprep.mubr.msk.f32.mxu0 %vm1509_vm1, %v15837_v26 }
 0x425   :  { %3068 = vmatmul.mubr.f32.gmra.mrb[102].mxu1 %v15833_v38  ;;  %v15839_v38 = vld [vmem:[#allocation112_spill] sm:$0xff]  ;;  %v11159_v4 = vpop.permute.xlu1 %6748 }
 0x426   :  { %7575 = vmatprep.mubr.msk.f32.mxu1 %vm1509_vm1, %v15834_v50  ;;  %v11154_v50 = vpop.f32.mrb[0].mxu0  ;;  %15841 = vst [vmem:[#allocation55_spill] sm:$0xff] %v11159_v4 }
 0x427   :  { %v1992_v5 = vpop.f32.mrb[1].mxu0  ;;  %2254 = vmatmul.mubr.f32.gmra.mrb[106].mxu0 %v15839_v38 }
 0x428   :  { %7439 = vmatprep.mubr.msk.f32.mxu0 %vm1509_vm1, %v15840_v32 }
 0x429   :  { %3073 = vmatmul.mubr.f32.gmra.mrb[104].mxu1 %v15835_v14  ;;  %v11163_v14 = vpop.permute.xlu0 %6753 }
 0x42a   :  { %7576 = vmatprep.mubr.msk.f32.mxu1 %vm1509_vm1, %v15837_v26  ;;  %15842 = vst [vmem:[#allocation54_spill] sm:$0xff] %v11163_v14  ;;  %v11166_v26 = vpop.f32.mrb[2].mxu0  ;;  %v15874_v14 = vld [vmem:[#allocation135_spill] sm:$0xff] }
 0x42b   :  { %v1997_v5 = vpop.f32.mrb[3].mxu0 }
 0x42c   :  { %v2814_v19 = vpop.f32.mrb[0].mxu1 }
 0x42d   :  { %v2816_v33 = vpop.f32.mrb[1].mxu1  ;;  %3505 = vperm.xlu0 %7842, %v2814_v19   ;;  %3078 = vmatmul.mubr.f32.gmra.mrb[106].mxu1 %v15839_v38  ;;  %v15843_v19 = vld [vmem:[#allocation114_spill] sm:$0xff]  ;;  %v11180_v9 = vpop.permute.xlu0 %6763 }
 0x42e   :  { %7577 = vmatprep.mubr.msk.f32.mxu1 %vm1509_vm1, %v15840_v32  ;;  %2259 = vmatmul.mubr.f32.gmra.mrb[108].mxu0 %v15843_v19  ;;  %v15845_v32 = vld [vmem:[#allocation116_spill] sm:$0xff]  ;;  %15848 = vst [vmem:[#allocation56_spill] sm:$0xff] %v11180_v9 }
 0x42f   :  { %7440 = vmatprep.mubr.msk.f32.mxu0 %vm1509_vm1, %v15844_v8 }
 0x430   :  { %v2819_v43 = vpop.f32.mrb[2].mxu1 }
 0x431   :  { %v2821_v33 = vpop.f32.mrb[3].mxu1  ;;  %3510 = vperm.xlu1 %7843, %v2819_v43   ;;  %3083 = vmatmul.mubr.f32.gmra.mrb[108].mxu1 %v15843_v19  ;;  %v11176_v43 = vpop.f32.mrb[4].mxu0 }
 0x432   :  { %7578 = vmatprep.mubr.msk.f32.mxu1 %vm1509_vm1, %v15844_v8  ;;  %v11174_v33 = vpop.permute.xlu1 %6758  ;;  %v2002_v5 = vpop.f32.mrb[5].mxu0  ;;  %2264 = vmatmul.mubr.f32.gmra.mrb[110].mxu0 %v15845_v32 }
 0x433   :  { %15846 = vst [vmem:[#allocation57_spill] sm:$0xff] %v11174_v33  ;;  %7441 = vmatprep.mubr.msk.f32.mxu0 %vm1509_vm1, %v15847_v41  ;;  %v15850_v33 = vld [vmem:[#allocation121_spill] sm:$0xff] }
 0x434   :  { %v2824_v38 = vpop.f32.mrb[4].mxu1 }
 0x435   :  { %v2826_v4 = vpop.f32.mrb[5].mxu1  ;;  %3515 = vperm.xlu1 %7843, %v2824_v38   ;;  %3088 = vmatmul.mubr.f32.gmra.mrb[110].mxu1 %v15845_v32  ;;  %v11186_v38 = vpop.f32.mrb[6].mxu0 }
 0x436   :  { %7579 = vmatprep.mubr.msk.f32.mxu1 %vm1509_vm1, %v15847_v41  ;;  %v15849_v4 = vld [vmem:[#allocation118_spill] sm:$0xff]  ;;  %v2007_v24 = vpop.f32.mrb[7].mxu0  ;;  %v11191_v9 = vpop.permute.xlu1 %6768 }
 0x437   :  { %2269 = vmatmul.mubr.f32.gmra.mrb[112].mxu0 %v15849_v4  ;;  %15851 = vst [vmem:[#allocation59_spill] sm:$0xff] %v11191_v9  ;;  %v11195_v32 = vpop.permute.xlu0 %6773 }
 0x438   :  { %v2829_v19 = vpop.f32.mrb[6].mxu1  ;;  %7442 = vmatprep.mubr.msk.f32.mxu0 %vm1509_vm1, %v15850_v33  ;;  %15852 = vst [vmem:[#allocation58_spill] sm:$0xff] %v11195_v32  ;;  %v15857_v32 = vld [vmem:[#allocation125_spill] sm:$0xff] }
 0x439   :  { %v2831_v8 = vpop.f32.mrb[7].mxu1  ;;  %3520 = vperm.xlu0 %7842, %v2829_v19   ;;  %3093 = vmatmul.mubr.f32.gmra.mrb[112].mxu1 %v15849_v4  ;;  %v15853_v19 = vld [vmem:[#allocation120_spill] sm:$0xff] }
 0x43a   :  { %7580 = vmatprep.mubr.msk.f32.mxu1 %vm1509_vm1, %v15850_v33  ;;  %v11198_v8 = vpop.f32.mrb[8].mxu0  ;;  %v15855_v33 = vld [vmem:[#allocation122_spill] sm:$0xff] }
 0x43b   :  { %v2012_v24 = vpop.f32.mrb[9].mxu0  ;;  %2274 = vmatmul.mubr.f32.gmra.mrb[114].mxu0 %v15853_v19  ;;  %v11212_v21 = vpop.permute.xlu0 %6783 }
 0x43c   :  { %v2834_v5 = vpop.f32.mrb[8].mxu1  ;;  %7443 = vmatprep.mubr.msk.f32.mxu0 %vm1509_vm1, %v15854_v51  ;;  %15858 = vst [vmem:[#allocation60_spill] sm:$0xff] %v11212_v21 }
 0x43d   :  { %v2836_v41 = vpop.f32.mrb[9].mxu1  ;;  %3525 = vperm.xlu1 %7843, %v2834_v5   ;;  %3098 = vmatmul.mubr.f32.gmra.mrb[114].mxu1 %v15853_v19  ;;  %v11208_v5 = vpop.f32.mrb[10].mxu0 }
 0x43e   :  { %7581 = vmatprep.mubr.msk.f32.mxu1 %vm1509_vm1, %v15854_v51  ;;  %v11206_v41 = vpop.permute.xlu1 %6778  ;;  %v2017_v24 = vpop.f32.mrb[11].mxu0 }
 0x43f   :  { %15856 = vst [vmem:[#allocation61_spill] sm:$0xff] %v11206_v41  ;;  %2279 = vmatmul.mubr.f32.gmra.mrb[116].mxu0 %v15855_v33  ;;  %v15860_v41 = vld [vmem:[#allocation127_spill] sm:$0xff] }
 0x440   :  { %v2839_v4 = vpop.f32.mrb[10].mxu1  ;;  %7444 = vmatprep.mubr.msk.f32.mxu0 %vm1509_vm1, %v15857_v32 }
 0x441   :  { %v2841_v9 = vpop.f32.mrb[11].mxu1  ;;  %3530 = vperm.xlu0 %7842, %v2839_v4   ;;  %3103 = vmatmul.mubr.f32.gmra.mrb[116].mxu1 %v15855_v33  ;;  %v11218_v4 = vpop.f32.mrb[12].mxu0 }
 0x442   :  { %7582 = vmatprep.mubr.msk.f32.mxu1 %vm1509_vm1, %v15857_v32  ;;  %v15859_v9 = vld [vmem:[#allocation124_spill] sm:$0xff]  ;;  %v2022_v1 = vpop.f32.mrb[13].mxu0  ;;  %v11223_v21 = vpop.permute.xlu1 %6788 }
 0x443   :  { %2284 = vmatmul.mubr.f32.gmra.mrb[118].mxu0 %v15859_v9  ;;  %15861 = vst [vmem:[#allocation63_spill] sm:$0xff] %v11223_v21  ;;  %v11227_v33 = vpop.permute.xlu0 %6793 }
 0x444   :  { %v2844_v19 = vpop.f32.mrb[12].mxu1  ;;  %7445 = vmatprep.mubr.msk.f32.mxu0 %vm1509_vm1, %v15860_v41  ;;  %15862 = vst [vmem:[#allocation62_spill] sm:$0xff] %v11227_v33  ;;  %v15867_v33 = vld [vmem:[#allocation131_spill] sm:$0xff] }
 0x445   :  { %v2846_v51 = vpop.f32.mrb[13].mxu1  ;;  %3535 = vperm.xlu1 %7843, %v2844_v19   ;;  %3108 = vmatmul.mubr.f32.gmra.mrb[118].mxu1 %v15859_v9  ;;  %v15863_v19 = vld [vmem:[#allocation126_spill] sm:$0xff] }
 0x446   :  { %7583 = vmatprep.mubr.msk.f32.mxu1 %vm1509_vm1, %v15860_v41  ;;  %v11230_v51 = vpop.f32.mrb[14].mxu0  ;;  %v15865_v41 = vld [vmem:[#allocation128_spill] sm:$0xff] }
 0x447   :  { %v2027_v1 = vpop.f32.mrb[15].mxu0  ;;  %2289 = vmatmul.mubr.f32.gmra.mrb[120].mxu0 %v15863_v19  ;;  %v11244_v63 = vpop.permute.xlu0 %6803 }
 0x448   :  { %v2849_v24 = vpop.f32.mrb[14].mxu1  ;;  %7446 = vmatprep.mubr.msk.f32.mxu0 %vm1509_vm1, %v15864_v28  ;;  %15868 = vst [vmem:[#allocation64_spill] sm:$0xff] %v11244_v63 }
 0x449   :  { %v2851_v32 = vpop.f32.mrb[15].mxu1  ;;  %3540 = vperm.xlu0 %7842, %v2849_v24   ;;  %3113 = vmatmul.mubr.f32.gmra.mrb[120].mxu1 %v15863_v19  ;;  %v11240_v24 = vpop.f32.mrb[16].mxu0 }
 0x44a   :  { %7584 = vmatprep.mubr.msk.f32.mxu1 %vm1509_vm1, %v15864_v28  ;;  %v11238_v32 = vpop.permute.xlu1 %6798  ;;  %v2032_v1 = vpop.f32.mrb[17].mxu0 }
 0x44b   :  { %15866 = vst [vmem:[#allocation65_spill] sm:$0xff] %v11238_v32  ;;  %2294 = vmatmul.mubr.f32.gmra.mrb[122].mxu0 %v15865_v41  ;;  %v15870_v32 = vld [vmem:[#allocation133_spill] sm:$0xff] }
 0x44c   :  { %v2854_v9 = vpop.f32.mrb[16].mxu1  ;;  %7447 = vmatprep.mubr.msk.f32.mxu0 %vm1509_vm1, %v15867_v33 }
 0x44d   :  { %v2856_v21 = vpop.f32.mrb[17].mxu1  ;;  %3545 = vperm.xlu1 %7843, %v2854_v9   ;;  %3118 = vmatmul.mubr.f32.gmra.mrb[122].mxu1 %v15865_v41  ;;  %v11250_v9 = vpop.f32.mrb[18].mxu0 }
 0x44e   :  { %7585 = vmatprep.mubr.msk.f32.mxu1 %vm1509_vm1, %v15867_v33  ;;  %v15869_v21 = vld [vmem:[#allocation130_spill] sm:$0xff]  ;;  %v2037_v2 = vpop.f32.mrb[19].mxu0  ;;  %v11255_v63 = vpop.permute.xlu1 %6808 }
 0x44f   :  { %2299 = vmatmul.mubr.f32.gmra.mrb[124].mxu0 %v15869_v21  ;;  %15871 = vst [vmem:[#allocation67_spill] sm:$0xff] %v11255_v63  ;;  %v11259_v41 = vpop.permute.xlu0 %6813 }
 0x450   :  { %v2859_v19 = vpop.f32.mrb[18].mxu1  ;;  %7448 = vmatprep.mubr.msk.f32.mxu0 %vm1509_vm1, %v15870_v32  ;;  %15872 = vst [vmem:[#allocation66_spill] sm:$0xff] %v11259_v41  ;;  %v15877_v41 = vld [vmem:[#allocation137_spill] sm:$0xff] }
 0x451   :  { %v2861_v28 = vpop.f32.mrb[19].mxu1  ;;  %3550 = vperm.xlu0 %7842, %v2859_v19   ;;  %3123 = vmatmul.mubr.f32.gmra.mrb[124].mxu1 %v15869_v21  ;;  %v15873_v19 = vld [vmem:[#allocation132_spill] sm:$0xff] }
 0x452   :  { %7586 = vmatprep.mubr.msk.f32.mxu1 %vm1509_vm1, %v15870_v32  ;;  %v11262_v28 = vpop.f32.mrb[20].mxu0  ;;  %v15875_v32 = vld [vmem:[#allocation134_spill] sm:$0xff] }
 0x453   :  { %v2042_v2 = vpop.f32.mrb[21].mxu0  ;;  %2304 = vmatmul.mubr.f32.gmra.mrb[126].mxu0 %v15873_v19  ;;  %v11276_v47 = vpop.permute.xlu0 %6823 }
 0x454   :  { %v2864_v1 = vpop.f32.mrb[20].mxu1  ;;  %7449 = vmatprep.mubr.msk.f32.mxu0 %vm1509_vm1, %v15874_v14  ;;  %15878 = vst [vmem:[#allocation68_spill] sm:$0xff] %v11276_v47 }
 0x455   :  { %v2866_v33 = vpop.f32.mrb[21].mxu1  ;;  %3555 = vperm.xlu1 %7843, %v2864_v1   ;;  %3128 = vmatmul.mubr.f32.gmra.mrb[126].mxu1 %v15873_v19  ;;  %v11272_v1 = vpop.f32.mrb[22].mxu0 }
 0x456   :  { %7587 = vmatprep.mubr.msk.f32.mxu1 %vm1509_vm1, %v15874_v14  ;;  %v11270_v33 = vpop.permute.xlu1 %6818  ;;  %v2047_v2 = vpop.f32.mrb[23].mxu0  ;;  %v15879_v14 = vld [vmem:[#allocation136_spill] sm:$0xff] }
 0x457   :  { %15876 = vst [vmem:[#allocation69_spill] sm:$0xff] %v11270_v33  ;;  %2309 = vmatmul.mubr.f32.gmra.mrb[128].mxu0 %v15875_v32  ;;  %v15880_v33 = vld [vmem:[#allocation139_spill] sm:$0xff] }
 0x458   :  { %v2869_v21 = vpop.f32.mrb[22].mxu1  ;;  %7450 = vmatprep.mubr.msk.f32.mxu0 %vm1509_vm1, %v15877_v41 }
 0x459   :  { %v2871_v63 = vpop.f32.mrb[23].mxu1  ;;  %3560 = vperm.xlu0 %7842, %v2869_v21   ;;  %3133 = vmatmul.mubr.f32.gmra.mrb[128].mxu1 %v15875_v32  ;;  %v11282_v21 = vpop.f32.mrb[24].mxu0 }
 0x45a   :  { %7588 = vmatprep.mubr.msk.f32.mxu1 %vm1509_vm1, %v15877_v41  ;;  %v2052_v48 = vpop.f32.mrb[25].mxu0  ;;  %v11287_v47 = vpop.permute.xlu1 %6828 }
 0x45b   :  { %2314 = vmatmul.mubr.f32.gmra.mrb[130].mxu0 %v15879_v14  ;;  %15881 = vst [vmem:[#allocation71_spill] sm:$0xff] %v11287_v47  ;;  %v11291_v32 = vpop.permute.xlu0 %6833 }
 0x45c   :  { %v2874_v19 = vpop.f32.mrb[24].mxu1  ;;  %7451 = vmatprep.mubr.msk.f32.mxu0 %vm1509_vm1, %v15880_v33  ;;  %15882 = vst [vmem:[#allocation70_spill] sm:$0xff] %v11291_v32  ;;  %v15887_v32 = vld [vmem:[#allocation143_spill] sm:$0xff] }
 0x45d   :  { %v2876_v63 = vpop.f32.mrb[25].mxu1  ;;  %3565 = vperm.xlu1 %7843, %v2874_v19   ;;  %3138 = vmatmul.mubr.f32.gmra.mrb[130].mxu1 %v15879_v14  ;;  %v15883_v19 = vld [vmem:[#allocation138_spill] sm:$0xff] }
 0x45e   :  { %7589 = vmatprep.mubr.msk.f32.mxu1 %vm1509_vm1, %v15880_v33  ;;  %v11294_v63 = vpop.f32.mrb[26].mxu0  ;;  %v15885_v33 = vld [vmem:[#allocation140_spill] sm:$0xff] }
 0x45f   :  { %v2057_v48 = vpop.f32.mrb[27].mxu0  ;;  %2319 = vmatmul.mubr.f32.gmra.mrb[132].mxu0 %v15883_v19  ;;  %v11308_v59 = vpop.permute.xlu0 %6843 }
 0x460   :  { %v2879_v2 = vpop.f32.mrb[26].mxu1  ;;  %7452 = vmatprep.mubr.msk.f32.mxu0 %vm1509_vm1, %v15884_v12  ;;  %15888 = vst [vmem:[#allocation72_spill] sm:$0xff] %v11308_v59 }
 0x461   :  { %v2881_v41 = vpop.f32.mrb[27].mxu1  ;;  %3570 = vperm.xlu0 %7842, %v2879_v2   ;;  %3143 = vmatmul.mubr.f32.gmra.mrb[132].mxu1 %v15883_v19  ;;  %v11304_v2 = vpop.f32.mrb[28].mxu0 }
 0x462   :  { %7590 = vmatprep.mubr.msk.f32.mxu1 %vm1509_vm1, %v15884_v12  ;;  %v11302_v41 = vpop.permute.xlu1 %6838  ;;  %v2062_v48 = vpop.f32.mrb[29].mxu0 }
 0x463   :  { %15886 = vst [vmem:[#allocation73_spill] sm:$0xff] %v11302_v41  ;;  %2324 = vmatmul.mubr.f32.gmra.mrb[134].mxu0 %v15885_v33  ;;  %v15890_v41 = vld [vmem:[#allocation145_spill] sm:$0xff] }
 0x464   :  { %v2884_v14 = vpop.f32.mrb[28].mxu1  ;;  %7453 = vmatprep.mubr.msk.f32.mxu0 %vm1509_vm1, %v15887_v32 }
 0x465   :  { %v2886_v47 = vpop.f32.mrb[29].mxu1  ;;  %3575 = vperm.xlu1 %7843, %v2884_v14   ;;  %3148 = vmatmul.mubr.f32.gmra.mrb[134].mxu1 %v15885_v33  ;;  %v11314_v14 = vpop.f32.mrb[30].mxu0 }
 0x466   :  { %7591 = vmatprep.mubr.msk.f32.mxu1 %vm1509_vm1, %v15887_v32  ;;  %v15889_v47 = vld [vmem:[#allocation142_spill] sm:$0xff]  ;;  %v2067_v40 = vpop.f32.mrb[31].mxu0  ;;  %v11319_v59 = vpop.permute.xlu1 %6848 }
 0x467   :  { %2329 = vmatmul.mubr.f32.gmra.mrb[136].mxu0 %v15889_v47  ;;  %15891 = vst [vmem:[#allocation75_spill] sm:$0xff] %v11319_v59  ;;  %v11323_v33 = vpop.permute.xlu0 %6853 }
 0x468   :  { %v2889_v19 = vpop.f32.mrb[30].mxu1  ;;  %7454 = vmatprep.mubr.msk.f32.mxu0 %vm1509_vm1, %v15890_v41  ;;  %15892 = vst [vmem:[#allocation74_spill] sm:$0xff] %v11323_v33  ;;  %v15897_v33 = vld [vmem:[#allocation149_spill] sm:$0xff] }
 0x469   :  { %v2891_v12 = vpop.f32.mrb[31].mxu1  ;;  %3580 = vperm.xlu0 %7842, %v2889_v19   ;;  %3153 = vmatmul.mubr.f32.gmra.mrb[136].mxu1 %v15889_v47  ;;  %v15893_v19 = vld [vmem:[#allocation144_spill] sm:$0xff] }
 0x46a   :  { %7592 = vmatprep.mubr.msk.f32.mxu1 %vm1509_vm1, %v15890_v41  ;;  %v11326_v12 = vpop.f32.mrb[32].mxu0  ;;  %v15895_v41 = vld [vmem:[#allocation146_spill] sm:$0xff] }
 0x46b   :  { %v2072_v40 = vpop.f32.mrb[33].mxu0  ;;  %2334 = vmatmul.mubr.f32.gmra.mrb[138].mxu0 %v15893_v19  ;;  %v11340_v60 = vpop.permute.xlu0 %6863 }
 0x46c   :  { %v2894_v48 = vpop.f32.mrb[32].mxu1  ;;  %7455 = vmatprep.mubr.msk.f32.mxu0 %vm1509_vm1, %v15894_v11  ;;  %15898 = vst [vmem:[#allocation76_spill] sm:$0xff] %v11340_v60 }
 0x46d   :  { %v2896_v32 = vpop.f32.mrb[33].mxu1  ;;  %3585 = vperm.xlu1 %7843, %v2894_v48   ;;  %3158 = vmatmul.mubr.f32.gmra.mrb[138].mxu1 %v15893_v19  ;;  %v11336_v48 = vpop.f32.mrb[34].mxu0 }
 0x46e   :  { %7593 = vmatprep.mubr.msk.f32.mxu1 %vm1509_vm1, %v15894_v11  ;;  %v11334_v32 = vpop.permute.xlu1 %6858  ;;  %v2077_v40 = vpop.f32.mrb[35].mxu0 }
 0x46f   :  { %15896 = vst [vmem:[#allocation77_spill] sm:$0xff] %v11334_v32  ;;  %2339 = vmatmul.mubr.f32.gmra.mrb[140].mxu0 %v15895_v41  ;;  %v15900_v32 = vld [vmem:[#allocation151_spill] sm:$0xff] }
 0x470   :  { %v2899_v47 = vpop.f32.mrb[34].mxu1  ;;  %7456 = vmatprep.mubr.msk.f32.mxu0 %vm1509_vm1, %v15897_v33 }
 0x471   :  { %v2901_v59 = vpop.f32.mrb[35].mxu1  ;;  %3590 = vperm.xlu0 %7842, %v2899_v47   ;;  %3163 = vmatmul.mubr.f32.gmra.mrb[140].mxu1 %v15895_v41  ;;  %v11346_v47 = vpop.f32.mrb[36].mxu0 }
 0x472   :  { %7594 = vmatprep.mubr.msk.f32.mxu1 %vm1509_vm1, %v15897_v33  ;;  %v15899_v59 = vld [vmem:[#allocation148_spill] sm:$0xff]  ;;  %v2082_v31 = vpop.f32.mrb[37].mxu0  ;;  %v11351_v60 = vpop.permute.xlu1 %6868 }
 0x473   :  { %2344 = vmatmul.mubr.f32.gmra.mrb[142].mxu0 %v15899_v59  ;;  %15901 = vst [vmem:[#allocation79_spill] sm:$0xff] %v11351_v60  ;;  %v11355_v41 = vpop.permute.xlu0 %6873 }
 0x474   :  { %v2904_v19 = vpop.f32.mrb[36].mxu1  ;;  %7457 = vmatprep.mubr.msk.f32.mxu0 %vm1509_vm1, %v15900_v32  ;;  %15902 = vst [vmem:[#allocation78_spill] sm:$0xff] %v11355_v41  ;;  %v15907_v41 = vld [vmem:[#allocation155_spill] sm:$0xff] }
 0x475   :  { %v2906_v11 = vpop.f32.mrb[37].mxu1  ;;  %3595 = vperm.xlu1 %7843, %v2904_v19   ;;  %3168 = vmatmul.mubr.f32.gmra.mrb[142].mxu1 %v15899_v59  ;;  %v15903_v19 = vld [vmem:[#allocation150_spill] sm:$0xff] }
 0x476   :  { %7595 = vmatprep.mubr.msk.f32.mxu1 %vm1509_vm1, %v15900_v32  ;;  %v11358_v11 = vpop.f32.mrb[38].mxu0  ;;  %v15905_v32 = vld [vmem:[#allocation152_spill] sm:$0xff] }
 0x477   :  { %v2087_v31 = vpop.f32.mrb[39].mxu0  ;;  %2349 = vmatmul.mubr.f32.gmra.mrb[144].mxu0 %v15903_v19  ;;  %v11372_v58 = vpop.permute.xlu0 %6883 }
 0x478   :  { %v2909_v40 = vpop.f32.mrb[38].mxu1  ;;  %7458 = vmatprep.mubr.msk.f32.mxu0 %vm1509_vm1, %v15904_v49  ;;  %15908 = vst [vmem:[#allocation80_spill] sm:$0xff] %v11372_v58 }
 0x479   :  { %v2911_v33 = vpop.f32.mrb[39].mxu1  ;;  %3600 = vperm.xlu0 %7842, %v2909_v40   ;;  %3173 = vmatmul.mubr.f32.gmra.mrb[144].mxu1 %v15903_v19  ;;  %v11368_v40 = vpop.f32.mrb[40].mxu0 }
 0x47a   :  { %7596 = vmatprep.mubr.msk.f32.mxu1 %vm1509_vm1, %v15904_v49  ;;  %v11366_v33 = vpop.permute.xlu1 %6878  ;;  %v2092_v31 = vpop.f32.mrb[41].mxu0  ;;  %v15909_v49 = vld [vmem:[#allocation154_spill] sm:$0xff] }
 0x47b   :  { %15906 = vst [vmem:[#allocation81_spill] sm:$0xff] %v11366_v33  ;;  %2354 = vmatmul.mubr.f32.gmra.mrb[146].mxu0 %v15905_v32  ;;  %v15910_v33 = vld [vmem:[#allocation157_spill] sm:$0xff] }
 0x47c   :  { %v2914_v59 = vpop.f32.mrb[40].mxu1  ;;  %7459 = vmatprep.mubr.msk.f32.mxu0 %vm1509_vm1, %v15907_v41 }
 0x47d   :  { %v2916_v60 = vpop.f32.mrb[41].mxu1  ;;  %3605 = vperm.xlu1 %7843, %v2914_v59   ;;  %3178 = vmatmul.mubr.f32.gmra.mrb[146].mxu1 %v15905_v32  ;;  %v11378_v59 = vpop.f32.mrb[42].mxu0 }
 0x47e   :  { %7597 = vmatprep.mubr.msk.f32.mxu1 %vm1509_vm1, %v15907_v41  ;;  %v2097_v15 = vpop.f32.mrb[43].mxu0  ;;  %v11383_v58 = vpop.permute.xlu1 %6888 }
 0x47f   :  { %2359 = vmatmul.mubr.f32.gmra.mrb[148].mxu0 %v15909_v49  ;;  %15911 = vst [vmem:[#allocation83_spill] sm:$0xff] %v11383_v58  ;;  %v11387_v32 = vpop.permute.xlu0 %6893 }
 0x480   :  { %v2919_v19 = vpop.f32.mrb[42].mxu1  ;;  %7460 = vmatprep.mubr.msk.f32.mxu0 %vm1509_vm1, %v15910_v33  ;;  %15912 = vst [vmem:[#allocation82_spill] sm:$0xff] %v11387_v32  ;;  %v15917_v32 = vld [vmem:[#allocation161_spill] sm:$0xff] }
 0x481   :  { %v2921_v60 = vpop.f32.mrb[43].mxu1  ;;  %3610 = vperm.xlu0 %7842, %v2919_v19   ;;  %3183 = vmatmul.mubr.f32.gmra.mrb[148].mxu1 %v15909_v49  ;;  %v15913_v19 = vld [vmem:[#allocation156_spill] sm:$0xff] }
 0x482   :  { %7598 = vmatprep.mubr.msk.f32.mxu1 %vm1509_vm1, %v15910_v33  ;;  %v11390_v60 = vpop.f32.mrb[44].mxu0  ;;  %v15915_v33 = vld [vmem:[#allocation158_spill] sm:$0xff] }
 0x483   :  { %v2102_v15 = vpop.f32.mrb[45].mxu0  ;;  %2364 = vmatmul.mubr.f32.gmra.mrb[150].mxu0 %v15913_v19  ;;  %v11404_v57 = vpop.permute.xlu0 %6903 }
 0x484   :  { %v2924_v31 = vpop.f32.mrb[44].mxu1  ;;  %7461 = vmatprep.mubr.msk.f32.mxu0 %vm1509_vm1, %v15914_v53  ;;  %15918 = vst [vmem:[#allocation84_spill] sm:$0xff] %v11404_v57 }
 0x485   :  { %v2926_v41 = vpop.f32.mrb[45].mxu1  ;;  %3615 = vperm.xlu1 %7843, %v2924_v31   ;;  %3188 = vmatmul.mubr.f32.gmra.mrb[150].mxu1 %v15913_v19  ;;  %v11400_v31 = vpop.f32.mrb[46].mxu0 }
 0x486   :  { %7599 = vmatprep.mubr.msk.f32.mxu1 %vm1509_vm1, %v15914_v53  ;;  %v11398_v41 = vpop.permute.xlu1 %6898  ;;  %v2107_v15 = vpop.f32.mrb[47].mxu0  ;;  %v15919_v53 = vld [vmem:[#allocation160_spill] sm:$0xff] }
 0x487   :  { %15916 = vst [vmem:[#allocation85_spill] sm:$0xff] %v11398_v41  ;;  %2369 = vmatmul.mubr.f32.gmra.mrb[152].mxu0 %v15915_v33  ;;  %v15920_v41 = vld [vmem:[#allocation163_spill] sm:$0xff] }
 0x488   :  { %v2929_v49 = vpop.f32.mrb[46].mxu1  ;;  %7462 = vmatprep.mubr.msk.f32.mxu0 %vm1509_vm1, %v15917_v32 }
 0x489   :  { %v2931_v58 = vpop.f32.mrb[47].mxu1  ;;  %3620 = vperm.xlu0 %7842, %v2929_v49   ;;  %3193 = vmatmul.mubr.f32.gmra.mrb[152].mxu1 %v15915_v33  ;;  %v11410_v49 = vpop.f32.mrb[48].mxu0 }
 0x48a   :  { %7600 = vmatprep.mubr.msk.f32.mxu1 %vm1509_vm1, %v15917_v32  ;;  %v2112_v29 = vpop.f32.mrb[49].mxu0  ;;  %v11415_v57 = vpop.permute.xlu1 %6908 }
 0x48b   :  { %2374 = vmatmul.mubr.f32.gmra.mrb[154].mxu0 %v15919_v53  ;;  %15921 = vst [vmem:[#allocation87_spill] sm:$0xff] %v11415_v57  ;;  %v11419_v33 = vpop.permute.xlu0 %6913 }
 0x48c   :  { %v2934_v19 = vpop.f32.mrb[48].mxu1  ;;  %7463 = vmatprep.mubr.msk.f32.mxu0 %vm1509_vm1, %v15920_v41  ;;  %15922 = vst [vmem:[#allocation86_spill] sm:$0xff] %v11419_v33  ;;  %v15927_v33 = vld [vmem:[#allocation167_spill] sm:$0xff] }
 0x48d   :  { %v2936_v58 = vpop.f32.mrb[49].mxu1  ;;  %3625 = vperm.xlu1 %7843, %v2934_v19   ;;  %3198 = vmatmul.mubr.f32.gmra.mrb[154].mxu1 %v15919_v53  ;;  %v15923_v19 = vld [vmem:[#allocation162_spill] sm:$0xff] }
 0x48e   :  { %7601 = vmatprep.mubr.msk.f32.mxu1 %vm1509_vm1, %v15920_v41  ;;  %v11422_v58 = vpop.f32.mrb[50].mxu0  ;;  %v15925_v41 = vld [vmem:[#allocation164_spill] sm:$0xff] }
 0x48f   :  { %v2117_v29 = vpop.f32.mrb[51].mxu0  ;;  %2379 = vmatmul.mubr.f32.gmra.mrb[156].mxu0 %v15923_v19  ;;  %v11436_v55 = vpop.permute.xlu0 %6923 }
 0x490   :  { %v2939_v15 = vpop.f32.mrb[50].mxu1  ;;  %7464 = vmatprep.mubr.msk.f32.mxu0 %vm1509_vm1, %v15924_v56  ;;  %15928 = vst [vmem:[#allocation88_spill] sm:$0xff] %v11436_v55 }
 0x491   :  { %v2941_v32 = vpop.f32.mrb[51].mxu1  ;;  %3630 = vperm.xlu0 %7842, %v2939_v15   ;;  %3203 = vmatmul.mubr.f32.gmra.mrb[156].mxu1 %v15923_v19  ;;  %v11432_v15 = vpop.f32.mrb[52].mxu0 }
 0x492   :  { %7602 = vmatprep.mubr.msk.f32.mxu1 %vm1509_vm1, %v15924_v56  ;;  %v11430_v32 = vpop.permute.xlu1 %6918  ;;  %v2122_v29 = vpop.f32.mrb[53].mxu0 }
 0x493   :  { %15926 = vst [vmem:[#allocation89_spill] sm:$0xff] %v11430_v32  ;;  %2384 = vmatmul.mubr.f32.gmra.mrb[158].mxu0 %v15925_v41  ;;  %v15930_v32 = vld [vmem:[#allocation169_spill] sm:$0xff] }
 0x494   :  { %v2944_v53 = vpop.f32.mrb[52].mxu1  ;;  %7465 = vmatprep.mubr.msk.f32.mxu0 %vm1509_vm1, %v15927_v33 }
 0x495   :  { %v2946_v57 = vpop.f32.mrb[53].mxu1  ;;  %3635 = vperm.xlu1 %7843, %v2944_v53   ;;  %3208 = vmatmul.mubr.f32.gmra.mrb[158].mxu1 %v15925_v41  ;;  %v11442_v53 = vpop.f32.mrb[54].mxu0 }
 0x496   :  { %7603 = vmatprep.mubr.msk.f32.mxu1 %vm1509_vm1, %v15927_v33  ;;  %v15929_v57 = vld [vmem:[#allocation166_spill] sm:$0xff]  ;;  %v2127_v23 = vpop.f32.mrb[55].mxu0  ;;  %v11447_v55 = vpop.permute.xlu1 %6928 }
 0x497   :  { %2389 = vmatmul.mubr.f32.gmra.mrb[160].mxu0 %v15929_v57  ;;  %15931 = vst [vmem:[#allocation91_spill] sm:$0xff] %v11447_v55  ;;  %v11451_v41 = vpop.permute.xlu0 %6933 }
 0x498   :  { %v2949_v19 = vpop.f32.mrb[54].mxu1  ;;  %7466 = vmatprep.mubr.msk.f32.mxu0 %vm1509_vm1, %v15930_v32  ;;  %15932 = vst [vmem:[#allocation90_spill] sm:$0xff] %v11451_v41  ;;  %v15937_v41 = vld [vmem:[#allocation173_spill] sm:$0xff] }
 0x499   :  { %v2951_v56 = vpop.f32.mrb[55].mxu1  ;;  %3640 = vperm.xlu0 %7842, %v2949_v19   ;;  %3213 = vmatmul.mubr.f32.gmra.mrb[160].mxu1 %v15929_v57  ;;  %v15933_v19 = vld [vmem:[#allocation168_spill] sm:$0xff] }
 0x49a   :  { %7604 = vmatprep.mubr.msk.f32.mxu1 %vm1509_vm1, %v15930_v32  ;;  %v11454_v56 = vpop.f32.mrb[56].mxu0  ;;  %v15935_v32 = vld [vmem:[#allocation170_spill] sm:$0xff] }
 0x49b   :  { %v2132_v23 = vpop.f32.mrb[57].mxu0  ;;  %2394 = vmatmul.mubr.f32.gmra.mrb[162].mxu0 %v15933_v19  ;;  %v11468_v61 = vpop.permute.xlu0 %6943 }
 0x49c   :  { %v2954_v29 = vpop.f32.mrb[56].mxu1  ;;  %7467 = vmatprep.mubr.msk.f32.mxu0 %vm1509_vm1, %v15934_v36  ;;  %15938 = vst [vmem:[#allocation92_spill] sm:$0xff] %v11468_v61 }
 0x49d   :  { %v2956_v33 = vpop.f32.mrb[57].mxu1  ;;  %3645 = vperm.xlu1 %7843, %v2954_v29   ;;  %3218 = vmatmul.mubr.f32.gmra.mrb[162].mxu1 %v15933_v19  ;;  %v11464_v29 = vpop.f32.mrb[58].mxu0 }
 0x49e   :  { %7605 = vmatprep.mubr.msk.f32.mxu1 %vm1509_vm1, %v15934_v36  ;;  %v11462_v33 = vpop.permute.xlu1 %6938  ;;  %v2137_v23 = vpop.f32.mrb[59].mxu0  ;;  %v15939_v36 = vld [vmem:[#allocation172_spill] sm:$0xff] }
 0x49f   :  { %15936 = vst [vmem:[#allocation93_spill] sm:$0xff] %v11462_v33  ;;  %2399 = vmatmul.mubr.f32.gmra.mrb[164].mxu0 %v15935_v32  ;;  %v15940_v33 = vld [vmem:[#allocation175_spill] sm:$0xff] }
 0x4a0   :  { %v2959_v57 = vpop.f32.mrb[58].mxu1  ;;  %7468 = vmatprep.mubr.msk.f32.mxu0 %vm1509_vm1, %v15937_v41 }
 0x4a1   :  { %v2961_v55 = vpop.f32.mrb[59].mxu1  ;;  %3650 = vperm.xlu0 %7842, %v2959_v57   ;;  %3223 = vmatmul.mubr.f32.gmra.mrb[164].mxu1 %v15935_v32  ;;  %v11474_v57 = vpop.f32.mrb[60].mxu0 }
 0x4a2   :  { %7606 = vmatprep.mubr.msk.f32.mxu1 %vm1509_vm1, %v15937_v41  ;;  %v2142_v62 = vpop.f32.mrb[61].mxu0  ;;  %v11479_v61 = vpop.permute.xlu1 %6948 }
 0x4a3   :  { %2404 = vmatmul.mubr.f32.gmra.mrb[166].mxu0 %v15939_v36  ;;  %15941 = vst [vmem:[#allocation95_spill] sm:$0xff] %v11479_v61  ;;  %v11483_v32 = vpop.permute.xlu0 %6953 }
 0x4a4   :  { %v2964_v19 = vpop.f32.mrb[60].mxu1  ;;  %7469 = vmatprep.mubr.msk.f32.mxu0 %vm1509_vm1, %v15940_v33  ;;  %15942 = vst [vmem:[#allocation94_spill] sm:$0xff] %v11483_v32  ;;  %v15947_v32 = vld [vmem:[#allocation179_spill] sm:$0xff] }
 0x4a5   :  { %v2966_v55 = vpop.f32.mrb[61].mxu1  ;;  %3655 = vperm.xlu1 %7843, %v2964_v19   ;;  %3228 = vmatmul.mubr.f32.gmra.mrb[166].mxu1 %v15939_v36  ;;  %v15943_v19 = vld [vmem:[#allocation174_spill] sm:$0xff] }
 0x4a6   :  { %7607 = vmatprep.mubr.msk.f32.mxu1 %vm1509_vm1, %v15940_v33  ;;  %v11486_v55 = vpop.f32.mrb[62].mxu0  ;;  %v15945_v33 = vld [vmem:[#allocation176_spill] sm:$0xff] }
 0x4a7   :  { %v2147_v62 = vpop.f32.mrb[63].mxu0  ;;  %2409 = vmatmul.mubr.f32.gmra.mrb[168].mxu0 %v15943_v19  ;;  %v11500_v52 = vpop.permute.xlu0 %6963 }
 0x4a8   :  { %v2969_v23 = vpop.f32.mrb[62].mxu1  ;;  %7470 = vmatprep.mubr.msk.f32.mxu0 %vm1509_vm1, %v15944_v20  ;;  %15948 = vst [vmem:[#allocation96_spill] sm:$0xff] %v11500_v52 }
 0x4a9   :  { %v2971_v41 = vpop.f32.mrb[63].mxu1  ;;  %3660 = vperm.xlu0 %7842, %v2969_v23   ;;  %3233 = vmatmul.mubr.f32.gmra.mrb[168].mxu1 %v15943_v19  ;;  %v11496_v23 = vpop.f32.mrb[64].mxu0 }
 0x4aa   :  { %7608 = vmatprep.mubr.msk.f32.mxu1 %vm1509_vm1, %v15944_v20  ;;  %v11494_v41 = vpop.permute.xlu1 %6958  ;;  %v2152_v62 = vpop.f32.mrb[65].mxu0 }
 0x4ab   :  { %15946 = vst [vmem:[#allocation97_spill] sm:$0xff] %v11494_v41  ;;  %2414 = vmatmul.mubr.f32.gmra.mrb[170].mxu0 %v15945_v33  ;;  %v15950_v41 = vld [vmem:[#allocation181_spill] sm:$0xff] }
 0x4ac   :  { %v2974_v36 = vpop.f32.mrb[64].mxu1  ;;  %7471 = vmatprep.mubr.msk.f32.mxu0 %vm1509_vm1, %v15947_v32 }
 0x4ad   :  { %v2976_v61 = vpop.f32.mrb[65].mxu1  ;;  %3665 = vperm.xlu1 %7843, %v2974_v36   ;;  %3238 = vmatmul.mubr.f32.gmra.mrb[170].mxu1 %v15945_v33  ;;  %v11506_v36 = vpop.f32.mrb[66].mxu0 }
 0x4ae   :  { %7609 = vmatprep.mubr.msk.f32.mxu1 %vm1509_vm1, %v15947_v32  ;;  %v15949_v61 = vld [vmem:[#allocation178_spill] sm:$0xff]  ;;  %v2157_v35 = vpop.f32.mrb[67].mxu0  ;;  %v11511_v52 = vpop.permute.xlu1 %6968 }
 0x4af   :  { %2419 = vmatmul.mubr.f32.gmra.mrb[172].mxu0 %v15949_v61  ;;  %15951 = vst [vmem:[#allocation99_spill] sm:$0xff] %v11511_v52  ;;  %v11517_v32 = vpop.permute.xlu0 %6973  ;;  %v15955_v52 = vld [vmem:[#allocation182_spill] sm:$0xff] }
 0x4b0   :  { %v2979_v19 = vpop.f32.mrb[66].mxu1  ;;  %7472 = vmatprep.mubr.msk.f32.mxu0 %vm1509_vm1, %v15950_v41  ;;  %15952 = vst [vmem:[#allocation98_spill] sm:$0xff] %v11517_v32 }
 0x4b1   :  { %3670 = vperm.xlu0 %7842, %v2979_v19   ;;  %v2981_v20 = vpop.f32.mrb[67].mxu1  ;;  %3243 = vmatmul.mubr.f32.gmra.mrb[172].mxu1 %v15949_v61  ;;  %v15953_v19 = vld [vmem:[#allocation180_spill] sm:$0xff] }
 0x4b2   :  { %7610 = vmatprep.mubr.msk.f32.mxu1 %vm1509_vm1, %v15950_v41  ;;  %v15954_v20 = vld [vmem:[#allocation183_spill] sm:$0xff]  ;;  %v11528_v30 = vpop.permute.xlu1 %6978  ;;  %v15957_v41 = vld [vmem:[#allocation185_spill] sm:$0xff] }
 0x4b3   :  { %2424 = vmatmul.mubr.f32.gmra.mrb[174].mxu0 %v15953_v19  ;;  %15956 = vst [vmem:[#allocation101_spill] sm:$0xff] %v11528_v30 }
 0x4b4   :  { %v11513_v62 = vpop.f32.mrb[68].mxu1  ;;  %7473 = vmatprep.mubr.msk.f32.mxu0 %vm1509_vm1, %v15954_v20 }
 0x4b5   :  { %v2986_v33 = vpop.f32.mrb[69].mxu1  ;;  %3248 = vmatmul.mubr.f32.gmra.mrb[174].mxu1 %v15953_v19 }
 0x4b6   :  { %7611 = vmatprep.mubr.msk.f32.mxu1 %vm1509_vm1, %v15954_v20  ;;  %v11532_v33 = vpop.permute.xlu0 %6983  ;;  %v15960_v20 = vld [vmem:[#allocation187_spill] sm:$0xff] }
 0x4b7   :  { %15958 = vst [vmem:[#allocation100_spill] sm:$0xff] %v11532_v33  ;;  %2429 = vmatmul.mubr.f32.gmra.mrb[176].mxu0 %v15955_v52 }
 0x4b8   :  { %v11523_v35 = vpop.f32.mrb[70].mxu1  ;;  %7474 = vmatprep.mubr.msk.f32.mxu0 %vm1509_vm1, %v15957_v41 }
 0x4b9   :  { %v2991_v61 = vpop.f32.mrb[71].mxu1  ;;  %3253 = vmatmul.mubr.f32.gmra.mrb[176].mxu1 %v15955_v52 }
 0x4ba   :  { %7612 = vmatprep.mubr.msk.f32.mxu1 %vm1509_vm1, %v15957_v41  ;;  %v11543_v61 = vpop.permute.xlu1 %6988  ;;  %v11549_v52 = vpop.permute.xlu0 %6993  ;;  %v15964_v41 = vld [vmem:[#allocation189_spill] sm:$0xff] }
 0x4bb   :  { %2434 = vmatmul.mubr.f32.gmra.mrb[178].mxu0 %v15959_v18  ;;  %15961 = vst [vmem:[#allocation103_spill] sm:$0xff] %v11543_v61  ;;  %15962 = vst [vmem:[#allocation102_spill] sm:$0xff] %v11549_v52 }
 0x4bc   :  { %v11535_v32 = vpop.f32.mrb[72].mxu1  ;;  %7475 = vmatprep.mubr.msk.f32.mxu0 %vm1509_vm1, %v15960_v20 }
 0x4bd   :  { %v2996_v19 = vpop.f32.mrb[73].mxu1  ;;  %3258 = vmatmul.mubr.f32.gmra.mrb[178].mxu1 %v15959_v18 }
 0x4be   :  { %7613 = vmatprep.mubr.msk.f32.mxu1 %vm1509_vm1, %v15960_v20  ;;  %v3511_v19 = vpop.permute.xlu1 %3510  ;;  %v3506_v18 = vpop.permute.xlu0 %3505  ;;  %v15966_v20 = vld [vmem:[#allocation191_spill] sm:$0xff] }
 0x4bf   :  { %2439 = vmatmul.mubr.f32.gmra.mrb[180].mxu0 %v15963_v3 }
 0x4c0   :  { %v11545_v30 = vpop.f32.mrb[74].mxu1  ;;  %7476 = vmatprep.mubr.msk.f32.mxu0 %vm1509_vm1, %v15964_v41 }
 0x4c1   :  { %v3001_v33 = vpop.f32.mrb[75].mxu1  ;;  %3263 = vmatmul.mubr.f32.gmra.mrb[180].mxu1 %v15963_v3  ;;  %v11567_v3 = vsub.f32 %v11154_v50, %v3506_v18  ;;  %v15970_v18 = vld [vmem:[#allocation192_spill] sm:$0xff] }
 0x4c2   :  { %7614 = vmatprep.mubr.msk.f32.mxu1 %vm1509_vm1, %v15964_v41  ;;  %v11563_v33 = vsub.f32 %v11166_v26, %v3511_v19 }
 0x4c3   :  { %2444 = vmatmul.mubr.f32.gmra.mrb[182].mxu0 %v15965_v7  ;;  %15967 = vst [vmem:[#allocation105_spill] sm:$0xff] %v11567_v3 }
 0x4c4   :  { %v11555_v27 = vpop.f32.mrb[76].mxu1  ;;  %7477 = vmatprep.mubr.msk.f32.mxu0 %vm1509_vm1, %v15966_v20  ;;  %v4332_v26 = vmul.f32 %v11563_v33, %v11563_v33 }
 0x4c5   :  { %v3006_v61 = vpop.f32.mrb[77].mxu1  ;;  %3268 = vmatmul.mubr.f32.gmra.mrb[182].mxu1 %v15965_v7  ;;  %v4331_v7 = vmul.f32 %v11567_v3, %v11567_v3  ;;  %v15972_v3 = vld [vmem:[#allocation194_spill] sm:$0xff] }
 0x4c6   :  { %7615 = vmatprep.mubr.msk.f32.mxu1 %vm1509_vm1, %v15966_v20  ;;  %v15968_v61 = vld [vmem:[#allocation190_spill] sm:$0xff]  ;;  %v15971_v20 = vld [vmem:[#allocation195_spill] sm:$0xff] }
 0x4c7   :  { %2449 = vmatmul.mubr.f32.gmra.mrb[184].mxu0 %v15968_v61 }
 0x4c8   :  { %v11569_v52 = vpop.f32.mrb[78].mxu1  ;;  %7478 = vmatprep.mubr.msk.f32.mxu0 %vm1509_vm1, %v15969_v17 }
 0x4c9   :  { %v3011_v41 = vpop.f32.mrb[79].mxu1  ;;  %3273 = vmatmul.mubr.f32.gmra.mrb[184].mxu1 %v15968_v61  ;;  %v4469_v61 = vsel %vm653_vm0, %v4331_v7, 0.0  ;;  %v15976_v7 = vld [vmem:[#allocation198_spill] sm:$0xff] }
 0x4ca   :  { %7616 = vmatprep.mubr.msk.f32.mxu1 %vm1509_vm1, %v15969_v17  ;;  %v4472_v41 = vsel %vm653_vm0, %v4332_v26, 0.0  ;;  %v15973_v17 = vld [vmem:[#allocation197_spill] sm:$0xff]  ;;  %v15974_v26 = vld [vmem:[#allocation196_spill] sm:$0xff] }
 0x4cb   :  { %2454 = vmatmul.mubr.f32.gmra.mrb[186].mxu0 %v15970_v18 }
 0x4cc   :  { %v11581_v50 = vpop.f32.mrb[80].mxu1  ;;  %7479 = vmatprep.mubr.msk.f32.mxu0 %vm1509_vm1, %v15971_v20 }
 0x4cd   :  { %v3016_v19 = vpop.f32.mrb[81].mxu1  ;;  %3278 = vmatmul.mubr.f32.gmra.mrb[186].mxu1 %v15970_v18  ;;  %v15977_v18 = vld [vmem:[#allocation201_spill] sm:$0xff] }
 0x4ce   :  { %7617 = vmatprep.mubr.msk.f32.mxu1 %vm1509_vm1, %v15971_v20  ;;  %v15975_v19 = vld [vmem:[#allocation199_spill] sm:$0xff] }
 0x4cf   :  { %2459 = vmatmul.mubr.f32.gmra.mrb[188].mxu0 %v15972_v3  ;;  %v15979_v20 = vld [vmem:[#allocation203_spill] sm:$0xff] }
 0x4d0   :  { %4473 = vadd.xlane.f32.xlu0 %v4472_v41  ;;  %7480 = vmatprep.mubr.msk.f32.mxu0 %vm1509_vm1, %v15973_v17  ;;  %v15980_v41 = vld [vmem:[#allocation202_spill] sm:$0xff] }
 0x4d1   :  { %4470 = vadd.xlane.f32.xlu1 %v4469_v61  ;;  %3283 = vmatmul.mubr.f32.gmra.mrb[188].mxu1 %v15972_v3  ;;  %v15978_v3 = vld [vmem:[#allocation200_spill] sm:$0xff]  ;;  %v15981_v61 = vld [vmem:[#allocation205_spill] sm:$0xff] }
 0x4d2   :  { %7618 = vmatprep.mubr.msk.f32.mxu1 %vm1509_vm1, %v15973_v17  ;;  %v11621_v17 = vpop.f32.mrb[68].mxu0 }
 0x4d3   :  { %2464 = vmatmul.mubr.f32.gmra.mrb[190].mxu0 %v15974_v26 }
 0x4d4   :  { %7481 = vmatprep.mubr.msk.f32.mxu0 %vm1509_vm1, %v15975_v19 }
 0x4d5   :  { %3288 = vmatmul.mubr.f32.gmra.mrb[190].mxu1 %v15974_v26  ;;  %v2162_v26 = vpop.f32.mrb[69].mxu0 }
 0x4d6   :  { %7619 = vmatprep.mubr.msk.f32.mxu1 %vm1509_vm1, %v15975_v19  ;;  %v11626_v19 = vpop.f32.mrb[70].mxu0  ;;  %v15988_v26 = vld [vmem:[#allocation210_spill] sm:$0xff] }
 0x4d7   :  { %2469 = vmatmul.mubr.f32.gmra.mrb[192].mxu0 %v15976_v7 }
 0x4d8   :  { %7482 = vmatprep.mubr.msk.f32.mxu0 %vm1509_vm1, %v15977_v18 }
 0x4d9   :  { %3293 = vmatmul.mubr.f32.gmra.mrb[192].mxu1 %v15976_v7  ;;  %v15982_v7 = vld [vmem:[#allocation204_spill] sm:$0xff] }
 0x4da   :  { %7620 = vmatprep.mubr.msk.f32.mxu1 %vm1509_vm1, %v15977_v18 }
 0x4db   :  { %2474 = vmatmul.mubr.f32.gmra.mrb[194].mxu0 %v15978_v3 }
 0x4dc   :  { %7483 = vmatprep.mubr.msk.f32.mxu0 %vm1509_vm1, %v15979_v20 }
 0x4dd   :  { %3298 = vmatmul.mubr.f32.gmra.mrb[194].mxu1 %v15978_v3  ;;  %v15983_v3 = vld [vmem:[#allocation207_spill] sm:$0xff] }
 0x4de   :  { %7621 = vmatprep.mubr.msk.f32.mxu1 %vm1509_vm1, %v15979_v20 }
 0x4df   :  { %2479 = vmatmul.mubr.f32.gmra.mrb[196].mxu0 %v15980_v41 }
 0x4e0   :  { %7484 = vmatprep.mubr.msk.f32.mxu0 %vm1509_vm1, %v15981_v61 }
 0x4e1   :  { %3303 = vmatmul.mubr.f32.gmra.mrb[196].mxu1 %v15980_v41  ;;  %v15984_v41 = vld [vmem:[#allocation206_spill] sm:$0xff] }
 0x4e2   :  { %3675 = vperm.xlu1 %7843, %v11513_v62   ;;  %7622 = vmatprep.mubr.msk.f32.mxu1 %vm1509_vm1, %v15981_v61  ;;  %v2167_v62 = vpop.f32.mrb[71].mxu0  ;;  %v15985_v61 = vld [vmem:[#allocation209_spill] sm:$0xff] }
 0x4e3   :  { %v11631_v18 = vpop.f32.mrb[72].mxu0  ;;  %2484 = vmatmul.mubr.f32.gmra.mrb[198].mxu0 %v15982_v7  ;;  %v11654_v62 = vpop.f32.mrb[82].mxu1 }
 0x4e4   :  { %v2172_v20 = vpop.f32.mrb[73].mxu0  ;;  %7485 = vmatprep.mubr.msk.f32.mxu0 %vm1509_vm1, %v15983_v3 }
 0x4e5   :  { %3308 = vmatmul.mubr.f32.gmra.mrb[198].mxu1 %v15982_v7  ;;  %v15989_v7 = vld [vmem:[#allocation213_spill] sm:$0xff]  ;;  %v15990_v20 = vld [vmem:[#allocation212_spill] sm:$0xff] }
 0x4e6   :  { %3685 = vperm.xlu1 %7843, %v11535_v32   ;;  %3680 = vperm.xlu0 %7842, %v11523_v35   ;;  %v15986_v32 = vld [vmem:[#allocation208_spill] sm:$0xff]  ;;  %v15987_v35 = vld [vmem:[#allocation211_spill] sm:$0xff] }
 0x4e7   :  { %7623 = vmatprep.mubr.msk.f32.mxu1 %vm1509_vm1, %v15983_v3  ;;  %2489 = vmatmul.mubr.f32.gmra.mrb[200].mxu0 %v15984_v41  ;;  %v3021_v3 = vpop.f32.mrb[83].mxu1 }
 0x4e8   :  { %7486 = vmatprep.mubr.msk.f32.mxu0 %vm1509_vm1, %v15985_v61  ;;  %v15994_v3 = vld [vmem:[#allocation216_spill] sm:$0xff] }
 0x4e9   :  { %3313 = vmatmul.mubr.f32.gmra.mrb[200].mxu1 %v15984_v41  ;;  %v11659_v41 = vpop.f32.mrb[84].mxu1 }
 0x4ea   :  { %7624 = vmatprep.mubr.msk.f32.mxu1 %vm1509_vm1, %v15985_v61  ;;  %v15991_v61 = vld [vmem:[#allocation215_spill] sm:$0xff] }
 0x4eb   :  { %2494 = vmatmul.mubr.f32.gmra.mrb[202].mxu0 %v15986_v32 }
 0x4ec   :  { %7487 = vmatprep.mubr.msk.f32.mxu0 %vm1509_vm1, %v15987_v35 }
 0x4ed   :  { %3318 = vmatmul.mubr.f32.gmra.mrb[202].mxu1 %v15986_v32  ;;  %v3026_v32 = vpop.f32.mrb[85].mxu1 }
 0x4ee   :  { %7625 = vmatprep.mubr.msk.f32.mxu1 %vm1509_vm1, %v15987_v35  ;;  %v3516_v35 = vpop.permute.xlu1 %3515  ;;  %v15995_v32 = vld [vmem:[#allocation219_spill] sm:$0xff] }
 0x4ef   :  { %2499 = vmatmul.mubr.f32.gmra.mrb[204].mxu0 %v15988_v26 }
 0x4f0   :  { %7488 = vmatprep.mubr.msk.f32.mxu0 %vm1509_vm1, %v15989_v7 }
 0x4f1   :  { %3323 = vmatmul.mubr.f32.gmra.mrb[204].mxu1 %v15988_v26  ;;  %v15992_v26 = vld [vmem:[#allocation214_spill] sm:$0xff] }
 0x4f2   :  { %7626 = vmatprep.mubr.msk.f32.mxu1 %vm1509_vm1, %v15989_v7  ;;  %v11671_v7 = vsub.f32 %v11176_v43, %v3516_v35  ;;  %v15997_v35 = vld [vmem:[#allocation218_spill] sm:$0xff] }
 0x4f3   :  { %2504 = vmatmul.mubr.f32.gmra.mrb[206].mxu0 %v15990_v20 }
 0x4f4   :  { %7489 = vmatprep.mubr.msk.f32.mxu0 %vm1509_vm1, %v15991_v61 }
 0x4f5   :  { %3328 = vmatmul.mubr.f32.gmra.mrb[206].mxu1 %v15990_v20  ;;  %v3521_v20 = vpop.permute.xlu0 %3520 }
 0x4f6   :  { %7627 = vmatprep.mubr.msk.f32.mxu1 %vm1509_vm1, %v15991_v61  ;;  %v4333_v61 = vmul.f32 %v11671_v7, %v11671_v7  ;;  %v11684_v43 = vsub.f32 %v11186_v38, %v3521_v20  ;;  %v16000_v38 = vld [vmem:[#allocation223_spill] sm:$0xff] }
 0x4f7   :  { %2509 = vmatmul.mubr.f32.gmra.mrb[208].mxu0 %v15992_v26 }
 0x4f8   :  { %7490 = vmatprep.mubr.msk.f32.mxu0 %vm1509_vm1, %v15993_v37  ;;  %15996 = vst [vmem:[#allocation104_spill] sm:$0xff] %v11684_v43 }
 0x4f9   :  { %3333 = vmatmul.mubr.f32.gmra.mrb[208].mxu1 %v15992_v26  ;;  %v4475_v26 = vsel %vm653_vm0, %v4333_v61, 0.0  ;;  %v16001_v61 = vld [vmem:[#allocation222_spill] sm:$0xff] }
 0x4fa   :  { %7628 = vmatprep.mubr.msk.f32.mxu1 %vm1509_vm1, %v15993_v37  ;;  %v15998_v37 = vld [vmem:[#allocation221_spill] sm:$0xff] }
 0x4fb   :  { %2514 = vmatmul.mubr.f32.gmra.mrb[210].mxu0 %v15994_v3 }
 0x4fc   :  { %7491 = vmatprep.mubr.msk.f32.mxu0 %vm1509_vm1, %v15995_v32 }
 0x4fd   :  { %3338 = vmatmul.mubr.f32.gmra.mrb[210].mxu1 %v15994_v3  ;;  %v4334_v3 = vmul.f32 %v11684_v43, %v11684_v43  ;;  %v16013_v43 = vld [vmem:[#allocation234_spill] sm:$0xff] }
 0x4fe   :  { %7629 = vmatprep.mubr.msk.f32.mxu1 %vm1509_vm1, %v15995_v32  ;;  %v15999_v32 = vld [vmem:[#allocation220_spill] sm:$0xff] }
 0x4ff   :  { %2519 = vmatmul.mubr.f32.gmra.mrb[212].mxu0 %v15997_v35  ;;  %v4478_v20 = vsel %vm653_vm0, %v4334_v3, 0.0  ;;  %v16005_v3 = vld [vmem:[#allocation226_spill] sm:$0xff] }
 0x500   :  { %7492 = vmatprep.mubr.msk.f32.mxu0 %vm1509_vm1, %v15998_v37 }
 0x501   :  { %3343 = vmatmul.mubr.f32.gmra.mrb[212].mxu1 %v15997_v35  ;;  %v16002_v35 = vld [vmem:[#allocation225_spill] sm:$0xff] }
 0x502   :  { %7630 = vmatprep.mubr.msk.f32.mxu1 %vm1509_vm1, %v15998_v37  ;;  %v16003_v37 = vld [vmem:[#allocation224_spill] sm:$0xff] }
 0x503   :  { %2524 = vmatmul.mubr.f32.gmra.mrb[214].mxu0 %v15999_v32 }
 0x504   :  { %7493 = vmatprep.mubr.msk.f32.mxu0 %vm1509_vm1, %v16000_v38 }
 0x505   :  { %4476 = vadd.xlane.f32.xlu0 %v4475_v26  ;;  %3348 = vmatmul.mubr.f32.gmra.mrb[214].mxu1 %v15999_v32  ;;  %v16004_v26 = vld [vmem:[#allocation227_spill] sm:$0xff]  ;;  %v16006_v32 = vld [vmem:[#allocation229_spill] sm:$0xff] }
 0x506   :  { %7631 = vmatprep.mubr.msk.f32.mxu1 %vm1509_vm1, %v16000_v38  ;;  %v16007_v38 = vld [vmem:[#allocation228_spill] sm:$0xff] }
 0x507   :  { %2529 = vmatmul.mubr.f32.gmra.mrb[216].mxu0 %v16001_v61 }
 0x508   :  { %7494 = vmatprep.mubr.msk.f32.mxu0 %vm1509_vm1, %v16002_v35 }
 0x509   :  { %3353 = vmatmul.mubr.f32.gmra.mrb[216].mxu1 %v16001_v61  ;;  %v16009_v61 = vld [vmem:[#allocation230_spill] sm:$0xff] }
 0x50a   :  { %4479 = vadd.xlane.f32.xlu1 %v4478_v20  ;;  %7632 = vmatprep.mubr.msk.f32.mxu1 %vm1509_vm1, %v16002_v35  ;;  %v16008_v20 = vld [vmem:[#allocation231_spill] sm:$0xff]  ;;  %v11727_v35 = vpop.f32.mrb[74].mxu0 }
 0x50b   :  { %2534 = vmatmul.mubr.f32.gmra.mrb[218].mxu0 %v16003_v37 }
 0x50c   :  { %7495 = vmatprep.mubr.msk.f32.mxu0 %vm1509_vm1, %v16004_v26 }
 0x50d   :  { %3358 = vmatmul.mubr.f32.gmra.mrb[218].mxu1 %v16003_v37  ;;  %v16010_v37 = vld [vmem:[#allocation233_spill] sm:$0xff] }
 0x50e   :  { %7633 = vmatprep.mubr.msk.f32.mxu1 %vm1509_vm1, %v16004_v26  ;;  %v2177_v26 = vpop.f32.mrb[75].mxu0 }
 0x50f   :  { %2539 = vmatmul.mubr.f32.gmra.mrb[220].mxu0 %v16005_v3  ;;  %v16017_v26 = vld [vmem:[#allocation238_spill] sm:$0xff] }
 0x510   :  { %7496 = vmatprep.mubr.msk.f32.mxu0 %vm1509_vm1, %v16006_v32 }
 0x511   :  { %3363 = vmatmul.mubr.f32.gmra.mrb[220].mxu1 %v16005_v3  ;;  %v11733_v3 = vpop.f32.mrb[76].mxu0 }
 0x512   :  { %7634 = vmatprep.mubr.msk.f32.mxu1 %vm1509_vm1, %v16006_v32  ;;  %v2182_v32 = vpop.f32.mrb[77].mxu0 }
 0x513   :  { %2544 = vmatmul.mubr.f32.gmra.mrb[222].mxu0 %v16007_v38 }
 0x514   :  { %7497 = vmatprep.mubr.msk.f32.mxu0 %vm1509_vm1, %v16008_v20 }
 0x515   :  { %3368 = vmatmul.mubr.f32.gmra.mrb[222].mxu1 %v16007_v38  ;;  %v16011_v38 = vld [vmem:[#allocation232_spill] sm:$0xff] }
 0x516   :  { %7635 = vmatprep.mubr.msk.f32.mxu1 %vm1509_vm1, %v16008_v20  ;;  %v16012_v20 = vld [vmem:[#allocation235_spill] sm:$0xff] }
 0x517   :  { %2549 = vmatmul.mubr.f32.gmra.mrb[224].mxu0 %v16009_v61 }
 0x518   :  { %7498 = vmatprep.mubr.msk.f32.mxu0 %vm1509_vm1, %v16010_v37 }
 0x519   :  { %3373 = vmatmul.mubr.f32.gmra.mrb[224].mxu1 %v16009_v61  ;;  %v16016_v61 = vld [vmem:[#allocation239_spill] sm:$0xff] }
 0x51a   :  { %7636 = vmatprep.mubr.msk.f32.mxu1 %vm1509_vm1, %v16010_v37  ;;  %v11754_v37 = vpop.f32.mrb[86].mxu1 }
 0x51b   :  { %3695 = vperm.xlu1 %7843, %v11555_v27   ;;  %3690 = vperm.xlu0 %7842, %v11545_v30   ;;  %v16014_v27 = vld [vmem:[#allocation237_spill] sm:$0xff]  ;;  %v16015_v30 = vld [vmem:[#allocation236_spill] sm:$0xff]  ;;  %v3031_v32 = vpop.f32.mrb[87].mxu1 }
 0x51c   :  { %2554 = vmatmul.mubr.f32.gmra.mrb[226].mxu0 %v16011_v38  ;;  %v16021_v32 = vld [vmem:[#allocation242_spill] sm:$0xff] }
 0x51d   :  { %3378 = vmatmul.mubr.f32.gmra.mrb[226].mxu1 %v16011_v38  ;;  %7499 = vmatprep.mubr.msk.f32.mxu0 %vm1509_vm1, %v16012_v20  ;;  %v16018_v38 = vld [vmem:[#allocation241_spill] sm:$0xff] }
 0x51e   :  { %7637 = vmatprep.mubr.msk.f32.mxu1 %vm1509_vm1, %v16012_v20 }
 0x520   :  { %2559 = vmatmul.mubr.f32.gmra.mrb[228].mxu0 %v16013_v43 }
 0x521   :  { %3383 = vmatmul.mubr.f32.gmra.mrb[228].mxu1 %v16013_v43  ;;  %7500 = vmatprep.mubr.msk.f32.mxu0 %vm1509_vm1, %v16014_v27  ;;  %v11761_v43 = vpop.f32.mrb[88].mxu1 }
 0x522   :  { %7638 = vmatprep.mubr.msk.f32.mxu1 %vm1509_vm1, %v16014_v27  ;;  %v3036_v20 = vpop.f32.mrb[89].mxu1  ;;  %v16019_v27 = vld [vmem:[#allocation240_spill] sm:$0xff] }
 0x523   :  { %v3531_v20 = vpop.permute.xlu0 %3530 }
 0x524   :  { %2564 = vmatmul.mubr.f32.gmra.mrb[230].mxu0 %v16015_v30 }
 0x525   :  { %3388 = vmatmul.mubr.f32.gmra.mrb[230].mxu1 %v16015_v30  ;;  %7501 = vmatprep.mubr.msk.f32.mxu0 %vm1509_vm1, %v16016_v61  ;;  %v3526_v30 = vpop.permute.xlu1 %3525 }
 0x526   :  { %7639 = vmatprep.mubr.msk.f32.mxu1 %vm1509_vm1, %v16016_v61  ;;  %v11771_v61 = vsub.f32 %v11198_v8, %v3526_v30  ;;  %v11785_v8 = vsub.f32 %v11208_v5, %v3531_v20  ;;  %v16026_v30 = vld [vmem:[#allocation246_spill] sm:$0xff]  ;;  %v16028_v5 = vld [vmem:[#allocation248_spill] sm:$0xff]  ;;  %v16029_v20 = vld [vmem:[#allocation251_spill] sm:$0xff] }
 0x528   :  { %2569 = vmatmul.mubr.f32.gmra.mrb[232].mxu0 %v16017_v26  ;;  %16024 = vst [vmem:[#allocation107_spill] sm:$0xff] %v11785_v8 }
 0x529   :  { %3393 = vmatmul.mubr.f32.gmra.mrb[232].mxu1 %v16017_v26  ;;  %7502 = vmatprep.mubr.msk.f32.mxu0 %vm1509_vm1, %v16018_v38  ;;  %v16022_v26 = vld [vmem:[#allocation245_spill] sm:$0xff] }
 0x52a   :  { %7640 = vmatprep.mubr.msk.f32.mxu1 %vm1509_vm1, %v16018_v38  ;;  %v4335_v38 = vmul.f32 %v11771_v61, %v11771_v61 }
 0x52c   :  { %2574 = vmatmul.mubr.f32.gmra.mrb[234].mxu0 %v16019_v27 }
 0x52d   :  { %3398 = vmatmul.mubr.f32.gmra.mrb[234].mxu1 %v16019_v27  ;;  %7503 = vmatprep.mubr.msk.f32.mxu0 %vm1509_vm1, %v16020_v25  ;;  %v16025_v27 = vld [vmem:[#allocation247_spill] sm:$0xff] }
 0x52e   :  { %7641 = vmatprep.mubr.msk.f32.mxu1 %vm1509_vm1, %v16020_v25  ;;  %v4481_v25 = vsel %vm653_vm0, %v4335_v38, 0.0  ;;  %v16030_v38 = vld [vmem:[#allocation250_spill] sm:$0xff] }
 0x530   :  { %2579 = vmatmul.mubr.f32.gmra.mrb[236].mxu0 %v16021_v32 }
 0x531   :  { %3403 = vmatmul.mubr.f32.gmra.mrb[236].mxu1 %v16021_v32  ;;  %7504 = vmatprep.mubr.msk.f32.mxu0 %vm1509_vm1, %v16022_v26  ;;  %v4336_v32 = vmul.f32 %v11785_v8, %v11785_v8  ;;  %v16046_v8 = vld [vmem:[#allocation266_spill] sm:$0xff] }
 0x532   :  { %7642 = vmatprep.mubr.msk.f32.mxu1 %vm1509_vm1, %v16022_v26  ;;  %v16027_v26 = vld [vmem:[#allocation249_spill] sm:$0xff] }
 0x534   :  { %2584 = vmatmul.mubr.f32.gmra.mrb[238].mxu0 %v16023_v10 }
 0x535   :  { %3408 = vmatmul.mubr.f32.gmra.mrb[238].mxu1 %v16023_v10  ;;  %7505 = vmatprep.mubr.msk.f32.mxu0 %vm1509_vm1, %v16025_v27  ;;  %v4484_v10 = vsel %vm653_vm0, %v4336_v32, 0.0  ;;  %v16034_v32 = vld [vmem:[#allocation254_spill] sm:$0xff] }
 0x536   :  { %7643 = vmatprep.mubr.msk.f32.mxu1 %vm1509_vm1, %v16025_v27  ;;  %v16031_v27 = vld [vmem:[#allocation253_spill] sm:$0xff] }
 0x538   :  { %2589 = vmatmul.mubr.f32.gmra.mrb[240].mxu0 %v16026_v30 }
 0x539   :  { %3413 = vmatmul.mubr.f32.gmra.mrb[240].mxu1 %v16026_v30  ;;  %7506 = vmatprep.mubr.msk.f32.mxu0 %vm1509_vm1, %v16027_v26  ;;  %v16033_v30 = vld [vmem:[#allocation255_spill] sm:$0xff] }
 0x53a   :  { %4482 = vadd.xlane.f32.xlu0 %v4481_v25  ;;  %7644 = vmatprep.mubr.msk.f32.mxu1 %vm1509_vm1, %v16027_v26  ;;  %v16032_v25 = vld [vmem:[#allocation252_spill] sm:$0xff]  ;;  %v16035_v26 = vld [vmem:[#allocation257_spill] sm:$0xff] }
 0x53c   :  { %2594 = vmatmul.mubr.f32.gmra.mrb[242].mxu0 %v16028_v5 }
 0x53d   :  { %3418 = vmatmul.mubr.f32.gmra.mrb[242].mxu1 %v16028_v5  ;;  %7507 = vmatprep.mubr.msk.f32.mxu0 %vm1509_vm1, %v16029_v20  ;;  %v16036_v5 = vld [vmem:[#allocation256_spill] sm:$0xff] }
 0x53e   :  { %7645 = vmatprep.mubr.msk.f32.mxu1 %vm1509_vm1, %v16029_v20  ;;  %v11829_v20 = vpop.f32.mrb[78].mxu0 }
 0x53f   :  { %4485 = vadd.xlane.f32.xlu1 %v4484_v10  ;;  %v16037_v10 = vld [vmem:[#allocation259_spill] sm:$0xff] }
 0x540   :  { %2599 = vmatmul.mubr.f32.gmra.mrb[244].mxu0 %v16030_v38 }
 0x541   :  { %3423 = vmatmul.mubr.f32.gmra.mrb[244].mxu1 %v16030_v38  ;;  %7508 = vmatprep.mubr.msk.f32.mxu0 %vm1509_vm1, %v16031_v27  ;;  %v2187_v38 = vpop.f32.mrb[79].mxu0 }
 0x542   :  { %7646 = vmatprep.mubr.msk.f32.mxu1 %vm1509_vm1, %v16031_v27  ;;  %v11833_v27 = vpop.f32.mrb[80].mxu0  ;;  %v11855_v38 = vpop.f32.mrb[90].mxu1 }
 0x544   :  { %2604 = vmatmul.mubr.f32.gmra.mrb[246].mxu0 %v16032_v25 }
 0x545   :  { %3428 = vmatmul.mubr.f32.gmra.mrb[246].mxu1 %v16032_v25  ;;  %7509 = vmatprep.mubr.msk.f32.mxu0 %vm1509_vm1, %v16033_v30  ;;  %v16038_v25 = vld [vmem:[#allocation258_spill] sm:$0xff] }
 0x546   :  { %7647 = vmatprep.mubr.msk.f32.mxu1 %vm1509_vm1, %v16033_v30  ;;  %v2192_v30 = vpop.f32.mrb[81].mxu0 }
 0x547   :  { %v3041_v30 = vpop.f32.mrb[91].mxu1 }
 0x548   :  { %2609 = vmatmul.mubr.f32.gmra.mrb[248].mxu0 %v16034_v32  ;;  %v16049_v30 = vld [vmem:[#allocation271_spill] sm:$0xff] }
 0x549   :  { %3433 = vmatmul.mubr.f32.gmra.mrb[248].mxu1 %v16034_v32  ;;  %7510 = vmatprep.mubr.msk.f32.mxu0 %vm1509_vm1, %v16035_v26  ;;  %v16039_v32 = vld [vmem:[#allocation261_spill] sm:$0xff] }
 0x54a   :  { %7648 = vmatprep.mubr.msk.f32.mxu1 %vm1509_vm1, %v16035_v26  ;;  %v16040_v26 = vld [vmem:[#allocation260_spill] sm:$0xff] }
 0x54c   :  { %2614 = vmatmul.mubr.f32.gmra.mrb[250].mxu0 %v16036_v5 }
 0x54d   :  { %3438 = vmatmul.mubr.f32.gmra.mrb[250].mxu1 %v16036_v5  ;;  %7511 = vmatprep.mubr.msk.f32.mxu0 %vm1509_vm1, %v16037_v10  ;;  %v16043_v5 = vld [vmem:[#allocation265_spill] sm:$0xff] }
 0x54e   :  { %7649 = vmatprep.mubr.msk.f32.mxu1 %vm1509_vm1, %v16037_v10  ;;  %v16044_v10 = vld [vmem:[#allocation264_spill] sm:$0xff] }
 0x550   :  { %3705 = vperm.xlu1 %7843, %v11581_v50   ;;  %3700 = vperm.xlu0 %7842, %v11569_v52   ;;  %v16041_v50 = vld [vmem:[#allocation263_spill] sm:$0xff]  ;;  %v16042_v52 = vld [vmem:[#allocation262_spill] sm:$0xff] }
 0x551   :  { %3443 = vmatmul.mubr.f32.gmra.mrb[252].mxu1 %v16038_v25  ;;  %2619 = vmatmul.mubr.f32.gmra.mrb[252].mxu0 %v16038_v25  ;;  %v16045_v25 = vld [vmem:[#allocation267_spill] sm:$0xff] }
 0x552   :  { %7650 = vmatprep.mubr.msk.f32.mxu1 %vm1509_vm1, %v16039_v32  ;;  %7512 = vmatprep.mubr.msk.f32.mxu0 %vm1509_vm1, %v16039_v32  ;;  %v11861_v32 = vpop.f32.mrb[92].mxu1 }
 0x555   :  { %3448 = vmatmul.mubr.f32.gmra.mrb[254].mxu1 %v16040_v26  ;;  %2624 = vmatmul.mubr.f32.gmra.mrb[254].mxu0 %v16040_v26  ;;  %v3046_v26 = vpop.f32.mrb[93].mxu1 }
 0x556   :  { %7651 = vmatprep.mubr.msk.f32.mxu1 %vm1509_vm1, %v16041_v50  ;;  %7513 = vmatprep.mubr.msk.f32.mxu0 %vm1509_vm1, %v16041_v50  ;;  %v16047_v50 = vld [vmem:[#allocation269_spill] sm:$0xff]  ;;  %v16050_v26 = vld [vmem:[#allocation270_spill] sm:$0xff] }
 0x559   :  { %3453 = vmatmul.mubr.f32.gmra.mrb[0].mxu1 %v16042_v52  ;;  %2629 = vmatmul.mubr.f32.gmra.mrb[0].mxu0 %v16042_v52  ;;  %v3536_v52 = vpop.permute.xlu1 %3535 }
 0x55a   :  { %7652 = vmatprep.mubr.msk.f32.mxu1 %vm1509_vm1, %v16043_v5  ;;  %7514 = vmatprep.mubr.msk.f32.mxu0 %vm1509_vm1, %v16043_v5  ;;  %v11872_v5 = vsub.f32 %v11218_v4, %v3536_v52  ;;  %v16054_v52 = vld [vmem:[#allocation275_spill] sm:$0xff] }
 0x55d   :  { %3458 = vmatmul.mubr.f32.gmra.mrb[2].mxu1 %v16044_v10  ;;  %2634 = vmatmul.mubr.f32.gmra.mrb[2].mxu0 %v16044_v10  ;;  %v3541_v10 = vpop.permute.xlu0 %3540 }
 0x55e   :  { %7653 = vmatprep.mubr.msk.f32.mxu1 %vm1509_vm1, %v16045_v25  ;;  %7515 = vmatprep.mubr.msk.f32.mxu0 %vm1509_vm1, %v16045_v25  ;;  %v4337_v25 = vmul.f32 %v11872_v5, %v11872_v5  ;;  %v11887_v4 = vsub.f32 %v11230_v51, %v3541_v10  ;;  %v16056_v51 = vld [vmem:[#allocation277_spill] sm:$0xff] }
 0x560   :  { %16052 = vst [vmem:[#allocation106_spill] sm:$0xff] %v11887_v4 }
 0x561   :  { %3463 = vmatmul.mubr.f32.gmra.mrb[4].mxu1 %v16046_v8  ;;  %2639 = vmatmul.mubr.f32.gmra.mrb[4].mxu0 %v16046_v8  ;;  %v16053_v8 = vld [vmem:[#allocation272_spill] sm:$0xff] }
 0x562   :  { %7654 = vmatprep.mubr.msk.f32.mxu1 %vm1509_vm1, %v16047_v50  ;;  %7516 = vmatprep.mubr.msk.f32.mxu0 %vm1509_vm1, %v16047_v50  ;;  %v4487_v50 = vsel %vm653_vm0, %v4337_v25, 0.0  ;;  %v16059_v25 = vld [vmem:[#allocation278_spill] sm:$0xff] }
 0x565   :  { %3468 = vmatmul.mubr.f32.gmra.mrb[6].mxu1 %v16048_v54  ;;  %2644 = vmatmul.mubr.f32.gmra.mrb[6].mxu0 %v16048_v54  ;;  %v4338_v54 = vmul.f32 %v11887_v4, %v11887_v4 }
 0x566   :  { %7655 = vmatprep.mubr.msk.f32.mxu1 %vm1509_vm1, %v16049_v30  ;;  %7517 = vmatprep.mubr.msk.f32.mxu0 %vm1509_vm1, %v16049_v30  ;;  %v16055_v30 = vld [vmem:[#allocation274_spill] sm:$0xff] }
 0x567   :  { %v4490_v10 = vsel %vm653_vm0, %v4338_v54, 0.0 }
 0x569   :  { %3473 = vmatmul.mubr.f32.gmra.mrb[8].mxu1 %v16050_v26  ;;  %2649 = vmatmul.mubr.f32.gmra.mrb[8].mxu0 %v16050_v26  ;;  %v16057_v26 = vld [vmem:[#allocation276_spill] sm:$0xff] }
 0x56a   :  { %7656 = vmatprep.mubr.msk.f32.mxu1 %vm1509_vm1, %v16051_v22  ;;  %7518 = vmatprep.mubr.msk.f32.mxu0 %vm1509_vm1, %v16051_v22  ;;  %v16058_v22 = vld [vmem:[#allocation279_spill] sm:$0xff] }
 0x56d   :  { %3478 = vmatmul.mubr.f32.gmra.mrb[10].mxu1 %v16053_v8  ;;  %2654 = vmatmul.mubr.f32.gmra.mrb[10].mxu0 %v16053_v8  ;;  %v16060_v8 = vld [vmem:[#allocation281_spill] sm:$0xff] }
 0x56e   :  { %7657 = vmatprep.mubr.msk.f32.mxu1 %vm1509_vm1, %v16054_v52  ;;  %7519 = vmatprep.mubr.msk.f32.mxu0 %vm1509_vm1, %v16054_v52  ;;  %v11922_v52 = vpop.f32.mrb[82].mxu0 }
 0x56f   :  { %4488 = vadd.xlane.f32.xlu0 %v4487_v50  ;;  %v16061_v50 = vld [vmem:[#allocation280_spill] sm:$0xff]  ;;  %v2197_v54 = vpop.f32.mrb[83].mxu0 }
 0x571   :  { %3483 = vmatmul.mubr.f32.gmra.mrb[12].mxu1 %v16055_v30  ;;  %2659 = vmatmul.mubr.f32.gmra.mrb[12].mxu0 %v16055_v30  ;;  %v11926_v30 = vpop.f32.mrb[84].mxu0 }
 0x572   :  { %7658 = vmatprep.mubr.msk.f32.mxu1 %vm1509_vm1, %v16056_v51  ;;  %7520 = vmatprep.mubr.msk.f32.mxu0 %vm1509_vm1, %v16056_v51  ;;  %v2202_v51 = vpop.f32.mrb[85].mxu0 }
 0x574   :  { %4491 = vadd.xlane.f32.xlu1 %v4490_v10  ;;  %v3049_v10 = vpop.f32.mrb[94].mxu1 }
 0x575   :  { %3488 = vmatmul.mubr.f32.gmra.mrb[14].mxu1 %v16057_v26  ;;  %2664 = vmatmul.mubr.f32.gmra.mrb[14].mxu0 %v16057_v26  ;;  %v3051_v26 = vpop.f32.mrb[95].mxu1 }
 0x576   :  { %7659 = vmatprep.mubr.msk.f32.mxu1 %vm1509_vm1, %v16058_v22  ;;  %7521 = vmatprep.mubr.msk.f32.mxu0 %vm1509_vm1, %v16058_v22  ;;  %v3054_v22 = vpop.f32.mrb[96].mxu1 }
 0x577   :  { %v3056_v4 = vpop.f32.mrb[97].mxu1 }
 0x578   :  { %v11940_v4 = vpop.f32.mrb[86].mxu0 }
 0x579   :  { %3493 = vmatmul.mubr.f32.gmra.mrb[16].mxu1 %v16059_v25  ;;  %2669 = vmatmul.mubr.f32.gmra.mrb[16].mxu0 %v16059_v25  ;;  %v3546_v25 = vpop.permute.xlu1 %3545 }
 0x57a   :  { %7660 = vmatprep.mubr.msk.f32.mxu1 %vm1509_vm1, %v16060_v8  ;;  %7522 = vmatprep.mubr.msk.f32.mxu0 %vm1509_vm1, %v16060_v8  ;;  %v11929_v39 = vsub.f32 %v11240_v24, %v3546_v25  ;;  %v3551_v8 = vpop.permute.xlu0 %3550  ;;  %v2207_v24 = vpop.f32.mrb[87].mxu0 }
 0x57b   :  { %v11944_v26 = vpop.f32.mrb[88].mxu0  ;;  %v3059_v25 = vpop.f32.mrb[98].mxu1 }
 0x57d   :  { %3498 = vmatmul.mubr.f32.gmra.mrb[18].mxu1 %v16061_v50  ;;  %2674 = vmatmul.mubr.f32.gmra.mrb[18].mxu0 %v16061_v50  ;;  %v4339_v50 = vmul.f32 %v11929_v39, %v11929_v39  ;;  %v3556_v34 = vpop.permute.xlu1 %3555 }
 0x581   :  { %v3566_v6 = vpop.permute.xlu1 %3565 }
 0x585   :  { %3715 = vperm.xlu1 %7843, %v11659_v41   ;;  %3710 = vperm.xlu0 %7842, %v11654_v62   ;;  %v11934_v41 = vsub.f32 %v11250_v9, %v3551_v8  ;;  %v4493_v62 = vsel %vm653_vm0, %v4339_v50, 0.0  ;;  %v2212_v9 = vpop.f32.mrb[89].mxu0  ;;  %v3061_v8 = vpop.f32.mrb[99].mxu1 }
 0x586   :  { %v3064_v50 = vpop.f32.mrb[100].mxu1  ;;  %v11958_v8 = vpop.f32.mrb[90].mxu0 }
 0x587   :  { %16062 = vst [vmem:[#allocation109_spill] sm:$0xff] %v11934_v41  ;;  %v4340_v54 = vmul.f32 %v11934_v41, %v11934_v41  ;;  %v11947_v41 = vsub.f32 %v11262_v28, %v3556_v34  ;;  %v2217_v34 = vpop.f32.mrb[91].mxu0 }
 0x588   :  { %v11962_v28 = vpop.f32.mrb[92].mxu0 }
 0x589   :  { %v4496_v51 = vsel %vm653_vm0, %v4340_v54, 0.0  ;;  %v3561_v54 = vpop.permute.xlu0 %3560 }
 0x5a4   :  { %4494 = vadd.xlane.f32.xlu0 %v4493_v62  ;;  %v3066_v62 = vpop.f32.mrb[101].mxu1 }
 0x5a5   :  { %v3069_v62 = vpop.f32.mrb[102].mxu1 }
 0x5a9   :  { %4497 = vadd.xlane.f32.xlu1 %v4496_v51  ;;  %v4341_v51 = vmul.f32 %v11947_v41, %v11947_v41 }
 0x5ba   :  { %3725 = vperm.xlu1 %7843, %v11761_v43   ;;  %3720 = vperm.xlu0 %7842, %v11754_v37   ;;  %v11952_v43 = vsub.f32 %v11272_v1, %v3561_v54  ;;  %v4499_v37 = vsel %vm653_vm0, %v4341_v51, 0.0  ;;  %v2222_v1 = vpop.f32.mrb[93].mxu0  ;;  %v3071_v54 = vpop.f32.mrb[103].mxu1 }
 0x5bb   :  { %v3074_v51 = vpop.f32.mrb[104].mxu1  ;;  %v11976_v54 = vpop.f32.mrb[94].mxu0 }
 0x5bc   :  { %16063 = vst [vmem:[#allocation108_spill] sm:$0xff] %v11952_v43  ;;  %v4342_v24 = vmul.f32 %v11952_v43, %v11952_v43  ;;  %v11965_v43 = vsub.f32 %v11282_v21, %v3566_v6  ;;  %v2227_v6 = vpop.f32.mrb[95].mxu0 }
 0x5bd   :  { %v11978_v21 = vpop.f32.mrb[96].mxu0 }
 0x5be   :  { %v4502_v9 = vsel %vm653_vm0, %v4342_v24, 0.0  ;;  %16064 = vst [vmem:[#allocation111_spill] sm:$0xff] %v11965_v43  ;;  %v3571_v24 = vpop.permute.xlu0 %3570 }
 0x5d9   :  { %4500 = vadd.xlane.f32.xlu0 %v4499_v37  ;;  %v3076_v37 = vpop.f32.mrb[105].mxu1 }
 0x5da   :  { %v2232_v37 = vpop.f32.mrb[97].mxu0  ;;  %v3079_v0 = vpop.f32.mrb[106].mxu1 }
 0x5de   :  { %4503 = vadd.xlane.f32.xlu1 %v4502_v9  ;;  %v4343_v9 = vmul.f32 %v11965_v43, %v11965_v43 }
 0x5ef   :  { %3735 = vperm.xlu1 %7843, %v11861_v32   ;;  %3730 = vperm.xlu0 %7842, %v11855_v38   ;;  %v11970_v32 = vsub.f32 %v11294_v63, %v3571_v24  ;;  %v4505_v38 = vsel %vm653_vm0, %v4343_v9, 0.0  ;;  %v3081_v63 = vpop.f32.mrb[107].mxu1  ;;  %v3576_v9 = vpop.permute.xlu1 %3575 }
 0x5f0   :  { %v3084_v24 = vpop.f32.mrb[108].mxu1 }
 0x5f1   :  { %16065 = vst [vmem:[#allocation110_spill] sm:$0xff] %v11970_v32  ;;  %v4344_v34 = vmul.f32 %v11970_v32, %v11970_v32  ;;  %v3086_v43 = vpop.f32.mrb[109].mxu1  ;;  %v3581_v32 = vpop.permute.xlu0 %3580 }
 0x5f2   :  { %v11992_v43 = vpop.f32.mrb[98].mxu0 }
 0x5f3   :  { %v4508_v1 = vsel %vm653_vm0, %v4344_v34, 0.0 }
 0x60e   :  { %4506 = vadd.xlane.f32.xlu0 %v4505_v38  ;;  %v11981_v38 = vsub.f32 %v11304_v2, %v3576_v9  ;;  %v2237_v2 = vpop.f32.mrb[99].mxu0  ;;  %v3089_v9 = vpop.f32.mrb[110].mxu1 }
 0x60f   :  { %v11994_v37 = vpop.f32.mrb[100].mxu0 }
 0x610   :  { %16066 = vst [vmem:[#allocation113_spill] sm:$0xff] %v11981_v38  ;;  %v4345_v34 = vmul.f32 %v11981_v38, %v11981_v38  ;;  %v2242_v63 = vpop.f32.mrb[101].mxu0 }
 0x613   :  { %4509 = vadd.xlane.f32.xlu1 %v4508_v1  ;;  %v11986_v1 = vsub.f32 %v11314_v14, %v3581_v32  ;;  %v3091_v14 = vpop.f32.mrb[111].mxu1 }
 0x614   :  { %v3094_v32 = vpop.f32.mrb[112].mxu1 }
 0x615   :  { %16067 = vst [vmem:[#allocation112_spill] sm:$0xff] %v11986_v1  ;;  %v3096_v38 = vpop.f32.mrb[113].mxu1 }
 0x616   :  { %v12008_v38 = vpop.f32.mrb[102].mxu0 }
 0x624   :  { %3745 = vperm.xlu1 %7843, %v3054_v22   ;;  %3740 = vperm.xlu0 %7842, %v3049_v10   ;;  %v4511_v10 = vsel %vm653_vm0, %v4345_v34, 0.0  ;;  %v4346_v22 = vmul.f32 %v11986_v1, %v11986_v1  ;;  %v3586_v34 = vpop.permute.xlu1 %3585  ;;  %v3591_v1 = vpop.permute.xlu0 %3590 }
 0x626   :  { %v4514_v6 = vsel %vm653_vm0, %v4346_v22, 0.0 }
 0x643   :  { %4512 = vadd.xlane.f32.xlu0 %v4511_v10  ;;  %v11997_v10 = vsub.f32 %v11326_v12, %v3586_v34  ;;  %v2247_v12 = vpop.f32.mrb[103].mxu0  ;;  %v3099_v34 = vpop.f32.mrb[114].mxu1 }
 0x644   :  { %v12010_v63 = vpop.f32.mrb[104].mxu0 }
 0x645   :  { %16068 = vst [vmem:[#allocation115_spill] sm:$0xff] %v11997_v10  ;;  %v4347_v22 = vmul.f32 %v11997_v10, %v11997_v10  ;;  %v2252_v14 = vpop.f32.mrb[105].mxu0 }
 0x648   :  { %4515 = vadd.xlane.f32.xlu1 %v4514_v6  ;;  %v12002_v6 = vsub.f32 %v11336_v48, %v3591_v1  ;;  %v3101_v48 = vpop.f32.mrb[115].mxu1 }
 0x649   :  { %v3104_v1 = vpop.f32.mrb[116].mxu1 }
 0x64a   :  { %16069 = vst [vmem:[#allocation114_spill] sm:$0xff] %v12002_v6  ;;  %v3106_v10 = vpop.f32.mrb[117].mxu1 }
 0x64b   :  { %v12024_v10 = vpop.f32.mrb[106].mxu0 }
 0x659   :  { %3755 = vperm.xlu1 %7843, %v3064_v50   ;;  %3750 = vperm.xlu0 %7842, %v3059_v25   ;;  %v4517_v25 = vsel %vm653_vm0, %v4347_v22, 0.0  ;;  %v4348_v50 = vmul.f32 %v12002_v6, %v12002_v6  ;;  %v3596_v22 = vpop.permute.xlu1 %3595  ;;  %v3601_v6 = vpop.permute.xlu0 %3600 }
 0x65b   :  { %v4520_v2 = vsel %vm653_vm0, %v4348_v50, 0.0 }
 0x678   :  { %4518 = vadd.xlane.f32.xlu0 %v4517_v25  ;;  %v12013_v25 = vsub.f32 %v11346_v47, %v3596_v22  ;;  %v2257_v47 = vpop.f32.mrb[107].mxu0  ;;  %v3109_v22 = vpop.f32.mrb[118].mxu1 }
 0x679   :  { %v12026_v14 = vpop.f32.mrb[108].mxu0 }
 0x67a   :  { %16070 = vst [vmem:[#allocation117_spill] sm:$0xff] %v12013_v25  ;;  %v4349_v50 = vmul.f32 %v12013_v25, %v12013_v25  ;;  %v2262_v48 = vpop.f32.mrb[109].mxu0 }
 0x67d   :  { %4521 = vadd.xlane.f32.xlu1 %v4520_v2  ;;  %v12018_v2 = vsub.f32 %v11358_v11, %v3601_v6  ;;  %v3111_v11 = vpop.f32.mrb[119].mxu1 }
 0x67e   :  { %v3114_v6 = vpop.f32.mrb[120].mxu1 }
 0x67f   :  { %16071 = vst [vmem:[#allocation116_spill] sm:$0xff] %v12018_v2  ;;  %v3116_v25 = vpop.f32.mrb[121].mxu1 }
 0x680   :  { %v12040_v25 = vpop.f32.mrb[110].mxu0 }
 0x68e   :  { %3765 = vperm.xlu1 %7843, %v3074_v51   ;;  %3760 = vperm.xlu0 %7842, %v3069_v62   ;;  %v4523_v62 = vsel %vm653_vm0, %v4349_v50, 0.0  ;;  %v4350_v51 = vmul.f32 %v12018_v2, %v12018_v2  ;;  %v3606_v50 = vpop.permute.xlu1 %3605  ;;  %v3611_v2 = vpop.permute.xlu0 %3610 }
 0x690   :  { %v4526_v12 = vsel %vm653_vm0, %v4350_v51, 0.0 }
 0x6ad   :  { %4524 = vadd.xlane.f32.xlu0 %v4523_v62  ;;  %v12029_v62 = vsub.f32 %v11368_v40, %v3606_v50  ;;  %v2267_v40 = vpop.f32.mrb[111].mxu0  ;;  %v3119_v50 = vpop.f32.mrb[122].mxu1 }
 0x6ae   :  { %v12042_v48 = vpop.f32.mrb[112].mxu0 }
 0x6af   :  { %16072 = vst [vmem:[#allocation119_spill] sm:$0xff] %v12029_v62  ;;  %v4351_v51 = vmul.f32 %v12029_v62, %v12029_v62  ;;  %v2272_v11 = vpop.f32.mrb[113].mxu0 }
 0x6b2   :  { %4527 = vadd.xlane.f32.xlu1 %v4526_v12  ;;  %v12034_v12 = vsub.f32 %v11378_v59, %v3611_v2  ;;  %v3121_v59 = vpop.f32.mrb[123].mxu1 }
 0x6b3   :  { %v3124_v2 = vpop.f32.mrb[124].mxu1 }
 0x6b4   :  { %16073 = vst [vmem:[#allocation118_spill] sm:$0xff] %v12034_v12  ;;  %v3126_v62 = vpop.f32.mrb[125].mxu1 }
 0x6b5   :  { %v12056_v62 = vpop.f32.mrb[114].mxu0 }
 0x6c3   :  { %3775 = vperm.xlu1 %7843, %v3084_v24   ;;  %3770 = vperm.xlu0 %7842, %v3079_v0   ;;  %v4529_v0 = vsel %vm653_vm0, %v4351_v51, 0.0  ;;  %v4352_v24 = vmul.f32 %v12034_v12, %v12034_v12  ;;  %v3616_v51 = vpop.permute.xlu1 %3615  ;;  %v3621_v12 = vpop.permute.xlu0 %3620 }
 0x6c5   :  { %v4532_v47 = vsel %vm653_vm0, %v4352_v24, 0.0 }
 0x6e2   :  { %4530 = vadd.xlane.f32.xlu0 %v4529_v0  ;;  %v12045_v0 = vsub.f32 %v11390_v60, %v3616_v51  ;;  %v2277_v60 = vpop.f32.mrb[115].mxu0  ;;  %v3129_v51 = vpop.f32.mrb[126].mxu1 }
 0x6e3   :  { %v12058_v11 = vpop.f32.mrb[116].mxu0 }
 0x6e4   :  { %16074 = vst [vmem:[#allocation121_spill] sm:$0xff] %v12045_v0  ;;  %v4353_v24 = vmul.f32 %v12045_v0, %v12045_v0  ;;  %v2282_v59 = vpop.f32.mrb[117].mxu0 }
 0x6e7   :  { %4533 = vadd.xlane.f32.xlu1 %v4532_v47  ;;  %v12050_v47 = vsub.f32 %v11400_v31, %v3621_v12  ;;  %v3131_v31 = vpop.f32.mrb[127].mxu1 }
 0x6e8   :  { %v3134_v12 = vpop.f32.mrb[128].mxu1 }
 0x6e9   :  { %16075 = vst [vmem:[#allocation120_spill] sm:$0xff] %v12050_v47  ;;  %v3136_v0 = vpop.f32.mrb[129].mxu1 }
 0x6ea   :  { %v12072_v0 = vpop.f32.mrb[118].mxu0 }
 0x6f8   :  { %3785 = vperm.xlu1 %7843, %v3094_v32   ;;  %3780 = vperm.xlu0 %7842, %v3089_v9   ;;  %v4535_v9 = vsel %vm653_vm0, %v4353_v24, 0.0  ;;  %v4354_v32 = vmul.f32 %v12050_v47, %v12050_v47  ;;  %v3626_v24 = vpop.permute.xlu1 %3625  ;;  %v3631_v47 = vpop.permute.xlu0 %3630 }
 0x6fa   :  { %v4538_v40 = vsel %vm653_vm0, %v4354_v32, 0.0 }
 0x717   :  { %4536 = vadd.xlane.f32.xlu0 %v4535_v9  ;;  %v12061_v9 = vsub.f32 %v11410_v49, %v3626_v24  ;;  %v2287_v49 = vpop.f32.mrb[119].mxu0  ;;  %v3139_v24 = vpop.f32.mrb[130].mxu1 }
 0x718   :  { %v12074_v59 = vpop.f32.mrb[120].mxu0 }
 0x719   :  { %16076 = vst [vmem:[#allocation123_spill] sm:$0xff] %v12061_v9  ;;  %v4355_v32 = vmul.f32 %v12061_v9, %v12061_v9  ;;  %v2292_v31 = vpop.f32.mrb[121].mxu0 }
 0x71c   :  { %4539 = vadd.xlane.f32.xlu1 %v4538_v40  ;;  %v12066_v40 = vsub.f32 %v11422_v58, %v3631_v47  ;;  %v3141_v58 = vpop.f32.mrb[131].mxu1 }
 0x71d   :  { %v3144_v47 = vpop.f32.mrb[132].mxu1 }
 0x71e   :  { %16077 = vst [vmem:[#allocation122_spill] sm:$0xff] %v12066_v40  ;;  %v3146_v9 = vpop.f32.mrb[133].mxu1 }
 0x71f   :  { %v12088_v9 = vpop.f32.mrb[122].mxu0 }
 0x72d   :  { %3795 = vperm.xlu1 %7843, %v3104_v1   ;;  %3790 = vperm.xlu0 %7842, %v3099_v34   ;;  %v4541_v34 = vsel %vm653_vm0, %v4355_v32, 0.0  ;;  %v4356_v1 = vmul.f32 %v12066_v40, %v12066_v40  ;;  %v3636_v32 = vpop.permute.xlu1 %3635  ;;  %v3641_v40 = vpop.permute.xlu0 %3640 }
 0x72f   :  { %v4544_v60 = vsel %vm653_vm0, %v4356_v1, 0.0 }
 0x74c   :  { %4542 = vadd.xlane.f32.xlu0 %v4541_v34  ;;  %v12077_v34 = vsub.f32 %v11432_v15, %v3636_v32  ;;  %v2297_v15 = vpop.f32.mrb[123].mxu0  ;;  %v3149_v32 = vpop.f32.mrb[134].mxu1 }
 0x74d   :  { %v12090_v31 = vpop.f32.mrb[124].mxu0 }
 0x74e   :  { %16078 = vst [vmem:[#allocation125_spill] sm:$0xff] %v12077_v34  ;;  %v4357_v1 = vmul.f32 %v12077_v34, %v12077_v34  ;;  %v2302_v58 = vpop.f32.mrb[125].mxu0 }
 0x751   :  { %4545 = vadd.xlane.f32.xlu1 %v4544_v60  ;;  %v12082_v60 = vsub.f32 %v11442_v53, %v3641_v40  ;;  %v3151_v53 = vpop.f32.mrb[135].mxu1 }
 0x752   :  { %v3154_v40 = vpop.f32.mrb[136].mxu1 }
 0x753   :  { %16079 = vst [vmem:[#allocation124_spill] sm:$0xff] %v12082_v60  ;;  %v3156_v34 = vpop.f32.mrb[137].mxu1 }
 0x754   :  { %v12104_v34 = vpop.f32.mrb[126].mxu0 }
 0x762   :  { %3805 = vperm.xlu1 %7843, %v3114_v6   ;;  %3800 = vperm.xlu0 %7842, %v3109_v22   ;;  %v4547_v22 = vsel %vm653_vm0, %v4357_v1, 0.0  ;;  %v4358_v6 = vmul.f32 %v12082_v60, %v12082_v60  ;;  %v3646_v1 = vpop.permute.xlu1 %3645  ;;  %v3651_v60 = vpop.permute.xlu0 %3650 }
 0x764   :  { %v4550_v49 = vsel %vm653_vm0, %v4358_v6, 0.0 }
 0x781   :  { %4548 = vadd.xlane.f32.xlu0 %v4547_v22  ;;  %v12093_v22 = vsub.f32 %v11454_v56, %v3646_v1  ;;  %v2307_v56 = vpop.f32.mrb[127].mxu0  ;;  %v3159_v1 = vpop.f32.mrb[138].mxu1 }
 0x782   :  { %v12106_v58 = vpop.f32.mrb[128].mxu0 }
 0x783   :  { %16080 = vst [vmem:[#allocation127_spill] sm:$0xff] %v12093_v22  ;;  %v4359_v6 = vmul.f32 %v12093_v22, %v12093_v22  ;;  %v2312_v53 = vpop.f32.mrb[129].mxu0 }
 0x786   :  { %4551 = vadd.xlane.f32.xlu1 %v4550_v49  ;;  %v12098_v49 = vsub.f32 %v11464_v29, %v3651_v60  ;;  %v3161_v29 = vpop.f32.mrb[139].mxu1 }
 0x787   :  { %v3164_v60 = vpop.f32.mrb[140].mxu1 }
 0x788   :  { %16081 = vst [vmem:[#allocation126_spill] sm:$0xff] %v12098_v49  ;;  %v3166_v22 = vpop.f32.mrb[141].mxu1 }
 0x789   :  { %v12120_v22 = vpop.f32.mrb[130].mxu0 }
 0x78a   :  { %16084 = vst [vmem:[#allocation131_spill] sm:$0xff] %v12120_v22 }
 0x797   :  { %3815 = vperm.xlu1 %7843, %v3124_v2   ;;  %3810 = vperm.xlu0 %7842, %v3119_v50   ;;  %v4553_v50 = vsel %vm653_vm0, %v4359_v6, 0.0  ;;  %v4360_v2 = vmul.f32 %v12098_v49, %v12098_v49  ;;  %v3656_v6 = vpop.permute.xlu1 %3655  ;;  %v3661_v49 = vpop.permute.xlu0 %3660 }
 0x799   :  { %v4556_v15 = vsel %vm653_vm0, %v4360_v2, 0.0 }
 0x7b6   :  { %4554 = vadd.xlane.f32.xlu0 %v4553_v50  ;;  %v12109_v50 = vsub.f32 %v11474_v57, %v3656_v6  ;;  %v2317_v57 = vpop.f32.mrb[131].mxu0  ;;  %v3169_v6 = vpop.f32.mrb[142].mxu1 }
 0x7b7   :  { %v12122_v53 = vpop.f32.mrb[132].mxu0 }
 0x7b8   :  { %16082 = vst [vmem:[#allocation129_spill] sm:$0xff] %v12109_v50  ;;  %v4361_v2 = vmul.f32 %v12109_v50, %v12109_v50  ;;  %16085 = vst [vmem:[#allocation130_spill] sm:$0xff] %v12122_v53  ;;  %v2322_v29 = vpop.f32.mrb[133].mxu0 }
 0x7bb   :  { %4557 = vadd.xlane.f32.xlu1 %v4556_v15  ;;  %v12114_v15 = vsub.f32 %v11486_v55, %v3661_v49  ;;  %v3171_v55 = vpop.f32.mrb[143].mxu1 }
 0x7bc   :  { %v3174_v49 = vpop.f32.mrb[144].mxu1 }
 0x7bd   :  { %16083 = vst [vmem:[#allocation128_spill] sm:$0xff] %v12114_v15  ;;  %v3176_v50 = vpop.f32.mrb[145].mxu1 }
 0x7be   :  { %v12136_v50 = vpop.f32.mrb[134].mxu0 }
 0x7bf   :  { %16088 = vst [vmem:[#allocation135_spill] sm:$0xff] %v12136_v50 }
 0x7cc   :  { %3825 = vperm.xlu1 %7843, %v3134_v12   ;;  %3820 = vperm.xlu0 %7842, %v3129_v51   ;;  %v4559_v51 = vsel %vm653_vm0, %v4361_v2, 0.0  ;;  %v4362_v12 = vmul.f32 %v12114_v15, %v12114_v15  ;;  %v3666_v2 = vpop.permute.xlu1 %3665  ;;  %v3671_v15 = vpop.permute.xlu0 %3670 }
 0x7ce   :  { %v4562_v56 = vsel %vm653_vm0, %v4362_v12, 0.0 }
 0x7eb   :  { %4560 = vadd.xlane.f32.xlu0 %v4559_v51  ;;  %v12125_v51 = vsub.f32 %v11496_v23, %v3666_v2  ;;  %v2327_v23 = vpop.f32.mrb[135].mxu0  ;;  %v12140_v2 = vpop.xlane.xlu1 %4470 }
 0x7ec   :  { %v12138_v29 = vpop.f32.mrb[136].mxu0  ;;  %16090 = vst [vmem:[#allocation137_spill] sm:$0xff] %v12140_v2 }
 0x7ed   :  { %16086 = vst [vmem:[#allocation133_spill] sm:$0xff] %v12125_v51  ;;  %v4363_v12 = vmul.f32 %v12125_v51, %v12125_v51  ;;  %16089 = vst [vmem:[#allocation134_spill] sm:$0xff] %v12138_v29  ;;  %v2332_v55 = vpop.f32.mrb[137].mxu0  ;;  %v4474_v51 = vpop.xlane.xlu0 %4473 }
 0x7f0   :  { %4563 = vadd.xlane.f32.xlu1 %v4562_v56  ;;  %v12130_v56 = vsub.f32 %v11506_v36, %v3671_v15  ;;  %v12142_v36 = vpop.f32.mrb[146].mxu1 }
 0x7f1   :  { %v3181_v15 = vpop.f32.mrb[147].mxu1 }
 0x7f2   :  { %16087 = vst [vmem:[#allocation132_spill] sm:$0xff] %v12130_v56 }
 0x801   :  { %3835 = vperm.xlu1 %7843, %v3144_v47   ;;  %3830 = vperm.xlu0 %7842, %v3139_v24   ;;  %v4565_v24 = vsel %vm653_vm0, %v4363_v12, 0.0  ;;  %v4364_v47 = vmul.f32 %v12130_v56, %v12130_v56  ;;  %v12144_v12 = vpop.f32.mrb[148].mxu1  ;;  %v3676_v56 = vpop.permute.xlu1 %3675 }
 0x803   :  { %v4568_v57 = vsel %vm653_vm0, %v4364_v47, 0.0  ;;  %v12147_v47 = vsub.f32 %v11621_v17, %v3676_v56 }
 0x805   :  { %16091 = vst [vmem:[#allocation136_spill] sm:$0xff] %v12147_v47 }
 0x820   :  { %4566 = vadd.xlane.f32.xlu0 %v4565_v24  ;;  %v3186_v24 = vpop.f32.mrb[149].mxu1 }
 0x821   :  { %v12158_v24 = vpop.f32.mrb[138].mxu0 }
 0x822   :  { %16093 = vst [vmem:[#allocation138_spill] sm:$0xff] %v12158_v24  ;;  %v2337_v17 = vpop.f32.mrb[139].mxu0 }
 0x823   :  { %v12160_v56 = vpop.f32.mrb[140].mxu0 }
 0x824   :  { %16094 = vst [vmem:[#allocation141_spill] sm:$0xff] %v12160_v56  ;;  %v2342_v2 = vpop.f32.mrb[141].mxu0 }
 0x825   :  { %4569 = vadd.xlane.f32.xlu1 %v4568_v57  ;;  %v3681_v57 = vpop.permute.xlu0 %3680 }
 0x836   :  { %3845 = vperm.xlu1 %7843, %v3154_v40   ;;  %3840 = vperm.xlu0 %7842, %v3149_v32   ;;  %v4365_v32 = vmul.f32 %v12147_v47, %v12147_v47  ;;  %v12152_v40 = vsub.f32 %v11626_v19, %v3681_v57  ;;  %v12162_v47 = vpop.f32.mrb[150].mxu1  ;;  %v3686_v19 = vpop.permute.xlu1 %3685 }
 0x837   :  { %v3191_v57 = vpop.f32.mrb[151].mxu1 }
 0x838   :  { %16092 = vst [vmem:[#allocation139_spill] sm:$0xff] %v12152_v40  ;;  %v4571_v23 = vsel %vm653_vm0, %v4365_v32, 0.0  ;;  %v4366_v55 = vmul.f32 %v12152_v40, %v12152_v40  ;;  %v12164_v32 = vpop.xlane.xlu0 %4476  ;;  %v12178_v17 = vpop.f32.mrb[152].mxu1 }
 0x839   :  { %v12182_v57 = vpop.f32.mrb[142].mxu0 }
 0x83a   :  { %v4574_v15 = vsel %vm653_vm0, %v4366_v55, 0.0  ;;  %16098 = vst [vmem:[#allocation145_spill] sm:$0xff] %v12182_v57 }
 0x83c   :  { %v3691_v40 = vpop.permute.xlu0 %3690 }
 0x855   :  { %4572 = vadd.xlane.f32.xlu0 %v4571_v23  ;;  %v12167_v23 = vsub.f32 %v11631_v18, %v3686_v19  ;;  %v3196_v18 = vpop.f32.mrb[153].mxu1  ;;  %v12180_v19 = vpop.xlane.xlu1 %4479 }
 0x856   :  { %16097 = vst [vmem:[#allocation142_spill] sm:$0xff] %v12180_v19  ;;  %v12197_v19 = vpop.f32.mrb[154].mxu1 }
 0x857   :  { %16095 = vst [vmem:[#allocation140_spill] sm:$0xff] %v12167_v23  ;;  %v4367_v55 = vmul.f32 %v12167_v23, %v12167_v23 }
 0x859   :  { %v3696_v23 = vpop.permute.xlu1 %3695 }
 0x85a   :  { %4575 = vadd.xlane.f32.xlu1 %v4574_v15  ;;  %v12195_v18 = vsub.f32 %v11733_v3, %v3696_v23  ;;  %v4884_v23 = vmul.f32 0.020408163, %v4474_v51 }
 0x85c   :  { %16102 = vst [vmem:[#allocation149_spill] sm:$0xff] %v12195_v18 }
 0x86b   :  { %3855 = vperm.xlu1 %7843, %v3164_v60   ;;  %3850 = vperm.xlu0 %7842, %v3159_v1   ;;  %v12172_v60 = vsub.f32 %v11727_v35, %v3691_v40  ;;  %v4577_v1 = vsel %vm653_vm0, %v4367_v55, 0.0  ;;  %v2347_v35 = vpop.f32.mrb[143].mxu0 }
 0x86c   :  { %v12184_v40 = vpop.f32.mrb[144].mxu0 }
 0x86d   :  { %16096 = vst [vmem:[#allocation143_spill] sm:$0xff] %v12172_v60  ;;  %v4368_v2 = vmul.f32 %v12172_v60, %v12172_v60  ;;  %16099 = vst [vmem:[#allocation144_spill] sm:$0xff] %v12184_v40  ;;  %v2352_v55 = vpop.f32.mrb[145].mxu0 }
 0x86e   :  { %v4369_v55 = vmul.f32 %v12195_v18, %v12195_v18  ;;  %v12222_v50 = vpop.f32.mrb[146].mxu0 }
 0x86f   :  { %v4580_v15 = vsel %vm653_vm0, %v4368_v2, 0.0  ;;  %v12190_v2 = vpop.xlane.xlu0 %4482  ;;  %16107 = vst [vmem:[#allocation152_spill] sm:$0xff] %v12222_v50  ;;  %v2357_v51 = vpop.f32.mrb[147].mxu0 }
 0x870   :  { %v4583_v57 = vsel %vm653_vm0, %v4369_v55, 0.0 }
 0x88a   :  { %4578 = vadd.xlane.f32.xlu0 %v4577_v1  ;;  %v12186_v1 = vpop.xlane.xlu1 %4485 }
 0x88b   :  { %16100 = vst [vmem:[#allocation147_spill] sm:$0xff] %v12186_v1 }
 0x88e   :  { %v3706_v60 = vpop.permute.xlu1 %3705 }
 0x88f   :  { %4581 = vadd.xlane.f32.xlu1 %v4580_v15 }
 0x892   :  { %v12188_v24 = vpop.xlane.xlu1 %4491 }
 0x893   :  { %16101 = vst [vmem:[#allocation146_spill] sm:$0xff] %v12188_v24 }
 0x896   :  { %v12192_v15 = vpop.permute.xlu1 %3715 }
 0x89a   :  { %v12199_v35 = vpop.xlane.xlu1 %4497 }
 0x89b   :  { %16103 = vst [vmem:[#allocation148_spill] sm:$0xff] %v12199_v35  ;;  %v5160_v35 = vadd.f32 0.001, %v4884_v23  ;;  %v12228_v23 = vpop.f32.mrb[148].mxu0 }
 0x89c   :  { %16109 = vst [vmem:[#allocation154_spill] sm:$0xff] %v12228_v23 }
 0x89d   :  { %7866 = vrsqrt.f32 %v5160_v35  ;;  %v8142_v35 = vld [vmem:[%s14963_s2 + $0x8] sm:$0xff] }
 0x89e   :  { %v12206_v24 = vpop.permute.xlu1 %3725 }
 0x8a0   :  { %3865 = vperm.xlu1 %7843, %v3174_v49   ;;  %3860 = vperm.xlu0 %7842, %v3169_v6   ;;  %v3201_v49 = vpop.f32.mrb[155].mxu1  ;;  %v3701_v6 = vpop.permute.xlu0 %3700 }
 0x8a1   :  { %v12204_v1 = vsub.f32 %v11829_v20, %v3701_v6  ;;  %v12214_v56 = vpop.f32.mrb[156].mxu1 }
 0x8a2   :  { %v12211_v40 = vpop.xlane.xlu1 %4503  ;;  %v3206_v20 = vpop.f32.mrb[157].mxu1 }
 0x8a3   :  { %16104 = vst [vmem:[#allocation151_spill] sm:$0xff] %v12204_v1  ;;  %v4370_v3 = vmul.f32 %v12204_v1, %v12204_v1  ;;  %16105 = vst [vmem:[#allocation150_spill] sm:$0xff] %v12211_v40  ;;  %v2362_v20 = vpop.f32.mrb[149].mxu0  ;;  %v12248_v50 = vpop.f32.mrb[158].mxu1 }
 0x8a4   :  { %v12244_v51 = vpop.xlane.xlu0 %4488 }
 0x8a5   :  { %v4586_v49 = vsel %vm653_vm0, %v4370_v3, 0.0 }
 0x8a6   :  { %v12216_v18 = vpop.permute.xlu1 %3735 }
 0x8aa   :  { %v12218_v6 = vpop.xlane.xlu1 %4509 }
 0x8ab   :  { %16106 = vst [vmem:[#allocation153_spill] sm:$0xff] %v12218_v6 }
 0x8ae   :  { %v12220_v55 = vpop.permute.xlu1 %3745 }
 0x8b2   :  { %v12226_v3 = vpop.xlane.xlu1 %4515 }
 0x8b3   :  { %16108 = vst [vmem:[#allocation155_spill] sm:$0xff] %v12226_v3 }
 0x8b6   :  { %v12233_v1 = vpop.permute.xlu1 %3755 }
 0x8ba   :  { %v12235_v6 = vpop.xlane.xlu1 %4521 }
 0x8bb   :  { %16110 = vst [vmem:[#allocation157_spill] sm:$0xff] %v12235_v6 }
 0x8be   :  { %v12237_v40 = vpop.permute.xlu1 %3765 }
 0x8bf   :  { %4584 = vadd.xlane.f32.xlu0 %v4583_v57  ;;  %v7867_v57 = vpop.eup %7866 }
 0x8c4   :  { %4587 = vadd.xlane.f32.xlu1 %v4586_v49  ;;  %v5436_v49 = vmul.f32 %v8142_v35, %v7867_v57  ;;  %v3211_v35 = vpop.f32.mrb[159].mxu1 }
 0x8d5   :  { %3875 = vperm.xlu1 %7843, %v12144_v12   ;;  %3870 = vperm.xlu0 %7842, %v12142_v36   ;;  %v12239_v12 = vpop.xlane.xlu1 %4527  ;;  %v12242_v36 = vsub.f32 %v11833_v27, %v3706_v60  ;;  %v4885_v27 = vmul.f32 0.020408163, %v12164_v32 }
 0x8d6   :  { %16111 = vst [vmem:[#allocation156_spill] sm:$0xff] %v12239_v12 }
 0x8d7   :  { %16112 = vst [vmem:[#allocation159_spill] sm:$0xff] %v12242_v36  ;;  %v4371_v3 = vmul.f32 %v12242_v36, %v12242_v36  ;;  %v5161_v23 = vadd.f32 0.001, %v4885_v27 }
 0x8d9   :  { %5580 = vperm.xlu1 %7843, %v5436_v49   ;;  %v12250_v57 = vpop.permute.xlu1 %3775  ;;  %v3711_v49 = vpop.permute.xlu0 %3710  ;;  %v4589_v20 = vsel %vm653_vm0, %v4371_v3, 0.0  ;;  %7868 = vrsqrt.f32 %v5161_v23 }
 0x8da   :  { %v12254_v6 = vsub.f32 %v11922_v52, %v3711_v49  ;;  %v12266_v3 = vpop.f32.mrb[160].mxu1 }
 0x8db   :  { %v3216_v49 = vpop.f32.mrb[161].mxu1 }
 0x8dc   :  { %16113 = vst [vmem:[#allocation158_spill] sm:$0xff] %v12254_v6  ;;  %v4372_v60 = vmul.f32 %v12254_v6, %v12254_v6 }
 0x8dd   :  { %v12256_v12 = vpop.xlane.xlu1 %4533 }
 0x8de   :  { %16114 = vst [vmem:[#allocation161_spill] sm:$0xff] %v12256_v12  ;;  %v4592_v29 = vsel %vm653_vm0, %v4372_v60, 0.0 }
 0x8e1   :  { %v12261_v36 = vpop.permute.xlu1 %3785 }
 0x8e3   :  { %v7869_v6 = vpop.eup %7868 }
 0x8e5   :  { %v12264_v35 = vpop.xlane.xlu1 %4539 }
 0x8e6   :  { %16115 = vst [vmem:[#allocation160_spill] sm:$0xff] %v12264_v35 }
 0x8e9   :  { %v12268_v52 = vpop.permute.xlu1 %3795 }
 0x8ed   :  { %v12272_v12 = vpop.xlane.xlu1 %4545 }
 0x8ee   :  { %16117 = vst [vmem:[#allocation162_spill] sm:$0xff] %v12272_v12 }
 0x8f1   :  { %v12278_v60 = vpop.permute.xlu1 %3805 }
 0x8f4   :  { %4590 = vadd.xlane.f32.xlu0 %v4589_v20  ;;  %v12270_v20 = vpop.f32.mrb[150].mxu0 }
 0x8f5   :  { %16116 = vst [vmem:[#allocation163_spill] sm:$0xff] %v12270_v20  ;;  %v2367_v32 = vpop.f32.mrb[151].mxu0  ;;  %v12280_v23 = vpop.xlane.xlu1 %4551 }
 0x8f6   :  { %16118 = vst [vmem:[#allocation165_spill] sm:$0xff] %v12280_v23  ;;  %v12283_v49 = vpop.f32.mrb[152].mxu0  ;;  %v12285_v32 = vpop.f32.mrb[162].mxu1 }
 0x8f7   :  { %16119 = vst [vmem:[#allocation164_spill] sm:$0xff] %v12283_v49  ;;  %v3221_v12 = vpop.f32.mrb[163].mxu1  ;;  %v2372_v35 = vpop.f32.mrb[153].mxu0 }
 0x8f9   :  { %v12287_v20 = vpop.permute.xlu1 %3815 }
 0x8fd   :  { %4593 = vadd.xlane.f32.xlu1 %v4592_v29  ;;  %v8143_v29 = vld [vmem:[%s14963_s2 + $0x10] sm:$0xff] }
 0x8fe   :  { %v5437_v27 = vmul.f32 %v8143_v29, %v7869_v6  ;;  %v12293_v6 = vsub.f32 %v11926_v30, %v12192_v15  ;;  %v4887_v30 = vmul.f32 0.020408163, %v12190_v2 }
 0x900   :  { %16121 = vst [vmem:[#allocation166_spill] sm:$0xff] %v12293_v6 }
 0x90a   :  { %3880 = vperm.xlu0 %7842, %v12162_v47   ;;  %v12289_v47 = vpop.xlane.xlu1 %4557 }
 0x90b   :  { %16120 = vst [vmem:[#allocation167_spill] sm:$0xff] %v12289_v47 }
 0x90e   :  { %5585 = vperm.xlu1 %7843, %v5437_v27   ;;  %v12295_v29 = vpop.permute.xlu1 %3825  ;;  %v4373_v27 = vmul.f32 %v12293_v6, %v12293_v6  ;;  %v5163_v6 = vadd.f32 0.001, %v4887_v30 }
 0x910   :  { %v4595_v12 = vsel %vm653_vm0, %v4373_v27, 0.0  ;;  %7870 = vrsqrt.f32 %v5163_v6 }
 0x912   :  { %3885 = vperm.xlu1 %7843, %v12178_v17   ;;  %v12299_v17 = vpop.xlane.xlu0 %4494  ;;  %v12301_v23 = vpop.xlane.xlu1 %4563 }
 0x913   :  { %16122 = vst [vmem:[#allocation169_spill] sm:$0xff] %v12301_v23  ;;  %v12321_v23 = vpop.f32.mrb[154].mxu0 }
 0x914   :  { %16127 = vst [vmem:[#allocation172_spill] sm:$0xff] %v12321_v23  ;;  %v2377_v2 = vpop.f32.mrb[155].mxu0  ;;  %v12342_v23 = vsub.f32 %v11944_v26, %v12206_v24 }
 0x916   :  { %v3721_v35 = vpop.permute.xlu0 %3720  ;;  %v12307_v47 = vpop.permute.xlu1 %3835 }
 0x917   :  { %v12305_v49 = vsub.f32 %v11940_v4, %v3721_v35  ;;  %16124 = vst [vmem:[#allocation171_spill] sm:$0xff] %v12307_v47 }
 0x919   :  { %16123 = vst [vmem:[#allocation168_spill] sm:$0xff] %v12305_v49  ;;  %v4374_v15 = vmul.f32 %v12305_v49, %v12305_v49 }
 0x91a   :  { %v12312_v22 = vpop.xlane.xlu1 %4569  ;;  %v7871_v49 = vpop.eup %7870 }
 0x91b   :  { %16125 = vst [vmem:[#allocation170_spill] sm:$0xff] %v12312_v22  ;;  %v4598_v53 = vsel %vm653_vm0, %v4374_v15, 0.0  ;;  %v12355_v26 = vpop.xlane.xlu0 %4500 }
 0x91e   :  { %v12315_v27 = vpop.permute.xlu1 %3845 }
 0x91f   :  { %v3731_v24 = vpop.permute.xlu0 %3730 }
 0x922   :  { %v12319_v4 = vpop.xlane.xlu1 %4575 }
 0x923   :  { %16126 = vst [vmem:[#allocation173_spill] sm:$0xff] %v12319_v4 }
 0x926   :  { %v12324_v47 = vpop.permute.xlu1 %3855 }
 0x929   :  { %4596 = vadd.xlane.f32.xlu0 %v4595_v12  ;;  %v12317_v12 = vpop.f32.mrb[164].mxu1 }
 0x92a   :  { %v3226_v35 = vpop.f32.mrb[165].mxu1  ;;  %v12329_v30 = vpop.xlane.xlu1 %4581 }
 0x92b   :  { %16128 = vst [vmem:[#allocation175_spill] sm:$0xff] %v12329_v30  ;;  %v12334_v35 = vpop.f32.mrb[156].mxu0  ;;  %v12336_v2 = vpop.f32.mrb[166].mxu1 }
 0x92c   :  { %16129 = vst [vmem:[#allocation174_spill] sm:$0xff] %v12334_v35  ;;  %v3231_v4 = vpop.f32.mrb[167].mxu1 }
 0x92d   :  { %v12358_v4 = vsub.f32 %v11958_v8, %v3731_v24 }
 0x92e   :  { %v12332_v15 = vpop.permute.xlu1 %3865 }
 0x92f   :  { %16131 = vst [vmem:[#allocation176_spill] sm:$0xff] %v12358_v4 }
 0x936   :  { %4599 = vadd.xlane.f32.xlu1 %v4598_v53  ;;  %v8144_v53 = vld [vmem:[%s14963_s2 + $0x20] sm:$0xff] }
 0x937   :  { %v5439_v6 = vmul.f32 %v8144_v53, %v7871_v49 }
 0x93f   :  { %3890 = vperm.xlu0 %7842, %v12197_v19   ;;  %v2382_v19 = vpop.f32.mrb[157].mxu0 }
 0x940   :  { %v4889_v19 = vmul.f32 0.020408163, %v12244_v51  ;;  %v8145_v51 = vld [vmem:[%s14963_s2 + $0x30] sm:$0xff] }
 0x947   :  { %5595 = vperm.xlu1 %7843, %v5439_v6  }
 0x94b   :  { %3895 = vperm.xlu1 %7843, %v12214_v56   ;;  %v4375_v56 = vmul.f32 %v12342_v23, %v12342_v23 }
 0x94d   :  { %v4601_v35 = vsel %vm653_vm0, %v4375_v56, 0.0  ;;  %v12364_v56 = vpop.f32.mrb[158].mxu0 }
 0x951   :  { %v12338_v22 = vpop.xlane.xlu1 %4587 }
 0x952   :  { %16130 = vst [vmem:[#allocation177_spill] sm:$0xff] %v12338_v22 }
 0x955   :  { %v12344_v49 = vpop.permute.xlu1 %3875 }
 0x959   :  { %v5581_v53 = vpop.permute.xlu1 %5580 }
 0x95a   :  { %v6264_v6 = vmul.f32 %v5581_v53, %v11563_v33  ;;  %v4376_v33 = vmul.f32 %v12358_v4, %v12358_v4 }
 0x95c   :  { %v7092_v30 = vadd.f32 %v10594_v13, %v6264_v6  ;;  %v5165_v13 = vadd.f32 0.001, %v4889_v19  ;;  %v4604_v53 = vsel %vm653_vm0, %v4376_v33, 0.0 }
 0x95e   :  { %7230 = vst.msk [vmem:[%s14965_s4 + $0x8] sm:$0xff] %vm653_vm0, %v7092_v30  ;;  %4602 = vadd.xlane.f32.xlu0 %v4601_v35  ;;  %7872 = vrsqrt.f32 %v5165_v13  ;;  %v2387_v30 = vpop.f32.mrb[159].mxu0  ;;  %v12367_v35 = vpop.f32.mrb[168].mxu1 }
 0x95f   :  { %v3236_v6 = vpop.f32.mrb[169].mxu1  ;;  %v12373_v19 = vpop.f32.mrb[160].mxu0 }
 0x960   :  { %v12375_v33 = vpop.f32.mrb[170].mxu1  ;;  %v2392_v13 = vpop.f32.mrb[161].mxu0 }
 0x961   :  { %v4891_v13 = vmul.f32 0.020408163, %v12299_v17  ;;  %v8146_v17 = vld [vmem:[%s14963_s2 + $0x40] sm:$0xff] }
 0x968   :  { %v7873_v8 = vpop.eup %7872 }
 0x969   :  { %v5441_v24 = vmul.f32 %v8145_v51, %v7873_v8 }
 0x96f   :  { %4605 = vadd.xlane.f32.xlu1 %v4604_v53  ;;  %v3241_v53 = vpop.f32.mrb[171].mxu1 }
 0x974   :  { %3900 = vperm.xlu0 %7842, %v12248_v50   ;;  %v12379_v50 = vsub.f32 %v11962_v28, %v12216_v18  ;;  %v12392_v28 = vpop.xlane.xlu0 %4506 }
 0x976   :  { %v4377_v4 = vmul.f32 %v12379_v50, %v12379_v50 }
 0x978   :  { %v4607_v51 = vsel %vm653_vm0, %v4377_v4, 0.0  ;;  %v3741_v18 = vpop.permute.xlu0 %3740  ;;  %v5167_v4 = vadd.f32 0.001, %v4891_v13 }
 0x97a   :  { %7874 = vrsqrt.f32 %v5167_v4 }
 0x980   :  { %5605 = vperm.xlu1 %7843, %v5441_v24   ;;  %v12395_v24 = vsub.f32 %v11976_v54, %v3741_v18 }
 0x982   :  { %16133 = vst [vmem:[#allocation178_spill] sm:$0xff] %v12395_v24 }
 0x984   :  { %3905 = vperm.xlu1 %7843, %v12266_v3   ;;  %v7875_v54 = vpop.eup %7874 }
 0x98a   :  { %v12381_v30 = vpop.xlane.xlu1 %4593 }
 0x98b   :  { %16132 = vst [vmem:[#allocation179_spill] sm:$0xff] %v12381_v30  ;;  %v16165_v30 = vld [vmem:[#allocation296_spill] sm:$0xff] }
 0x98e   :  { %v5586_v6 = vpop.permute.xlu1 %5585 }
 0x98f   :  { %v6265_v8 = vmul.f32 %v5586_v6, %v11671_v7  ;;  %v4378_v7 = vmul.f32 %v12395_v24, %v12395_v24 }
 0x991   :  { %v7093_v3 = vadd.f32 %v10590_v16, %v6265_v8  ;;  %v12400_v16 = vpop.f32.mrb[162].mxu0  ;;  %v4610_v6 = vsel %vm653_vm0, %v4378_v7, 0.0  ;;  %v12404_v8 = vpop.f32.mrb[172].mxu1 }
 0x992   :  { %v2397_v53 = vpop.f32.mrb[163].mxu0  ;;  %v12410_v18 = vpop.permute.xlu1 %3885 }
 0x993   :  { %7231 = vst.msk [vmem:[%s14965_s4 + $0x10] sm:$0xff] %vm653_vm0, %v7093_v3  ;;  %4608 = vadd.xlane.f32.xlu0 %v4607_v51  ;;  %v3246_v3 = vpop.f32.mrb[173].mxu1  ;;  %v5443_v51 = vmul.f32 %v8146_v17, %v7875_v54  ;;  %v12412_v13 = vpop.f32.mrb[164].mxu0 }
 0x994   :  { %v12418_v7 = vpop.f32.mrb[174].mxu1  ;;  %v2402_v4 = vpop.f32.mrb[165].mxu0 }
 0x995   :  { %v3251_v53 = vpop.f32.mrb[175].mxu1 }
 0x996   :  { %v12436_v53 = vpop.f32.mrb[166].mxu0 }
 0x997   :  { %v2407_v24 = vpop.f32.mrb[167].mxu0 }
 0x998   :  { %v12450_v24 = vsub.f32 %v11994_v37, %v12233_v1 }
 0x9a8   :  { %4611 = vadd.xlane.f32.xlu1 %v4610_v6 }
 0x9a9   :  { %3910 = vperm.xlu0 %7842, %v12285_v32   ;;  %v12416_v32 = vsub.f32 %v11978_v21, %v12220_v55  ;;  %v12431_v21 = vpop.xlane.xlu0 %4512 }
 0x9ab   :  { %v4379_v3 = vmul.f32 %v12416_v32, %v12416_v32 }
 0x9ad   :  { %v3751_v55 = vpop.permute.xlu0 %3750 }
 0x9ae   :  { %v12434_v4 = vsub.f32 %v11992_v43, %v3751_v55  ;;  %v12455_v55 = vpop.f32.mrb[168].mxu0 }
 0x9b0   :  { %16135 = vst [vmem:[#allocation180_spill] sm:$0xff] %v12434_v4 }
 0x9b9   :  { %5615 = vperm.xlu1 %7843, %v5443_v51  }
 0x9bd   :  { %3915 = vperm.xlu1 %7843, %v12317_v12   ;;  %v4613_v12 = vsel %vm653_vm0, %v4379_v3, 0.0  ;;  %v4893_v3 = vmul.f32 0.020408163, %v12355_v26 }
 0x9c3   :  { %v12420_v6 = vpop.xlane.xlu1 %4599 }
 0x9c4   :  { %16134 = vst [vmem:[#allocation181_spill] sm:$0xff] %v12420_v6  ;;  %v16160_v6 = vld [vmem:[#allocation282_spill] sm:$0xff] }
 0x9c7   :  { %v5596_v54 = vpop.permute.xlu1 %5595 }
 0x9c8   :  { %v6267_v17 = vmul.f32 %v5596_v54, %v11771_v61  ;;  %4614 = vadd.xlane.f32.xlu0 %v4613_v12  ;;  %v4380_v61 = vmul.f32 %v12434_v4, %v12434_v4  ;;  %v12443_v12 = vpop.f32.mrb[176].mxu1 }
 0x9ca   :  { %v7095_v51 = vadd.f32 %v10616_v44, %v6267_v17  ;;  %v5169_v44 = vadd.f32 0.001, %v4893_v3  ;;  %v4616_v54 = vsel %vm653_vm0, %v4380_v61, 0.0  ;;  %v3256_v17 = vpop.f32.mrb[177].mxu1  ;;  %v4381_v61 = vmul.f32 %v12450_v24, %v12450_v24 }
 0x9cb   :  { %v12457_v3 = vpop.f32.mrb[178].mxu1 }
 0x9cc   :  { %7233 = vst.msk [vmem:[%s14965_s4 + $0x20] sm:$0xff] %vm653_vm0, %v7095_v51  ;;  %7876 = vrsqrt.f32 %v5169_v44  ;;  %v8147_v51 = vld [vmem:[%s14963_s2 + $0x50] sm:$0xff]  ;;  %v2412_v44 = vpop.f32.mrb[169].mxu0 }
 0x9cd   :  { %v12472_v44 = vpop.f32.mrb[170].mxu0 }
 0x9d6   :  { %v7877_v43 = vpop.eup %7876 }
 0x9d7   :  { %v5445_v26 = vmul.f32 %v8147_v51, %v7877_v43  ;;  %v4619_v43 = vsel %vm653_vm0, %v4381_v61, 0.0 }
 0x9de   :  { %3920 = vperm.xlu0 %7842, %v12336_v2   ;;  %v12452_v2 = vpop.permute.xlu1 %3895 }
 0x9e1   :  { %4617 = vadd.xlane.f32.xlu1 %v4616_v54  ;;  %v3261_v54 = vpop.f32.mrb[179].mxu1 }
 0x9e2   :  { %v2417_v54 = vpop.f32.mrb[171].mxu0 }
 0x9f2   :  { %5625 = vperm.xlu1 %7843, %v5445_v26  }
 0x9f6   :  { %3925 = vperm.xlu1 %7843, %v12367_v35   ;;  %v12470_v35 = vpop.xlane.xlu0 %4518 }
 0x9fa   :  { %v3761_v26 = vpop.permute.xlu0 %3760 }
 0x9fb   :  { %v12475_v4 = vsub.f32 %v12008_v38, %v3761_v26  ;;  %v12486_v38 = vsub.f32 %v12010_v63, %v12237_v40 }
 0x9fc   :  { %v12461_v17 = vpop.xlane.xlu1 %4605 }
 0x9fd   :  { %16136 = vst [vmem:[#allocation183_spill] sm:$0xff] %v12461_v17  ;;  %4620 = vadd.xlane.f32.xlu0 %v4619_v43  ;;  %16137 = vst [vmem:[#allocation182_spill] sm:$0xff] %v12475_v4  ;;  %v4383_v26 = vmul.f32 %v12486_v38, %v12486_v38 }
 0x9ff   :  { %v4625_v63 = vsel %vm653_vm0, %v4383_v26, 0.0 }
 0xa00   :  { %v5606_v37 = vpop.permute.xlu1 %5605 }
 0xa01   :  { %v6269_v1 = vmul.f32 %v5606_v37, %v11872_v5  ;;  %v4895_v5 = vmul.f32 0.020408163, %v12392_v28  ;;  %v12482_v37 = vpop.f32.mrb[180].mxu1 }
 0xa03   :  { %v7097_v51 = vadd.f32 %v10638_v46, %v6269_v1  ;;  %v4382_v46 = vmul.f32 %v12475_v4, %v12475_v4  ;;  %v5171_v61 = vadd.f32 0.001, %v4895_v5  ;;  %v3266_v1 = vpop.f32.mrb[181].mxu1  ;;  %v12496_v5 = vpop.f32.mrb[172].mxu0 }
 0xa04   :  { %v12493_v54 = vpop.permute.xlu1 %3905  ;;  %v2422_v40 = vpop.f32.mrb[173].mxu0 }
 0xa05   :  { %7235 = vst.msk [vmem:[%s14965_s4 + $0x30] sm:$0xff] %vm653_vm0, %v7097_v51  ;;  %v4622_v43 = vsel %vm653_vm0, %v4382_v46, 0.0  ;;  %7878 = vrsqrt.f32 %v5171_v61  ;;  %v12498_v46 = vpop.f32.mrb[182].mxu1 }
 0xa06   :  { %v3271_v61 = vpop.f32.mrb[183].mxu1 }
 0xa0f   :  { %v7879_v51 = vpop.eup %7878 }
 0xa13   :  { %3930 = vperm.xlu0 %7842, %v12375_v33   ;;  %v8148_v33 = vld [vmem:[%s14963_s2 + $0x60] sm:$0xff] }
 0xa14   :  { %v5447_v28 = vmul.f32 %v8148_v33, %v7879_v51 }
 0xa1a   :  { %4623 = vadd.xlane.f32.xlu1 %v4622_v43 }
 0xa2b   :  { %5635 = vperm.xlu1 %7843, %v5447_v28   ;;  %v12511_v28 = vpop.f32.mrb[174].mxu0 }
 0xa2c   :  { %v2427_v26 = vpop.f32.mrb[175].mxu0 }
 0xa2d   :  { %v12525_v26 = vsub.f32 %v12026_v14, %v12250_v57  ;;  %v12536_v14 = vpop.f32.mrb[176].mxu0 }
 0xa2f   :  { %3935 = vperm.xlu1 %7843, %v12404_v8   ;;  %v12509_v8 = vpop.xlane.xlu0 %4524 }
 0xa32   :  { %4626 = vadd.xlane.f32.xlu0 %v4625_v63 }
 0xa33   :  { %v3771_v40 = vpop.permute.xlu0 %3770 }
 0xa34   :  { %v12515_v63 = vsub.f32 %v12024_v10, %v3771_v40  ;;  %v8149_v10 = vld [vmem:[%s14963_s2 + $0x70] sm:$0xff]  ;;  %v4385_v40 = vmul.f32 %v12525_v26, %v12525_v26 }
 0xa35   :  { %v12501_v43 = vpop.xlane.xlu1 %4611 }
 0xa36   :  { %16138 = vst [vmem:[#allocation185_spill] sm:$0xff] %v12501_v43  ;;  %16139 = vst [vmem:[#allocation184_spill] sm:$0xff] %v12515_v63 }
 0xa39   :  { %v5616_v1 = vpop.permute.xlu1 %5615 }
 0xa3a   :  { %v6271_v51 = vmul.f32 %v5616_v1, %v11929_v39  ;;  %v4897_v39 = vmul.f32 0.020408163, %v12431_v21 }
 0xa3c   :  { %v7099_v33 = vadd.f32 %v10660_v45, %v6271_v51  ;;  %v4384_v45 = vmul.f32 %v12515_v63, %v12515_v63  ;;  %v5173_v61 = vadd.f32 0.001, %v4897_v39  ;;  %v12521_v51 = vpop.f32.mrb[184].mxu1  ;;  %v4631_v39 = vsel %vm653_vm0, %v4385_v40, 0.0  ;;  %v16144_v63 = vld [vmem:[#allocation111_spill] sm:$0xff] }
 0xa3d   :  { %v12538_v57 = vpop.permute.xlu1 %3915 }
 0xa3e   :  { %7237 = vst.msk [vmem:[%s14965_s4 + $0x40] sm:$0xff] %vm653_vm0, %v7099_v33  ;;  %v4628_v1 = vsel %vm653_vm0, %v4384_v45, 0.0  ;;  %7880 = vrsqrt.f32 %v5173_v61  ;;  %v3276_v33 = vpop.f32.mrb[185].mxu1 }
 0xa3f   :  { %v12533_v45 = vpop.f32.mrb[186].mxu1 }
 0xa40   :  { %v3281_v61 = vpop.f32.mrb[187].mxu1 }
 0xa48   :  { %3940 = vperm.xlu0 %7842, %v12418_v7   ;;  %v7881_v7 = vpop.eup %7880 }
 0xa49   :  { %v5449_v21 = vmul.f32 %v8149_v10, %v7881_v7 }
 0xa53   :  { %4629 = vadd.xlane.f32.xlu1 %v4628_v1  ;;  %v2432_v1 = vpop.f32.mrb[177].mxu0 }
 0xa54   :  { %v12548_v40 = vpop.f32.mrb[178].mxu0 }
 0xa64   :  { %5645 = vperm.xlu1 %7843, %v5449_v21  }
 0xa67   :  { %4632 = vadd.xlane.f32.xlu0 %v4631_v39  ;;  %v12550_v39 = vpop.xlane.xlu0 %4530 }
 0xa68   :  { %3945 = vperm.xlu1 %7843, %v12443_v12   ;;  %v2437_v12 = vpop.f32.mrb[179].mxu0 }
 0xa6b   :  { %v3781_v61 = vpop.permute.xlu0 %3780 }
 0xa6c   :  { %v12554_v1 = vsub.f32 %v12040_v25, %v3781_v61 }
 0xa6e   :  { %v12540_v33 = vpop.xlane.xlu1 %4617  ;;  %16141 = vst [vmem:[#allocation186_spill] sm:$0xff] %v12554_v1 }
 0xa6f   :  { %16140 = vst [vmem:[#allocation187_spill] sm:$0xff] %v12540_v33  ;;  %v16145_v33 = vld [vmem:[#allocation285_spill] sm:$0xff] }
 0xa72   :  { %v5626_v7 = vpop.permute.xlu1 %5625 }
 0xa73   :  { %v6273_v10 = vmul.f32 %v5626_v7, %v11947_v41  ;;  %v4899_v41 = vmul.f32 0.020408163, %v12470_v35 }
 0xa75   :  { %v7101_v21 = vadd.f32 %v10682_v42, %v6273_v10  ;;  %v4386_v42 = vmul.f32 %v12554_v1, %v12554_v1  ;;  %v5175_v7 = vadd.f32 0.001, %v4899_v41  ;;  %v8150_v41 = vld [vmem:[%s14963_s2 + $0x80] sm:$0xff] }
 0xa77   :  { %7239 = vst.msk [vmem:[%s14965_s4 + $0x50] sm:$0xff] %vm653_vm0, %v7101_v21  ;;  %v4634_v10 = vsel %vm653_vm0, %v4386_v42, 0.0  ;;  %7882 = vrsqrt.f32 %v5175_v7  ;;  %v12560_v21 = vpop.f32.mrb[188].mxu1 }
 0xa78   :  { %v3286_v12 = vpop.f32.mrb[189].mxu1 }
 0xa79   :  { %v12572_v7 = vpop.f32.mrb[190].mxu1 }
 0xa7d   :  { %3950 = vperm.xlu0 %7842, %v12457_v3   ;;  %v12564_v3 = vsub.f32 %v12042_v48, %v12261_v36  ;;  %v12575_v48 = vpop.f32.mrb[180].mxu0  ;;  %v12577_v36 = vpop.permute.xlu1 %3925 }
 0xa7e   :  { %v2442_v12 = vpop.f32.mrb[181].mxu0 }
 0xa7f   :  { %16142 = vst [vmem:[#allocation189_spill] sm:$0xff] %v12564_v3  ;;  %v4387_v25 = vmul.f32 %v12564_v3, %v12564_v3  ;;  %v16200_v3 = vld [vmem:[#allocation127_spill] sm:$0xff] }
 0xa81   :  { %v7883_v61 = vpop.eup %7882  ;;  %v4637_v35 = vsel %vm653_vm0, %v4387_v25, 0.0 }
 0xa82   :  { %v5451_v42 = vmul.f32 %v8150_v41, %v7883_v61  ;;  %v12583_v61 = vpop.f32.mrb[182].mxu0 }
 0xa8c   :  { %4635 = vadd.xlane.f32.xlu1 %v4634_v10  ;;  %v3291_v10 = vpop.f32.mrb[191].mxu1 }
 0xa9c   :  { %4638 = vadd.xlane.f32.xlu0 %v4637_v35  ;;  %v2447_v35 = vpop.f32.mrb[183].mxu0 }
 0xa9d   :  { %5655 = vperm.xlu1 %7843, %v5451_v42  }
 0xaa1   :  { %3955 = vperm.xlu1 %7843, %v12482_v37   ;;  %v12590_v37 = vpop.xlane.xlu0 %4536 }
 0xaa5   :  { %v3791_v41 = vpop.permute.xlu0 %3790 }
 0xaa6   :  { %v12593_v42 = vsub.f32 %v12056_v62, %v3791_v41 }
 0xaa7   :  { %v12579_v1 = vpop.xlane.xlu1 %4623 }
 0xaa8   :  { %16143 = vst [vmem:[#allocation188_spill] sm:$0xff] %v12579_v1  ;;  %16146 = vst [vmem:[#allocation191_spill] sm:$0xff] %v12593_v42  ;;  %v16150_v1 = vld [vmem:[#allocation286_spill] sm:$0xff] }
 0xaab   :  { %v5636_v25 = vpop.permute.xlu1 %5635 }
 0xaac   :  { %v6275_v4 = vmul.f32 %v5636_v25, %v16144_v63  ;;  %v4901_v63 = vmul.f32 0.020408163, %v12509_v8 }
 0xaae   :  { %v7103_v43 = vadd.f32 %v16145_v33, %v6275_v4  ;;  %v4388_v4 = vmul.f32 %v12593_v42, %v12593_v42  ;;  %v5177_v33 = vadd.f32 0.001, %v4901_v63  ;;  %v8151_v63 = vld [vmem:[%s14963_s2 + $0x90] sm:$0xff] }
 0xab0   :  { %7241 = vst.msk [vmem:[%s14965_s4 + $0x60] sm:$0xff] %vm653_vm0, %v7103_v43  ;;  %v4640_v10 = vsel %vm653_vm0, %v4388_v4, 0.0  ;;  %7884 = vrsqrt.f32 %v5177_v33  ;;  %v12601_v43 = vsub.f32 %v12058_v11, %v12268_v52  ;;  %v12614_v11 = vpop.f32.mrb[184].mxu0  ;;  %v12616_v52 = vpop.permute.xlu1 %3935 }
 0xab1   :  { %v2452_v33 = vpop.f32.mrb[185].mxu0 }
 0xab2   :  { %3960 = vperm.xlu0 %7842, %v12498_v46   ;;  %16147 = vst [vmem:[#allocation190_spill] sm:$0xff] %v12601_v43  ;;  %v12603_v46 = vpop.f32.mrb[192].mxu1  ;;  %v4389_v62 = vmul.f32 %v12601_v43, %v12601_v43 }
 0xab3   :  { %v3296_v12 = vpop.f32.mrb[193].mxu1 }
 0xab4   :  { %v12607_v25 = vpop.f32.mrb[194].mxu1  ;;  %v4643_v35 = vsel %vm653_vm0, %v4389_v62, 0.0  ;;  %v12620_v12 = vpop.f32.mrb[186].mxu0 }
 0xab5   :  { %v3301_v8 = vpop.f32.mrb[195].mxu1 }
 0xab6   :  { %v2457_v8 = vpop.f32.mrb[187].mxu0 }
 0xaba   :  { %v7885_v41 = vpop.eup %7884 }
 0xabb   :  { %v5453_v4 = vmul.f32 %v8151_v63, %v7885_v41 }
 0xac5   :  { %4641 = vadd.xlane.f32.xlu1 %v4640_v10 }
 0xad1   :  { %4644 = vadd.xlane.f32.xlu0 %v4643_v35  ;;  %v16149_v35 = vld [vmem:[#allocation113_spill] sm:$0xff] }
 0xad6   :  { %5665 = vperm.xlu1 %7843, %v5453_v4   ;;  %v4903_v4 = vmul.f32 0.020408163, %v12550_v39 }
 0xada   :  { %3965 = vperm.xlu1 %7843, %v12521_v51   ;;  %v12629_v51 = vpop.xlane.xlu0 %4542 }
 0xade   :  { %v3801_v41 = vpop.permute.xlu0 %3800 }
 0xadf   :  { %v12632_v63 = vsub.f32 %v12072_v0, %v3801_v41 }
 0xae0   :  { %v12618_v10 = vpop.xlane.xlu1 %4629 }
 0xae1   :  { %16148 = vst [vmem:[#allocation193_spill] sm:$0xff] %v12618_v10  ;;  %16151 = vst [vmem:[#allocation192_spill] sm:$0xff] %v12632_v63  ;;  %v4390_v33 = vmul.f32 %v12632_v63, %v12632_v63  ;;  %v16155_v10 = vld [vmem:[#allocation290_spill] sm:$0xff] }
 0xae4   :  { %v5646_v62 = vpop.permute.xlu1 %5645 }
 0xae5   :  { %v6277_v42 = vmul.f32 %v5646_v62, %v16149_v35  ;;  %v5179_v62 = vadd.f32 0.001, %v4903_v4  ;;  %v12653_v4 = vpop.f32.mrb[188].mxu0 }
 0xae7   :  { %v7105_v17 = vadd.f32 %v16150_v1, %v6277_v42  ;;  %3970 = vperm.xlu0 %7842, %v12533_v45   ;;  %v12639_v45 = vsub.f32 %v12074_v59, %v12278_v60  ;;  %v4646_v1 = vsel %vm653_vm0, %v4390_v33, 0.0  ;;  %7886 = vrsqrt.f32 %v5179_v62  ;;  %v12644_v42 = vpop.f32.mrb[196].mxu1  ;;  %v8152_v59 = vld [vmem:[%s14963_s2 + $0xa0] sm:$0xff]  ;;  %v2462_v62 = vpop.f32.mrb[189].mxu0 }
 0xae8   :  { %v3306_v0 = vpop.f32.mrb[197].mxu1  ;;  %v12655_v33 = vpop.permute.xlu1 %3945 }
 0xae9   :  { %7243 = vst.msk [vmem:[%s14965_s4 + $0x70] sm:$0xff] %vm653_vm0, %v7105_v17  ;;  %16152 = vst [vmem:[#allocation195_spill] sm:$0xff] %v12639_v45  ;;  %v4391_v17 = vmul.f32 %v12639_v45, %v12639_v45  ;;  %v12646_v8 = vpop.f32.mrb[198].mxu1 }
 0xaea   :  { %v3311_v39 = vpop.f32.mrb[199].mxu1 }
 0xaeb   :  { %v4649_v35 = vsel %vm653_vm0, %v4391_v17, 0.0 }
 0xaf1   :  { %v7887_v41 = vpop.eup %7886 }
 0xaf2   :  { %v5455_v60 = vmul.f32 %v8152_v59, %v7887_v41  ;;  %v12670_v59 = vpop.f32.mrb[200].mxu1 }
 0xafe   :  { %4647 = vadd.xlane.f32.xlu1 %v4646_v1  ;;  %v12657_v1 = vpop.f32.mrb[190].mxu0 }
 0xaff   :  { %v2467_v17 = vpop.f32.mrb[191].mxu0 }
 0xb06   :  { %4650 = vadd.xlane.f32.xlu0 %v4649_v35  ;;  %v16154_v35 = vld [vmem:[#allocation115_spill] sm:$0xff] }
 0xb0f   :  { %5675 = vperm.xlu1 %7843, %v5455_v60   ;;  %v3316_v60 = vpop.f32.mrb[201].mxu1 }
 0xb13   :  { %3975 = vperm.xlu1 %7843, %v12560_v21   ;;  %v12668_v21 = vpop.xlane.xlu0 %4548 }
 0xb17   :  { %v3811_v62 = vpop.permute.xlu0 %3810 }
 0xb19   :  { %v12659_v0 = vpop.xlane.xlu1 %4635 }
 0xb1a   :  { %16153 = vst [vmem:[#allocation194_spill] sm:$0xff] %v12659_v0  ;;  %v12672_v0 = vpop.f32.mrb[202].mxu1 }
 0xb1b   :  { %v3321_v17 = vpop.f32.mrb[203].mxu1 }
 0xb1c   :  { %3980 = vperm.xlu0 %7842, %v12572_v7   ;;  %v12675_v7 = vsub.f32 %v12088_v9, %v3811_v62 }
 0xb1d   :  { %v5656_v39 = vpop.permute.xlu1 %5655 }
 0xb1e   :  { %v6279_v63 = vmul.f32 %v5656_v39, %v16154_v35  ;;  %16156 = vst [vmem:[#allocation197_spill] sm:$0xff] %v12675_v7  ;;  %v4905_v39 = vmul.f32 0.020408163, %v12590_v37  ;;  %v12692_v37 = vpop.f32.mrb[192].mxu0 }
 0xb20   :  { %v7107_v41 = vadd.f32 %v16155_v10, %v6279_v63  ;;  %v12680_v10 = vsub.f32 %v12090_v31, %v12287_v20  ;;  %v4392_v63 = vmul.f32 %v12675_v7, %v12675_v7  ;;  %v5181_v35 = vadd.f32 0.001, %v4905_v39  ;;  %v8153_v31 = vld [vmem:[%s14963_s2 + $0xb0] sm:$0xff]  ;;  %v2472_v39 = vpop.f32.mrb[193].mxu0 }
 0xb21   :  { %v12694_v17 = vpop.permute.xlu1 %3955 }
 0xb22   :  { %7245 = vst.msk [vmem:[%s14965_s4 + $0x80] sm:$0xff] %vm653_vm0, %v7107_v41  ;;  %16157 = vst [vmem:[#allocation196_spill] sm:$0xff] %v12680_v10  ;;  %v4652_v41 = vsel %vm653_vm0, %v4392_v63, 0.0  ;;  %v4393_v60 = vmul.f32 %v12680_v10, %v12680_v10  ;;  %7888 = vrsqrt.f32 %v5181_v35  ;;  %v12696_v63 = vpop.f32.mrb[194].mxu0 }
 0xb23   :  { %v2477_v35 = vpop.f32.mrb[195].mxu0 }
 0xb24   :  { %v4655_v9 = vsel %vm653_vm0, %v4393_v60, 0.0 }
 0xb2c   :  { %v7889_v62 = vpop.eup %7888 }
 0xb2d   :  { %v5457_v20 = vmul.f32 %v8153_v31, %v7889_v62  ;;  %v12709_v31 = vpop.f32.mrb[204].mxu1 }
 0xb37   :  { %4653 = vadd.xlane.f32.xlu1 %v4652_v41 }
 0xb3b   :  { %4656 = vadd.xlane.f32.xlu0 %v4655_v9  ;;  %v16159_v9 = vld [vmem:[#allocation117_spill] sm:$0xff] }
 0xb48   :  { %5685 = vperm.xlu1 %7843, %v5457_v20   ;;  %v3326_v20 = vpop.f32.mrb[205].mxu1 }
 0xb49   :  { %v12711_v35 = vpop.f32.mrb[206].mxu1 }
 0xb4c   :  { %3985 = vperm.xlu1 %7843, %v12603_v46   ;;  %v12707_v46 = vpop.xlane.xlu0 %4554 }
 0xb50   :  { %v3821_v39 = vpop.permute.xlu0 %3820 }
 0xb51   :  { %3990 = vperm.xlu0 %7842, %v12607_v25   ;;  %v3331_v25 = vpop.f32.mrb[207].mxu1 }
 0xb52   :  { %v12699_v41 = vpop.xlane.xlu1 %4641 }
 0xb53   :  { %16158 = vst [vmem:[#allocation199_spill] sm:$0xff] %v12699_v41  ;;  %v12714_v41 = vsub.f32 %v12104_v34, %v3821_v39 }
 0xb55   :  { %16161 = vst [vmem:[#allocation198_spill] sm:$0xff] %v12714_v41 }
 0xb56   :  { %v5666_v60 = vpop.permute.xlu1 %5665 }
 0xb57   :  { %v6281_v7 = vmul.f32 %v5666_v60, %v16159_v9  ;;  %v4394_v60 = vmul.f32 %v12714_v41, %v12714_v41 }
 0xb59   :  { %v7109_v62 = vadd.f32 %v16160_v6, %v6281_v7  ;;  %v12718_v6 = vsub.f32 %v12106_v58, %v12295_v29  ;;  %v4907_v7 = vmul.f32 0.020408163, %v12629_v51  ;;  %v4658_v20 = vsel %vm653_vm0, %v4394_v60, 0.0  ;;  %v8154_v58 = vld [vmem:[%s14963_s2 + $0xc0] sm:$0xff]  ;;  %v12730_v51 = vpop.f32.mrb[196].mxu0 }
 0xb5a   :  { %v2482_v39 = vpop.f32.mrb[197].mxu0  ;;  %v12736_v60 = vpop.permute.xlu1 %3965 }
 0xb5b   :  { %7247 = vst.msk [vmem:[%s14965_s4 + $0x90] sm:$0xff] %vm653_vm0, %v7109_v62  ;;  %16162 = vst [vmem:[#allocation201_spill] sm:$0xff] %v12718_v6  ;;  %v4395_v9 = vmul.f32 %v12718_v6, %v12718_v6  ;;  %v5183_v62 = vadd.f32 0.001, %v4907_v7  ;;  %v12734_v7 = vpop.f32.mrb[198].mxu0 }
 0xb5d   :  { %v4661_v25 = vsel %vm653_vm0, %v4395_v9, 0.0  ;;  %7890 = vrsqrt.f32 %v5183_v62  ;;  %v2487_v9 = vpop.f32.mrb[199].mxu0 }
 0xb67   :  { %v7891_v34 = vpop.eup %7890 }
 0xb68   :  { %v5459_v29 = vmul.f32 %v8154_v58, %v7891_v34  ;;  %v16166_v58 = vld [vmem:[#allocation171_spill] sm:$0xff] }
 0xb70   :  { %4659 = vadd.xlane.f32.xlu1 %v4658_v20  ;;  %4662 = vadd.xlane.f32.xlu0 %v4661_v25  ;;  %v16164_v25 = vld [vmem:[#allocation119_spill] sm:$0xff] }
 0xb81   :  { %5695 = vperm.xlu1 %7843, %v5459_v29   ;;  %v16167_v29 = vld [vmem:[#allocation130_spill] sm:$0xff] }
 0xb82   :  { %v12752_v39 = vsub.f32 %v16167_v29, %v16166_v58 }
 0xb84   :  { %16168 = vst [vmem:[#allocation203_spill] sm:$0xff] %v12752_v39 }
 0xb85   :  { %3995 = vperm.xlu1 %7843, %v12644_v42   ;;  %v12746_v42 = vpop.xlane.xlu0 %4560 }
 0xb86   :  { %4000 = vperm.xlu0 %7842, %v12646_v8   ;;  %v12748_v8 = vpop.f32.mrb[208].mxu1 }
 0xb87   :  { %v3336_v9 = vpop.f32.mrb[209].mxu1 }
 0xb88   :  { %v12754_v22 = vpop.f32.mrb[210].mxu1 }
 0xb8b   :  { %v12738_v62 = vpop.xlane.xlu1 %4647 }
 0xb8c   :  { %16163 = vst [vmem:[#allocation200_spill] sm:$0xff] %v12738_v62  ;;  %v3831_v62 = vpop.permute.xlu0 %3830 }
 0xb8f   :  { %v5676_v20 = vpop.permute.xlu1 %5675 }
 0xb90   :  { %v6283_v41 = vmul.f32 %v5676_v20, %v16164_v25  ;;  %v3341_v20 = vpop.f32.mrb[211].mxu1  ;;  %v16169_v25 = vld [vmem:[#allocation131_spill] sm:$0xff] }
 0xb92   :  { %v7111_v34 = vadd.f32 %v16165_v30, %v6283_v41  ;;  %v12757_v30 = vsub.f32 %v16169_v25, %v3831_v62  ;;  %v4397_v41 = vmul.f32 %v12752_v39, %v12752_v39  ;;  %v8155_v62 = vld [vmem:[%s14963_s2 + $0xd0] sm:$0xff]  ;;  %v12769_v25 = vpop.f32.mrb[200].mxu0  ;;  %v16174_v39 = vld [vmem:[#allocation6_spill] sm:$0xff] }
 0xb94   :  { %7249 = vst.msk [vmem:[%s14965_s4 + $0xa0] sm:$0xff] %vm653_vm0, %v7111_v34  ;;  %16170 = vst [vmem:[#allocation202_spill] sm:$0xff] %v12757_v30  ;;  %v4909_v34 = vmul.f32 0.020408163, %v12668_v21  ;;  %v4667_v6 = vsel %vm653_vm0, %v4397_v41, 0.0  ;;  %v4396_v10 = vmul.f32 %v12757_v30, %v12757_v30  ;;  %v2492_v21 = vpop.f32.mrb[201].mxu0 }
 0xb95   :  { %v12772_v41 = vpop.f32.mrb[202].mxu0 }
 0xb96   :  { %v5185_v58 = vadd.f32 0.001, %v4909_v34  ;;  %v4664_v29 = vsel %vm653_vm0, %v4396_v10, 0.0  ;;  %16171 = vst [vmem:[#allocation205_spill] sm:$0xff] %v12772_v41  ;;  %v12775_v10 = vpop.permute.xlu1 %3975 }
 0xb98   :  { %7892 = vrsqrt.f32 %v5185_v58 }
 0xba2   :  { %v7893_v9 = vpop.eup %7892 }
 0xba3   :  { %v5461_v20 = vmul.f32 %v8155_v62, %v7893_v9 }
 0xba5   :  { %4668 = vadd.xlane.f32.xlu0 %v4667_v6  ;;  %v2497_v6 = vpop.f32.mrb[203].mxu0 }
 0xba9   :  { %4665 = vadd.xlane.f32.xlu1 %v4664_v29  ;;  %v16173_v29 = vld [vmem:[#allocation121_spill] sm:$0xff] }
 0xbba   :  { %5705 = vperm.xlu1 %7843, %v5461_v20   ;;  %v12789_v20 = vpop.xlane.xlu0 %4566 }
 0xbbb   :  { %4010 = vperm.xlu0 %7842, %v12672_v0   ;;  %v16175_v0 = vld [vmem:[#allocation134_spill] sm:$0xff] }
 0xbbc   :  { %v12787_v62 = vsub.f32 %v16175_v0, %v12315_v27  ;;  %v4911_v27 = vmul.f32 0.020408163, %v12707_v46  ;;  %v8156_v46 = vld [vmem:[%s14963_s2 + $0xe0] sm:$0xff] }
 0xbbe   :  { %4005 = vperm.xlu1 %7843, %v12670_v59   ;;  %16176 = vst [vmem:[#allocation207_spill] sm:$0xff] %v12787_v62  ;;  %v12791_v59 = vpop.f32.mrb[212].mxu1  ;;  %v4399_v21 = vmul.f32 %v12787_v62, %v12787_v62  ;;  %v5187_v45 = vadd.f32 0.001, %v4911_v27  ;;  %v16181_v27 = vld [vmem:[#allocation123_spill] sm:$0xff] }
 0xbbf   :  { %v3346_v6 = vpop.f32.mrb[213].mxu1 }
 0xbc0   :  { %7894 = vrsqrt.f32 %v5187_v45  ;;  %v12805_v6 = vpop.f32.mrb[204].mxu0 }
 0xbc1   :  { %v2502_v62 = vpop.f32.mrb[205].mxu0 }
 0xbc2   :  { %v12807_v41 = vpop.f32.mrb[206].mxu0 }
 0xbc3   :  { %16179 = vst [vmem:[#allocation209_spill] sm:$0xff] %v12807_v41 }
 0xbc4   :  { %v12777_v34 = vpop.xlane.xlu1 %4653 }
 0xbc5   :  { %16172 = vst [vmem:[#allocation204_spill] sm:$0xff] %v12777_v34 }
 0xbc8   :  { %v5686_v58 = vpop.permute.xlu1 %5685 }
 0xbc9   :  { %v6285_v30 = vmul.f32 %v5686_v58, %v16173_v29  ;;  %v3841_v58 = vpop.permute.xlu0 %3840  ;;  %v12795_v29 = vpop.f32.mrb[214].mxu1 }
 0xbcb   :  { %v7113_v9 = vadd.f32 %v16174_v39, %v6285_v30  ;;  %v3351_v39 = vpop.f32.mrb[215].mxu1  ;;  %v16177_v30 = vld [vmem:[#allocation135_spill] sm:$0xff] }
 0xbcc   :  { %v12798_v34 = vsub.f32 %v16177_v30, %v3841_v58  ;;  %v7895_v39 = vpop.eup %7894  ;;  %v2507_v58 = vpop.f32.mrb[207].mxu0 }
 0xbcd   :  { %7251 = vst.msk [vmem:[%s14965_s4 + $0xb0] sm:$0xff] %vm653_vm0, %v7113_v9  ;;  %v4673_v9 = vsel %vm653_vm0, %v4399_v21, 0.0  ;;  %v5463_v21 = vmul.f32 %v8156_v46, %v7895_v39  ;;  %v12814_v30 = vpop.permute.xlu1 %3985  ;;  %v16182_v58 = vld [vmem:[#allocation8_spill] sm:$0xff]  ;;  %v12832_v39 = vpop.xlane.xlu0 %4572 }
 0xbce   :  { %16178 = vst [vmem:[#allocation206_spill] sm:$0xff] %v12798_v34  ;;  %v4398_v0 = vmul.f32 %v12798_v34, %v12798_v34  ;;  %v16183_v34 = vld [vmem:[#allocation141_spill] sm:$0xff] }
 0xbcf   :  { %v12824_v41 = vsub.f32 %v16183_v34, %v12324_v47  ;;  %v4913_v34 = vmul.f32 0.020408163, %v12746_v42  ;;  %v8157_v42 = vld [vmem:[%s14963_s2 + $0xf0] sm:$0xff] }
 0xbd0   :  { %v4670_v43 = vsel %vm653_vm0, %v4398_v0, 0.0 }
 0xbd1   :  { %16184 = vst [vmem:[#allocation211_spill] sm:$0xff] %v12824_v41 }
 0xbda   :  { %4674 = vadd.xlane.f32.xlu0 %v4673_v9 }
 0xbe2   :  { %4671 = vadd.xlane.f32.xlu1 %v4670_v43  ;;  %v12816_v43 = vpop.f32.mrb[216].mxu1 }
 0xbe3   :  { %v3356_v45 = vpop.f32.mrb[217].mxu1 }
 0xbe4   :  { %v12834_v46 = vpop.f32.mrb[218].mxu1 }
 0xbe5   :  { %v3361_v45 = vpop.f32.mrb[219].mxu1 }
 0xbf0   :  { %4020 = vperm.xlu0 %7842, %v12711_v35  }
 0xbf3   :  { %5715 = vperm.xlu1 %7843, %v5463_v21  }
 0xbf7   :  { %4015 = vperm.xlu1 %7843, %v12709_v31   ;;  %v4401_v31 = vmul.f32 %v12824_v41, %v12824_v41  ;;  %v12844_v41 = vpop.f32.mrb[208].mxu0 }
 0xbf9   :  { %v4679_v21 = vsel %vm653_vm0, %v4401_v31, 0.0 }
 0xbfd   :  { %v12818_v62 = vpop.xlane.xlu1 %4659 }
 0xbfe   :  { %16180 = vst [vmem:[#allocation208_spill] sm:$0xff] %v12818_v62  ;;  %v2512_v62 = vpop.f32.mrb[209].mxu0 }
 0xbff   :  { %v12846_v31 = vpop.f32.mrb[210].mxu0 }
 0xc00   :  { %16187 = vst [vmem:[#allocation213_spill] sm:$0xff] %v12846_v31  ;;  %v2517_v45 = vpop.f32.mrb[211].mxu0  ;;  %v16191_v31 = vld [vmem:[#allocation125_spill] sm:$0xff] }
 0xc01   :  { %v5696_v9 = vpop.permute.xlu1 %5695  ;;  %v16189_v45 = vld [vmem:[#allocation144_spill] sm:$0xff] }
 0xc02   :  { %v6287_v0 = vmul.f32 %v5696_v9, %v16181_v27  ;;  %v3851_v9 = vpop.permute.xlu0 %3850  ;;  %v16185_v27 = vld [vmem:[#allocation138_spill] sm:$0xff] }
 0xc03   :  { %v12838_v47 = vsub.f32 %v16185_v27, %v3851_v9  ;;  %v12853_v27 = vpop.f32.mrb[220].mxu1 }
 0xc04   :  { %v7115_v35 = vadd.f32 %v16182_v58, %v6287_v0  ;;  %v5189_v58 = vadd.f32 0.001, %v4913_v34 }
 0xc05   :  { %16186 = vst [vmem:[#allocation210_spill] sm:$0xff] %v12838_v47  ;;  %v4400_v0 = vmul.f32 %v12838_v47, %v12838_v47  ;;  %v12855_v34 = vpop.permute.xlu1 %3995  ;;  %v12863_v47 = vsub.f32 %v16189_v45, %v12332_v15  ;;  %v16193_v15 = vld [vmem:[#allocation145_spill] sm:$0xff] }
 0xc06   :  { %7253 = vst.msk [vmem:[%s14965_s4 + $0xc0] sm:$0xff] %vm653_vm0, %v7115_v35  ;;  %7896 = vrsqrt.f32 %v5189_v58 }
 0xc07   :  { %v4676_v35 = vsel %vm653_vm0, %v4400_v0, 0.0  ;;  %v3366_v0 = vpop.f32.mrb[221].mxu1  ;;  %16190 = vst [vmem:[#allocation215_spill] sm:$0xff] %v12863_v47 }
 0xc08   :  { %v12857_v62 = vpop.f32.mrb[222].mxu1 }
 0xc09   :  { %v3371_v58 = vpop.f32.mrb[223].mxu1 }
 0xc0a   :  { %v12874_v58 = vpop.xlane.xlu0 %4578 }
 0xc0f   :  { %4680 = vadd.xlane.f32.xlu0 %v4679_v21 }
 0xc10   :  { %v7897_v21 = vpop.eup %7896 }
 0xc11   :  { %v5465_v9 = vmul.f32 %v8157_v42, %v7897_v21  ;;  %v16192_v42 = vld [vmem:[#allocation10_spill] sm:$0xff] }
 0xc1b   :  { %4677 = vadd.xlane.f32.xlu1 %v4676_v35 }
 0xc25   :  { %4030 = vperm.xlu0 %7842, %v12754_v22  }
 0xc2c   :  { %5725 = vperm.xlu1 %7843, %v5465_v9  }
 0xc30   :  { %4025 = vperm.xlu1 %7843, %v12748_v8   ;;  %v4403_v8 = vmul.f32 %v12863_v47, %v12863_v47 }
 0xc32   :  { %v4685_v0 = vsel %vm653_vm0, %v4403_v8, 0.0 }
 0xc36   :  { %v12859_v35 = vpop.xlane.xlu1 %4665 }
 0xc37   :  { %16188 = vst [vmem:[#allocation212_spill] sm:$0xff] %v12859_v35  ;;  %v3861_v35 = vpop.permute.xlu0 %3860 }
 0xc38   :  { %v12877_v45 = vsub.f32 %v16193_v15, %v3861_v35 }
 0xc3a   :  { %v5706_v22 = vpop.permute.xlu1 %5705  ;;  %16194 = vst [vmem:[#allocation214_spill] sm:$0xff] %v12877_v45 }
 0xc3b   :  { %v6289_v21 = vmul.f32 %v5706_v22, %v16191_v31  ;;  %v4915_v31 = vmul.f32 0.020408163, %v12789_v20  ;;  %v4402_v22 = vmul.f32 %v12877_v45, %v12877_v45  ;;  %v8158_v20 = vld [vmem:[%s14963_s2 + $0x100] sm:$0xff] }
 0xc3d   :  { %v7117_v9 = vadd.f32 %v16192_v42, %v6289_v21  ;;  %v5191_v21 = vadd.f32 0.001, %v4915_v31  ;;  %v4682_v42 = vsel %vm653_vm0, %v4402_v22, 0.0  ;;  %v12892_v31 = vpop.f32.mrb[224].mxu1 }
 0xc3e   :  { %v12894_v22 = vpop.permute.xlu1 %4005 }
 0xc3f   :  { %7255 = vst.msk [vmem:[%s14965_s4 + $0xd0] sm:$0xff] %vm653_vm0, %v7117_v9  ;;  %7898 = vrsqrt.f32 %v5191_v21  ;;  %v12883_v9 = vpop.f32.mrb[212].mxu0  ;;  %v3376_v21 = vpop.f32.mrb[225].mxu1 }
 0xc40   :  { %16195 = vst [vmem:[#allocation217_spill] sm:$0xff] %v12883_v9  ;;  %v2522_v8 = vpop.f32.mrb[213].mxu0 }
 0xc41   :  { %v12885_v47 = vpop.f32.mrb[214].mxu0 }
 0xc42   :  { %16196 = vst [vmem:[#allocation216_spill] sm:$0xff] %v12885_v47 }
 0xc44   :  { %4686 = vadd.xlane.f32.xlu0 %v4685_v0  ;;  %v2527_v0 = vpop.f32.mrb[215].mxu0 }
 0xc49   :  { %v7899_v35 = vpop.eup %7898 }
 0xc4a   :  { %v5467_v15 = vmul.f32 %v8158_v20, %v7899_v35  ;;  %v16201_v20 = vld [vmem:[#allocation12_spill] sm:$0xff] }
 0xc54   :  { %4683 = vadd.xlane.f32.xlu1 %v4682_v42  ;;  %v12896_v42 = vpop.f32.mrb[226].mxu1 }
 0xc55   :  { %v3381_v8 = vpop.f32.mrb[227].mxu1 }
 0xc56   :  { %v12913_v8 = vpop.xlane.xlu0 %4584 }
 0xc5a   :  { %4040 = vperm.xlu0 %7842, %v12795_v29   ;;  %v16198_v29 = vld [vmem:[#allocation154_spill] sm:$0xff] }
 0xc5b   :  { %v12902_v45 = vsub.f32 %v16198_v29, %v12344_v49  ;;  %v3871_v49 = vpop.permute.xlu0 %3870  ;;  %v16202_v29 = vld [vmem:[#allocation152_spill] sm:$0xff] }
 0xc5d   :  { %16199 = vst [vmem:[#allocation218_spill] sm:$0xff] %v12902_v45 }
 0xc65   :  { %5735 = vperm.xlu1 %7843, %v5467_v15  }
 0xc69   :  { %4035 = vperm.xlu1 %7843, %v12791_v59   ;;  %v4405_v59 = vmul.f32 %v12902_v45, %v12902_v45 }
 0xc6b   :  { %v4691_v21 = vsel %vm653_vm0, %v4405_v59, 0.0 }
 0xc6f   :  { %v12898_v0 = vpop.xlane.xlu1 %4671 }
 0xc70   :  { %16197 = vst [vmem:[#allocation219_spill] sm:$0xff] %v12898_v0  ;;  %v12916_v0 = vsub.f32 %v16202_v29, %v3871_v49 }
 0xc72   :  { %16203 = vst [vmem:[#allocation221_spill] sm:$0xff] %v12916_v0 }
 0xc73   :  { %v5716_v47 = vpop.permute.xlu1 %5715 }
 0xc74   :  { %v6291_v35 = vmul.f32 %v5716_v47, %v16200_v3  ;;  %v4917_v3 = vmul.f32 0.020408163, %v12832_v39  ;;  %v4404_v47 = vmul.f32 %v12916_v0, %v12916_v0  ;;  %v8159_v39 = vld [vmem:[%s14963_s2 + $0x110] sm:$0xff] }
 0xc76   :  { %v7119_v15 = vadd.f32 %v16201_v20, %v6291_v35  ;;  %v5193_v35 = vadd.f32 0.001, %v4917_v3  ;;  %v12921_v20 = vpop.f32.mrb[216].mxu0  ;;  %v4688_v45 = vsel %vm653_vm0, %v4404_v47, 0.0  ;;  %v12931_v3 = vpop.f32.mrb[228].mxu1 }
 0xc77   :  { %16204 = vst [vmem:[#allocation220_spill] sm:$0xff] %v12921_v20  ;;  %v12933_v47 = vpop.permute.xlu1 %4015  ;;  %v16210_v20 = vld [vmem:[#allocation14_spill] sm:$0xff] }
 0xc78   :  { %7257 = vst.msk [vmem:[%s14965_s4 + $0xe0] sm:$0xff] %vm653_vm0, %v7119_v15  ;;  %v2532_v15 = vpop.f32.mrb[217].mxu0  ;;  %7900 = vrsqrt.f32 %v5193_v35 }
 0xc79   :  { %4692 = vadd.xlane.f32.xlu0 %v4691_v21  ;;  %v12924_v59 = vpop.f32.mrb[218].mxu0  ;;  %v16206_v15 = vld [vmem:[#allocation164_spill] sm:$0xff] }
 0xc7a   :  { %16205 = vst [vmem:[#allocation223_spill] sm:$0xff] %v12924_v59  ;;  %v2537_v21 = vpop.f32.mrb[219].mxu0 }
 0xc7b   :  { %v12937_v21 = vsub.f32 %v16206_v15, %v12410_v18  ;;  %v12952_v18 = vpop.xlane.xlu0 %4590  ;;  %v12958_v9 = vpop.f32.mrb[220].mxu0 }
 0xc7c   :  { %16213 = vst [vmem:[#allocation227_spill] sm:$0xff] %v12958_v9 }
 0xc7d   :  { %16207 = vst [vmem:[#allocation222_spill] sm:$0xff] %v12937_v21 }
 0xc7f   :  { %v3881_v15 = vpop.permute.xlu0 %3880 }
 0xc82   :  { %v7901_v49 = vpop.eup %7900 }
 0xc83   :  { %v5469_v29 = vmul.f32 %v8159_v39, %v7901_v49  ;;  %v4407_v49 = vmul.f32 %v12937_v21, %v12937_v21  ;;  %v4919_v21 = vmul.f32 0.020408163, %v12874_v58  ;;  %v8160_v58 = vld [vmem:[%s14963_s2 + $0x120] sm:$0xff] }
 0xc85   :  { %v4697_v59 = vsel %vm653_vm0, %v4407_v49, 0.0  ;;  %v2542_v49 = vpop.f32.mrb[221].mxu0 }
 0xc8d   :  { %4689 = vadd.xlane.f32.xlu1 %v4688_v45  ;;  %v3386_v45 = vpop.f32.mrb[229].mxu1 }
 0xc8e   :  { %v12939_v35 = vpop.f32.mrb[230].mxu1 }
 0xc8f   :  { %4050 = vperm.xlu0 %7842, %v12834_v46   ;;  %v3391_v46 = vpop.f32.mrb[231].mxu1 }
 0xc90   :  { %v16211_v46 = vld [vmem:[#allocation163_spill] sm:$0xff] }
 0xc9e   :  { %5745 = vperm.xlu1 %7843, %v5469_v29   ;;  %v16209_v29 = vld [vmem:[#allocation129_spill] sm:$0xff] }
 0xca2   :  { %4045 = vperm.xlu1 %7843, %v12816_v43  }
 0xca8   :  { %v12941_v0 = vpop.xlane.xlu1 %4677 }
 0xca9   :  { %16208 = vst [vmem:[#allocation225_spill] sm:$0xff] %v12941_v0  ;;  %v12955_v0 = vsub.f32 %v16211_v46, %v3881_v15  ;;  %v16215_v46 = vld [vmem:[#allocation174_spill] sm:$0xff] }
 0xcaa   :  { %v12971_v49 = vsub.f32 %v16215_v46, %v12452_v2 }
 0xcab   :  { %16212 = vst [vmem:[#allocation224_spill] sm:$0xff] %v12955_v0 }
 0xcac   :  { %v5726_v39 = vpop.permute.xlu1 %5725  ;;  %16216 = vst [vmem:[#allocation229_spill] sm:$0xff] %v12971_v49 }
 0xcad   :  { %v6293_v43 = vmul.f32 %v5726_v39, %v16209_v29  ;;  %v5195_v29 = vadd.f32 0.001, %v4919_v21  ;;  %v12974_v21 = vpop.f32.mrb[232].mxu1 }
 0xcae   :  { %4698 = vadd.xlane.f32.xlu0 %v4697_v59  ;;  %v4406_v59 = vmul.f32 %v12955_v0, %v12955_v0 }
 0xcaf   :  { %v7121_v45 = vadd.f32 %v16210_v20, %v6293_v43  ;;  %v12962_v20 = vpop.f32.mrb[222].mxu0  ;;  %7902 = vrsqrt.f32 %v5195_v29 }
 0xcb0   :  { %16214 = vst [vmem:[#allocation226_spill] sm:$0xff] %v12962_v20  ;;  %v2547_v39 = vpop.f32.mrb[223].mxu0  ;;  %v4694_v43 = vsel %vm653_vm0, %v4406_v59, 0.0  ;;  %v3396_v59 = vpop.f32.mrb[233].mxu1 }
 0xcb1   :  { %7259 = vst.msk [vmem:[%s14965_s4 + $0xf0] sm:$0xff] %vm653_vm0, %v7121_v45  ;;  %v4409_v39 = vmul.f32 %v12971_v49, %v12971_v49  ;;  %v12980_v29 = vpop.f32.mrb[234].mxu1  ;;  %v12991_v59 = vpop.xlane.xlu0 %4596 }
 0xcb2   :  { %v12993_v20 = vpop.f32.mrb[224].mxu0 }
 0xcb5   :  { %v3891_v49 = vpop.permute.xlu0 %3890 }
 0xcb9   :  { %v7903_v45 = vpop.eup %7902 }
 0xcba   :  { %v5471_v15 = vmul.f32 %v8160_v58, %v7903_v45  ;;  %v4703_v45 = vsel %vm653_vm0, %v4409_v39, 0.0  ;;  %v16218_v58 = vld [vmem:[#allocation133_spill] sm:$0xff]  ;;  %v2552_v39 = vpop.f32.mrb[225].mxu0 }
 0xcc4   :  { %4060 = vperm.xlu0 %7842, %v12857_v62   ;;  %v12976_v62 = vpop.permute.xlu1 %4025 }
 0xcc6   :  { %4695 = vadd.xlane.f32.xlu1 %v4694_v43  ;;  %v3401_v43 = vpop.f32.mrb[235].mxu1 }
 0xcc7   :  { %v16220_v43 = vld [vmem:[#allocation172_spill] sm:$0xff] }
 0xcd7   :  { %5755 = vperm.xlu1 %7843, %v5471_v15  }
 0xcdb   :  { %4055 = vperm.xlu1 %7843, %v12853_v27   ;;  %v16219_v27 = vld [vmem:[#allocation16_spill] sm:$0xff] }
 0xce1   :  { %v12982_v0 = vpop.xlane.xlu1 %4683 }
 0xce2   :  { %16217 = vst [vmem:[#allocation228_spill] sm:$0xff] %v12982_v0  ;;  %v12996_v0 = vsub.f32 %v16220_v43, %v3891_v49  ;;  %v8161_v49 = vld [vmem:[%s14963_s2 + $0x130] sm:$0xff] }
 0xce3   :  { %4704 = vadd.xlane.f32.xlu0 %v4703_v45  ;;  %v12998_v45 = vpop.f32.mrb[226].mxu0 }
 0xce4   :  { %16221 = vst [vmem:[#allocation231_spill] sm:$0xff] %v12996_v0  ;;  %v2557_v9 = vpop.f32.mrb[227].mxu0 }
 0xce5   :  { %v5736_v2 = vpop.permute.xlu1 %5735  ;;  %v13010_v9 = vsub.f32 %v12373_v19, %v12493_v54  ;;  %v16223_v54 = vld [vmem:[#allocation136_spill] sm:$0xff] }
 0xce6   :  { %v6295_v15 = vmul.f32 %v5736_v2, %v16218_v58  ;;  %v4921_v2 = vmul.f32 0.020408163, %v12913_v8  ;;  %v4408_v58 = vmul.f32 %v12996_v0, %v12996_v0  ;;  %v13015_v8 = vpop.f32.mrb[236].mxu1 }
 0xce7   :  { %16222 = vst [vmem:[#allocation230_spill] sm:$0xff] %v13010_v9 }
 0xce8   :  { %v7123_v46 = vadd.f32 %v16219_v27, %v6295_v15  ;;  %v5197_v15 = vadd.f32 0.001, %v4921_v2  ;;  %v4700_v27 = vsel %vm653_vm0, %v4408_v58, 0.0  ;;  %v3406_v2 = vpop.f32.mrb[237].mxu1 }
 0xce9   :  { %v13017_v39 = vpop.permute.xlu1 %4035  ;;  %v13032_v2 = vpop.f32.mrb[228].mxu0 }
 0xcea   :  { %7261 = vst.msk [vmem:[%s14965_s4 + $0x100] sm:$0xff] %vm653_vm0, %v7123_v46  ;;  %7904 = vrsqrt.f32 %v5197_v15  ;;  %v13020_v15 = vpop.f32.mrb[238].mxu1 }
 0xcf4   :  { %v7905_v46 = vpop.eup %7904 }
 0xcf5   :  { %v5473_v43 = vmul.f32 %v8161_v49, %v7905_v46 }
 0xcf9   :  { %4070 = vperm.xlu0 %7842, %v12896_v42   ;;  %v4411_v42 = vmul.f32 %v13010_v9, %v13010_v9 }
 0xcfb   :  { %v4709_v58 = vsel %vm653_vm0, %v4411_v42, 0.0  ;;  %v2562_v42 = vpop.f32.mrb[229].mxu0 }
 0xcff   :  { %4701 = vadd.xlane.f32.xlu1 %v4700_v27  ;;  %v3411_v27 = vpop.f32.mrb[239].mxu1 }
 0xd10   :  { %5765 = vperm.xlu1 %7843, %v5473_v43   ;;  %v16224_v43 = vld [vmem:[#allocation18_spill] sm:$0xff] }
 0xd14   :  { %4065 = vperm.xlu1 %7843, %v12892_v31   ;;  %v13030_v31 = vpop.xlane.xlu0 %4602 }
 0xd18   :  { %4710 = vadd.xlane.f32.xlu0 %v4709_v58  ;;  %v3901_v0 = vpop.permute.xlu0 %3900  ;;  %v13034_v58 = vpop.f32.mrb[230].mxu0 }
 0xd19   :  { %16225 = vst [vmem:[#allocation233_spill] sm:$0xff] %v13034_v58  ;;  %v2567_v27 = vpop.f32.mrb[231].mxu0  ;;  %v13046_v58 = vsub.f32 %v12412_v13, %v12538_v57 }
 0xd1a   :  { %v13022_v46 = vpop.xlane.xlu1 %4689 }
 0xd1b   :  { %16227 = vst [vmem:[#allocation235_spill] sm:$0xff] %v13046_v58 }
 0xd1e   :  { %v5746_v19 = vpop.permute.xlu1 %5745 }
 0xd1f   :  { %v6297_v49 = vmul.f32 %v5746_v19, %v16223_v54  ;;  %v13038_v19 = vsub.f32 %v12364_v56, %v3901_v0  ;;  %v4923_v54 = vmul.f32 0.020408163, %v12952_v18  ;;  %v8162_v56 = vld [vmem:[%s14963_s2 + $0x140] sm:$0xff]  ;;  %v13053_v18 = vpop.f32.mrb[240].mxu1 }
 0xd21   :  { %v7125_v9 = vadd.f32 %v16224_v43, %v6297_v49  ;;  %16226 = vst [vmem:[#allocation232_spill] sm:$0xff] %v13038_v19  ;;  %v4410_v49 = vmul.f32 %v13038_v19, %v13038_v19 }
 0xd22   :  { %v13059_v57 = vpop.permute.xlu1 %4045 }
 0xd23   :  { %7263 = vst.msk [vmem:[%s14965_s4 + $0x110] sm:$0xff] %vm653_vm0, %v7125_v9  ;;  %v5199_v9 = vadd.f32 0.001, %v4923_v54  ;;  %v4706_v43 = vsel %vm653_vm0, %v4410_v49, 0.0  ;;  %v3416_v54 = vpop.f32.mrb[241].mxu1 }
 0xd24   :  { %v13057_v49 = vpop.f32.mrb[242].mxu1 }
 0xd25   :  { %7906 = vrsqrt.f32 %v5199_v9  ;;  %v3421_v13 = vpop.f32.mrb[243].mxu1 }
 0xd2e   :  { %4080 = vperm.xlu0 %7842, %v12939_v35   ;;  %v4413_v35 = vmul.f32 %v13046_v58, %v13046_v58  ;;  %v16230_v58 = vld [vmem:[#allocation20_spill] sm:$0xff] }
 0xd2f   :  { %v7907_v42 = vpop.eup %7906 }
 0xd30   :  { %v5475_v0 = vmul.f32 %v8162_v56, %v7907_v42  ;;  %v4715_v27 = vsel %vm653_vm0, %v4413_v35, 0.0  ;;  %v16229_v42 = vld [vmem:[#allocation140_spill] sm:$0xff]  ;;  %v13069_v35 = vpop.f32.mrb[232].mxu0 }
 0xd38   :  { %4707 = vadd.xlane.f32.xlu1 %v4706_v43 }
 0xd49   :  { %5775 = vperm.xlu1 %7843, %v5475_v0  }
 0xd4d   :  { %4075 = vperm.xlu1 %7843, %v12931_v3   ;;  %4716 = vadd.xlane.f32.xlu0 %v4715_v27  ;;  %v2572_v3 = vpop.f32.mrb[233].mxu0  ;;  %v13071_v27 = vpop.xlane.xlu0 %4608 }
 0xd4e   :  { %v13073_v54 = vpop.f32.mrb[234].mxu0  ;;  %v13085_v3 = vsub.f32 %v12455_v55, %v12577_v36 }
 0xd4f   :  { %16231 = vst [vmem:[#allocation237_spill] sm:$0xff] %v13073_v54  ;;  %v2577_v13 = vpop.f32.mrb[235].mxu0 }
 0xd50   :  { %16233 = vst [vmem:[#allocation239_spill] sm:$0xff] %v13085_v3 }
 0xd51   :  { %v3911_v19 = vpop.permute.xlu0 %3910 }
 0xd53   :  { %v13061_v9 = vpop.xlane.xlu1 %4695 }
 0xd54   :  { %16228 = vst [vmem:[#allocation234_spill] sm:$0xff] %v13061_v9  ;;  %v13104_v9 = vpop.f32.mrb[236].mxu0 }
 0xd57   :  { %v5756_v43 = vpop.permute.xlu1 %5755 }
 0xd58   :  { %v6299_v56 = vmul.f32 %v5756_v43, %v16229_v42  ;;  %v13077_v43 = vsub.f32 %v12400_v16, %v3911_v19  ;;  %v8163_v16 = vld [vmem:[%s14963_s2 + $0x150] sm:$0xff]  ;;  %v13092_v19 = vpop.f32.mrb[244].mxu1 }
 0xd5a   :  { %v7127_v0 = vadd.f32 %v16230_v58, %v6299_v56  ;;  %16232 = vst [vmem:[#allocation236_spill] sm:$0xff] %v13077_v43  ;;  %v4925_v58 = vmul.f32 0.020408163, %v12991_v59  ;;  %v4412_v42 = vmul.f32 %v13077_v43, %v13077_v43  ;;  %v16235_v43 = vld [vmem:[#allocation149_spill] sm:$0xff] }
 0xd5b   :  { %v13098_v36 = vpop.permute.xlu1 %4055 }
 0xd5c   :  { %7265 = vst.msk [vmem:[%s14965_s4 + $0x120] sm:$0xff] %vm653_vm0, %v7127_v0  ;;  %v5201_v56 = vadd.f32 0.001, %v4925_v58  ;;  %v4712_v0 = vsel %vm653_vm0, %v4412_v42, 0.0  ;;  %v3426_v42 = vpop.f32.mrb[245].mxu1 }
 0xd5e   :  { %7908 = vrsqrt.f32 %v5201_v56  ;;  %v13095_v56 = vpop.f32.mrb[246].mxu1 }
 0xd5f   :  { %v3431_v55 = vpop.f32.mrb[247].mxu1 }
 0xd63   :  { %4090 = vperm.xlu0 %7842, %v12980_v29   ;;  %v4415_v29 = vmul.f32 %v13085_v3, %v13085_v3 }
 0xd65   :  { %v4721_v58 = vsel %vm653_vm0, %v4415_v29, 0.0  ;;  %v2582_v29 = vpop.f32.mrb[237].mxu0 }
 0xd68   :  { %v7909_v13 = vpop.eup %7908 }
 0xd69   :  { %v5477_v59 = vmul.f32 %v8163_v16, %v7909_v13  ;;  %v16236_v13 = vld [vmem:[#allocation22_spill] sm:$0xff] }
 0xd71   :  { %4713 = vadd.xlane.f32.xlu1 %v4712_v0 }
 0xd82   :  { %5785 = vperm.xlu1 %7843, %v5477_v59   ;;  %4722 = vadd.xlane.f32.xlu0 %v4721_v58  ;;  %v13110_v59 = vpop.f32.mrb[238].mxu0  ;;  %v13113_v58 = vpop.xlane.xlu0 %4614 }
 0xd83   :  { %16237 = vst [vmem:[#allocation241_spill] sm:$0xff] %v13110_v59 }
 0xd86   :  { %4085 = vperm.xlu1 %7843, %v12974_v21   ;;  %v2587_v21 = vpop.f32.mrb[239].mxu0  ;;  %v3921_v42 = vpop.permute.xlu0 %3920 }
 0xd8c   :  { %v13100_v0 = vpop.xlane.xlu1 %4701 }
 0xd8d   :  { %16234 = vst [vmem:[#allocation238_spill] sm:$0xff] %v13100_v0 }
 0xd90   :  { %v5766_v3 = vpop.permute.xlu1 %5765 }
 0xd91   :  { %v6301_v54 = vmul.f32 %v5766_v3, %v16235_v43  ;;  %v13116_v43 = vsub.f32 %v12436_v53, %v3921_v42 }
 0xd93   :  { %v7129_v16 = vadd.f32 %v16236_v13, %v6301_v54  ;;  %16238 = vst [vmem:[#allocation240_spill] sm:$0xff] %v13116_v43  ;;  %v4927_v54 = vmul.f32 0.020408163, %v13030_v31  ;;  %v4414_v3 = vmul.f32 %v13116_v43, %v13116_v43 }
 0xd95   :  { %7267 = vst.msk [vmem:[%s14965_s4 + $0x130] sm:$0xff] %vm653_vm0, %v7129_v16  ;;  %v5203_v55 = vadd.f32 0.001, %v4927_v54  ;;  %v4718_v13 = vsel %vm653_vm0, %v4414_v3, 0.0  ;;  %v13124_v16 = vsub.f32 %v12496_v5, %v12616_v52  ;;  %v8164_v3 = vld [vmem:[%s14963_s2 + $0x160] sm:$0xff]  ;;  %v13137_v5 = vpop.permute.xlu1 %4065 }
 0xd97   :  { %7910 = vrsqrt.f32 %v5203_v55  ;;  %16239 = vst [vmem:[#allocation243_spill] sm:$0xff] %v13124_v16  ;;  %v4417_v53 = vmul.f32 %v13124_v16, %v13124_v16 }
 0xd98   :  { %4100 = vperm.xlu0 %7842, %v13020_v15   ;;  %v13126_v15 = vpop.f32.mrb[248].mxu1 }
 0xd99   :  { %v3436_v29 = vpop.f32.mrb[249].mxu1  ;;  %v4727_v54 = vsel %vm653_vm0, %v4417_v53, 0.0 }
 0xd9a   :  { %v13130_v21 = vpop.f32.mrb[250].mxu1  ;;  %v13141_v29 = vpop.f32.mrb[240].mxu0 }
 0xd9b   :  { %v3441_v31 = vpop.f32.mrb[251].mxu1  ;;  %v2592_v43 = vpop.f32.mrb[241].mxu0 }
 0xd9c   :  { %v16240_v31 = vld [vmem:[#allocation159_spill] sm:$0xff]  ;;  %v13144_v53 = vpop.f32.mrb[242].mxu0  ;;  %v4929_v43 = vmul.f32 0.020408163, %v13071_v27 }
 0xd9d   :  { %16241 = vst [vmem:[#allocation242_spill] sm:$0xff] %v13144_v53  ;;  %v2597_v0 = vpop.f32.mrb[243].mxu0  ;;  %v16246_v53 = vld [vmem:[#allocation26_spill] sm:$0xff] }
 0xda1   :  { %v7911_v42 = vpop.eup %7910 }
 0xda2   :  { %v5479_v55 = vmul.f32 %v8164_v3, %v7911_v42 }
 0xdaa   :  { %4719 = vadd.xlane.f32.xlu1 %v4718_v13 }
 0xdb7   :  { %4728 = vadd.xlane.f32.xlu0 %v4727_v54  ;;  %v16242_v54 = vld [vmem:[#allocation24_spill] sm:$0xff] }
 0xdbb   :  { %5795 = vperm.xlu1 %7843, %v5479_v55  }
 0xdbf   :  { %4095 = vperm.xlu1 %7843, %v13015_v8   ;;  %v13152_v8 = vpop.xlane.xlu0 %4620 }
 0xdc3   :  { %v3931_v42 = vpop.permute.xlu0 %3930 }
 0xdc4   :  { %v13155_v3 = vsub.f32 %v12472_v44, %v3931_v42 }
 0xdc5   :  { %v13139_v52 = vpop.xlane.xlu1 %4707 }
 0xdc6   :  { %v4416_v55 = vmul.f32 %v13155_v3, %v13155_v3 }
 0xdc8   :  { %v4724_v0 = vsel %vm653_vm0, %v4416_v55, 0.0 }
 0xdc9   :  { %v5776_v13 = vpop.permute.xlu1 %5775 }
 0xdca   :  { %v6303_v16 = vmul.f32 %v5776_v13, %v16240_v31 }
 0xdcc   :  { %v7131_v59 = vadd.f32 %v16242_v54, %v6303_v16  ;;  %v5205_v16 = vadd.f32 0.001, %v4929_v43 }
 0xdcd   :  { %4110 = vperm.xlu0 %7842, %v13057_v49   ;;  %v13163_v49 = vsub.f32 %v12536_v14, %v12655_v33  ;;  %v8165_v14 = vld [vmem:[%s14963_s2 + $0x170] sm:$0xff]  ;;  %v13176_v43 = vpop.permute.xlu1 %4075 }
 0xdce   :  { %7269 = vst.msk [vmem:[%s14965_s4 + $0x140] sm:$0xff] %vm653_vm0, %v7131_v59  ;;  %7912 = vrsqrt.f32 %v5205_v16  ;;  %v13165_v59 = vpop.f32.mrb[252].mxu1  ;;  %v13180_v16 = vpop.f32.mrb[244].mxu0 }
 0xdcf   :  { %16243 = vst [vmem:[#allocation245_spill] sm:$0xff] %v13163_v49  ;;  %v4419_v44 = vmul.f32 %v13163_v49, %v13163_v49  ;;  %v3446_v13 = vpop.f32.mrb[253].mxu1 }
 0xdd0   :  { %v13169_v31 = vpop.f32.mrb[254].mxu1 }
 0xdd1   :  { %v4733_v27 = vsel %vm653_vm0, %v4419_v44, 0.0  ;;  %v3451_v54 = vpop.f32.mrb[255].mxu1 }
 0xdd2   :  { %v16245_v54 = vld [vmem:[#allocation166_spill] sm:$0xff] }
 0xdd8   :  { %v7913_v42 = vpop.eup %7912 }
 0xdd9   :  { %v5481_v33 = vmul.f32 %v8165_v14, %v7913_v42  ;;  %v13193_v14 = vpop.f32.mrb[0].mxu1 }
 0xde3   :  { %4725 = vadd.xlane.f32.xlu1 %v4724_v0  ;;  %v2602_v0 = vpop.f32.mrb[245].mxu0 }
 0xde4   :  { %v13182_v13 = vpop.f32.mrb[246].mxu0 }
 0xde5   :  { %16244 = vst [vmem:[#allocation244_spill] sm:$0xff] %v13182_v13  ;;  %v2607_v44 = vpop.f32.mrb[247].mxu0  ;;  %v16249_v13 = vld [vmem:[#allocation28_spill] sm:$0xff] }
 0xdec   :  { %4734 = vadd.xlane.f32.xlu0 %v4733_v27 }
 0xdf4   :  { %5805 = vperm.xlu1 %7843, %v5481_v33   ;;  %v3456_v33 = vpop.f32.mrb[1].mxu1 }
 0xdf5   :  { %v13208_v33 = vpop.f32.mrb[2].mxu1 }
 0xdf8   :  { %4105 = vperm.xlu1 %7843, %v13053_v18   ;;  %v13191_v18 = vpop.xlane.xlu0 %4626 }
 0xdfc   :  { %v3941_v0 = vpop.permute.xlu0 %3940 }
 0xdfd   :  { %v13196_v44 = vsub.f32 %v12511_v28, %v3941_v0 }
 0xdfe   :  { %v13178_v55 = vpop.xlane.xlu1 %4713 }
 0xe02   :  { %4120 = vperm.xlu0 %7842, %v13095_v56   ;;  %v5786_v27 = vpop.permute.xlu1 %5785  ;;  %v4931_v56 = vmul.f32 0.020408163, %v13113_v58  ;;  %v3461_v58 = vpop.f32.mrb[3].mxu1 }
 0xe03   :  { %v6305_v49 = vmul.f32 %v5786_v27, %v16245_v54  ;;  %v4418_v27 = vmul.f32 %v13196_v44, %v13196_v44 }
 0xe05   :  { %v7133_v42 = vadd.f32 %v16246_v53, %v6305_v49  ;;  %v13203_v53 = vsub.f32 %v12575_v48, %v12694_v17  ;;  %v5207_v49 = vadd.f32 0.001, %v4931_v56  ;;  %v4730_v54 = vsel %vm653_vm0, %v4418_v27, 0.0  ;;  %v8166_v48 = vld [vmem:[%s14963_s2 + $0x180] sm:$0xff]  ;;  %v13217_v27 = vpop.f32.mrb[248].mxu0 }
 0xe06   :  { %v13215_v56 = vpop.permute.xlu1 %4085 }
 0xe07   :  { %7271 = vst.msk [vmem:[%s14965_s4 + $0x150] sm:$0xff] %vm653_vm0, %v7133_v42  ;;  %16247 = vst [vmem:[#allocation247_spill] sm:$0xff] %v13203_v53  ;;  %v4421_v42 = vmul.f32 %v13203_v53, %v13203_v53  ;;  %7914 = vrsqrt.f32 %v5207_v49  ;;  %v2612_v49 = vpop.f32.mrb[249].mxu0 }
 0xe09   :  { %v4739_v28 = vsel %vm653_vm0, %v4421_v42, 0.0 }
 0xe11   :  { %v7915_v0 = vpop.eup %7914 }
 0xe12   :  { %v5483_v17 = vmul.f32 %v8166_v48, %v7915_v0  ;;  %v13232_v48 = vpop.f32.mrb[4].mxu1 }
 0xe1c   :  { %4731 = vadd.xlane.f32.xlu1 %v4730_v54  ;;  %v13219_v54 = vpop.f32.mrb[250].mxu0 }
 0xe1d   :  { %16248 = vst [vmem:[#allocation246_spill] sm:$0xff] %v13219_v54  ;;  %v2617_v53 = vpop.f32.mrb[251].mxu0 }
 0xe21   :  { %4740 = vadd.xlane.f32.xlu0 %v4739_v28 }
 0xe2d   :  { %5815 = vperm.xlu1 %7843, %v5483_v17   ;;  %v3466_v17 = vpop.f32.mrb[5].mxu1 }
 0xe2e   :  { %v13234_v49 = vpop.f32.mrb[6].mxu1 }
 0xe31   :  { %4115 = vperm.xlu1 %7843, %v13092_v19   ;;  %v13230_v19 = vpop.xlane.xlu0 %4632 }
 0xe35   :  { %v3951_v53 = vpop.permute.xlu0 %3950 }
 0xe36   :  { %v13237_v54 = vsub.f32 %v12548_v40, %v3951_v53 }
 0xe37   :  { %4130 = vperm.xlu0 %7842, %v13130_v21   ;;  %v13222_v42 = vpop.xlane.xlu1 %4719  ;;  %v3471_v21 = vpop.f32.mrb[7].mxu1 }
 0xe3b   :  { %v5796_v28 = vpop.permute.xlu1 %5795 }
 0xe3c   :  { %v6307_v58 = vmul.f32 %v5796_v28, %v12342_v23  ;;  %v13241_v23 = vsub.f32 %v12614_v11, %v12736_v60  ;;  %v4420_v28 = vmul.f32 %v13237_v54, %v13237_v54  ;;  %v8167_v11 = vld [vmem:[%s14963_s2 + $0x190] sm:$0xff] }
 0xe3e   :  { %v7135_v0 = vadd.f32 %v16249_v13, %v6307_v58  ;;  %16250 = vst [vmem:[#allocation249_spill] sm:$0xff] %v13241_v23  ;;  %v4933_v13 = vmul.f32 0.020408163, %v13152_v8  ;;  %v4423_v58 = vmul.f32 %v13241_v23, %v13241_v23  ;;  %v4736_v17 = vsel %vm653_vm0, %v4420_v28, 0.0  ;;  %v13254_v8 = vpop.f32.mrb[252].mxu0  ;;  %v16252_v23 = vld [vmem:[#allocation30_spill] sm:$0xff] }
 0xe3f   :  { %v2622_v53 = vpop.f32.mrb[253].mxu0 }
 0xe40   :  { %7273 = vst.msk [vmem:[%s14965_s4 + $0x160] sm:$0xff] %vm653_vm0, %v7135_v0  ;;  %v5209_v0 = vadd.f32 0.001, %v4933_v13  ;;  %v4745_v21 = vsel %vm653_vm0, %v4423_v58, 0.0  ;;  %v13256_v13 = vpop.permute.xlu1 %4095  ;;  %v13259_v28 = vpop.f32.mrb[254].mxu0  ;;  %v13275_v53 = vsub.f32 %v12653_v4, %v12775_v10 }
 0xe41   :  { %16251 = vst [vmem:[#allocation248_spill] sm:$0xff] %v13259_v28  ;;  %v2627_v58 = vpop.f32.mrb[255].mxu0 }
 0xe42   :  { %7916 = vrsqrt.f32 %v5209_v0  ;;  %16253 = vst [vmem:[#allocation251_spill] sm:$0xff] %v13275_v53 }
 0xe4c   :  { %v7917_v40 = vpop.eup %7916 }
 0xe4d   :  { %v5485_v60 = vmul.f32 %v8167_v11, %v7917_v40  ;;  %v13271_v11 = vpop.f32.mrb[8].mxu1 }
 0xe55   :  { %4737 = vadd.xlane.f32.xlu1 %v4736_v17 }
 0xe56   :  { %4746 = vadd.xlane.f32.xlu0 %v4745_v21 }
 0xe66   :  { %5825 = vperm.xlu1 %7843, %v5485_v60  }
 0xe6a   :  { %4125 = vperm.xlu1 %7843, %v13126_v15   ;;  %v13269_v15 = vpop.xlane.xlu0 %4638 }
 0xe6c   :  { %4140 = vperm.xlu0 %7842, %v13169_v31   ;;  %v3476_v31 = vpop.f32.mrb[9].mxu1 }
 0xe6d   :  { %v13277_v58 = vpop.f32.mrb[10].mxu1 }
 0xe6e   :  { %v3961_v60 = vpop.permute.xlu0 %3960 }
 0xe70   :  { %v13261_v0 = vpop.xlane.xlu1 %4725 }
 0xe74   :  { %v5806_v17 = vpop.permute.xlu1 %5805 }
 0xe75   :  { %v6309_v21 = vmul.f32 %v5806_v17, %v12379_v50  ;;  %v3481_v50 = vpop.f32.mrb[11].mxu1  ;;  %v4425_v17 = vmul.f32 %v13275_v53, %v13275_v53 }
 0xe76   :  { %v13292_v50 = vpop.f32.mrb[0].mxu0 }
 0xe77   :  { %v7137_v40 = vadd.f32 %v16252_v23, %v6309_v21  ;;  %v13280_v23 = vsub.f32 %v12583_v61, %v3961_v60  ;;  %v4935_v21 = vmul.f32 0.020408163, %v13191_v18  ;;  %v4751_v31 = vsel %vm653_vm0, %v4425_v17, 0.0  ;;  %v8168_v61 = vld [vmem:[%s14963_s2 + $0x1a0] sm:$0xff]  ;;  %v2632_v18 = vpop.f32.mrb[1].mxu0 }
 0xe78   :  { %v13295_v53 = vpop.f32.mrb[2].mxu0 }
 0xe79   :  { %7275 = vst.msk [vmem:[%s14965_s4 + $0x170] sm:$0xff] %vm653_vm0, %v7137_v40  ;;  %v4422_v40 = vmul.f32 %v13280_v23, %v13280_v23  ;;  %v5211_v28 = vadd.f32 0.001, %v4935_v21  ;;  %16254 = vst [vmem:[#allocation250_spill] sm:$0xff] %v13295_v53  ;;  %v2637_v17 = vpop.f32.mrb[3].mxu0  ;;  %v13298_v21 = vpop.permute.xlu1 %4105 }
 0xe7b   :  { %v4742_v4 = vsel %vm653_vm0, %v4422_v40, 0.0  ;;  %7918 = vrsqrt.f32 %v5211_v28 }
 0xe85   :  { %v7919_v10 = vpop.eup %7918 }
 0xe86   :  { %v5487_v60 = vmul.f32 %v8168_v61, %v7919_v10  ;;  %v13312_v61 = vsub.f32 %v12692_v37, %v12814_v30 }
 0xe88   :  { %16256 = vst [vmem:[#allocation253_spill] sm:$0xff] %v13312_v61 }
 0xe8b   :  { %4752 = vadd.xlane.f32.xlu0 %v4751_v31 }
 0xe8e   :  { %4743 = vadd.xlane.f32.xlu1 %v4742_v4  ;;  %v16255_v4 = vld [vmem:[#allocation32_spill] sm:$0xff] }
 0xe9f   :  { %5835 = vperm.xlu1 %7843, %v5487_v60  }
 0xea1   :  { %4150 = vperm.xlu0 %7842, %v13208_v33   ;;  %v13308_v33 = vpop.xlane.xlu0 %4644 }
 0xea3   :  { %4135 = vperm.xlu1 %7843, %v13165_v59   ;;  %v13314_v59 = vpop.f32.mrb[12].mxu1 }
 0xea4   :  { %v3486_v60 = vpop.f32.mrb[13].mxu1 }
 0xea5   :  { %v3971_v18 = vpop.permute.xlu0 %3970  ;;  %v13318_v17 = vpop.f32.mrb[14].mxu1 }
 0xea9   :  { %v13300_v28 = vpop.xlane.xlu1 %4731 }
 0xead   :  { %v5816_v40 = vpop.permute.xlu1 %5815 }
 0xeae   :  { %v6311_v31 = vmul.f32 %v5816_v40, %v12416_v32  ;;  %v4427_v32 = vmul.f32 %v13312_v61, %v13312_v61  ;;  %v3491_v40 = vpop.f32.mrb[15].mxu1  ;;  %v13328_v61 = vpop.f32.mrb[4].mxu0 }
 0xeaf   :  { %v2642_v40 = vpop.f32.mrb[5].mxu0 }
 0xeb0   :  { %v7139_v10 = vadd.f32 %v16255_v4, %v6311_v31  ;;  %v13321_v31 = vsub.f32 %v12620_v12, %v3971_v18  ;;  %v4757_v4 = vsel %vm653_vm0, %v4427_v32, 0.0  ;;  %v8169_v12 = vld [vmem:[%s14963_s2 + $0x1b0] sm:$0xff]  ;;  %v16259_v40 = vld [vmem:[#allocation34_spill] sm:$0xff] }
 0xeb2   :  { %7277 = vst.msk [vmem:[%s14965_s4 + $0x180] sm:$0xff] %vm653_vm0, %v7139_v10  ;;  %16257 = vst [vmem:[#allocation252_spill] sm:$0xff] %v13321_v31  ;;  %v4937_v10 = vmul.f32 0.020408163, %v13230_v19  ;;  %v4424_v37 = vmul.f32 %v13321_v31, %v13321_v31  ;;  %v13334_v19 = vpop.f32.mrb[6].mxu0 }
 0xeb3   :  { %16258 = vst [vmem:[#allocation255_spill] sm:$0xff] %v13334_v19  ;;  %v2647_v32 = vpop.f32.mrb[7].mxu0 }
 0xeb4   :  { %v5213_v30 = vadd.f32 0.001, %v4937_v10  ;;  %v4748_v60 = vsel %vm653_vm0, %v4424_v37, 0.0  ;;  %v13339_v10 = vpop.f32.mrb[16].mxu1 }
 0xeb5   :  { %v3496_v37 = vpop.f32.mrb[17].mxu1 }
 0xeb6   :  { %7920 = vrsqrt.f32 %v5213_v30 }
 0xec0   :  { %4758 = vadd.xlane.f32.xlu0 %v4757_v4  ;;  %v7921_v53 = vpop.eup %7920  ;;  %v13337_v4 = vpop.permute.xlu1 %4115 }
 0xec1   :  { %v5489_v18 = vmul.f32 %v8169_v12, %v7921_v53  ;;  %v13353_v53 = vpop.xlane.xlu0 %4650 }
 0xec7   :  { %4749 = vadd.xlane.f32.xlu1 %v4748_v60 }
 0xed6   :  { %4160 = vperm.xlu0 %7842, %v13234_v49  }
 0xed8   :  { %5845 = vperm.xlu1 %7843, %v5489_v18   ;;  %v13357_v18 = vpop.f32.mrb[18].mxu1 }
 0xed9   :  { %v3501_v32 = vpop.f32.mrb[19].mxu1 }
 0xedc   :  { %4145 = vperm.xlu1 %7843, %v13193_v14   ;;  %v13351_v14 = vsub.f32 %v12730_v51, %v12855_v34 }
 0xede   :  { %16260 = vst [vmem:[#allocation254_spill] sm:$0xff] %v13351_v14  ;;  %v4429_v12 = vmul.f32 %v13351_v14, %v13351_v14 }
 0xee0   :  { %v4763_v37 = vsel %vm653_vm0, %v4429_v12, 0.0 }
 0xee2   :  { %v13341_v30 = vpop.xlane.xlu1 %4737 }
 0xee6   :  { %v5826_v60 = vpop.permute.xlu1 %5825 }
 0xee7   :  { %v6313_v49 = vmul.f32 %v5826_v60, %v12450_v24  ;;  %v3981_v24 = vpop.permute.xlu0 %3980 }
 0xee8   :  { %v13361_v60 = vsub.f32 %v12657_v1, %v3981_v24 }
 0xee9   :  { %v7141_v31 = vadd.f32 %v16259_v40, %v6313_v49  ;;  %v13367_v40 = vpop.f32.mrb[8].mxu0 }
 0xeea   :  { %v4426_v51 = vmul.f32 %v13361_v60, %v13361_v60  ;;  %v2652_v32 = vpop.f32.mrb[9].mxu0 }
 0xeeb   :  { %7279 = vst.msk [vmem:[%s14965_s4 + $0x190] sm:$0xff] %vm653_vm0, %v7141_v31  ;;  %v4939_v31 = vmul.f32 0.020408163, %v13269_v15  ;;  %v13369_v14 = vpop.f32.mrb[10].mxu0  ;;  %v8170_v15 = vld [vmem:[%s14963_s2 + $0x1c0] sm:$0xff] }
 0xeec   :  { %v4754_v49 = vsel %vm653_vm0, %v4426_v51, 0.0  ;;  %16261 = vst [vmem:[#allocation257_spill] sm:$0xff] %v13369_v14  ;;  %v2657_v12 = vpop.f32.mrb[11].mxu0 }
 0xeed   :  { %v5215_v34 = vadd.f32 0.001, %v4939_v31  ;;  %v13392_v12 = vpop.xlane.xlu0 %4656 }
 0xeef   :  { %7922 = vrsqrt.f32 %v5215_v34 }
 0xef5   :  { %4764 = vadd.xlane.f32.xlu0 %v4763_v37  ;;  %v13376_v37 = vpop.permute.xlu1 %4125 }
 0xef9   :  { %v7923_v1 = vpop.eup %7922 }
 0xefa   :  { %v5491_v24 = vmul.f32 %v8170_v15, %v7923_v1 }
 0xf00   :  { %4755 = vadd.xlane.f32.xlu1 %v4754_v49  ;;  %v13383_v49 = vsub.f32 %v12769_v25, %v12894_v22  ;;  %v4941_v25 = vmul.f32 0.020408163, %v13308_v33  ;;  %v8171_v33 = vld [vmem:[%s14963_s2 + $0x1d0] sm:$0xff] }
 0xf02   :  { %16262 = vst [vmem:[#allocation256_spill] sm:$0xff] %v13383_v49 }
 0xf0b   :  { %4170 = vperm.xlu0 %7842, %v13277_v58   ;;  %v16263_v58 = vld [vmem:[#allocation36_spill] sm:$0xff] }
 0xf11   :  { %5855 = vperm.xlu1 %7843, %v5491_v24   ;;  %v5217_v24 = vadd.f32 0.001, %v4941_v25 }
 0xf13   :  { %7924 = vrsqrt.f32 %v5217_v24 }
 0xf15   :  { %4155 = vperm.xlu1 %7843, %v13232_v48   ;;  %v4431_v48 = vmul.f32 %v13383_v49, %v13383_v49 }
 0xf17   :  { %v4769_v1 = vsel %vm653_vm0, %v4431_v48, 0.0 }
 0xf1b   :  { %v13378_v31 = vpop.xlane.xlu1 %4743 }
 0xf1f   :  { %v5836_v51 = vpop.permute.xlu1 %5835 }
 0xf20   :  { %v6315_v34 = vmul.f32 %v5836_v51, %v12486_v38  ;;  %v3991_v38 = vpop.permute.xlu0 %3990 }
 0xf21   :  { %v13396_v15 = vsub.f32 %v12696_v63, %v3991_v38  ;;  %v7925_v63 = vpop.eup %7924 }
 0xf22   :  { %v7143_v32 = vadd.f32 %v16263_v58, %v6315_v34  ;;  %v13402_v34 = vpop.f32.mrb[12].mxu0 }
 0xf23   :  { %v4428_v22 = vmul.f32 %v13396_v15, %v13396_v15  ;;  %v2662_v58 = vpop.f32.mrb[13].mxu0  ;;  %v13411_v38 = vpop.permute.xlu1 %4135 }
 0xf24   :  { %7281 = vst.msk [vmem:[%s14965_s4 + $0x1a0] sm:$0xff] %vm653_vm0, %v7143_v32  ;;  %v13404_v32 = vpop.f32.mrb[14].mxu0  ;;  %v16266_v58 = vld [vmem:[#allocation38_spill] sm:$0xff] }
 0xf25   :  { %v4760_v51 = vsel %vm653_vm0, %v4428_v22, 0.0  ;;  %16264 = vst [vmem:[#allocation259_spill] sm:$0xff] %v13404_v32  ;;  %v2667_v48 = vpop.f32.mrb[15].mxu0  ;;  %v13417_v22 = vsub.f32 %v12805_v6, %v12933_v47 }
 0xf27   :  { %16265 = vst [vmem:[#allocation258_spill] sm:$0xff] %v13417_v22 }
 0xf2a   :  { %4770 = vadd.xlane.f32.xlu0 %v4769_v1  ;;  %v5493_v1 = vmul.f32 %v8171_v33, %v7925_v63  ;;  %v13428_v63 = vpop.xlane.xlu0 %4662 }
 0xf2e   :  { %v4001_v6 = vpop.permute.xlu0 %4000 }
 0xf2f   :  { %v13431_v47 = vsub.f32 %v12734_v7, %v4001_v6  ;;  %v16268_v7 = vmov 1  }
 0xf31   :  { %v4430_v33 = vmul.f32 %v13431_v47, %v13431_v47 }
 0xf39   :  { %4761 = vadd.xlane.f32.xlu1 %v4760_v51  ;;  %v4433_v51 = vmul.f32 %v13417_v22, %v13417_v22  ;;  %v16272_v22 = vld [vmem:[#allocation189_spill] sm:$0xff] }
 0xf40   :  { %4180 = vperm.xlu0 %7842, %v13318_v17  }
 0xf4a   :  { %5865 = vperm.xlu1 %7843, %v5493_v1  }
 0xf4e   :  { %4165 = vperm.xlu1 %7843, %v13271_v11   ;;  %v4775_v11 = vsel %vm653_vm0, %v4433_v51, 0.0 }
 0xf54   :  { %v13413_v25 = vpop.xlane.xlu1 %4749 }
 0xf58   :  { %v5846_v24 = vpop.permute.xlu1 %5845 }
 0xf59   :  { %v6317_v17 = vmul.f32 %v5846_v24, %v12525_v26  ;;  %v4943_v26 = vmul.f32 0.020408163, %v13353_v53  ;;  %v4766_v24 = vsel %vm653_vm0, %v4430_v33, 0.0  ;;  %v8172_v53 = vld [vmem:[%s14963_s2 + $0x1e0] sm:$0xff]  ;;  %v13449_v33 = vsub.f32 %v12844_v41, %v12976_v62  ;;  %v16275_v62 = vld [vmem:[#allocation40_spill] sm:$0xff] }
 0xf5b   :  { %v7145_v48 = vadd.f32 %v16266_v58, %v6317_v17  ;;  %v5219_v1 = vadd.f32 0.001, %v4943_v26  ;;  %v13437_v17 = vpop.f32.mrb[16].mxu0  ;;  %16269 = vst [vmem:[#allocation260_spill] sm:$0xff] %v13449_v33 }
 0xf5c   :  { %v2672_v58 = vpop.f32.mrb[17].mxu0  ;;  %v4146_v26 = vpop.permute.xlu1 %4145 }
 0xf5d   :  { %7283 = vst.msk [vmem:[%s14965_s4 + $0x1b0] sm:$0xff] %vm653_vm0, %v7145_v48  ;;  %v13439_v51 = vpop.f32.mrb[18].mxu0  ;;  %7926 = vrsqrt.f32 %v5219_v1  ;;  %v4435_v58 = vmul.f32 %v13449_v33, %v13449_v33 }
 0xf5e   :  { %16267 = vst [vmem:[#allocation261_spill] sm:$0xff] %v13439_v51  ;;  %v2677_v48 = vpop.f32.mrb[19].mxu0  ;;  %v5149_v51 = vld [vmem:[%s14963_s2 + $0x400] sm:$0xff] }
 0xf5f   :  { %4776 = vadd.xlane.f32.xlu0 %v4775_v11 }
 0xf67   :  { %v7927_v11 = vpop.eup %7926 }
 0xf68   :  { %v5495_v6 = vmul.f32 %v8172_v53, %v7927_v11  ;;  %v16273_v53 = vld [vmem:[#allocation220_spill] sm:$0xff] }
 0xf72   :  { %4767 = vadd.xlane.f32.xlu1 %v4766_v24 }
 0xf75   :  { %4190 = vperm.xlu0 %7842, %v13357_v18   ;;  %v16270_v18 = vld [vmem:[#allocation217_spill] sm:$0xff] }
 0xf76   :  { %v13455_v24 = vsub.f32 %v16270_v18, %v13017_v39  ;;  %v16276_v39 = vld [vmem:[#allocation227_spill] sm:$0xff] }
 0xf78   :  { %16271 = vst [vmem:[#allocation263_spill] sm:$0xff] %v13455_v24  ;;  %v4437_v41 = vmul.f32 %v13455_v24, %v13455_v24  ;;  %v16308_v24 = vld [vmem:[#allocation137_spill] sm:$0xff] }
 0xf79   :  { %7845 = vset.pattern.permute.xlu0 %v16268_v7  ;;  %v4883_v33 = vmul.f32 0.020408163, %v16308_v24  ;;  %v16312_v24 = vld [vmem:[#allocation147_spill] sm:$0xff] }
 0xf83   :  { %5875 = vperm.xlu1 %7843, %v5495_v6   ;;  %v4781_v6 = vsel %vm653_vm0, %v4435_v58, 0.0  ;;  %v13479_v58 = vpop.xlane.xlu0 %4668 }
 0xf87   :  { %4175 = vperm.xlu1 %7843, %v13314_v59   ;;  %v13462_v59 = vsub.f32 %v16273_v53, %v13059_v57  ;;  %v4787_v57 = vsel %vm653_vm0, %v4437_v41, 0.0  ;;  %v13490_v53 = vsub.f32 %v13032_v2, %v13176_v43  ;;  %v4945_v2 = vmul.f32 0.020408163, %v13392_v12 }
 0xf89   :  { %16274 = vst [vmem:[#allocation262_spill] sm:$0xff] %v13462_v59  ;;  %v4439_v18 = vmul.f32 %v13462_v59, %v13462_v59  ;;  %16279 = vst [vmem:[#allocation267_spill] sm:$0xff] %v13490_v53  ;;  %v5145_v59 = vld [vmem:[%s14963_s2 + $0x3e0] sm:$0xff] }
 0xf8d   :  { %v13451_v1 = vpop.xlane.xlu1 %4755 }
 0xf91   :  { %v5856_v48 = vpop.permute.xlu1 %5855 }
 0xf92   :  { %v6319_v11 = vmul.f32 %v5856_v48, %v16272_v22  ;;  %v13474_v22 = vsub.f32 %v16276_v39, %v13098_v36  ;;  %v13483_v48 = vsub.f32 %v12993_v20, %v13137_v5  ;;  %v4011_v36 = vpop.permute.xlu0 %4010  ;;  %v13500_v5 = vsub.f32 %v13069_v35, %v13215_v56 }
 0xf93   :  { %v5221_v56 = vadd.f32 0.001, %v4945_v2  ;;  %v13548_v2 = vsub.f32 %v13292_v50, %v4146_v26 }
 0xf94   :  { %v7147_v49 = vadd.f32 %v16275_v62, %v6319_v11  ;;  %4782 = vadd.xlane.f32.xlu0 %v4781_v6  ;;  %16277 = vst [vmem:[#allocation265_spill] sm:$0xff] %v13474_v22  ;;  %16278 = vst [vmem:[#allocation264_spill] sm:$0xff] %v13483_v48  ;;  %v4793_v11 = vsel %vm653_vm0, %v4439_v18, 0.0  ;;  %v4443_v41 = vmul.f32 %v13483_v48, %v13483_v48  ;;  %v16280_v62 = vld [vmem:[#allocation205_spill] sm:$0xff] }
 0xf95   :  { %v13496_v20 = vsub.f32 %v16280_v62, %v4011_v36  ;;  %16281 = vst [vmem:[#allocation266_spill] sm:$0xff] %v13500_v5  ;;  %v13510_v18 = vsub.f32 %v13104_v9, %v13256_v13  ;;  %v4447_v35 = vmul.f32 %v13500_v5, %v13500_v5  ;;  %v13518_v36 = vsub.f32 %v13141_v29, %v13298_v21 }
 0xf96   :  { %7285 = vst.msk [vmem:[%s14965_s4 + $0x1c0] sm:$0xff] %vm653_vm0, %v7147_v49  ;;  %v4441_v49 = vmul.f32 %v13474_v22, %v13474_v22  ;;  %v4805_v39 = vsel %vm653_vm0, %v4443_v41, 0.0  ;;  %7928 = vrsqrt.f32 %v5221_v56  ;;  %v13525_v13 = vsub.f32 %v13180_v16, %v13337_v4  ;;  %16287 = vst [vmem:[#allocation272_spill] sm:$0xff] %v13548_v2 }
 0xf97   :  { %v4432_v43 = vmul.f32 %v13496_v20, %v13496_v20  ;;  %16282 = vst [vmem:[#allocation269_spill] sm:$0xff] %v13510_v18  ;;  %16283 = vst [vmem:[#allocation268_spill] sm:$0xff] %v13518_v36  ;;  %v4817_v12 = vsel %vm653_vm0, %v4447_v35, 0.0  ;;  %v4449_v9 = vmul.f32 %v13510_v18, %v13510_v18  ;;  %v4451_v41 = vmul.f32 %v13518_v36, %v13518_v36  ;;  %v16298_v36 = vld [vmem:[#allocation46_spill] sm:$0xff] }
 0xf98   :  { %4788 = vadd.xlane.f32.xlu0 %v4787_v57  ;;  %v4799_v6 = vsel %vm653_vm0, %v4441_v49, 0.0  ;;  %v4445_v57 = vmul.f32 %v13490_v53, %v13490_v53  ;;  %16284 = vst [vmem:[#allocation271_spill] sm:$0xff] %v13525_v13  ;;  %v13532_v29 = vsub.f32 %v13217_v27, %v13376_v37  ;;  %v4453_v62 = vmul.f32 %v13525_v13, %v13525_v13  ;;  %v8173_v27 = vld [vmem:[%s14963_s2 + $0x1f0] sm:$0xff] }
 0xf99   :  { %v4772_v49 = vsel %vm653_vm0, %v4432_v43, 0.0  ;;  %v4829_v21 = vsel %vm653_vm0, %v4451_v41, 0.0  ;;  %v13539_v16 = vsub.f32 %v13254_v8, %v13411_v38  ;;  %v4156_v38 = vpop.permute.xlu1 %4155  ;;  %v4459_v56 = vmul.f32 %v13548_v2, %v13548_v2  ;;  %v16300_v53 = vld [vmem:[#allocation216_spill] sm:$0xff] }
 0xf9a   :  { %16285 = vst [vmem:[#allocation270_spill] sm:$0xff] %v13532_v29  ;;  %v4835_v4 = vsel %vm653_vm0, %v4453_v62, 0.0 }
 0xf9b   :  { %16286 = vst [vmem:[#allocation273_spill] sm:$0xff] %v13539_v16  ;;  %v4457_v8 = vmul.f32 %v13539_v16, %v13539_v16  ;;  %v4853_v50 = vsel %vm653_vm0, %v4459_v56, 0.0 }
 0xf9c   :  { %4794 = vadd.xlane.f32.xlu0 %v4793_v11  ;;  %v4811_v11 = vsel %vm653_vm0, %v4445_v57, 0.0  ;;  %v4455_v57 = vmul.f32 %v13532_v29, %v13532_v29  ;;  %v16297_v29 = vld [vmem:[#allocation196_spill] sm:$0xff] }
 0xf9d   :  { %v4847_v35 = vsel %vm653_vm0, %v4457_v8, 0.0  ;;  %v4947_v8 = vmul.f32 0.020408163, %v13428_v63 }
 0xf9e   :  { %v4841_v43 = vsel %vm653_vm0, %v4455_v57, 0.0 }
 0xfa0   :  { %4800 = vadd.xlane.f32.xlu0 %v4799_v6  ;;  %v4823_v6 = vsel %vm653_vm0, %v4449_v9, 0.0 }
 0xfa4   :  { %4806 = vadd.xlane.f32.xlu0 %v4805_v39  ;;  %v7929_v39 = vpop.eup %7928 }
 0xfa5   :  { %v5497_v37 = vmul.f32 %v8173_v27, %v7929_v39 }
 0xfa8   :  { %4812 = vadd.xlane.f32.xlu0 %v4811_v11  ;;  %v13554_v11 = vsub.f32 %v13328_v61, %v4156_v38  ;;  %v13566_v61 = vpop.xlane.xlu0 %4674 }
 0xfaa   :  { %16288 = vst [vmem:[#allocation275_spill] sm:$0xff] %v13554_v11  ;;  %v4461_v26 = vmul.f32 %v13554_v11, %v13554_v11 }
 0xfab   :  { %4773 = vadd.xlane.f32.xlu1 %v4772_v49 }
 0xfac   :  { %4818 = vadd.xlane.f32.xlu0 %v4817_v12  ;;  %v4859_v12 = vsel %vm653_vm0, %v4461_v26, 0.0  ;;  %v4021_v27 = vpop.permute.xlu0 %4020 }
 0xfb0   :  { %4824 = vadd.xlane.f32.xlu0 %v4823_v6  ;;  %v16289_v6 = vld [vmem:[#allocation190_spill] sm:$0xff] }
 0xfb4   :  { %4830 = vadd.xlane.f32.xlu0 %v4829_v21  ;;  %v16290_v21 = vld [vmem:[#allocation42_spill] sm:$0xff] }
 0xfb8   :  { %4836 = vadd.xlane.f32.xlu0 %v4835_v4 }
 0xfbc   :  { %5885 = vperm.xlu1 %7843, %v5497_v37   ;;  %4842 = vadd.xlane.f32.xlu0 %v4841_v43  ;;  %v16292_v37 = vld [vmem:[#allocation209_spill] sm:$0xff] }
 0xfbd   :  { %v13581_v43 = vsub.f32 %v16292_v37, %v4021_v27 }
 0xfbf   :  { %v4434_v38 = vmul.f32 %v13581_v43, %v13581_v43 }
 0xfc0   :  { %4185 = vperm.xlu1 %7843, %v13339_v10   ;;  %4848 = vadd.xlane.f32.xlu0 %v4847_v35  ;;  %v5223_v35 = vadd.f32 0.001, %v4947_v8 }
 0xfc1   :  { %v4778_v56 = vsel %vm653_vm0, %v4434_v38, 0.0 }
 0xfc2   :  { %7930 = vrsqrt.f32 %v5223_v35 }
 0xfc4   :  { %4854 = vadd.xlane.f32.xlu0 %v4853_v50  ;;  %v8174_v50 = vld [vmem:[%s14963_s2 + $0x200] sm:$0xff] }
 0xfc6   :  { %v13563_v49 = vpop.xlane.xlu1 %4761 }
 0xfc8   :  { %4860 = vadd.xlane.f32.xlu0 %v4859_v12  ;;  %v13590_v12 = vpop.xlane.xlu0 %4680 }
 0xfca   :  { %v5866_v9 = vpop.permute.xlu1 %5865 }
 0xfcb   :  { %v6321_v41 = vmul.f32 %v5866_v9, %v16289_v6 }
 0xfcc   :  { %v4031_v9 = vpop.permute.xlu0 %4030 }
 0xfcd   :  { %v7149_v62 = vadd.f32 %v16290_v21, %v6321_v41 }
 0xfce   :  { %v4166_v10 = vpop.permute.xlu1 %4165 }
 0xfcf   :  { %7287 = vst.msk [vmem:[%s14965_s4 + $0x1d0] sm:$0xff] %vm653_vm0, %v7149_v62  ;;  %v13575_v39 = vsub.f32 %v13367_v40, %v4166_v10  ;;  %v7931_v40 = vpop.eup %7930  ;;  %v16293_v62 = vld [vmem:[#allocation195_spill] sm:$0xff] }
 0xfd0   :  { %v5499_v26 = vmul.f32 %v8174_v50, %v7931_v40  ;;  %v13592_v6 = vpop.xlane.xlu0 %4686  ;;  %v16296_v50 = vld [vmem:[#allocation213_spill] sm:$0xff] }
 0xfd1   :  { %16291 = vst [vmem:[#allocation274_spill] sm:$0xff] %v13575_v39  ;;  %v4463_v4 = vmul.f32 %v13575_v39, %v13575_v39 }
 0xfd3   :  { %v4865_v57 = vsel %vm653_vm0, %v4463_v4, 0.0 }
 0xfd4   :  { %4866 = vadd.xlane.f32.xlu0 %v4865_v57  ;;  %v4041_v41 = vpop.permute.xlu0 %4040  ;;  %v16294_v57 = vld [vmem:[#allocation44_spill] sm:$0xff] }
 0xfd5   :  { %v13664_v48 = vsub.f32 %v16300_v53, %v4041_v41 }
 0xfd8   :  { %v13597_v4 = vpop.xlane.xlu0 %4692 }
 0xfdc   :  { %v13607_v38 = vpop.permute.xlu0 %4050 }
 0xfe0   :  { %v13612_v40 = vpop.xlane.xlu0 %4698 }
 0xfe4   :  { %4779 = vadd.xlane.f32.xlu1 %v4778_v56 }
 0xff5   :  { %5895 = vperm.xlu1 %7843, %v5499_v26   ;;  %v13615_v26 = vsub.f32 %v16296_v50, %v4031_v9 }
 0xfff   :  { %v13594_v63 = vpop.xlane.xlu1 %4767 }
0x1003   :  { %v5876_v21 = vpop.permute.xlu1 %5875 }
0x1004   :  { %v6323_v10 = vmul.f32 %v5876_v21, %v16293_v62  ;;  %v13617_v21 = vpop.permute.xlu0 %4060  ;;  %v4949_v62 = vmul.f32 0.020408163, %v13479_v58  ;;  %v8175_v58 = vld [vmem:[%s14963_s2 + $0x210] sm:$0xff] }
0x1006   :  { %v7151_v27 = vadd.f32 %v16294_v57, %v6323_v10  ;;  %v5225_v57 = vadd.f32 0.001, %v4949_v62 }
0x1007   :  { %v4176_v37 = vpop.permute.xlu1 %4175 }
0x1008   :  { %7289 = vst.msk [vmem:[%s14965_s4 + $0x1e0] sm:$0xff] %vm653_vm0, %v7151_v27  ;;  %v13605_v8 = vsub.f32 %v13402_v34, %v4176_v37  ;;  %v4436_v34 = vmul.f32 %v13615_v26, %v13615_v26  ;;  %v13622_v10 = vpop.xlane.xlu0 %4704  ;;  %7932 = vrsqrt.f32 %v5225_v57 }
0x100a   :  { %16295 = vst [vmem:[#allocation277_spill] sm:$0xff] %v13605_v8  ;;  %v4465_v35 = vmul.f32 %v13605_v8, %v13605_v8  ;;  %v4784_v27 = vsel %vm653_vm0, %v4436_v34, 0.0 }
0x100c   :  { %v4871_v56 = vsel %vm653_vm0, %v4465_v35, 0.0  ;;  %v13625_v37 = vpop.permute.xlu0 %4070 }
0x100d   :  { %4872 = vadd.xlane.f32.xlu0 %v4871_v56 }
0x1010   :  { %v13627_v35 = vpop.xlane.xlu0 %4710 }
0x1012   :  { %v7933_v56 = vpop.eup %7932 }
0x1013   :  { %v5501_v8 = vmul.f32 %v8175_v58, %v7933_v56 }
0x1014   :  { %v13629_v9 = vpop.permute.xlu0 %4080 }
0x1018   :  { %v13631_v50 = vpop.xlane.xlu0 %4716 }
0x1019   :  { %4785 = vadd.xlane.f32.xlu1 %v4784_v27 }
0x101c   :  { %v13636_v39 = vpop.permute.xlu0 %4090 }
0x1020   :  { %v13638_v62 = vpop.xlane.xlu0 %4722 }
0x1024   :  { %v13640_v34 = vpop.permute.xlu0 %4100 }
0x1028   :  { %v13642_v57 = vpop.xlane.xlu0 %4728 }
0x102a   :  { %5905 = vperm.xlu1 %7843, %v5501_v8  }
0x102c   :  { %v13646_v11 = vpop.permute.xlu0 %4110 }
0x1030   :  { %v13648_v16 = vpop.xlane.xlu0 %4734 }
0x1034   :  { %v13652_v18 = vpop.permute.xlu0 %4120 }
0x1038   :  { %v13644_v27 = vpop.xlane.xlu1 %4773 }
0x103c   :  { %v5886_v2 = vpop.permute.xlu1 %5885 }
0x103d   :  { %v6325_v13 = vmul.f32 %v5886_v2, %v16297_v29  ;;  %v13666_v29 = vpop.xlane.xlu0 %4740 }
0x103e   :  { %16301 = vst [vmem:[#allocation279_spill] sm:$0xff] %v13666_v29  ;;  %v16321_v29 = vld [vmem:[#allocation223_spill] sm:$0xff] }
0x103f   :  { %v7153_v56 = vadd.f32 %v16298_v36, %v6325_v13  ;;  %v4951_v13 = vmul.f32 0.020408163, %v13566_v61  ;;  %v5141_v61 = vld [vmem:[%s14963_s2 + $0x3c0] sm:$0xff] }
0x1040   :  { %v4186_v58 = vpop.permute.xlu1 %4185 }
0x1041   :  { %7291 = vst.msk [vmem:[%s14965_s4 + $0x1f0] sm:$0xff] %vm653_vm0, %v7153_v56  ;;  %v13659_v8 = vsub.f32 %v13437_v17, %v4186_v58  ;;  %v13670_v2 = vpop.permute.xlu0 %4130  ;;  %v4438_v56 = vmul.f32 %v13664_v48, %v13664_v48  ;;  %v5227_v17 = vadd.f32 0.001, %v4951_v13  ;;  %v8176_v13 = vld [vmem:[%s14963_s2 + $0x220] sm:$0xff] }
0x1043   :  { %16299 = vst [vmem:[#allocation276_spill] sm:$0xff] %v13659_v8  ;;  %v4467_v5 = vmul.f32 %v13659_v8, %v13659_v8  ;;  %v4790_v8 = vsel %vm653_vm0, %v4438_v56, 0.0  ;;  %7934 = vrsqrt.f32 %v5227_v17  ;;  %v5143_v56 = vld [vmem:[%s14963_s2 + $0x3d0] sm:$0xff] }
0x1045   :  { %v4877_v36 = vsel %vm653_vm0, %v4467_v5, 0.0  ;;  %v13674_v58 = vpop.xlane.xlu0 %4746 }
0x1046   :  { %4878 = vadd.xlane.f32.xlu0 %v4877_v36  ;;  %16302 = vst [vmem:[#allocation278_spill] sm:$0xff] %v13674_v58 }
0x1049   :  { %v13677_v53 = vpop.permute.xlu0 %4140 }
0x104d   :  { %v13679_v41 = vpop.xlane.xlu0 %4752  ;;  %v7935_v36 = vpop.eup %7934 }
0x104e   :  { %4791 = vadd.xlane.f32.xlu1 %v4790_v8  ;;  %16303 = vst [vmem:[#allocation281_spill] sm:$0xff] %v13679_v41  ;;  %v5503_v8 = vmul.f32 %v8176_v13, %v7935_v36  ;;  %v5147_v36 = vld [vmem:[%s14963_s2 + $0x3f0] sm:$0xff]  ;;  %v16314_v41 = vld [vmem:[#allocation146_spill] sm:$0xff] }
0x104f   :  { %v4890_v14 = vmul.f32 0.020408163, %v16314_v41  ;;  %v16318_v41 = vld [vmem:[#allocation48_spill] sm:$0xff] }
0x1051   :  { %v13681_v5 = vpop.permute.xlu0 %4150 }
0x1052   :  { %16304 = vst [vmem:[#allocation280_spill] sm:$0xff] %v13681_v5  ;;  %v13738_v5 = vsub.f32 %v16321_v29, %v13607_v38  ;;  %v16324_v29 = vld [vmem:[#allocation153_spill] sm:$0xff] }
0x1055   :  { %v13686_v22 = vpop.xlane.xlu0 %4758 }
0x1056   :  { %16305 = vst [vmem:[#allocation111_spill] sm:$0xff] %v13686_v22  ;;  %v4888_v22 = vmul.f32 0.020408163, %v16312_v24  ;;  %v5155_v24 = vld [vmem:[%s14963_s2 + $0x430] sm:$0xff] }
0x1059   :  { %v13694_v17 = vpop.permute.xlu0 %4160 }
0x105a   :  { %16306 = vst [vmem:[#allocation285_spill] sm:$0xff] %v13694_v17 }
0x105c   :  { %7003 = vperm.xlu0 %7845, %v5141_v61  }
0x105d   :  { %v13699_v61 = vpop.xlane.xlu0 %4764 }
0x105e   :  { %16307 = vst [vmem:[#allocation113_spill] sm:$0xff] %v13699_v61 }
0x105f   :  { %5915 = vperm.xlu1 %7843, %v5503_v8   ;;  %v5159_v8 = vadd.f32 0.001, %v4883_v33 }
0x1060   :  { %7013 = vperm.xlu0 %7845, %v5143_v56   ;;  %v16310_v56 = vld [vmem:[#allocation142_spill] sm:$0xff] }
0x1061   :  { %v13705_v13 = vpop.permute.xlu0 %4170  ;;  %v4886_v7 = vmul.f32 0.020408163, %v16310_v56  ;;  %7936 = vrsqrt.f32 %v5159_v8  ;;  %v5164_v56 = vadd.f32 0.001, %v4888_v22 }
0x1062   :  { %16309 = vst [vmem:[#allocation286_spill] sm:$0xff] %v13705_v13 }
0x1063   :  { %v5162_v61 = vadd.f32 0.001, %v4886_v7 }
0x1064   :  { %7023 = vperm.xlu0 %7845, %v5145_v59  }
0x1065   :  { %v13711_v59 = vpop.xlane.xlu0 %4770  ;;  %7938 = vrsqrt.f32 %v5162_v61  ;;  %v16317_v61 = vld [vmem:[#allocation201_spill] sm:$0xff] }
0x1066   :  { %16311 = vst [vmem:[#allocation115_spill] sm:$0xff] %v13711_v59  ;;  %7940 = vrsqrt.f32 %v5164_v56  ;;  %v16316_v59 = vld [vmem:[#allocation148_spill] sm:$0xff] }
0x1068   :  { %7033 = vperm.xlu0 %7845, %v5147_v36   ;;  %v5151_v36 = vld [vmem:[%s14963_s2 + $0x410] sm:$0xff] }
0x1069   :  { %v13717_v32 = vpop.permute.xlu0 %4180 }
0x106a   :  { %16313 = vst [vmem:[#allocation290_spill] sm:$0xff] %v13717_v32  ;;  %v4892_v32 = vmul.f32 0.020408163, %v16316_v59 }
0x106b   :  { %v7937_v13 = vpop.eup %7936 }
0x106c   :  { %7043 = vperm.xlu0 %7845, %v5149_v51   ;;  %v5153_v51 = vld [vmem:[%s14963_s2 + $0x420] sm:$0xff] }
0x106d   :  { %v13725_v7 = vpop.xlane.xlu0 %4776 }
0x106e   :  { %16315 = vst [vmem:[#allocation117_spill] sm:$0xff] %v13725_v7  ;;  %v16320_v7 = vld [vmem:[#allocation150_spill] sm:$0xff] }
0x106f   :  { %v4894_v17 = vmul.f32 0.020408163, %v16320_v7  ;;  %v7939_v56 = vpop.eup %7938 }
0x1070   :  { %7053 = vperm.xlu0 %7845, %v5151_v36   ;;  %v5166_v36 = vadd.f32 0.001, %v4890_v14  ;;  %v8177_v14 = vld [vmem:[%s14963_s2] sm:$0xff] }
0x1071   :  { %v13719_v33 = vpop.xlane.xlu1 %4779  ;;  %v13733_v19 = vpop.permute.xlu0 %4190  ;;  %v5435_v59 = vmul.f32 %v8177_v14, %v7937_v13  ;;  %v5170_v38 = vadd.f32 0.001, %v4894_v17 }
0x1072   :  { %16319 = vst [vmem:[#allocation282_spill] sm:$0xff] %v13733_v19  ;;  %7942 = vrsqrt.f32 %v5166_v36  ;;  %v8178_v36 = vld [vmem:[%s14963_s2 + $0x18] sm:$0xff] }
0x1073   :  { %v5438_v13 = vmul.f32 %v8178_v36, %v7939_v56 }
0x1074   :  { %7063 = vperm.xlu0 %7845, %v5153_v51   ;;  %v5168_v51 = vadd.f32 0.001, %v4892_v32  ;;  %v4953_v32 = vmul.f32 0.020408163, %v13590_v12 }
0x1075   :  { %v5896_v8 = vpop.permute.xlu1 %5895  ;;  %v13749_v7 = vpop.xlane.xlu0 %4782 }
0x1076   :  { %v6327_v22 = vmul.f32 %v5896_v8, %v16317_v61  ;;  %v16322_v8 = vmov 0   ;;  %16323 = vst [vmem:[#allocation119_spill] sm:$0xff] %v13749_v7  ;;  %7944 = vrsqrt.f32 %v5168_v51  ;;  %v7941_v61 = vpop.eup %7940  ;;  %v16345_v7 = vld [vmem:[#allocation50_spill] sm:$0xff] }
0x1077   :  { %7946 = vrsqrt.f32 %v5170_v38 }
0x1078   :  { %v7155_v58 = vadd.f32 %v16318_v41, %v6327_v22  ;;  %7073 = vperm.xlu0 %7845, %v5155_v24   ;;  %v4896_v24 = vmul.f32 0.020408163, %v16324_v29  ;;  %v5229_v22 = vadd.f32 0.001, %v4953_v32  ;;  %v16325_v41 = vld [vmem:[#allocation155_spill] sm:$0xff]  ;;  %v16327_v32 = vld [vmem:[#allocation157_spill] sm:$0xff] }
0x1079   :  { %v4898_v14 = vmul.f32 0.020408163, %v16325_v41  ;;  %v13759_v17 = vpop.xlane.xlu0 %4788  ;;  %v4900_v38 = vmul.f32 0.020408163, %v16327_v32 }
0x107a   :  { %7293 = vst.msk [vmem:[%s14965_s4 + $0x200] sm:$0xff] %vm653_vm0, %v7155_v58  ;;  %v4440_v58 = vmul.f32 %v13738_v5, %v13738_v5  ;;  %v5172_v12 = vadd.f32 0.001, %v4896_v24  ;;  %16326 = vst [vmem:[#allocation296_spill] sm:$0xff] %v13759_v17  ;;  %7948 = vrsqrt.f32 %v5229_v22  ;;  %v8180_v24 = vld [vmem:[%s14963_s2 + $0x38] sm:$0xff]  ;;  %v8181_v22 = vld [vmem:[%s14963_s2 + $0x48] sm:$0xff] }
0x107b   :  { %v5174_v56 = vadd.f32 0.001, %v4898_v14  ;;  %v5176_v41 = vadd.f32 0.001, %v4900_v38 }
0x107c   :  { %7860 = vset.pattern.permute.xlu0 %v16322_v8  ;;  %v4796_v51 = vsel %vm653_vm0, %v4440_v58, 0.0  ;;  %v7943_v8 = vpop.eup %7942  ;;  %7950 = vrsqrt.f32 %v5172_v12 }
0x107d   :  { %5575 = vperm.xlu0 %7860, %v5435_v59   ;;  %v8179_v59 = vld [vmem:[%s14963_s2 + $0x28] sm:$0xff]  ;;  %v5442_v58 = vmul.f32 %v8180_v24, %v7943_v8  ;;  %7952 = vrsqrt.f32 %v5174_v56  ;;  %v8182_v56 = vld [vmem:[%s14963_s2 + $0x58] sm:$0xff] }
0x107e   :  { %v5440_v29 = vmul.f32 %v8179_v59, %v7941_v61  ;;  %7954 = vrsqrt.f32 %v5176_v41  ;;  %v8183_v41 = vld [vmem:[%s14963_s2 + $0x230] sm:$0xff] }
0x1080   :  { %v7945_v36 = vpop.eup %7944 }
0x1081   :  { %5590 = vperm.xlu0 %7860, %v5438_v13   ;;  %v13768_v13 = vpop.xlane.xlu0 %4794  ;;  %v5444_v12 = vmul.f32 %v8181_v22, %v7945_v36  ;;  %v7947_v14 = vpop.eup %7946  ;;  %v8184_v22 = vld [vmem:[%s14963_s2 + $0x68] sm:$0xff] }
0x1082   :  { %16328 = vst [vmem:[#allocation171_spill] sm:$0xff] %v13768_v13  ;;  %v5446_v38 = vmul.f32 %v8182_v56, %v7947_v14  ;;  %v16332_v13 = vld [vmem:[#allocation160_spill] sm:$0xff] }
0x1083   :  { %4797 = vadd.xlane.f32.xlu1 %v4796_v51  ;;  %v16329_v51 = vld [vmem:[#allocation156_spill] sm:$0xff]  ;;  %v4906_v36 = vmul.f32 0.020408163, %v16332_v13  ;;  %v8185_v13 = vld [vmem:[%s14963_s2 + $0x78] sm:$0xff] }
0x1084   :  { %v4902_v61 = vmul.f32 0.020408163, %v16329_v51  ;;  %v7949_v8 = vpop.eup %7948 }
0x1085   :  { %5600 = vperm.xlu0 %7860, %v5440_v29   ;;  %v16330_v29 = vld [vmem:[#allocation161_spill] sm:$0xff]  ;;  %v13775_v24 = vpop.xlane.xlu0 %4800  ;;  %v5182_v14 = vadd.f32 0.001, %v4906_v36 }
0x1086   :  { %v5178_v59 = vadd.f32 0.001, %v4902_v61  ;;  %v4904_v32 = vmul.f32 0.020408163, %v16330_v29  ;;  %16331 = vst [vmem:[#allocation130_spill] sm:$0xff] %v13775_v24  ;;  %v5505_v61 = vmul.f32 %v8183_v41, %v7949_v8  ;;  %v16335_v41 = vld [vmem:[#allocation165_spill] sm:$0xff] }
0x1088   :  { %7956 = vrsqrt.f32 %v5178_v59  ;;  %v5180_v51 = vadd.f32 0.001, %v4904_v32  ;;  %v16334_v59 = vld [vmem:[#allocation162_spill] sm:$0xff] }
0x1089   :  { %5610 = vperm.xlu0 %7860, %v5442_v58   ;;  %v7951_v58 = vpop.eup %7950  ;;  %v13787_v24 = vpop.xlane.xlu0 %4806  ;;  %v4908_v32 = vmul.f32 0.020408163, %v16334_v59  ;;  %v16337_v59 = vld [vmem:[#allocation167_spill] sm:$0xff] }
0x108a   :  { %v7953_v29 = vpop.eup %7952  ;;  %16333 = vst [vmem:[#allocation131_spill] sm:$0xff] %v13787_v24  ;;  %7958 = vrsqrt.f32 %v5180_v51  ;;  %v8186_v51 = vld [vmem:[%s14963_s2 + $0x88] sm:$0xff]  ;;  %v4912_v24 = vmul.f32 0.020408163, %v16337_v59 }
0x108b   :  { %v5450_v56 = vmul.f32 %v8185_v13, %v7953_v29  ;;  %v7955_v8 = vpop.eup %7954  ;;  %7960 = vrsqrt.f32 %v5182_v14  ;;  %v8187_v29 = vld [vmem:[%s14963_s2 + $0x98] sm:$0xff] }
0x108c   :  { %v5452_v36 = vmul.f32 %v8186_v51, %v7955_v8  ;;  %v8188_v8 = vld [vmem:[%s14963_s2 + $0xa8] sm:$0xff] }
0x108d   :  { %5620 = vperm.xlu0 %7860, %v5444_v12   ;;  %v5448_v12 = vmul.f32 %v8184_v22, %v7951_v58  ;;  %v4910_v58 = vmul.f32 0.020408163, %v16335_v41  ;;  %v13794_v22 = vpop.xlane.xlu0 %4812  ;;  %v16339_v41 = vld [vmem:[#allocation169_spill] sm:$0xff] }
0x108e   :  { %16336 = vst [vmem:[#allocation121_spill] sm:$0xff] %v13794_v22  ;;  %v4914_v22 = vmul.f32 0.020408163, %v16339_v41 }
0x1090   :  { %v5190_v51 = vadd.f32 0.001, %v4914_v22 }
0x1091   :  { %5630 = vperm.xlu0 %7860, %v5446_v38   ;;  %v5184_v38 = vadd.f32 0.001, %v4908_v32  ;;  %v13803_v13 = vpop.xlane.xlu0 %4818 }
0x1092   :  { %16338 = vst [vmem:[#allocation6_spill] sm:$0xff] %v13803_v13 }
0x1093   :  { %7962 = vrsqrt.f32 %v5184_v38 }
0x1094   :  { %5925 = vperm.xlu1 %7843, %v5505_v61   ;;  %v7957_v61 = vpop.eup %7956 }
0x1095   :  { %5640 = vperm.xlu0 %7860, %v5448_v12   ;;  %v5186_v12 = vadd.f32 0.001, %v4910_v58  ;;  %v5454_v14 = vmul.f32 %v8187_v29, %v7957_v61  ;;  %v7959_v32 = vpop.eup %7958  ;;  %v13812_v29 = vpop.xlane.xlu0 %4824 }
0x1096   :  { %v5456_v38 = vmul.f32 %v8188_v8, %v7959_v32  ;;  %v7961_v58 = vpop.eup %7960  ;;  %16341 = vst [vmem:[#allocation134_spill] sm:$0xff] %v13812_v29  ;;  %v16342_v32 = vld [vmem:[#allocation173_spill] sm:$0xff] }
0x1097   :  { %7964 = vrsqrt.f32 %v5186_v12  ;;  %v4918_v8 = vmul.f32 0.020408163, %v16342_v32 }
0x1099   :  { %5650 = vperm.xlu0 %7860, %v5450_v56   ;;  %v5188_v56 = vadd.f32 0.001, %v4912_v24  ;;  %v8189_v24 = vld [vmem:[%s14963_s2 + $0xb8] sm:$0xff]  ;;  %v13822_v17 = vpop.xlane.xlu0 %4830 }
0x109a   :  { %v5458_v12 = vmul.f32 %v8189_v24, %v7961_v58  ;;  %16344 = vst [vmem:[#allocation135_spill] sm:$0xff] %v13822_v17  ;;  %v5194_v58 = vadd.f32 0.001, %v4918_v8  ;;  %v16347_v24 = vld [vmem:[#allocation226_spill] sm:$0xff] }
0x109b   :  { %7966 = vrsqrt.f32 %v5188_v56  ;;  %v16343_v56 = vld [vmem:[#allocation203_spill] sm:$0xff] }
0x109c   :  { %7968 = vrsqrt.f32 %v5190_v51  ;;  %v16346_v51 = vld [vmem:[#allocation175_spill] sm:$0xff] }
0x109d   :  { %5660 = vperm.xlu0 %7860, %v5452_v36   ;;  %v16340_v36 = vld [vmem:[#allocation170_spill] sm:$0xff] }
0x109e   :  { %v4916_v59 = vmul.f32 0.020408163, %v16340_v36  ;;  %v8190_v36 = vld [vmem:[%s14963_s2 + $0xc8] sm:$0xff] }
0x10a0   :  { %v5192_v41 = vadd.f32 0.001, %v4916_v59  ;;  %v4920_v59 = vmul.f32 0.020408163, %v16346_v51  ;;  %v16350_v51 = vld [vmem:[#allocation179_spill] sm:$0xff] }
0x10a1   :  { %5670 = vperm.xlu0 %7860, %v5454_v14   ;;  %v7963_v14 = vpop.eup %7962 }
0x10a2   :  { %v5460_v13 = vmul.f32 %v8190_v36, %v7963_v14  ;;  %v7965_v29 = vpop.eup %7964  ;;  %7970 = vrsqrt.f32 %v5192_v41  ;;  %v8191_v14 = vld [vmem:[%s14963_s2 + $0xd8] sm:$0xff]  ;;  %v5196_v8 = vadd.f32 0.001, %v4920_v59 }
0x10a3   :  { %v5462_v32 = vmul.f32 %v8191_v14, %v7965_v29  ;;  %7972 = vrsqrt.f32 %v5194_v58 }
0x10a4   :  { %7974 = vrsqrt.f32 %v5196_v8  ;;  %v8194_v8 = vld [vmem:[%s14963_s2 + $0x108] sm:$0xff] }
0x10a5   :  { %5680 = vperm.xlu0 %7860, %v5456_v38  }
0x10a6   :  { %v13810_v61 = vpop.xlane.xlu1 %4785 }
0x10a9   :  { %5690 = vperm.xlu0 %7860, %v5458_v12   ;;  %v13828_v12 = vsub.f32 %v16347_v24, %v13617_v21  ;;  %v13839_v21 = vpop.xlane.xlu0 %4836  ;;  %v4924_v24 = vmul.f32 0.020408163, %v16350_v51 }
0x10aa   :  { %v5906_v38 = vpop.permute.xlu1 %5905  ;;  %16349 = vst [vmem:[#allocation123_spill] sm:$0xff] %v13839_v21 }
0x10ab   :  { %v6329_v22 = vmul.f32 %v5906_v38, %v16343_v56  ;;  %v4955_v38 = vmul.f32 0.020408163, %v13592_v6  ;;  %v8192_v56 = vld [vmem:[%s14963_s2 + $0xe8] sm:$0xff]  ;;  %v8193_v6 = vld [vmem:[%s14963_s2 + $0xf8] sm:$0xff] }
0x10ad   :  { %v7157_v19 = vadd.f32 %v16345_v7, %v6329_v22  ;;  %5700 = vperm.xlu0 %7860, %v5460_v13   ;;  %v7967_v7 = vpop.eup %7966  ;;  %v16348_v13 = vld [vmem:[#allocation177_spill] sm:$0xff]  ;;  %v4442_v22 = vmul.f32 %v13828_v12, %v13828_v12  ;;  %v5231_v58 = vadd.f32 0.001, %v4955_v38 }
0x10ae   :  { %v4922_v41 = vmul.f32 0.020408163, %v16348_v13  ;;  %v7969_v36 = vpop.eup %7968  ;;  %v5200_v13 = vadd.f32 0.001, %v4924_v24 }
0x10af   :  { %7295 = vst.msk [vmem:[%s14965_s4 + $0x210] sm:$0xff] %vm653_vm0, %v7157_v19  ;;  %v5464_v19 = vmul.f32 %v8192_v56, %v7967_v7  ;;  %v4802_v59 = vsel %vm653_vm0, %v4442_v22, 0.0  ;;  %v5466_v14 = vmul.f32 %v8193_v6, %v7969_v36  ;;  %v13851_v7 = vpop.xlane.xlu0 %4842  ;;  %v16353_v36 = vld [vmem:[#allocation183_spill] sm:$0xff] }
0x10b0   :  { %v5198_v29 = vadd.f32 0.001, %v4922_v41  ;;  %16351 = vst [vmem:[#allocation8_spill] sm:$0xff] %v13851_v7  ;;  %v16352_v41 = vld [vmem:[#allocation181_spill] sm:$0xff]  ;;  %v4928_v51 = vmul.f32 0.020408163, %v16353_v36 }
0x10b1   :  { %5710 = vperm.xlu0 %7860, %v5462_v32   ;;  %v7971_v32 = vpop.eup %7970  ;;  %v4926_v56 = vmul.f32 0.020408163, %v16352_v41 }
0x10b2   :  { %7976 = vrsqrt.f32 %v5198_v29  ;;  %v5468_v38 = vmul.f32 %v8194_v8, %v7971_v32  ;;  %v8195_v29 = vld [vmem:[%s14963_s2 + $0x118] sm:$0xff] }
0x10b3   :  { %7978 = vrsqrt.f32 %v5231_v58  ;;  %v5202_v22 = vadd.f32 0.001, %v4926_v56  ;;  %v5204_v58 = vadd.f32 0.001, %v4928_v51 }
0x10b4   :  { %7980 = vrsqrt.f32 %v5200_v13  ;;  %v8196_v13 = vld [vmem:[%s14963_s2 + $0x128] sm:$0xff] }
0x10b5   :  { %5720 = vperm.xlu0 %7860, %v5464_v19   ;;  %v7973_v19 = vpop.eup %7972  ;;  %7982 = vrsqrt.f32 %v5202_v22  ;;  %v8197_v22 = vld [vmem:[%s14963_s2 + $0x240] sm:$0xff] }
0x10b6   :  { %v5470_v24 = vmul.f32 %v8195_v29, %v7973_v19  ;;  %v7975_v6 = vpop.eup %7974  ;;  %7984 = vrsqrt.f32 %v5204_v58  ;;  %v8198_v29 = vld [vmem:[%s14963_s2 + $0x138] sm:$0xff] }
0x10b7   :  { %v5472_v56 = vmul.f32 %v8196_v13, %v7975_v6  ;;  %v16358_v13 = vld [vmem:[#allocation188_spill] sm:$0xff] }
0x10b8   :  { %4803 = vadd.xlane.f32.xlu1 %v4802_v59  ;;  %v13858_v59 = vpop.xlane.xlu0 %4848  ;;  %v4934_v58 = vmul.f32 0.020408163, %v16358_v13  ;;  %v16362_v13 = vld [vmem:[#allocation194_spill] sm:$0xff] }
0x10b9   :  { %5730 = vperm.xlu0 %7860, %v5466_v14   ;;  %16354 = vst [vmem:[#allocation141_spill] sm:$0xff] %v13858_v59  ;;  %v16355_v14 = vld [vmem:[#allocation185_spill] sm:$0xff]  ;;  %v16357_v59 = vld [vmem:[#allocation187_spill] sm:$0xff] }
0x10ba   :  { %v4930_v41 = vmul.f32 0.020408163, %v16355_v14  ;;  %v4932_v19 = vmul.f32 0.020408163, %v16357_v59  ;;  %v8199_v59 = vld [vmem:[%s14963_s2 + $0x148] sm:$0xff] }
0x10bc   :  { %v7977_v32 = vpop.eup %7976  ;;  %v5206_v36 = vadd.f32 0.001, %v4930_v41  ;;  %v5208_v6 = vadd.f32 0.001, %v4932_v19 }
0x10bd   :  { %5740 = vperm.xlu0 %7860, %v5468_v38   ;;  %v7979_v8 = vpop.eup %7978  ;;  %v13867_v38 = vpop.xlane.xlu0 %4854 }
0x10be   :  { %16356 = vst [vmem:[#allocation138_spill] sm:$0xff] %v13867_v38  ;;  %v5507_v51 = vmul.f32 %v8197_v22, %v7979_v8  ;;  %v7981_v14 = vpop.eup %7980  ;;  %7986 = vrsqrt.f32 %v5206_v36  ;;  %v5210_v22 = vadd.f32 0.001, %v4934_v58  ;;  %v16360_v38 = vld [vmem:[#allocation193_spill] sm:$0xff] }
0x10bf   :  { %v7983_v8 = vpop.eup %7982  ;;  %7988 = vrsqrt.f32 %v5208_v6  ;;  %v8200_v36 = vld [vmem:[%s14963_s2 + $0x158] sm:$0xff]  ;;  %v8201_v6 = vld [vmem:[%s14963_s2 + $0x168] sm:$0xff] }
0x10c0   :  { %v5478_v19 = vmul.f32 %v8200_v36, %v7983_v8  ;;  %7990 = vrsqrt.f32 %v5210_v22  ;;  %v8202_v22 = vld [vmem:[%s14963_s2 + $0x178] sm:$0xff] }
0x10c1   :  { %5750 = vperm.xlu0 %7860, %v5470_v24   ;;  %v5474_v24 = vmul.f32 %v8198_v29, %v7977_v32  ;;  %v13877_v41 = vpop.xlane.xlu0 %4860  ;;  %v4936_v32 = vmul.f32 0.020408163, %v16360_v38 }
0x10c2   :  { %16359 = vst [vmem:[#allocation144_spill] sm:$0xff] %v13877_v41  ;;  %v4938_v41 = vmul.f32 0.020408163, %v16362_v13  ;;  %v16366_v13 = vld [vmem:[#allocation200_spill] sm:$0xff] }
0x10c5   :  { %5760 = vperm.xlu0 %7860, %v5472_v56   ;;  %v5476_v56 = vmul.f32 %v8199_v59, %v7981_v14  ;;  %v13883_v29 = vpop.xlane.xlu0 %4866  ;;  %v5214_v59 = vadd.f32 0.001, %v4938_v41  ;;  %v8203_v41 = vld [vmem:[%s14963_s2 + $0x188] sm:$0xff] }
0x10c6   :  { %16361 = vst [vmem:[#allocation125_spill] sm:$0xff] %v13883_v29 }
0x10c9   :  { %5935 = vperm.xlu1 %7843, %v5507_v51   ;;  %5770 = vperm.xlu0 %7860, %v5474_v24   ;;  %v7985_v51 = vpop.eup %7984  ;;  %v5212_v24 = vadd.f32 0.001, %v4936_v32  ;;  %v13889_v14 = vpop.xlane.xlu0 %4872 }
0x10ca   :  { %16363 = vst [vmem:[#allocation10_spill] sm:$0xff] %v13889_v14  ;;  %v5480_v38 = vmul.f32 %v8201_v6, %v7985_v51  ;;  %v7987_v58 = vpop.eup %7986  ;;  %v4942_v14 = vmul.f32 0.020408163, %v16366_v13 }
0x10cb   :  { %7992 = vrsqrt.f32 %v5212_v24  ;;  %v5482_v32 = vmul.f32 %v8202_v22, %v7987_v58  ;;  %v7989_v36 = vpop.eup %7988  ;;  %v16368_v58 = vld [vmem:[#allocation204_spill] sm:$0xff] }
0x10cc   :  { %7994 = vrsqrt.f32 %v5214_v59  ;;  %v5484_v24 = vmul.f32 %v8203_v41, %v7989_v36  ;;  %v4944_v22 = vmul.f32 0.020408163, %v16368_v58  ;;  %v16371_v41 = vld [vmem:[#allocation208_spill] sm:$0xff]  ;;  %v8205_v58 = vld [vmem:[%s14963_s2 + $0x1a8] sm:$0xff] }
0x10cd   :  { %5780 = vperm.xlu0 %7860, %v5476_v56   ;;  %v16364_v56 = vld [vmem:[#allocation199_spill] sm:$0xff] }
0x10ce   :  { %v4940_v29 = vmul.f32 0.020408163, %v16364_v56  ;;  %v5218_v56 = vadd.f32 0.001, %v4942_v14  ;;  %v5220_v36 = vadd.f32 0.001, %v4944_v22 }
0x10cf   :  { %v4957_v22 = vmul.f32 0.020408163, %v13597_v4  ;;  %v8207_v4 = vld [vmem:[%s14963_s2 + $0x1c8] sm:$0xff] }
0x10d1   :  { %5790 = vperm.xlu0 %7860, %v5478_v19   ;;  %v5216_v19 = vadd.f32 0.001, %v4940_v29  ;;  %v8204_v29 = vld [vmem:[%s14963_s2 + $0x198] sm:$0xff] }
0x10d3   :  { %v13895_v8 = vpop.xlane.xlu0 %4878  ;;  %7996 = vrsqrt.f32 %v5216_v19  ;;  %v16372_v19 = vld [vmem:[#allocation52_spill] sm:$0xff] }
0x10d4   :  { %16365 = vst [vmem:[#allocation145_spill] sm:$0xff] %v13895_v8  ;;  %v16370_v8 = vld [vmem:[#allocation207_spill] sm:$0xff]  ;;  %7998 = vrsqrt.f32 %v5218_v56 }
0x10d5   :  { %5800 = vperm.xlu0 %7860, %v5480_v38   ;;  %v7991_v38 = vpop.eup %7990  ;;  %8000 = vrsqrt.f32 %v5220_v36 }
0x10d6   :  { %v5486_v13 = vmul.f32 %v8204_v29, %v7991_v38  ;;  %v13924_v38 = vsub.f32 %v12998_v45, %v13625_v37 }
0x10d8   :  { %v4444_v29 = vmul.f32 %v13924_v38, %v13924_v38 }
0x10d9   :  { %5810 = vperm.xlu0 %7860, %v5482_v32  }
0x10db   :  { %v13901_v51 = vpop.xlane.xlu1 %4791  ;;  %v13903_v6 = vpop.permute.xlu0 %7003 }
0x10dc   :  { %16367 = vst [vmem:[#allocation154_spill] sm:$0xff] %v13903_v6  ;;  %v7993_v6 = vpop.eup %7992 }
0x10dd   :  { %5820 = vperm.xlu0 %7860, %v5484_v24   ;;  %v4946_v24 = vmul.f32 0.020408163, %v16371_v41  ;;  %v7995_v17 = vpop.eup %7994  ;;  %v5233_v41 = vadd.f32 0.001, %v4957_v22  ;;  %v8208_v22 = vld [vmem:[%s14963_s2 + $0x1d8] sm:$0xff] }
0x10de   :  { %v7997_v37 = vpop.eup %7996 }
0x10df   :  { %v5916_v32 = vpop.permute.xlu1 %5915  ;;  %v13909_v59 = vpop.permute.xlu0 %7013 }
0x10e0   :  { %16369 = vst [vmem:[#allocation127_spill] sm:$0xff] %v13909_v59  ;;  %v6331_v7 = vmul.f32 %v5916_v32, %v16370_v8  ;;  %v5488_v59 = vmul.f32 %v8205_v58, %v7993_v6  ;;  %v16373_v8 = vld [vmem:[#allocation212_spill] sm:$0xff]  ;;  %v8206_v6 = vld [vmem:[%s14963_s2 + $0x1b8] sm:$0xff] }
0x10e1   :  { %5830 = vperm.xlu0 %7860, %v5486_v13   ;;  %v4948_v56 = vmul.f32 0.020408163, %v16373_v8  ;;  %v5490_v45 = vmul.f32 %v8206_v6, %v7995_v17  ;;  %v16374_v13 = vld [vmem:[#allocation219_spill] sm:$0xff]  ;;  %v4808_v17 = vsel %vm653_vm0, %v4444_v29, 0.0  ;;  %v16376_v8 = vld [vmem:[#allocation225_spill] sm:$0xff] }
0x10e2   :  { %v7159_v14 = vadd.f32 %v16372_v19, %v6331_v7  ;;  %v5222_v7 = vadd.f32 0.001, %v4946_v24  ;;  %v4950_v36 = vmul.f32 0.020408163, %v16374_v13  ;;  %v5492_v19 = vmul.f32 %v8207_v4, %v7997_v37  ;;  %v16378_v13 = vld [vmem:[#allocation228_spill] sm:$0xff] }
0x10e3   :  { %v13917_v21 = vpop.permute.xlu0 %7023  ;;  %v4954_v29 = vmul.f32 0.020408163, %v16378_v13  ;;  %v16381_v13 = vld [vmem:[#allocation234_spill] sm:$0xff] }
0x10e4   :  { %7297 = vst.msk [vmem:[%s14965_s4 + $0x220] sm:$0xff] %vm653_vm0, %v7159_v14  ;;  %8002 = vrsqrt.f32 %v5222_v7  ;;  %v7999_v14 = vpop.eup %7998  ;;  %v5226_v58 = vadd.f32 0.001, %v4950_v36  ;;  %v4952_v7 = vmul.f32 0.020408163, %v16376_v8 }
0x10e5   :  { %5840 = vperm.xlu0 %7860, %v5488_v59   ;;  %v5224_v59 = vadd.f32 0.001, %v4948_v56  ;;  %v5494_v6 = vmul.f32 %v8208_v22, %v7999_v14 }
0x10e6   :  { %v5228_v37 = vadd.f32 0.001, %v4952_v7 }
0x10e7   :  { %v13932_v32 = vpop.permute.xlu0 %7033  ;;  %8004 = vrsqrt.f32 %v5224_v59  ;;  %v8209_v59 = vld [vmem:[%s14963_s2 + $0x1e8] sm:$0xff] }
0x10e8   :  { %8006 = vrsqrt.f32 %v5233_v41 }
0x10e9   :  { %5850 = vperm.xlu0 %7860, %v5490_v45   ;;  %v8001_v45 = vpop.eup %8000  ;;  %8008 = vrsqrt.f32 %v5226_v58  ;;  %v8210_v58 = vld [vmem:[%s14963_s2 + $0x1f8] sm:$0xff] }
0x10ea   :  { %v5496_v36 = vmul.f32 %v8209_v59, %v8001_v45  ;;  %8010 = vrsqrt.f32 %v5228_v37  ;;  %v4958_v45 = vmul.f32 0.020408163, %v16381_v13  ;;  %v8211_v37 = vld [vmem:[%s14963_s2 + $0x208] sm:$0xff]  ;;  %v16384_v13 = vld [vmem:[#allocation293_spill] sm:$0xff] }
0x10eb   :  { %v13940_v24 = vpop.permute.xlu0 %7043 }
0x10ec   :  { %16375 = vst [vmem:[#allocation12_spill] sm:$0xff] %v13940_v24 }
0x10ed   :  { %4809 = vadd.xlane.f32.xlu1 %v4808_v17  ;;  %5860 = vperm.xlu0 %7860, %v5492_v19   ;;  %v5230_v19 = vadd.f32 0.001, %v4954_v29  ;;  %v4956_v17 = vmul.f32 0.020408163, %v13022_v46 }
0x10ee   :  { %v8003_v41 = vpop.eup %8002 }
0x10ef   :  { %v13947_v56 = vpop.permute.xlu0 %7053  ;;  %v5498_v8 = vmul.f32 %v8210_v58, %v8003_v41  ;;  %8012 = vrsqrt.f32 %v5230_v19  ;;  %v16382_v41 = vld [vmem:[#allocation105_spill] sm:$0xff]  ;;  %v5234_v19 = vadd.f32 0.001, %v4958_v45 }
0x10f0   :  { %16377 = vst [vmem:[#allocation152_spill] sm:$0xff] %v13947_v56 }
0x10f1   :  { %5870 = vperm.xlu0 %7860, %v5494_v6   ;;  %v8005_v7 = vpop.eup %8004  ;;  %v5232_v6 = vadd.f32 0.001, %v4956_v17  ;;  %v16383_v17 = vld [vmem:[#allocation238_spill] sm:$0xff] }
0x10f2   :  { %v8007_v22 = vpop.eup %8006  ;;  %v5500_v29 = vmul.f32 %v8211_v37, %v8005_v7  ;;  %v8213_v7 = vld [vmem:[%s14963_s2 + $0x218] sm:$0xff] }
0x10f3   :  { %v13953_v4 = vpop.permute.xlu0 %7063  ;;  %v8009_v46 = vpop.eup %8008  ;;  %8014 = vrsqrt.f32 %v5232_v6 }
0x10f4   :  { %16379 = vst [vmem:[#allocation164_spill] sm:$0xff] %v13953_v4  ;;  %v5502_v37 = vmul.f32 %v8213_v7, %v8009_v46  ;;  %v8011_v56 = vpop.eup %8010  ;;  %8016 = vrsqrt.f32 %v5234_v19  ;;  %v8214_v46 = vld [vmem:[%s14963_s2 + $0x228] sm:$0xff] }
0x10f5   :  { %5880 = vperm.xlu0 %7860, %v5496_v36   ;;  %v8212_v36 = vld [vmem:[%s14963_s2 + $0x250] sm:$0xff] }
0x10f7   :  { %v13959_v14 = vpop.permute.xlu0 %7073 }
0x10f8   :  { %16380 = vst [vmem:[#allocation129_spill] sm:$0xff] %v13959_v14  ;;  %v5509_v14 = vmul.f32 %v8212_v36, %v8007_v22  ;;  %v16385_v22 = vld [vmem:[#allocation104_spill] sm:$0xff]  ;;  %v5504_v36 = vmul.f32 %v8214_v46, %v8011_v56  ;;  %v8215_v56 = vld [vmem:[%s14963_s2 + $0x238] sm:$0xff] }
0x10f9   :  { %5890 = vperm.xlu0 %7860, %v5498_v8   ;;  %v4960_v8 = vmul.f32 0.020408163, %v16383_v17  ;;  %v16388_v17 = vld [vmem:[#allocation287_spill] sm:$0xff] }
0x10fb   :  { %v5236_v45 = vadd.f32 0.001, %v4960_v8 }
0x10fc   :  { %v5576_v59 = vpop.permute.xlu0 %5575 }
0x10fd   :  { %v6263_v58 = vmul.f32 %v5576_v59, %v16382_v41  ;;  %5900 = vperm.xlu0 %7860, %v5500_v29   ;;  %v16386_v29 = vld [vmem:[#allocation283_spill] sm:$0xff]  ;;  %v8013_v41 = vpop.eup %8012  ;;  %8018 = vrsqrt.f32 %v5236_v45 }
0x10fe   :  { %5945 = vperm.xlu1 %7843, %v5509_v14   ;;  %v4962_v14 = vmul.f32 0.020408163, %v13139_v52  ;;  %v4964_v52 = vmul.f32 0.020408163, %v13178_v55  ;;  %v8015_v7 = vpop.eup %8014  ;;  %v4966_v55 = vmul.f32 0.020408163, %v13222_v42 }
0x10ff   :  { %v7091_v4 = vadd.f32 %v16384_v13, %v6263_v58  ;;  %v5506_v13 = vmul.f32 %v8215_v56, %v8013_v41  ;;  %v4968_v42 = vmul.f32 0.020408163, %v13261_v0 }
0x1100   :  { %v5591_v24 = vpop.permute.xlu0 %5590  ;;  %v5238_v19 = vadd.f32 0.001, %v4962_v14  ;;  %v5240_v45 = vadd.f32 0.001, %v4964_v52  ;;  %v16390_v14 = vld [vmem:[#allocation294_spill] sm:$0xff] }
0x1101   :  { %7229 = vst.msk [vmem:[%s14965_s4] sm:$0xff] %vm653_vm0, %v7091_v4  ;;  %v6266_v6 = vmul.f32 %v5591_v24, %v16385_v22  ;;  %5910 = vperm.xlu0 %7860, %v5502_v37   ;;  %v16387_v24 = vld [vmem:[#allocation107_spill] sm:$0xff]  ;;  %v16389_v22 = vld [vmem:[#allocation106_spill] sm:$0xff]  ;;  %v5244_v0 = vadd.f32 0.001, %v4968_v42 }
0x1102   :  { %8020 = vrsqrt.f32 %v5238_v19  ;;  %v16392_v19 = vld [vmem:[#allocation284_spill] sm:$0xff]  ;;  %v4972_v42 = vmul.f32 0.020408163, %v13341_v30 }
0x1103   :  { %v7094_v59 = vadd.f32 %v16386_v29, %v6266_v6  ;;  %8022 = vrsqrt.f32 %v5240_v45  ;;  %v16394_v45 = vld [vmem:[#allocation289_spill] sm:$0xff]  ;;  %v16400_v30 = vld [vmem:[#allocation112_spill] sm:$0xff] }
0x1104   :  { %v5601_v58 = vpop.permute.xlu0 %5600 }
0x1105   :  { %7232 = vst.msk [vmem:[%s14965_s4 + $0x18] sm:$0xff] %vm653_vm0, %v7094_v59  ;;  %v6268_v4 = vmul.f32 %v5601_v58, %v16387_v24  ;;  %5920 = vperm.xlu0 %7860, %v5504_v36   ;;  %v8216_v59 = vld [vmem:[%s14963_s2 + $0x248] sm:$0xff]  ;;  %v8017_v36 = vpop.eup %8016  ;;  %v16391_v58 = vld [vmem:[#allocation109_spill] sm:$0xff] }
0x1106   :  { %v5508_v46 = vmul.f32 %v8216_v59, %v8015_v7 }
0x1107   :  { %v7096_v8 = vadd.f32 %v16388_v17, %v6268_v4  ;;  %v5242_v4 = vadd.f32 0.001, %v4966_v55  ;;  %v8217_v17 = vld [vmem:[%s14963_s2 + $0x258] sm:$0xff]  ;;  %v8019_v56 = vpop.eup %8018 }
0x1108   :  { %v5611_v37 = vpop.permute.xlu0 %5610 }
0x1109   :  { %7234 = vst.msk [vmem:[%s14965_s4 + $0x28] sm:$0xff] %vm653_vm0, %v7096_v8  ;;  %v6270_v6 = vmul.f32 %v5611_v37, %v16389_v22  ;;  %5930 = vperm.xlu0 %7860, %v5506_v13   ;;  %v5510_v8 = vmul.f32 %v8217_v17, %v8017_v36  ;;  %v16393_v37 = vld [vmem:[#allocation108_spill] sm:$0xff]  ;;  %8024 = vrsqrt.f32 %v5242_v4  ;;  %v16398_v17 = vld [vmem:[#allocation54_spill] sm:$0xff] }
0x110a   :  { %8026 = vrsqrt.f32 %v5244_v0 }
0x110b   :  { %v7098_v29 = vadd.f32 %v16390_v14, %v6270_v6  ;;  %v4970_v6 = vmul.f32 0.020408163, %v13300_v28  ;;  %v8218_v14 = vld [vmem:[%s14963_s2 + $0x268] sm:$0xff] }
0x110c   :  { %v5621_v41 = vpop.permute.xlu0 %5620  ;;  %v8021_v59 = vpop.eup %8020 }
0x110d   :  { %7236 = vst.msk [vmem:[%s14965_s4 + $0x38] sm:$0xff] %vm653_vm0, %v7098_v29  ;;  %v6272_v24 = vmul.f32 %v5621_v41, %v16391_v58  ;;  %5940 = vperm.xlu0 %7860, %v5508_v46   ;;  %v5512_v29 = vmul.f32 %v8218_v14, %v8019_v56  ;;  %v16395_v41 = vld [vmem:[#allocation110_spill] sm:$0xff]  ;;  %v5246_v28 = vadd.f32 0.001, %v4970_v6  ;;  %v8219_v56 = vld [vmem:[%s14963_s2 + $0x278] sm:$0xff] }
0x110e   :  { %v5248_v6 = vadd.f32 0.001, %v4972_v42  ;;  %v4974_v14 = vmul.f32 0.020408163, %v13378_v31  ;;  %v4976_v42 = vmul.f32 0.020408163, %v13413_v25 }
0x110f   :  { %v7100_v52 = vadd.f32 %v16392_v19, %v6272_v24  ;;  %v16396_v24 = vld [vmem:[#allocation211_spill] sm:$0xff]  ;;  %8028 = vrsqrt.f32 %v5246_v28 }
0x1110   :  { %v5631_v13 = vpop.permute.xlu0 %5630  ;;  %v14017_v7 = vpop.xlane.xlu1 %4797  ;;  %v16397_v19 = vld [vmem:[#allocation291_spill] sm:$0xff]  ;;  %8030 = vrsqrt.f32 %v5248_v6  ;;  %v5250_v28 = vadd.f32 0.001, %v4974_v14 }
0x1111   :  { %7238 = vst.msk [vmem:[%s14965_s4 + $0x48] sm:$0xff] %vm653_vm0, %v7100_v52  ;;  %v6274_v22 = vmul.f32 %v5631_v13, %v16393_v37  ;;  %5950 = vperm.xlu0 %7860, %v5510_v8   ;;  %v5514_v13 = vmul.f32 %v8219_v56, %v8021_v59  ;;  %v8023_v37 = vpop.eup %8022  ;;  %v8220_v59 = vld [vmem:[%s14963_s2 + $0x288] sm:$0xff] }
0x1112   :  { %8032 = vrsqrt.f32 %v5250_v28  ;;  %v8222_v14 = vld [vmem:[%s14963_s2 + $0x2a8] sm:$0xff] }
0x1113   :  { %v7102_v55 = vadd.f32 %v16394_v45, %v6274_v22  ;;  %v16399_v45 = vld [vmem:[#allocation233_spill] sm:$0xff] }
0x1114   :  { %v5641_v46 = vpop.permute.xlu0 %5640  ;;  %v5926_v36 = vpop.permute.xlu1 %5925 }
0x1115   :  { %7240 = vst.msk [vmem:[%s14965_s4 + $0x58] sm:$0xff] %vm653_vm0, %v7102_v55  ;;  %v6276_v58 = vmul.f32 %v5641_v46, %v16395_v41  ;;  %v6333_v4 = vmul.f32 %v5926_v36, %v16396_v24  ;;  %5960 = vperm.xlu0 %7860, %v5512_v29   ;;  %v14043_v55 = vsub.f32 %v16399_v45, %v13629_v9  ;;  %v16401_v29 = vld [vmem:[#allocation288_spill] sm:$0xff]  ;;  %v8025_v36 = vpop.eup %8024  ;;  %v4959_v41 = vmul.f32 0.020408163, %v13612_v40  ;;  %v16402_v24 = vld [vmem:[#allocation114_spill] sm:$0xff]  ;;  %v8221_v40 = vld [vmem:[%s14963_s2 + $0x298] sm:$0xff] }
0x1116   :  { %v5516_v46 = vmul.f32 %v8220_v59, %v8023_v37  ;;  %v16404_v37 = vld [vmem:[#allocation116_spill] sm:$0xff]  ;;  %v5252_v45 = vadd.f32 0.001, %v4976_v42 }
0x1117   :  { %v7104_v52 = vadd.f32 %v16397_v19, %v6276_v58  ;;  %v7161_v8 = vadd.f32 %v16398_v17, %v6333_v4  ;;  %v4446_v31 = vmul.f32 %v14043_v55, %v14043_v55  ;;  %v16403_v19 = vld [vmem:[#allocation292_spill] sm:$0xff]  ;;  %v5518_v17 = vmul.f32 %v8221_v40, %v8025_v36 }
0x1118   :  { %v5651_v22 = vpop.permute.xlu0 %5650  ;;  %v5235_v56 = vadd.f32 0.001, %v4959_v41  ;;  %v4980_v41 = vmul.f32 0.020408163, %v13563_v49  ;;  %v4982_v49 = vmul.f32 0.020408163, %v13594_v63 }
0x1119   :  { %7242 = vst.msk [vmem:[%s14965_s4 + $0x68] sm:$0xff] %vm653_vm0, %v7104_v52  ;;  %7299 = vst.msk [vmem:[%s14965_s4 + $0x230] sm:$0xff] %vm653_vm0, %v7161_v8  ;;  %v6278_v0 = vmul.f32 %v5651_v22, %v16400_v30  ;;  %5970 = vperm.xlu0 %7860, %v5514_v13   ;;  %v8027_v8 = vpop.eup %8026  ;;  %v4814_v25 = vsel %vm653_vm0, %v4446_v31, 0.0  ;;  %v4978_v30 = vmul.f32 0.020408163, %v13451_v1 }
0x111a   :  { %8034 = vrsqrt.f32 %v5235_v56  ;;  %v5256_v40 = vadd.f32 0.001, %v4980_v41  ;;  %v8224_v56 = vld [vmem:[%s14963_s2 + $0x2c8] sm:$0xff]  ;;  %v5258_v63 = vadd.f32 0.001, %v4982_v49 }
0x111b   :  { %v7106_v9 = vadd.f32 %v16401_v29, %v6278_v0  ;;  %v16405_v0 = vld [vmem:[#allocation295_spill] sm:$0xff]  ;;  %v5520_v29 = vmul.f32 %v8222_v14, %v8027_v8  ;;  %8036 = vrsqrt.f32 %v5252_v45  ;;  %v5254_v1 = vadd.f32 0.001, %v4978_v30 }
0x111c   :  { %v5661_v58 = vpop.permute.xlu0 %5660 }
0x111d   :  { %7244 = vst.msk [vmem:[%s14965_s4 + $0x78] sm:$0xff] %vm653_vm0, %v7106_v9  ;;  %v6280_v4 = vmul.f32 %v5661_v58, %v16402_v24  ;;  %5980 = vperm.xlu0 %7860, %v5516_v46   ;;  %v8029_v9 = vpop.eup %8028  ;;  %v16406_v46 = vld [vmem:[#allocation118_spill] sm:$0xff]  ;;  %v16407_v58 = vld [vmem:[#allocation7_spill] sm:$0xff]  ;;  %8038 = vrsqrt.f32 %v5254_v1 }
0x111e   :  { %v8031_v28 = vpop.eup %8030  ;;  %8040 = vrsqrt.f32 %v5256_v40  ;;  %v16414_v40 = vld [vmem:[#allocation126_spill] sm:$0xff] }
0x111f   :  { %v7108_v52 = vadd.f32 %v16403_v19, %v6280_v4  ;;  %v8223_v4 = vld [vmem:[%s14963_s2 + $0x2b8] sm:$0xff]  ;;  %v16408_v19 = vld [vmem:[#allocation120_spill] sm:$0xff]  ;;  %8042 = vrsqrt.f32 %v5258_v63 }
0x1120   :  { %v5671_v13 = vpop.permute.xlu0 %5670  ;;  %v5522_v31 = vmul.f32 %v8223_v4, %v8029_v9  ;;  %v16413_v4 = vld [vmem:[#allocation13_spill] sm:$0xff] }
0x1121   :  { %7246 = vst.msk [vmem:[%s14965_s4 + $0x88] sm:$0xff] %vm653_vm0, %v7108_v52  ;;  %v6282_v22 = vmul.f32 %v5671_v13, %v16404_v37  ;;  %5990 = vperm.xlu0 %7860, %v5518_v17   ;;  %v16409_v17 = vld [vmem:[#allocation9_spill] sm:$0xff]  ;;  %v5524_v13 = vmul.f32 %v8224_v56, %v8031_v28  ;;  %v8033_v37 = vpop.eup %8032  ;;  %v8227_v28 = vld [vmem:[%s14963_s2 + $0x2e8] sm:$0xff] }
0x1122   :  { %4815 = vadd.xlane.f32.xlu1 %v4814_v25  ;;  %v16410_v25 = vld [vmem:[#allocation122_spill] sm:$0xff] }
0x1123   :  { %v7110_v6 = vadd.f32 %v16405_v0, %v6282_v22  ;;  %v4984_v0 = vmul.f32 0.020408163, %v13644_v27  ;;  %v8226_v27 = vld [vmem:[%s14963_s2 + $0x260] sm:$0xff] }
0x1124   :  { %v5681_v59 = vpop.permute.xlu0 %5680  ;;  %v8035_v30 = vpop.eup %8034 }
0x1125   :  { %7248 = vst.msk [vmem:[%s14965_s4 + $0x98] sm:$0xff] %vm653_vm0, %v7110_v6  ;;  %v6284_v36 = vmul.f32 %v5681_v59, %v16406_v46  ;;  %6000 = vperm.xlu0 %7860, %v5520_v29   ;;  %v16411_v6 = vld [vmem:[#allocation11_spill] sm:$0xff]  ;;  %v8225_v29 = vld [vmem:[%s14963_s2 + $0x2d8] sm:$0xff]  ;;  %v8037_v59 = vpop.eup %8036  ;;  %v5511_v41 = vmul.f32 %v8226_v27, %v8035_v30 }
0x1126   :  { %v5526_v9 = vmul.f32 %v8225_v29, %v8033_v37  ;;  %v16419_v27 = vld [vmem:[#allocation19_spill] sm:$0xff] }
0x1127   :  { %v7112_v24 = vadd.f32 %v16407_v58, %v6284_v36  ;;  %v16412_v36 = vld [vmem:[#allocation124_spill] sm:$0xff]  ;;  %v5260_v58 = vadd.f32 0.001, %v4984_v0  ;;  %v16417_v0 = vld [vmem:[#allocation17_spill] sm:$0xff] }
0x1128   :  { %v5691_v42 = vpop.permute.xlu0 %5690 }
0x1129   :  { %7250 = vst.msk [vmem:[%s14965_s4 + $0xa8] sm:$0xff] %vm653_vm0, %v7112_v24  ;;  %v6286_v52 = vmul.f32 %v5691_v42, %v16408_v19  ;;  %6010 = vperm.xlu0 %7860, %v5522_v31   ;;  %v4986_v24 = vmul.f32 0.020408163, %v13719_v33  ;;  %v5528_v42 = vmul.f32 %v8227_v28, %v8037_v59  ;;  %v8039_v19 = vpop.eup %8038  ;;  %8044 = vrsqrt.f32 %v5260_v58  ;;  %v8230_v58 = vld [vmem:[%s14963_s2 + $0x318] sm:$0xff]  ;;  %v16420_v28 = vld [vmem:[#allocation139_spill] sm:$0xff] }
0x112b   :  { %v7114_v8 = vadd.f32 %v16409_v17, %v6286_v52  ;;  %v5262_v33 = vadd.f32 0.001, %v4986_v24  ;;  %v4988_v17 = vmul.f32 0.020408163, %v13810_v61  ;;  %v4990_v61 = vmul.f32 0.020408163, %v13901_v51 }
0x112c   :  { %v5701_v22 = vpop.permute.xlu0 %5700  ;;  %v4992_v51 = vmul.f32 0.020408163, %v14017_v7  ;;  %v16421_v7 = vld [vmem:[#allocation21_spill] sm:$0xff] }
0x112d   :  { %7252 = vst.msk [vmem:[%s14965_s4 + $0xb8] sm:$0xff] %vm653_vm0, %v7114_v8  ;;  %v6288_v45 = vmul.f32 %v5701_v22, %v16410_v25  ;;  %6020 = vperm.xlu0 %7860, %v5524_v13   ;;  %v16415_v8 = vld [vmem:[#allocation15_spill] sm:$0xff]  ;;  %v8228_v13 = vld [vmem:[%s14963_s2 + $0x2f8] sm:$0xff]  ;;  %v8041_v22 = vpop.eup %8040  ;;  %8046 = vrsqrt.f32 %v5262_v33  ;;  %v5264_v63 = vadd.f32 0.001, %v4988_v17 }
0x112e   :  { %v5530_v37 = vmul.f32 %v8228_v13, %v8039_v19  ;;  %v5268_v19 = vadd.f32 0.001, %v4992_v51 }
0x112f   :  { %v7116_v14 = vadd.f32 %v16411_v6, %v6288_v45  ;;  %v16416_v45 = vld [vmem:[#allocation128_spill] sm:$0xff]  ;;  %8048 = vrsqrt.f32 %v5264_v63 }
0x1130   :  { %v5711_v46 = vpop.permute.xlu0 %5710 }
0x1131   :  { %7254 = vst.msk [vmem:[%s14965_s4 + $0xc8] sm:$0xff] %vm653_vm0, %v7116_v14  ;;  %v6290_v1 = vmul.f32 %v5711_v46, %v16412_v36  ;;  %6030 = vperm.xlu0 %7860, %v5526_v9   ;;  %v8229_v14 = vld [vmem:[%s14963_s2 + $0x308] sm:$0xff]  ;;  %v8043_v9 = vpop.eup %8042  ;;  %v16418_v46 = vld [vmem:[#allocation132_spill] sm:$0xff] }
0x1132   :  { %v5532_v29 = vmul.f32 %v8229_v14, %v8041_v22  ;;  %v5534_v24 = vmul.f32 %v8230_v58, %v8043_v9  ;;  %v16423_v22 = vld [vmem:[#allocation23_spill] sm:$0xff] }
0x1133   :  { %v7118_v31 = vadd.f32 %v16413_v4, %v6290_v1  ;;  %5955 = vperm.xlu1 %7843, %v5511_v41   ;;  %v5266_v1 = vadd.f32 0.001, %v4990_v61  ;;  %v8045_v4 = vpop.eup %8044  ;;  %v16425_v9 = vld [vmem:[#allocation215_spill] sm:$0xff] }
0x1134   :  { %v5721_v52 = vpop.permute.xlu0 %5720 }
0x1135   :  { %7256 = vst.msk [vmem:[%s14965_s4 + $0xd8] sm:$0xff] %vm653_vm0, %v7118_v31  ;;  %v6292_v49 = vmul.f32 %v5721_v52, %v16414_v40  ;;  %6040 = vperm.xlu0 %7860, %v5528_v42   ;;  %8050 = vrsqrt.f32 %v5266_v1  ;;  %v8231_v40 = vld [vmem:[%s14963_s2 + $0x328] sm:$0xff] }
0x1136   :  { %8052 = vrsqrt.f32 %v5268_v19  ;;  %v8233_v1 = vld [vmem:[%s14963_s2 + $0x348] sm:$0xff] }
0x1137   :  { %v7120_v56 = vadd.f32 %v16415_v8, %v6292_v49  ;;  %v5536_v49 = vmul.f32 %v8231_v40, %v8045_v4  ;;  %v8047_v33 = vpop.eup %8046  ;;  %v16422_v8 = vld [vmem:[#allocation143_spill] sm:$0xff]  ;;  %v16428_v4 = vld [vmem:[#allocation158_spill] sm:$0xff] }
0x1138   :  { %v5731_v25 = vpop.permute.xlu0 %5730  ;;  %v16430_v19 = vld [vmem:[#allocation27_spill] sm:$0xff] }
0x1139   :  { %7258 = vst.msk [vmem:[%s14965_s4 + $0xe8] sm:$0xff] %vm653_vm0, %v7120_v56  ;;  %v6294_v30 = vmul.f32 %v5731_v25, %v16416_v45  ;;  %6050 = vperm.xlu0 %7860, %v5530_v37   ;;  %v8232_v45 = vld [vmem:[%s14963_s2 + $0x338] sm:$0xff]  ;;  %v8049_v63 = vpop.eup %8048 }
0x113a   :  { %v5540_v51 = vmul.f32 %v8233_v1, %v8049_v63  ;;  %v16433_v63 = vld [vmem:[#allocation176_spill] sm:$0xff]  ;;  %v16436_v1 = vld [vmem:[#allocation33_spill] sm:$0xff] }
0x113b   :  { %v7122_v6 = vadd.f32 %v16417_v0, %v6294_v30  ;;  %v5538_v30 = vmul.f32 %v8232_v45, %v8047_v33 }
0x113c   :  { %v5741_v59 = vpop.permute.xlu0 %5740 }
0x113d   :  { %7260 = vst.msk [vmem:[%s14965_s4 + $0xf8] sm:$0xff] %vm653_vm0, %v7122_v6  ;;  %v6296_v36 = vmul.f32 %v5741_v59, %v16418_v46  ;;  %6060 = vperm.xlu0 %7860, %v5532_v29   ;;  %v16424_v6 = vld [vmem:[#allocation151_spill] sm:$0xff]  ;;  %v16426_v46 = vld [vmem:[#allocation25_spill] sm:$0xff] }
0x113f   :  { %v7124_v41 = vadd.f32 %v16419_v27, %v6296_v36  ;;  %v8051_v27 = vpop.eup %8050 }
0x1140   :  { %v5751_v31 = vpop.permute.xlu0 %5750 }
0x1141   :  { %7262 = vst.msk [vmem:[%s14965_s4 + $0x108] sm:$0xff] %vm653_vm0, %v7124_v41  ;;  %v6298_v42 = vmul.f32 %v5751_v31, %v16420_v28  ;;  %6070 = vperm.xlu0 %7860, %v5534_v24   ;;  %v16427_v41 = vld [vmem:[#allocation56_spill] sm:$0xff]  ;;  %v16429_v28 = vld [vmem:[#allocation237_spill] sm:$0xff] }
0x1143   :  { %v7126_v52 = vadd.f32 %v16421_v7, %v6298_v42  ;;  %v14192_v42 = vsub.f32 %v16429_v28, %v13636_v39  ;;  %v16431_v39 = vld [vmem:[#allocation168_spill] sm:$0xff]  ;;  %v16439_v28 = vld [vmem:[#allocation182_spill] sm:$0xff] }
0x1144   :  { %v5761_v17 = vpop.permute.xlu0 %5760 }
0x1145   :  { %7264 = vst.msk [vmem:[%s14965_s4 + $0x118] sm:$0xff] %vm653_vm0, %v7126_v52  ;;  %v6300_v56 = vmul.f32 %v5761_v17, %v16422_v8  ;;  %6080 = vperm.xlu0 %7860, %v5536_v49   ;;  %v4804_v13 = vpop.xlane.xlu1 %4803  ;;  %v8234_v52 = vld [vmem:[%s14963_s2 + $0x358] sm:$0xff]  ;;  %v8053_v49 = vpop.eup %8052  ;;  %v4961_v17 = vmul.f32 0.020408163, %v13622_v10 }
0x1146   :  { %v4994_v37 = vmul.f32 0.020408163, %v4804_v13  ;;  %v5542_v40 = vmul.f32 %v8234_v52, %v8051_v27  ;;  %v16432_v13 = vld [vmem:[#allocation29_spill] sm:$0xff] }
0x1147   :  { %v7128_v25 = vadd.f32 %v16423_v22, %v6300_v56  ;;  %v4448_v56 = vmul.f32 %v14192_v42, %v14192_v42  ;;  %v8235_v22 = vld [vmem:[%s14963_s2 + $0x368] sm:$0xff]  ;;  %v16440_v52 = vld [vmem:[#allocation37_spill] sm:$0xff] }
0x1148   :  { %v5270_v61 = vadd.f32 0.001, %v4994_v37  ;;  %v5771_v0 = vpop.permute.xlu0 %5770 }
0x1149   :  { %7266 = vst.msk [vmem:[%s14965_s4 + $0x128] sm:$0xff] %vm653_vm0, %v7128_v25  ;;  %v6302_v14 = vmul.f32 %v5771_v0, %v16424_v6  ;;  %6090 = vperm.xlu0 %7860, %v5538_v30   ;;  %v5936_v29 = vpop.permute.xlu1 %5935  ;;  %v5544_v25 = vmul.f32 %v8235_v22, %v8053_v49  ;;  %v5237_v30 = vadd.f32 0.001, %v4961_v17  ;;  %v4820_v0 = vsel %vm653_vm0, %v4448_v56, 0.0  ;;  %v16434_v6 = vld [vmem:[#allocation31_spill] sm:$0xff]  ;;  %v16443_v22 = vld [vmem:[#allocation186_spill] sm:$0xff] }
0x114a   :  { %8054 = vrsqrt.f32 %v5270_v61  ;;  %v6335_v59 = vmul.f32 %v5936_v29, %v16425_v9  ;;  %v8236_v29 = vld [vmem:[%s14963_s2 + $0x378] sm:$0xff]  ;;  %v16442_v56 = vld [vmem:[#allocation39_spill] sm:$0xff] }
0x114b   :  { %v7130_v36 = vadd.f32 %v16426_v46, %v6302_v14  ;;  %8056 = vrsqrt.f32 %v5237_v30  ;;  %v16435_v46 = vld [vmem:[#allocation178_spill] sm:$0xff] }
0x114c   :  { %v7163_v58 = vadd.f32 %v16427_v41, %v6335_v59  ;;  %v5781_v24 = vpop.permute.xlu0 %5780  ;;  %v16437_v41 = vld [vmem:[#allocation180_spill] sm:$0xff] }
0x114d   :  { %7268 = vst.msk [vmem:[%s14965_s4 + $0x138] sm:$0xff] %vm653_vm0, %v7130_v36  ;;  %v6304_v31 = vmul.f32 %v5781_v24, %v16428_v4  ;;  %6100 = vperm.xlu0 %7860, %v5540_v51   ;;  %v16438_v24 = vld [vmem:[#allocation35_spill] sm:$0xff] }
0x114e   :  { %7301 = vst.msk [vmem:[%s14965_s4 + $0x240] sm:$0xff] %vm653_vm0, %v7163_v58 }
0x114f   :  { %v7132_v7 = vadd.f32 %v16430_v19, %v6304_v31 }
0x1150   :  { %v5791_v33 = vpop.permute.xlu0 %5790 }
0x1151   :  { %7270 = vst.msk [vmem:[%s14965_s4 + $0x148] sm:$0xff] %vm653_vm0, %v7132_v7  ;;  %v6306_v8 = vmul.f32 %v5791_v33, %v16431_v39  ;;  %6110 = vperm.xlu0 %7860, %v5542_v40   ;;  %v16441_v33 = vld [vmem:[#allocation184_spill] sm:$0xff] }
0x1152   :  { %v8237_v39 = vld [vmem:[%s14963_s2 + $0x270] sm:$0xff] }
0x1153   :  { %v7134_v37 = vadd.f32 %v16432_v13, %v6306_v8 }
0x1154   :  { %v8055_v45 = vpop.eup %8054  ;;  %v5801_v10 = vpop.permute.xlu0 %5800 }
0x1155   :  { %7272 = vst.msk [vmem:[%s14965_s4 + $0x158] sm:$0xff] %vm653_vm0, %v7134_v37  ;;  %v6308_v61 = vmul.f32 %v5801_v10, %v16433_v63  ;;  %6120 = vperm.xlu0 %7860, %v5544_v25   ;;  %v5546_v9 = vmul.f32 %v8236_v29, %v8055_v45  ;;  %v8057_v7 = vpop.eup %8056  ;;  %v16444_v45 = vld [vmem:[#allocation41_spill] sm:$0xff]  ;;  %v16445_v63 = vld [vmem:[#allocation191_spill] sm:$0xff]  ;;  %v16447_v29 = vld [vmem:[#allocation192_spill] sm:$0xff] }
0x1156   :  { %v5513_v8 = vmul.f32 %v8237_v39, %v8057_v7  ;;  %v16454_v39 = vld [vmem:[#allocation51_spill] sm:$0xff] }
0x1157   :  { %v7136_v14 = vadd.f32 %v16434_v6, %v6308_v61  ;;  %4821 = vadd.xlane.f32.xlu1 %v4820_v0  ;;  %v16446_v0 = vld [vmem:[#allocation43_spill] sm:$0xff] }
0x1158   :  { %v5811_v59 = vpop.permute.xlu0 %5810 }
0x1159   :  { %7274 = vst.msk [vmem:[%s14965_s4 + $0x168] sm:$0xff] %vm653_vm0, %v7136_v14  ;;  %v6310_v36 = vmul.f32 %v5811_v59, %v16435_v46  ;;  %6130 = vperm.xlu0 %7860, %v5546_v9   ;;  %v16448_v59 = vld [vmem:[#allocation45_spill] sm:$0xff] }
0x115b   :  { %v7138_v51 = vadd.f32 %v16436_v1, %v6310_v36  ;;  %v16449_v1 = vld [vmem:[#allocation197_spill] sm:$0xff] }
0x115c   :  { %v5821_v27 = vpop.permute.xlu0 %5820 }
0x115d   :  { %7276 = vst.msk [vmem:[%s14965_s4 + $0x178] sm:$0xff] %vm653_vm0, %v7138_v51  ;;  %v6312_v58 = vmul.f32 %v5821_v27, %v16437_v41  ;;  %v16450_v27 = vld [vmem:[#allocation47_spill] sm:$0xff] }
0x115f   :  { %v7140_v4 = vadd.f32 %v16438_v24, %v6312_v58  ;;  %v16451_v24 = vld [vmem:[#allocation198_spill] sm:$0xff] }
0x1160   :  { %v5831_v31 = vpop.permute.xlu0 %5830 }
0x1161   :  { %7278 = vst.msk [vmem:[%s14965_s4 + $0x188] sm:$0xff] %vm653_vm0, %v7140_v4  ;;  %v6314_v19 = vmul.f32 %v5831_v31, %v16439_v28  ;;  %v16452_v28 = vld [vmem:[#allocation49_spill] sm:$0xff] }
0x1163   :  { %v7142_v40 = vadd.f32 %v16440_v52, %v6314_v19 }
0x1164   :  { %v5841_v49 = vpop.permute.xlu0 %5840 }
0x1165   :  { %7280 = vst.msk [vmem:[%s14965_s4 + $0x198] sm:$0xff] %vm653_vm0, %v7142_v40  ;;  %v6316_v17 = vmul.f32 %v5841_v49, %v16441_v33  ;;  %v16453_v49 = vld [vmem:[#allocation202_spill] sm:$0xff] }
0x1167   :  { %v7144_v13 = vadd.f32 %v16442_v56, %v6316_v17  ;;  %v16455_v56 = vld [vmem:[#allocation218_spill] sm:$0xff] }
0x1168   :  { %5965 = vperm.xlu1 %7843, %v5513_v8   ;;  %v5851_v37 = vpop.permute.xlu0 %5850 }
0x1169   :  { %7282 = vst.msk [vmem:[%s14965_s4 + $0x1a8] sm:$0xff] %vm653_vm0, %v7144_v13  ;;  %v6318_v25 = vmul.f32 %v5851_v37, %v16443_v22  ;;  %v16456_v22 = vld [vmem:[#allocation58_spill] sm:$0xff] }
0x116b   :  { %v7146_v10 = vadd.f32 %v16444_v45, %v6318_v25  ;;  %v16457_v45 = vld [vmem:[#allocation206_spill] sm:$0xff] }
0x116c   :  { %v5861_v30 = vpop.permute.xlu0 %5860 }
0x116d   :  { %7284 = vst.msk [vmem:[%s14965_s4 + $0x1b8] sm:$0xff] %vm653_vm0, %v7146_v10  ;;  %v6320_v61 = vmul.f32 %v5861_v30, %v16445_v63  ;;  %v16458_v30 = vld [vmem:[#allocation241_spill] sm:$0xff] }
0x116e   :  { %v14296_v63 = vsub.f32 %v16458_v30, %v13640_v34  ;;  %v16470_v30 = vld [vmem:[#allocation232_spill] sm:$0xff] }
0x116f   :  { %v7148_v6 = vadd.f32 %v16446_v0, %v6320_v61  ;;  %v16459_v61 = vld [vmem:[#allocation53_spill] sm:$0xff] }
0x1170   :  { %v5871_v14 = vpop.permute.xlu0 %5870 }
0x1171   :  { %7286 = vst.msk [vmem:[%s14965_s4 + $0x1c8] sm:$0xff] %vm653_vm0, %v7148_v6  ;;  %v6322_v9 = vmul.f32 %v5871_v14, %v16447_v29  ;;  %v16460_v14 = vld [vmem:[#allocation210_spill] sm:$0xff] }
0x1173   :  { %v7150_v46 = vadd.f32 %v16448_v59, %v6322_v9  ;;  %v4963_v9 = vmul.f32 0.020408163, %v13627_v35  ;;  %v16461_v59 = vld [vmem:[#allocation55_spill] sm:$0xff] }
0x1174   :  { %v5881_v36 = vpop.permute.xlu0 %5880 }
0x1175   :  { %7288 = vst.msk [vmem:[%s14965_s4 + $0x1d8] sm:$0xff] %vm653_vm0, %v7150_v46  ;;  %v6324_v51 = vmul.f32 %v5881_v36, %v16449_v1  ;;  %v4450_v46 = vmul.f32 %v14296_v63, %v14296_v63 }
0x1177   :  { %v7152_v41 = vadd.f32 %v16450_v27, %v6324_v51  ;;  %v16462_v51 = vld [vmem:[#allocation214_spill] sm:$0xff] }
0x1178   :  { %v5891_v58 = vpop.permute.xlu0 %5890 }
0x1179   :  { %7290 = vst.msk [vmem:[%s14965_s4 + $0x1e8] sm:$0xff] %vm653_vm0, %v7152_v41  ;;  %v6326_v4 = vmul.f32 %v5891_v58, %v16451_v24  ;;  %v5239_v41 = vadd.f32 0.001, %v4963_v9  ;;  %v8238_v58 = vld [vmem:[%s14963_s2 + $0x388] sm:$0xff]  ;;  %v16463_v24 = vld [vmem:[#allocation57_spill] sm:$0xff] }
0x117a   :  { %v4810_v31 = vpop.xlane.xlu1 %4809 }
0x117b   :  { %v7154_v19 = vadd.f32 %v16452_v28, %v6326_v4  ;;  %v4996_v7 = vmul.f32 0.020408163, %v4810_v31  ;;  %v4826_v31 = vsel %vm653_vm0, %v4450_v46, 0.0  ;;  %v16473_v46 = vld [vmem:[#allocation67_spill] sm:$0xff] }
0x117c   :  { %v5901_v52 = vpop.permute.xlu0 %5900 }
0x117d   :  { %7292 = vst.msk [vmem:[%s14965_s4 + $0x1f8] sm:$0xff] %vm653_vm0, %v7154_v19  ;;  %v5272_v40 = vadd.f32 0.001, %v4996_v7  ;;  %v6328_v33 = vmul.f32 %v5901_v52, %v16453_v49  ;;  %v16464_v19 = vld [vmem:[#allocation221_spill] sm:$0xff]  ;;  %v16465_v52 = vld [vmem:[#allocation59_spill] sm:$0xff] }
0x117e   :  { %v5946_v17 = vpop.permute.xlu1 %5945 }
0x117f   :  { %8058 = vrsqrt.f32 %v5272_v40  ;;  %v7156_v8 = vadd.f32 %v16454_v39, %v6328_v33  ;;  %v6337_v13 = vmul.f32 %v5946_v17, %v16455_v56  ;;  %v16466_v33 = vld [vmem:[#allocation224_spill] sm:$0xff]  ;;  %v16467_v39 = vld [vmem:[#allocation61_spill] sm:$0xff] }
0x1180   :  { %v5911_v37 = vpop.permute.xlu0 %5910  ;;  %8060 = vrsqrt.f32 %v5239_v41  ;;  %v16475_v41 = vld [vmem:[#allocation69_spill] sm:$0xff] }
0x1181   :  { %7294 = vst.msk [vmem:[%s14965_s4 + $0x208] sm:$0xff] %vm653_vm0, %v7156_v8  ;;  %v7165_v25 = vadd.f32 %v16456_v22, %v6337_v13  ;;  %v6330_v10 = vmul.f32 %v5911_v37, %v16457_v45  ;;  %v16468_v13 = vld [vmem:[#allocation231_spill] sm:$0xff] }
0x1182   :  { %v16469_v22 = vld [vmem:[#allocation63_spill] sm:$0xff] }
0x1183   :  { %7303 = vst.msk [vmem:[%s14965_s4 + $0x250] sm:$0xff] %vm653_vm0, %v7165_v25  ;;  %v7158_v0 = vadd.f32 %v16459_v61, %v6330_v10 }
0x1184   :  { %v5921_v6 = vpop.permute.xlu0 %5920 }
0x1185   :  { %7296 = vst.msk [vmem:[%s14965_s4 + $0x218] sm:$0xff] %vm653_vm0, %v7158_v0  ;;  %v6332_v29 = vmul.f32 %v5921_v6, %v16460_v14  ;;  %v16471_v0 = vld [vmem:[#allocation65_spill] sm:$0xff]  ;;  %v8239_v14 = vld [vmem:[%s14963_s2 + $0x280] sm:$0xff] }
0x1187   :  { %v7160_v34 = vadd.f32 %v16461_v59, %v6332_v29  ;;  %v16472_v59 = vld [vmem:[#allocation236_spill] sm:$0xff] }
0x1188   :  { %v5931_v36 = vpop.permute.xlu0 %5930 }
0x1189   :  { %v8059_v1 = vpop.eup %8058  ;;  %7298 = vst.msk [vmem:[%s14965_s4 + $0x228] sm:$0xff] %vm653_vm0, %v7160_v34  ;;  %v6334_v27 = vmul.f32 %v5931_v36, %v16462_v51  ;;  %v16474_v51 = vld [vmem:[#allocation240_spill] sm:$0xff] }
0x118a   :  { %v5548_v35 = vmul.f32 %v8238_v58, %v8059_v1  ;;  %v8061_v45 = vpop.eup %8060 }
0x118b   :  { %v7162_v4 = vadd.f32 %v16463_v24, %v6334_v27  ;;  %v5515_v29 = vmul.f32 %v8239_v14, %v8061_v45 }
0x118c   :  { %4827 = vadd.xlane.f32.xlu1 %v4826_v31  ;;  %v5941_v28 = vpop.permute.xlu0 %5940  ;;  %6140 = vperm.xlu0 %7860, %v5548_v35  }
0x118d   :  { %7300 = vst.msk [vmem:[%s14965_s4 + $0x238] sm:$0xff] %vm653_vm0, %v7162_v4  ;;  %v6336_v7 = vmul.f32 %v5941_v28, %v16464_v19  ;;  %v16476_v4 = vld [vmem:[#allocation71_spill] sm:$0xff] }
0x118f   :  { %v7164_v40 = vadd.f32 %v16465_v52, %v6336_v7  ;;  %v16477_v7 = vld [vmem:[#allocation73_spill] sm:$0xff] }
0x1190   :  { %v5951_v49 = vpop.permute.xlu0 %5950 }
0x1191   :  { %7302 = vst.msk [vmem:[%s14965_s4 + $0x248] sm:$0xff] %vm653_vm0, %v7164_v40  ;;  %v6338_v17 = vmul.f32 %v5951_v49, %v16466_v33  ;;  %v16478_v49 = vld [vmem:[#allocation75_spill] sm:$0xff] }
0x1193   :  { %v7166_v8 = vadd.f32 %v16467_v39, %v6338_v17 }
0x1194   :  { %v5961_v56 = vpop.permute.xlu0 %5960 }
0x1195   :  { %7304 = vst.msk [vmem:[%s14965_s4 + $0x258] sm:$0xff] %vm653_vm0, %v7166_v8  ;;  %v6340_v37 = vmul.f32 %v5961_v56, %v16468_v13  ;;  %v16479_v13 = vld [vmem:[#allocation77_spill] sm:$0xff] }
0x1197   :  { %v7168_v25 = vadd.f32 %v16469_v22, %v6340_v37 }
0x1198   :  { %v5971_v10 = vpop.permute.xlu0 %5970 }
0x1199   :  { %7306 = vst.msk [vmem:[%s14965_s4 + $0x268] sm:$0xff] %vm653_vm0, %v7168_v25  ;;  %v6342_v61 = vmul.f32 %v5971_v10, %v16470_v30  ;;  %v16480_v25 = vld [vmem:[#allocation222_spill] sm:$0xff]  ;;  %v16481_v10 = vld [vmem:[#allocation252_spill] sm:$0xff] }
0x119b   :  { %v7170_v6 = vadd.f32 %v16471_v0, %v6342_v61  ;;  %v16482_v61 = vld [vmem:[#allocation60_spill] sm:$0xff] }
0x119c   :  { %v5981_v9 = vpop.permute.xlu0 %5980 }
0x119d   :  { %7308 = vst.msk [vmem:[%s14965_s4 + $0x278] sm:$0xff] %vm653_vm0, %v7170_v6  ;;  %v6344_v34 = vmul.f32 %v5981_v9, %v16472_v59  ;;  %5975 = vperm.xlu1 %7843, %v5515_v29   ;;  %v16483_v6 = vld [vmem:[#allocation79_spill] sm:$0xff] }
0x119f   :  { %v7172_v36 = vadd.f32 %v16473_v46, %v6344_v34  ;;  %v4965_v34 = vmul.f32 0.020408163, %v13631_v50  ;;  %v16485_v46 = vld [vmem:[#allocation81_spill] sm:$0xff] }
0x11a0   :  { %v5991_v1 = vpop.permute.xlu0 %5990 }
0x11a1   :  { %7310 = vst.msk [vmem:[%s14965_s4 + $0x288] sm:$0xff] %vm653_vm0, %v7172_v36  ;;  %v6346_v27 = vmul.f32 %v5991_v1, %v16474_v51 }
0x11a3   :  { %v7174_v58 = vadd.f32 %v16475_v41, %v6346_v27  ;;  %v5241_v41 = vadd.f32 0.001, %v4965_v34  ;;  %v16495_v34 = vld [vmem:[#allocation62_spill] sm:$0xff] }
0x11a4   :  { %v6001_v35 = vpop.permute.xlu0 %6000 }
0x11a5   :  { %7312 = vst.msk [vmem:[%s14965_s4 + $0x298] sm:$0xff] %vm653_vm0, %v7174_v58  ;;  %v6348_v24 = vmul.f32 %v6001_v35, %v13155_v3  ;;  %v16486_v58 = vld [vmem:[#allocation83_spill] sm:$0xff] }
0x11a7   :  { %v7176_v31 = vadd.f32 %v16476_v4, %v6348_v24 }
0x11a8   :  { %v6011_v28 = vpop.permute.xlu0 %6010 }
0x11a9   :  { %7314 = vst.msk [vmem:[%s14965_s4 + $0x2a8] sm:$0xff] %vm653_vm0, %v7176_v31  ;;  %v6350_v19 = vmul.f32 %v6011_v28, %v13196_v44 }
0x11ab   :  { %v7178_v52 = vadd.f32 %v16477_v7, %v6350_v19 }
0x11ac   :  { %v6021_v40 = vpop.permute.xlu0 %6020 }
0x11ad   :  { %7316 = vst.msk [vmem:[%s14965_s4 + $0x2b8] sm:$0xff] %vm653_vm0, %v7178_v52  ;;  %v6352_v3 = vmul.f32 %v6021_v40, %v13237_v54  ;;  %v16488_v52 = vld [vmem:[#allocation87_spill] sm:$0xff] }
0x11af   :  { %v7180_v33 = vadd.f32 %v16478_v49, %v6352_v3  ;;  %v4816_v17 = vpop.xlane.xlu1 %4815  ;;  %v16489_v49 = vld [vmem:[#allocation89_spill] sm:$0xff] }
0x11b0   :  { %v4998_v39 = vmul.f32 0.020408163, %v4816_v17  ;;  %v6031_v8 = vpop.permute.xlu0 %6030 }
0x11b1   :  { %7318 = vst.msk [vmem:[%s14965_s4 + $0x2c8] sm:$0xff] %vm653_vm0, %v7180_v33  ;;  %v6354_v44 = vmul.f32 %v6031_v8, %v13280_v23  ;;  %v16484_v23 = vld [vmem:[#allocation242_spill] sm:$0xff]  ;;  %v16490_v8 = vld [vmem:[#allocation91_spill] sm:$0xff] }
0x11b2   :  { %v5274_v56 = vadd.f32 0.001, %v4998_v39  ;;  %v14395_v29 = vsub.f32 %v16484_v23, %v13646_v11 }
0x11b3   :  { %v7182_v37 = vadd.f32 %v16479_v13, %v6354_v44  ;;  %v5956_v22 = vpop.permute.xlu1 %5955  ;;  %v8241_v13 = vld [vmem:[%s14963_s2 + $0x290] sm:$0xff] }
0x11b4   :  { %8062 = vrsqrt.f32 %v5274_v56  ;;  %v6339_v45 = vmul.f32 %v5956_v22, %v16480_v25  ;;  %v6041_v54 = vpop.permute.xlu0 %6040  ;;  %v4452_v11 = vmul.f32 %v14395_v29, %v14395_v29  ;;  %v16491_v22 = vld [vmem:[#allocation93_spill] sm:$0xff] }
0x11b5   :  { %7320 = vst.msk [vmem:[%s14965_s4 + $0x2d8] sm:$0xff] %vm653_vm0, %v7182_v37  ;;  %v6356_v30 = vmul.f32 %v6041_v54, %v16481_v10  ;;  %8064 = vrsqrt.f32 %v5241_v41  ;;  %v16492_v54 = vld [vmem:[#allocation95_spill] sm:$0xff] }
0x11b6   :  { %v7167_v0 = vadd.f32 %v16482_v61, %v6339_v45  ;;  %v4832_v4 = vsel %vm653_vm0, %v4452_v11, 0.0  ;;  %v16493_v61 = vld [vmem:[#allocation97_spill] sm:$0xff]  ;;  %v8242_v41 = vld [vmem:[%s14963_s2 + $0x3a8] sm:$0xff] }
0x11b7   :  { %v7184_v14 = vadd.f32 %v16483_v6, %v6356_v30 }
0x11b8   :  { %7305 = vst.msk [vmem:[%s14965_s4 + $0x260] sm:$0xff] %vm653_vm0, %v7167_v0  ;;  %v6051_v9 = vpop.permute.xlu0 %6050 }
0x11b9   :  { %7322 = vst.msk [vmem:[%s14965_s4 + $0x2e8] sm:$0xff] %vm653_vm0, %v7184_v14  ;;  %v6358_v59 = vmul.f32 %v6051_v9, %v13361_v60  ;;  %v8240_v60 = vld [vmem:[%s14963_s2 + $0x398] sm:$0xff] }
0x11ba   :  { %v16494_v9 = vld [vmem:[#allocation229_spill] sm:$0xff] }
0x11bb   :  { %v7186_v36 = vadd.f32 %v16485_v46, %v6358_v59 }
0x11bc   :  { %v6061_v1 = vpop.permute.xlu0 %6060 }
0x11bd   :  { %7324 = vst.msk [vmem:[%s14965_s4 + $0x2f8] sm:$0xff] %vm653_vm0, %v7186_v36  ;;  %v6360_v51 = vmul.f32 %v6061_v1, %v13396_v15  ;;  %v16487_v15 = vld [vmem:[#allocation85_spill] sm:$0xff]  ;;  %v16496_v36 = vld [vmem:[#allocation244_spill] sm:$0xff] }
0x11be   :  { %v8063_v27 = vpop.eup %8062  ;;  %v14473_v1 = vsub.f32 %v16496_v36, %v13652_v18 }
0x11bf   :  { %v7188_v35 = vadd.f32 %v16486_v58, %v6360_v51  ;;  %v5550_v50 = vmul.f32 %v8240_v60, %v8063_v27  ;;  %v8065_v39 = vpop.eup %8064 }
0x11c0   :  { %v6071_v24 = vpop.permute.xlu0 %6070  ;;  %v5517_v37 = vmul.f32 %v8241_v13, %v8065_v39  ;;  %v4454_v11 = vmul.f32 %v14473_v1, %v14473_v1  ;;  %v14511_v39 = vld [vmem:[%s14963_s2 + $0x3b8] sm:$0xff] }
0x11c1   :  { %7326 = vst.msk [vmem:[%s14965_s4 + $0x308] sm:$0xff] %vm653_vm0, %v7188_v35  ;;  %v6362_v31 = vmul.f32 %v6071_v24, %v13431_v47  ;;  %4833 = vadd.xlane.f32.xlu1 %v4832_v4  ;;  %6150 = vperm.xlu0 %7860, %v5550_v50   ;;  %v16497_v4 = vld [vmem:[#allocation99_spill] sm:$0xff] }
0x11c2   :  { %v4838_v18 = vsel %vm653_vm0, %v4454_v11, 0.0 }
0x11c3   :  { %v7190_v28 = vadd.f32 %v16487_v15, %v6362_v31 }
0x11c4   :  { %v6081_v19 = vpop.permute.xlu0 %6080 }
0x11c5   :  { %7328 = vst.msk [vmem:[%s14965_s4 + $0x318] sm:$0xff] %vm653_vm0, %v7190_v28  ;;  %v6364_v7 = vmul.f32 %v6081_v19, %v13496_v20 }
0x11c7   :  { %v7192_v40 = vadd.f32 %v16488_v52, %v6364_v7  ;;  %v16498_v52 = vld [vmem:[#allocation230_spill] sm:$0xff] }
0x11c8   :  { %v6091_v3 = vpop.permute.xlu0 %6090 }
0x11c9   :  { %7330 = vst.msk [vmem:[%s14965_s4 + $0x328] sm:$0xff] %vm653_vm0, %v7192_v40  ;;  %v6366_v47 = vmul.f32 %v6091_v3, %v13581_v43  ;;  %v16499_v3 = vld [vmem:[#allocation64_spill] sm:$0xff] }
0x11cb   :  { %v7194_v33 = vadd.f32 %v16489_v49, %v6366_v47  ;;  %v16500_v49 = vld [vmem:[#allocation246_spill] sm:$0xff] }
0x11cc   :  { %v6101_v17 = vpop.permute.xlu0 %6100 }
0x11cd   :  { %7332 = vst.msk [vmem:[%s14965_s4 + $0x338] sm:$0xff] %vm653_vm0, %v7194_v33  ;;  %v6368_v20 = vmul.f32 %v6101_v17, %v13615_v26  ;;  %v14499_v33 = vsub.f32 %v16500_v49, %v13670_v2 }
0x11cf   :  { %v7196_v44 = vadd.f32 %v16490_v8, %v6368_v20  ;;  %v4456_v17 = vmul.f32 %v14499_v33, %v14499_v33 }
0x11d0   :  { %v6111_v56 = vpop.permute.xlu0 %6110 }
0x11d1   :  { %7334 = vst.msk [vmem:[%s14965_s4 + $0x348] sm:$0xff] %vm653_vm0, %v7196_v44  ;;  %v6370_v43 = vmul.f32 %v6111_v56, %v13664_v48  ;;  %v4844_v44 = vsel %vm653_vm0, %v4456_v17, 0.0 }
0x11d2   :  { %5985 = vperm.xlu1 %7843, %v5517_v37  }
0x11d3   :  { %v7198_v25 = vadd.f32 %v16491_v22, %v6370_v43  ;;  %v16501_v22 = vld [vmem:[#allocation101_spill] sm:$0xff] }
0x11d4   :  { %v6121_v45 = vpop.permute.xlu0 %6120 }
0x11d5   :  { %7336 = vst.msk [vmem:[%s14965_s4 + $0x358] sm:$0xff] %vm653_vm0, %v7198_v25  ;;  %v6372_v26 = vmul.f32 %v6121_v45, %v13738_v5 }
0x11d7   :  { %v7200_v10 = vadd.f32 %v16492_v54, %v6372_v26 }
0x11d8   :  { %v6131_v30 = vpop.permute.xlu0 %6130 }
0x11d9   :  { %7338 = vst.msk [vmem:[%s14965_s4 + $0x368] sm:$0xff] %vm653_vm0, %v7200_v10  ;;  %v6374_v48 = vmul.f32 %v6131_v30, %v13828_v12  ;;  %v4967_v12 = vmul.f32 0.020408163, %v13638_v62  ;;  %v8243_v62 = vld [vmem:[%s14963_s2 + $0x2a0] sm:$0xff]  ;;  %v16502_v30 = vld [vmem:[#allocation235_spill] sm:$0xff] }
0x11db   :  { %v7202_v0 = vadd.f32 %v16493_v61, %v6374_v48  ;;  %v5243_v27 = vadd.f32 0.001, %v4967_v12  ;;  %v16503_v61 = vld [vmem:[#allocation66_spill] sm:$0xff] }
0x11dd   :  { %7340 = vst.msk [vmem:[%s14965_s4 + $0x378] sm:$0xff] %vm653_vm0, %v7202_v0 }
0x11e4   :  { %v4822_v6 = vpop.xlane.xlu1 %4821 }
0x11e5   :  { %v5000_v14 = vmul.f32 0.020408163, %v4822_v6  ;;  %v16504_v6 = vld [vmem:[#allocation248_spill] sm:$0xff] }
0x11e7   :  { %v5276_v5 = vadd.f32 0.001, %v5000_v14  ;;  %v14528_v14 = vsub.f32 %v16504_v6, %v13677_v53 }
0x11e8   :  { %v5966_v23 = vpop.permute.xlu1 %5965 }
0x11e9   :  { %8066 = vrsqrt.f32 %v5276_v5  ;;  %v6341_v59 = vmul.f32 %v5966_v23, %v16494_v9  ;;  %v4458_v5 = vmul.f32 %v14528_v14, %v14528_v14  ;;  %v14540_v23 = vld [vmem:[%s14963_s2 + $0x3c8] sm:$0xff] }
0x11ea   :  { %8068 = vrsqrt.f32 %v5243_v27 }
0x11eb   :  { %v7169_v46 = vadd.f32 %v16495_v34, %v6341_v59  ;;  %v4850_v34 = vsel %vm653_vm0, %v4458_v5, 0.0 }
0x11ed   :  { %7307 = vst.msk [vmem:[%s14965_s4 + $0x270] sm:$0xff] %vm653_vm0, %v7169_v46 }
0x11f3   :  { %v8067_v51 = vpop.eup %8066 }
0x11f4   :  { %v5552_v58 = vmul.f32 %v8242_v41, %v8067_v51  ;;  %v8069_v35 = vpop.eup %8068  ;;  %v16505_v51 = vld [vmem:[#allocation103_spill] sm:$0xff] }
0x11f5   :  { %v5519_v60 = vmul.f32 %v8243_v62, %v8069_v35  ;;  %v16506_v62 = vld [vmem:[#allocation239_spill] sm:$0xff] }
0x11f6   :  { %4839 = vadd.xlane.f32.xlu1 %v4838_v18  ;;  %6160 = vperm.xlu0 %7860, %v5552_v58  }
0x1207   :  { %5995 = vperm.xlu1 %7843, %v5519_v60  }
0x120b   :  { %v6141_v50 = vpop.permute.xlu0 %6140 }
0x120c   :  { %v6376_v24 = vmul.f32 %v6141_v50, %v13924_v38  ;;  %v4969_v38 = vmul.f32 0.020408163, %v13642_v57  ;;  %v8244_v57 = vld [vmem:[%s14963_s2 + $0x2b0] sm:$0xff] }
0x120d   :  { %v16507_v50 = vld [vmem:[#allocation68_spill] sm:$0xff] }
0x120e   :  { %v7204_v31 = vadd.f32 %v16497_v4, %v6376_v24  ;;  %v5245_v8 = vadd.f32 0.001, %v4969_v38  ;;  %v16508_v4 = vld [vmem:[#allocation280_spill] sm:$0xff] }
0x120f   :  { %v8246_v38 = vld [vmem:[%s14963_s2 + $0x2d0] sm:$0xff] }
0x1210   :  { %7342 = vst.msk [vmem:[%s14965_s4 + $0x388] sm:$0xff] %vm653_vm0, %v7204_v31  ;;  %v16509_v31 = vld [vmem:[#allocation250_spill] sm:$0xff] }
0x1219   :  { %v4828_v15 = vpop.xlane.xlu1 %4827 }
0x121a   :  { %v5002_v28 = vmul.f32 0.020408163, %v4828_v15  ;;  %v14557_v15 = vsub.f32 %v16509_v31, %v16508_v4  ;;  %v8248_v31 = vld [vmem:[%s14963_s2 + $0x2f0] sm:$0xff] }
0x121c   :  { %v5278_v19 = vadd.f32 0.001, %v5002_v28 }
0x121d   :  { %v5976_v7 = vpop.permute.xlu1 %5975 }
0x121e   :  { %8070 = vrsqrt.f32 %v5278_v19  ;;  %v6343_v40 = vmul.f32 %v5976_v7, %v16498_v52  ;;  %v4460_v19 = vmul.f32 %v14557_v15, %v14557_v15  ;;  %v14569_v7 = vld [vmem:[%s14963_s2 + $0x3d8] sm:$0xff] }
0x121f   :  { %8072 = vrsqrt.f32 %v5245_v8 }
0x1220   :  { %v7171_v47 = vadd.f32 %v16499_v3, %v6343_v40 }
0x1222   :  { %7309 = vst.msk [vmem:[%s14965_s4 + $0x280] sm:$0xff] %vm653_vm0, %v7171_v47  ;;  %v4856_v47 = vsel %vm653_vm0, %v4460_v19, 0.0 }
0x1228   :  { %v8071_v20 = vpop.eup %8070 }
0x1229   :  { %v5554_v2 = vmul.f32 %v8071_v20, %v14511_v39  ;;  %v8073_v56 = vpop.eup %8072 }
0x122a   :  { %v5521_v13 = vmul.f32 %v8244_v57, %v8073_v56  ;;  %v16511_v56 = vld [vmem:[#allocation243_spill] sm:$0xff] }
0x122b   :  { %4845 = vadd.xlane.f32.xlu1 %v4844_v44  ;;  %6170 = vperm.xlu0 %7860, %v5554_v2  }
0x123c   :  { %6005 = vperm.xlu1 %7843, %v5521_v13   ;;  %v16512_v13 = vld [vmem:[#allocation70_spill] sm:$0xff] }
0x1240   :  { %v6151_v37 = vpop.permute.xlu0 %6150 }
0x1241   :  { %v6378_v43 = vmul.f32 %v6151_v37, %v14043_v55  ;;  %v4971_v55 = vmul.f32 0.020408163, %v13648_v16  ;;  %v8245_v16 = vld [vmem:[%s14963_s2 + $0x2c0] sm:$0xff] }
0x1243   :  { %v7206_v25 = vadd.f32 %v16501_v22, %v6378_v43  ;;  %v5247_v59 = vadd.f32 0.001, %v4971_v55  ;;  %v16513_v43 = vld [vmem:[#allocation285_spill] sm:$0xff]  ;;  %v16514_v22 = vld [vmem:[#allocation255_spill] sm:$0xff]  ;;  %v8247_v55 = vld [vmem:[%s14963_s2 + $0x2e0] sm:$0xff] }
0x1245   :  { %7344 = vst.msk [vmem:[%s14965_s4 + $0x398] sm:$0xff] %vm653_vm0, %v7206_v25  ;;  %v14580_v25 = vsub.f32 %v16514_v22, %v16513_v43 }
0x124e   :  { %v4834_v45 = vpop.xlane.xlu1 %4833 }
0x124f   :  { %v5004_v26 = vmul.f32 0.020408163, %v4834_v45  ;;  %v16515_v45 = vld [vmem:[#allocation278_spill] sm:$0xff] }
0x1251   :  { %v5280_v54 = vadd.f32 0.001, %v5004_v26  ;;  %v4975_v26 = vmul.f32 0.020408163, %v16515_v45 }
0x1252   :  { %v5986_v10 = vpop.permute.xlu1 %5985 }
0x1253   :  { %8074 = vrsqrt.f32 %v5280_v54  ;;  %v6345_v48 = vmul.f32 %v5986_v10, %v16502_v30  ;;  %v4462_v54 = vmul.f32 %v14580_v25, %v14580_v25  ;;  %v14592_v10 = vld [vmem:[%s14963_s2 + $0x3e8] sm:$0xff] }
0x1254   :  { %8076 = vrsqrt.f32 %v5247_v59 }
0x1255   :  { %v7173_v0 = vadd.f32 %v16503_v61, %v6345_v48  ;;  %v5251_v48 = vadd.f32 0.001, %v4975_v26  ;;  %v8249_v26 = vld [vmem:[%s14963_s2 + $0x300] sm:$0xff] }
0x1257   :  { %7311 = vst.msk [vmem:[%s14965_s4 + $0x290] sm:$0xff] %vm653_vm0, %v7173_v0  ;;  %v4862_v0 = vsel %vm653_vm0, %v4462_v54, 0.0 }
0x125d   :  { %v8075_v9 = vpop.eup %8074 }
0x125e   :  { %v5556_v53 = vmul.f32 %v8075_v9, %v14540_v23  ;;  %v8077_v46 = vpop.eup %8076 }
0x125f   :  { %v5523_v36 = vmul.f32 %v8245_v16, %v8077_v46  ;;  %v16516_v46 = vld [vmem:[#allocation245_spill] sm:$0xff] }
0x1260   :  { %4851 = vadd.xlane.f32.xlu1 %v4850_v34  ;;  %6180 = vperm.xlu0 %7860, %v5556_v53  }
0x1271   :  { %6015 = vperm.xlu1 %7843, %v5523_v36   ;;  %v16517_v36 = vld [vmem:[#allocation72_spill] sm:$0xff] }
0x1275   :  { %v6161_v12 = vpop.permute.xlu0 %6160 }
0x1276   :  { %v6380_v11 = vmul.f32 %v6161_v12, %v14192_v42  ;;  %v16510_v42 = vld [vmem:[#allocation279_spill] sm:$0xff] }
0x1277   :  { %v4973_v28 = vmul.f32 0.020408163, %v16510_v42 }
0x1278   :  { %v7208_v27 = vadd.f32 %v16505_v51, %v6380_v11  ;;  %v16518_v11 = vld [vmem:[#allocation286_spill] sm:$0xff]  ;;  %v16519_v51 = vld [vmem:[#allocation257_spill] sm:$0xff] }
0x1279   :  { %v5249_v40 = vadd.f32 0.001, %v4973_v28 }
0x127a   :  { %7346 = vst.msk [vmem:[%s14965_s4 + $0x3a8] sm:$0xff] %vm653_vm0, %v7208_v27  ;;  %v14603_v27 = vsub.f32 %v16519_v51, %v16518_v11 }
0x1283   :  { %v4840_v41 = vpop.xlane.xlu1 %4839 }
0x1284   :  { %v5006_v58 = vmul.f32 0.020408163, %v4840_v41  ;;  %v16520_v41 = vld [vmem:[#allocation281_spill] sm:$0xff] }
0x1286   :  { %v5282_v18 = vadd.f32 0.001, %v5006_v58  ;;  %v4977_v58 = vmul.f32 0.020408163, %v16520_v41 }
0x1287   :  { %v5996_v35 = vpop.permute.xlu1 %5995 }
0x1288   :  { %8078 = vrsqrt.f32 %v5282_v18  ;;  %v6347_v60 = vmul.f32 %v5996_v35, %v16506_v62  ;;  %v4464_v18 = vmul.f32 %v14603_v27, %v14603_v27  ;;  %v14615_v35 = vld [vmem:[%s14963_s2 + $0x3f8] sm:$0xff] }
0x1289   :  { %8080 = vrsqrt.f32 %v5249_v40 }
0x128a   :  { %v7175_v24 = vadd.f32 %v16507_v50, %v6347_v60  ;;  %v5253_v60 = vadd.f32 0.001, %v4977_v58 }
0x128c   :  { %7313 = vst.msk [vmem:[%s14965_s4 + $0x2a0] sm:$0xff] %vm653_vm0, %v7175_v24  ;;  %v4868_v24 = vsel %vm653_vm0, %v4464_v18, 0.0  ;;  %v16531_v18 = vld [vmem:[#allocation115_spill] sm:$0xff] }
0x1292   :  { %v8079_v52 = vpop.eup %8078 }
0x1293   :  { %v5558_v3 = vmul.f32 %v8079_v52, %v14569_v7  ;;  %v8081_v49 = vpop.eup %8080 }
0x1294   :  { %v5525_v17 = vmul.f32 %v8246_v38, %v8081_v49  ;;  %v16522_v49 = vld [vmem:[#allocation74_spill] sm:$0xff] }
0x1295   :  { %4857 = vadd.xlane.f32.xlu1 %v4856_v47  ;;  %6190 = vperm.xlu0 %7860, %v5558_v3   ;;  %v16521_v3 = vld [vmem:[#allocation247_spill] sm:$0xff] }
0x12a6   :  { %6025 = vperm.xlu1 %7843, %v5525_v17   ;;  %v16523_v17 = vld [vmem:[#allocation290_spill] sm:$0xff] }
0x12b8   :  { %v4846_v20 = vpop.xlane.xlu1 %4845 }
0x12b9   :  { %v5008_v8 = vmul.f32 0.020408163, %v4846_v20  ;;  %v16524_v20 = vld [vmem:[#allocation259_spill] sm:$0xff] }
0x12bb   :  { %v5284_v2 = vadd.f32 0.001, %v5008_v8  ;;  %v14626_v8 = vsub.f32 %v16524_v20, %v16523_v17 }
0x12bc   :  { %v6006_v44 = vpop.permute.xlu1 %6005 }
0x12bd   :  { %8082 = vrsqrt.f32 %v5284_v2  ;;  %v6349_v57 = vmul.f32 %v6006_v44, %v16511_v56  ;;  %v16525_v2 = vld [vmem:[#allocation111_spill] sm:$0xff]  ;;  %v4466_v56 = vmul.f32 %v14626_v8, %v14626_v8 }
0x12be   :  { %8084 = vrsqrt.f32 %v5251_v48  ;;  %v4979_v44 = vmul.f32 0.020408163, %v16525_v2  ;;  %v16536_v2 = vld [vmem:[#allocation296_spill] sm:$0xff] }
0x12bf   :  { %v7177_v37 = vadd.f32 %v16512_v13, %v6349_v57  ;;  %v14638_v57 = vld [vmem:[%s14963_s2 + $0x408] sm:$0xff]  ;;  %v4874_v22 = vsel %vm653_vm0, %v4466_v56, 0.0  ;;  %v8252_v56 = vld [vmem:[%s14963_s2 + $0x330] sm:$0xff] }
0x12c1   :  { %7315 = vst.msk [vmem:[%s14965_s4 + $0x2b0] sm:$0xff] %vm653_vm0, %v7177_v37  ;;  %v5255_v37 = vadd.f32 0.001, %v4979_v44  ;;  %v4989_v44 = vmul.f32 0.020408163, %v16536_v2 }
0x12c7   :  { %v8083_v30 = vpop.eup %8082 }
0x12c8   :  { %v5560_v61 = vmul.f32 %v8083_v30, %v14592_v10  ;;  %v8085_v6 = vpop.eup %8084 }
0x12c9   :  { %v5527_v5 = vmul.f32 %v8247_v55, %v8085_v6  ;;  %v16526_v6 = vld [vmem:[#allocation249_spill] sm:$0xff] }
0x12ca   :  { %4863 = vadd.xlane.f32.xlu1 %v4862_v0  ;;  %6200 = vperm.xlu0 %7860, %v5560_v61  }
0x12db   :  { %6035 = vperm.xlu1 %7843, %v5527_v5   ;;  %v16527_v5 = vld [vmem:[#allocation76_spill] sm:$0xff] }
0x12ed   :  { %v4852_v9 = vpop.xlane.xlu1 %4851 }
0x12ee   :  { %v5010_v59 = vmul.f32 0.020408163, %v4852_v9 }
0x12f0   :  { %v5286_v53 = vadd.f32 0.001, %v5010_v59  ;;  %v16528_v59 = vld [vmem:[#allocation282_spill] sm:$0xff] }
0x12f1   :  { %v6016_v34 = vpop.permute.xlu1 %6015 }
0x12f2   :  { %8086 = vrsqrt.f32 %v5286_v53  ;;  %v6351_v16 = vmul.f32 %v6016_v34, %v16516_v46  ;;  %v16529_v53 = vld [vmem:[#allocation261_spill] sm:$0xff] }
0x12f3   :  { %8088 = vrsqrt.f32 %v5253_v60  ;;  %v14649_v34 = vsub.f32 %v16529_v53, %v16528_v59  ;;  %v16530_v46 = vld [vmem:[#allocation113_spill] sm:$0xff] }
0x12f4   :  { %v7179_v12 = vadd.f32 %v16517_v36, %v6351_v16  ;;  %v4981_v16 = vmul.f32 0.020408163, %v16530_v46  ;;  %v16540_v46 = vld [vmem:[#allocation130_spill] sm:$0xff] }
0x12f5   :  { %v4468_v36 = vmul.f32 %v14649_v34, %v14649_v34 }
0x12f6   :  { %7317 = vst.msk [vmem:[%s14965_s4 + $0x2c0] sm:$0xff] %vm653_vm0, %v7179_v12  ;;  %v14661_v12 = vld [vmem:[%s14963_s2 + $0x418] sm:$0xff]  ;;  %v5257_v51 = vadd.f32 0.001, %v4981_v16  ;;  %v4993_v16 = vmul.f32 0.020408163, %v16540_v46 }
0x12f7   :  { %v4880_v58 = vsel %vm653_vm0, %v4468_v36, 0.0  ;;  %v8254_v36 = vld [vmem:[%s14963_s2 + $0x350] sm:$0xff] }
0x12fc   :  { %v8087_v62 = vpop.eup %8086 }
0x12fd   :  { %v5562_v50 = vmul.f32 %v8087_v62, %v14615_v35  ;;  %v8089_v4 = vpop.eup %8088  ;;  %v4983_v62 = vmul.f32 0.020408163, %v16531_v18  ;;  %v8255_v18 = vld [vmem:[%s14963_s2 + $0x360] sm:$0xff] }
0x12fe   :  { %v5529_v42 = vmul.f32 %v8248_v31, %v8089_v4  ;;  %v8250_v31 = vld [vmem:[%s14963_s2 + $0x310] sm:$0xff] }
0x12ff   :  { %4869 = vadd.xlane.f32.xlu1 %v4868_v24  ;;  %6210 = vperm.xlu0 %7860, %v5562_v50   ;;  %v5259_v60 = vadd.f32 0.001, %v4983_v62  ;;  %v16532_v24 = vld [vmem:[#allocation117_spill] sm:$0xff] }
0x1300   :  { %v4985_v4 = vmul.f32 0.020408163, %v16532_v24  ;;  %v16542_v24 = vld [vmem:[#allocation121_spill] sm:$0xff] }
0x1310   :  { %6045 = vperm.xlu1 %7843, %v5529_v42  }
0x1322   :  { %v4858_v28 = vpop.xlane.xlu1 %4857 }
0x1323   :  { %v5012_v19 = vmul.f32 0.020408163, %v4858_v28  ;;  %v5261_v28 = vadd.f32 0.001, %v4985_v4  ;;  %v4997_v4 = vmul.f32 0.020408163, %v16542_v24 }
0x1324   :  { %v16552_v24 = vld [vmem:[#allocation144_spill] sm:$0xff] }
0x1325   :  { %v5288_v52 = vadd.f32 0.001, %v5012_v19  ;;  %v16533_v19 = vmov 1  }
0x1326   :  { %v6026_v40 = vpop.permute.xlu1 %6025 }
0x1327   :  { %8090 = vrsqrt.f32 %v5288_v52  ;;  %v6353_v47 = vmul.f32 %v6026_v40, %v16521_v3  ;;  %v16534_v40 = vld [vmem:[#allocation119_spill] sm:$0xff] }
0x1328   :  { %8092 = vrsqrt.f32 %v5255_v37  ;;  %v4987_v3 = vmul.f32 0.020408163, %v16534_v40 }
0x1329   :  { %v7181_v38 = vadd.f32 %v16522_v49, %v6353_v47  ;;  %v8251_v47 = vld [vmem:[%s14963_s2 + $0x320] sm:$0xff] }
0x132a   :  { %v5263_v17 = vadd.f32 0.001, %v4987_v3 }
0x132b   :  { %7319 = vst.msk [vmem:[%s14965_s4 + $0x2d0] sm:$0xff] %vm653_vm0, %v7181_v38  ;;  %v16535_v38 = vmov 0  }
0x1331   :  { %v8091_v13 = vpop.eup %8090 }
0x1332   :  { %v5564_v43 = vmul.f32 %v8091_v13, %v14638_v57  ;;  %v8093_v45 = vpop.eup %8092 }
0x1333   :  { %v5531_v54 = vmul.f32 %v8249_v26, %v8093_v45  ;;  %v16537_v26 = vld [vmem:[#allocation251_spill] sm:$0xff] }
0x1334   :  { %4875 = vadd.xlane.f32.xlu1 %v4874_v22  ;;  %6220 = vperm.xlu0 %7860, %v5564_v43   ;;  %v5265_v43 = vadd.f32 0.001, %v4989_v44 }
0x1345   :  { %6055 = vperm.xlu1 %7843, %v5531_v54  }
0x1357   :  { %v4864_v30 = vpop.xlane.xlu1 %4863 }
0x1358   :  { %v5014_v48 = vmul.f32 0.020408163, %v4864_v30  ;;  %v16538_v30 = vld [vmem:[#allocation78_spill] sm:$0xff] }
0x135a   :  { %v5290_v61 = vadd.f32 0.001, %v5014_v48 }
0x135b   :  { %v6036_v0 = vpop.permute.xlu1 %6035 }
0x135c   :  { %8094 = vrsqrt.f32 %v5290_v61  ;;  %v6355_v55 = vmul.f32 %v6036_v0, %v16526_v6  ;;  %v16539_v61 = vld [vmem:[#allocation171_spill] sm:$0xff]  ;;  %v8253_v6 = vld [vmem:[%s14963_s2 + $0x340] sm:$0xff] }
0x135d   :  { %8096 = vrsqrt.f32 %v5257_v51  ;;  %v4991_v0 = vmul.f32 0.020408163, %v16539_v61  ;;  %v5269_v51 = vadd.f32 0.001, %v4993_v16 }
0x135e   :  { %v7183_v9 = vadd.f32 %v16527_v5, %v6355_v55  ;;  %8098 = vrsqrt.f32 %v5259_v60 }
0x135f   :  { %8100 = vrsqrt.f32 %v5261_v28  ;;  %v5267_v5 = vadd.f32 0.001, %v4991_v0  ;;  %v5156_v0 = vld [vmem:[%s14963_s2 + $0x438] sm:$0xff] }
0x1360   :  { %7321 = vst.msk [vmem:[%s14965_s4 + $0x2e0] sm:$0xff] %vm653_vm0, %v7183_v9  ;;  %8102 = vrsqrt.f32 %v5263_v17 }
0x1366   :  { %v8095_v11 = vpop.eup %8094 }
0x1367   :  { %v5566_v41 = vmul.f32 %v8095_v11, %v14661_v12  ;;  %v8097_v50 = vpop.eup %8096 }
0x1368   :  { %v5533_v42 = vmul.f32 %v8250_v31, %v8097_v50  ;;  %v8099_v52 = vpop.eup %8098 }
0x1369   :  { %4881 = vadd.xlane.f32.xlu1 %v4880_v58  ;;  %6230 = vperm.xlu0 %7860, %v5566_v41   ;;  %v5535_v49 = vmul.f32 %v8251_v47, %v8099_v52  ;;  %v8101_v20 = vpop.eup %8100  ;;  %v16541_v58 = vld [vmem:[#allocation131_spill] sm:$0xff]  ;;  %v16543_v52 = vld [vmem:[#allocation6_spill] sm:$0xff] }
0x136a   :  { %v5537_v13 = vmul.f32 %v8252_v56, %v8101_v20  ;;  %v4999_v40 = vmul.f32 0.020408163, %v16543_v52  ;;  %v16545_v56 = vld [vmem:[#allocation135_spill] sm:$0xff] }
0x136c   :  { %v5275_v47 = vadd.f32 0.001, %v4999_v40  ;;  %v8262_v40 = vld [vmem:[%s14963_s2 + $0x3d0] sm:$0xff] }
0x137a   :  { %6065 = vperm.xlu1 %7843, %v5533_v42   ;;  %v5273_v42 = vadd.f32 0.001, %v4997_v4  ;;  %v5013_v4 = vmul.f32 0.020408163, %v16552_v24 }
0x137e   :  { %7844 = vset.pattern.permute.xlu1 %v16533_v19 }
0x137f   :  { %6998 = vperm.xlu1 %7844, %v14511_v39  }
0x1383   :  { %7846 = vset.pattern.permute.xlu1 %v16535_v38 }
0x1384   :  { %6075 = vperm.xlu1 %7846, %v5535_v49   ;;  %v16544_v49 = vld [vmem:[#allocation134_spill] sm:$0xff] }
0x1385   :  { %v5001_v17 = vmul.f32 0.020408163, %v16544_v49  ;;  %v16554_v49 = vld [vmem:[#allocation10_spill] sm:$0xff] }
0x1388   :  { %7847 = vset.pattern.permute.xlu1 %v16533_v19 }
0x1389   :  { %7008 = vperm.xlu1 %7847, %v14540_v23   ;;  %v8103_v23 = vpop.eup %8102 }
0x138a   :  { %v5539_v55 = vmul.f32 %v8253_v6, %v8103_v23 }
0x138c   :  { %v4870_v39 = vpop.xlane.xlu1 %4869 }
0x138d   :  { %v5016_v37 = vmul.f32 0.020408163, %v4870_v39  ;;  %7848 = vset.pattern.permute.xlu1 %v16535_v38 }
0x138e   :  { %6085 = vperm.xlu1 %7848, %v5537_v13   ;;  %v5003_v13 = vmul.f32 0.020408163, %v16545_v56 }
0x138f   :  { %v5292_v22 = vadd.f32 0.001, %v5016_v37 }
0x1390   :  { %v6046_v45 = vpop.permute.xlu1 %6045 }
0x1391   :  { %8104 = vrsqrt.f32 %v5292_v22  ;;  %v6357_v54 = vmul.f32 %v6046_v45, %v16537_v26  ;;  %v16547_v45 = vld [vmem:[#allocation80_spill] sm:$0xff] }
0x1392   :  { %7849 = vset.pattern.permute.xlu1 %v16533_v19  ;;  %8106 = vrsqrt.f32 %v5265_v43  ;;  %v16546_v43 = vld [vmem:[#allocation253_spill] sm:$0xff] }
0x1393   :  { %v7185_v48 = vadd.f32 %v16538_v30, %v6357_v54  ;;  %7018 = vperm.xlu1 %7849, %v14569_v7   ;;  %v5154_v7 = vld [vmem:[%s14963_s2 + $0x428] sm:$0xff]  ;;  %8108 = vrsqrt.f32 %v5267_v5  ;;  %v8258_v54 = vld [vmem:[%s14963_s2 + $0x390] sm:$0xff]  ;;  %v5279_v30 = vadd.f32 0.001, %v5003_v13 }
0x1394   :  { %8110 = vrsqrt.f32 %v5269_v51  ;;  %v8264_v13 = vld [vmem:[%s14963_s2 + $0x3f0] sm:$0xff] }
0x1395   :  { %7323 = vst.msk [vmem:[%s14965_s4 + $0x2f0] sm:$0xff] %vm653_vm0, %v7185_v48  ;;  %v16548_v48 = vld [vmem:[#allocation123_spill] sm:$0xff] }
0x1396   :  { %v5005_v61 = vmul.f32 0.020408163, %v16548_v48 }
0x1397   :  { %7850 = vset.pattern.permute.xlu1 %v16535_v38 }
0x1398   :  { %6095 = vperm.xlu1 %7850, %v5539_v55   ;;  %v5281_v6 = vadd.f32 0.001, %v5005_v61  ;;  %v16549_v55 = vld [vmem:[#allocation8_spill] sm:$0xff]  ;;  %v8267_v61 = vld [vmem:[%s14963_s2 + $0x420] sm:$0xff] }
0x1399   :  { %v5007_v5 = vmul.f32 0.020408163, %v16549_v55 }
0x139b   :  { %v8105_v9 = vpop.eup %8104 }
0x139c   :  { %7851 = vset.pattern.permute.xlu1 %v16533_v19  ;;  %v5568_v59 = vmul.f32 %v8105_v9, %v5154_v7  ;;  %v8107_v53 = vpop.eup %8106 }
0x139d   :  { %7028 = vperm.xlu1 %7851, %v14592_v10   ;;  %v5541_v11 = vmul.f32 %v8254_v36, %v8107_v53  ;;  %v8109_v41 = vpop.eup %8108  ;;  %v4995_v10 = vmul.f32 0.020408163, %v16541_v58  ;;  %v16550_v53 = vld [vmem:[#allocation141_spill] sm:$0xff]  ;;  %v8259_v36 = vld [vmem:[%s14963_s2 + $0x3a0] sm:$0xff] }
0x139e   :  { %6240 = vperm.xlu0 %7860, %v5568_v59   ;;  %v5543_v62 = vmul.f32 %v8255_v18, %v8109_v41  ;;  %v8111_v50 = vpop.eup %8110  ;;  %v5283_v59 = vadd.f32 0.001, %v5007_v5  ;;  %v5009_v46 = vmul.f32 0.020408163, %v16550_v53  ;;  %v16551_v58 = vld [vmem:[#allocation138_spill] sm:$0xff]  ;;  %v8260_v18 = vld [vmem:[%s14963_s2 + $0x3b0] sm:$0xff] }
0x139f   :  { %v5271_v60 = vadd.f32 0.001, %v4995_v10  ;;  %v5011_v10 = vmul.f32 0.020408163, %v16551_v58  ;;  %v8268_v5 = vld [vmem:[%s14963_s2 + $0x430] sm:$0xff]  ;;  %v5157_v53 = vld [vmem:[%s14963_s2 + $0x440] sm:$0xff] }
0x13a0   :  { %v5285_v41 = vadd.f32 0.001, %v5009_v46 }
0x13a1   :  { %7852 = vset.pattern.permute.xlu1 %v16535_v38  ;;  %8112 = vrsqrt.f32 %v5271_v60 }
0x13a2   :  { %6105 = vperm.xlu1 %7852, %v5541_v11   ;;  %8114 = vrsqrt.f32 %v5273_v42  ;;  %v5289_v42 = vadd.f32 0.001, %v5013_v4  ;;  %v16558_v4 = vld [vmem:[#allocation256_spill] sm:$0xff] }
0x13a3   :  { %8116 = vrsqrt.f32 %v5275_v47 }
0x13a6   :  { %7853 = vset.pattern.permute.xlu1 %v16533_v19 }
0x13a7   :  { %7038 = vperm.xlu1 %7853, %v14615_v35   ;;  %v8256_v35 = vld [vmem:[%s14963_s2 + $0x370] sm:$0xff] }
0x13a8   :  { %v5545_v31 = vmul.f32 %v8256_v35, %v8111_v50  ;;  %v5287_v50 = vadd.f32 0.001, %v5011_v10  ;;  %v16557_v10 = vld [vmem:[#allocation82_spill] sm:$0xff] }
0x13ab   :  { %7854 = vset.pattern.permute.xlu1 %v16535_v38  ;;  %v8113_v28 = vpop.eup %8112 }
0x13ac   :  { %6115 = vperm.xlu1 %7854, %v5543_v62   ;;  %v8115_v39 = vpop.eup %8114 }
0x13ad   :  { %v5549_v23 = vmul.f32 %v8258_v54, %v8115_v39 }
0x13b0   :  { %7855 = vset.pattern.permute.xlu1 %v16533_v19 }
0x13b1   :  { %7048 = vperm.xlu1 %7855, %v14638_v57   ;;  %v8257_v57 = vld [vmem:[%s14963_s2 + $0x380] sm:$0xff] }
0x13b2   :  { %v5547_v3 = vmul.f32 %v8257_v57, %v8113_v28  ;;  %v16553_v28 = vld [vmem:[#allocation125_spill] sm:$0xff] }
0x13b3   :  { %v5015_v52 = vmul.f32 0.020408163, %v16553_v28 }
0x13b5   :  { %7856 = vset.pattern.permute.xlu1 %v16535_v38  ;;  %v5291_v47 = vadd.f32 0.001, %v5015_v52 }
0x13b6   :  { %6125 = vperm.xlu1 %7856, %v5545_v31  }
0x13ba   :  { %7857 = vset.pattern.permute.xlu1 %v16533_v19 }
0x13bb   :  { %7058 = vperm.xlu1 %7857, %v14661_v12   ;;  %v5277_v12 = vadd.f32 0.001, %v5001_v17  ;;  %v5017_v17 = vmul.f32 0.020408163, %v16554_v49  ;;  %v16560_v49 = vld [vmem:[#allocation258_spill] sm:$0xff] }
0x13bd   :  { %v5293_v39 = vadd.f32 0.001, %v5017_v17  ;;  %v16561_v17 = vld [vmem:[#allocation86_spill] sm:$0xff] }
0x13bf   :  { %7858 = vset.pattern.permute.xlu1 %v16535_v38 }
0x13c0   :  { %6135 = vperm.xlu1 %7858, %v5547_v3  }
0x13c1   :  { %v4876_v20 = vpop.xlane.xlu1 %4875 }
0x13c2   :  { %v5018_v2 = vmul.f32 0.020408163, %v4876_v20  ;;  %v8263_v20 = vld [vmem:[%s14963_s2 + $0x3e0] sm:$0xff] }
0x13c4   :  { %v5294_v44 = vadd.f32 0.001, %v5018_v2  ;;  %7859 = vset.pattern.permute.xlu1 %v16533_v19 }
0x13c5   :  { %7068 = vperm.xlu1 %7859, %v5154_v7   ;;  %v6056_v37 = vpop.permute.xlu1 %6055  ;;  %v8117_v7 = vpop.eup %8116 }
0x13c6   :  { %8118 = vrsqrt.f32 %v5294_v44  ;;  %v6359_v22 = vmul.f32 %v6056_v37, %v16546_v43  ;;  %v5551_v11 = vmul.f32 %v8259_v36, %v8117_v7 }
0x13c7   :  { %8120 = vrsqrt.f32 %v5277_v12  ;;  %v16555_v12 = vld [vmem:[#allocation145_spill] sm:$0xff] }
0x13c8   :  { %v7187_v26 = vadd.f32 %v16547_v45, %v6359_v22  ;;  %8122 = vrsqrt.f32 %v5279_v30  ;;  %v5019_v56 = vmul.f32 0.020408163, %v16555_v12  ;;  %v8265_v45 = vld [vmem:[%s14963_s2 + $0x400] sm:$0xff] }
0x13c9   :  { %7861 = vset.pattern.permute.xlu1 %v16535_v38  ;;  %8124 = vrsqrt.f32 %v5281_v6 }
0x13ca   :  { %7325 = vst.msk [vmem:[%s14965_s4 + $0x300] sm:$0xff] %vm653_vm0, %v7187_v26  ;;  %6145 = vperm.xlu1 %7861, %v5549_v23   ;;  %8126 = vrsqrt.f32 %v5283_v59  ;;  %v5295_v22 = vadd.f32 0.001, %v5019_v56  ;;  %v8266_v23 = vld [vmem:[%s14963_s2 + $0x410] sm:$0xff] }
0x13cb   :  { %8128 = vrsqrt.f32 %v5285_v41  ;;  %v16562_v56 = vld [vmem:[#allocation260_spill] sm:$0xff] }
0x13cc   :  { %8130 = vrsqrt.f32 %v5287_v50  ;;  %v5158_v50 = vld [vmem:[%s14963_s2 + $0x448] sm:$0xff] }
0x13cd   :  { %8132 = vrsqrt.f32 %v5289_v42 }
0x13ce   :  { %7862 = vset.pattern.permute.xlu1 %v16533_v19  ;;  %8134 = vrsqrt.f32 %v5291_v47 }
0x13cf   :  { %7078 = vperm.xlu1 %7862, %v5156_v0   ;;  %8136 = vrsqrt.f32 %v5293_v39 }
0x13d0   :  { %v8119_v9 = vpop.eup %8118  ;;  %8138 = vrsqrt.f32 %v5295_v22 }
0x13d1   :  { %v5570_v16 = vmul.f32 %v8119_v9, %v5156_v0  ;;  %v8121_v51 = vpop.eup %8120 }
0x13d2   :  { %v5553_v62 = vmul.f32 %v8260_v18, %v8121_v51  ;;  %v8123_v60 = vpop.eup %8122  ;;  %v16556_v51 = vld [vmem:[#allocation254_spill] sm:$0xff] }
0x13d3   :  { %7863 = vset.pattern.permute.xlu1 %v16535_v38  ;;  %6250 = vperm.xlu0 %7860, %v5570_v16   ;;  %v8261_v38 = vld [vmem:[%s14963_s2 + $0x3c0] sm:$0xff]  ;;  %v8125_v31 = vpop.eup %8124  ;;  %v6171_v16 = vpop.permute.xlu0 %6170 }
0x13d4   :  { %6155 = vperm.xlu1 %7863, %v5551_v11   ;;  %v5555_v35 = vmul.f32 %v8261_v38, %v8123_v60  ;;  %v5557_v57 = vmul.f32 %v8262_v40, %v8125_v31  ;;  %v8127_v3 = vpop.eup %8126  ;;  %v6382_v58 = vmul.f32 %v6171_v16, %v14296_v63  ;;  %v16559_v31 = vld [vmem:[#allocation84_spill] sm:$0xff] }
0x13d5   :  { %v5559_v2 = vmul.f32 %v8263_v20, %v8127_v3  ;;  %v8129_v44 = vpop.eup %8128 }
0x13d6   :  { %v5561_v37 = vmul.f32 %v8264_v13, %v8129_v44  ;;  %v8131_v43 = vpop.eup %8130 }
0x13d7   :  { %v5563_v26 = vmul.f32 %v8265_v45, %v8131_v43  ;;  %v8133_v54 = vpop.eup %8132  ;;  %v6181_v24 = vpop.permute.xlu0 %6180 }
0x13d8   :  { %6165 = vperm.xlu1 %7863, %v5553_v62   ;;  %v5565_v30 = vmul.f32 %v8266_v23, %v8133_v54  ;;  %v8135_v48 = vpop.eup %8134  ;;  %v6384_v52 = vmul.f32 %v6181_v24, %v14395_v29  ;;  %v16564_v23 = vld [vmem:[#allocation263_spill] sm:$0xff] }
0x13d9   :  { %v5567_v0 = vmul.f32 %v8267_v61, %v8135_v48  ;;  %v8137_v6 = vpop.eup %8136  ;;  %v16565_v48 = vld [vmem:[#allocation90_spill] sm:$0xff] }
0x13da   :  { %v5569_v7 = vmul.f32 %v8268_v5, %v8137_v6  ;;  %v8139_v9 = vpop.eup %8138 }
0x13db   :  { %v5571_v11 = vmul.f32 %v8139_v9, %v5157_v53  ;;  %v6191_v47 = vpop.permute.xlu0 %6190 }
0x13dc   :  { %6175 = vperm.xlu1 %7863, %v5555_v35  }
0x13df   :  { %v6201_v12 = vpop.permute.xlu0 %6200 }
0x13e0   :  { %6185 = vperm.xlu1 %7863, %v5557_v57  }
0x13e3   :  { %v6211_v54 = vpop.permute.xlu0 %6210 }
0x13e4   :  { %6195 = vperm.xlu1 %7863, %v5559_v2   ;;  %v6386_v2 = vmul.f32 %v6191_v47, %v14473_v1  ;;  %v6388_v1 = vmul.f32 %v6201_v12, %v14499_v33  ;;  %v6390_v33 = vmul.f32 %v6211_v54, %v14528_v14 }
0x13e7   :  { %v6221_v5 = vpop.permute.xlu0 %6220 }
0x13e8   :  { %6205 = vperm.xlu1 %7863, %v5561_v37   ;;  %v16563_v37 = vld [vmem:[#allocation88_spill] sm:$0xff]  ;;  %v6392_v14 = vmul.f32 %v6221_v5, %v14557_v15 }
0x13ec   :  { %6215 = vperm.xlu1 %7863, %v5563_v26  }
0x13f0   :  { %6225 = vperm.xlu1 %7863, %v5565_v30  }
0x13f4   :  { %6235 = vperm.xlu1 %7863, %v5567_v0  }
0x13f6   :  { %v4882_v55 = vpop.xlane.xlu1 %4881 }
0x13f7   :  { %v5020_v59 = vmul.f32 0.020408163, %v4882_v55 }
0x13f8   :  { %6245 = vperm.xlu1 %7863, %v5569_v7   ;;  %v16566_v7 = vld [vmem:[#allocation262_spill] sm:$0xff] }
0x13f9   :  { %v5296_v46 = vadd.f32 0.001, %v5020_v59  ;;  %v16567_v59 = vld [vmem:[#allocation92_spill] sm:$0xff] }
0x13fa   :  { %v6066_v36 = vpop.permute.xlu1 %6065 }
0x13fb   :  { %8140 = vrsqrt.f32 %v5296_v46  ;;  %v6361_v41 = vmul.f32 %v6066_v36, %v16556_v51  ;;  %v16568_v51 = vld [vmem:[#allocation265_spill] sm:$0xff] }
0x13fc   :  { %6255 = vperm.xlu1 %7863, %v5571_v11   ;;  %v6231_v11 = vpop.permute.xlu0 %6230 }
0x13fd   :  { %v7189_v18 = vadd.f32 %v16557_v10, %v6361_v41  ;;  %v6394_v15 = vmul.f32 %v6231_v11, %v14580_v25  ;;  %v16587_v11 = vld [vmem:[#allocation152_spill] sm:$0xff] }
0x13fe   :  { %v6999_v62 = vpop.permute.xlu1 %6998 }
0x13ff   :  { %7327 = vst.msk [vmem:[%s14965_s4 + $0x310] sm:$0xff] %vm653_vm0, %v7189_v18  ;;  %v7210_v60 = vadd.f32 %v6999_v62, %v6382_v58  ;;  %v16569_v58 = vld [vmem:[#allocation94_spill] sm:$0xff] }
0x1400   :  { %7865 = vset.pattern.permute.xlu1 %v16533_v19 }
0x1401   :  { %7348 = vst.msk [vmem:[%s14965_s4 + $0x3b8] sm:$0xff] %vm653_vm0, %v7210_v60  ;;  %7088 = vperm.xlu1 %7865, %v5158_v50  }
0x1403   :  { %v6076_v63 = vpop.permute.xlu1 %6075 }
0x1404   :  { %v6363_v38 = vmul.f32 %v6076_v63, %v16558_v4  ;;  %v16570_v63 = vld [vmem:[#allocation264_spill] sm:$0xff] }
0x1405   :  { %v8141_v35 = vpop.eup %8140  ;;  %v16571_v4 = vld [vmem:[#allocation96_spill] sm:$0xff] }
0x1406   :  { %v7191_v42 = vadd.f32 %v16559_v31, %v6363_v38  ;;  %v5572_v28 = vmul.f32 %v8141_v35, %v5158_v50 }
0x1408   :  { %7329 = vst.msk [vmem:[%s14965_s4 + $0x320] sm:$0xff] %vm653_vm0, %v7191_v42  ;;  %6260 = vperm.xlu0 %7860, %v5572_v28   ;;  %v7009_v40 = vpop.permute.xlu1 %7008  ;;  %v16572_v28 = vld [vmem:[#allocation267_spill] sm:$0xff] }
0x1409   :  { %v7212_v57 = vadd.f32 %v7009_v40, %v6384_v52  ;;  %v16573_v40 = vld [vmem:[#allocation98_spill] sm:$0xff] }
0x140b   :  { %7350 = vst.msk [vmem:[%s14965_s4 + $0x3c8] sm:$0xff] %vm653_vm0, %v7212_v57 }
0x140c   :  { %7864 = vset.pattern.permute.xlu0 %v16533_v19 }
0x140d   :  { %7083 = vperm.xlu0 %7864, %v5157_v53   ;;  %v6086_v3 = vpop.permute.xlu1 %6085 }
0x140e   :  { %v6365_v29 = vmul.f32 %v6086_v3, %v16560_v49 }
0x1410   :  { %v7193_v20 = vadd.f32 %v16561_v17, %v6365_v29  ;;  %v16574_v29 = vld [vmem:[#allocation266_spill] sm:$0xff] }
0x1412   :  { %7331 = vst.msk [vmem:[%s14965_s4 + $0x330] sm:$0xff] %vm653_vm0, %v7193_v20  ;;  %v7019_v44 = vpop.permute.xlu1 %7018 }
0x1413   :  { %v7214_v39 = vadd.f32 %v7019_v44, %v6386_v2  ;;  %v16575_v2 = vld [vmem:[#allocation100_spill] sm:$0xff] }
0x1415   :  { %7352 = vst.msk [vmem:[%s14965_s4 + $0x3d8] sm:$0xff] %vm653_vm0, %v7214_v39 }
0x1417   :  { %v6096_v19 = vpop.permute.xlu1 %6095 }
0x1418   :  { %v6367_v13 = vmul.f32 %v6096_v19, %v16562_v56  ;;  %v16576_v19 = vld [vmem:[#allocation269_spill] sm:$0xff] }
0x141a   :  { %v7195_v43 = vadd.f32 %v16563_v37, %v6367_v13  ;;  %v16578_v37 = vld [vmem:[#allocation268_spill] sm:$0xff] }
0x141c   :  { %7333 = vst.msk [vmem:[%s14965_s4 + $0x340] sm:$0xff] %vm653_vm0, %v7195_v43  ;;  %v7029_v22 = vpop.permute.xlu1 %7028 }
0x141d   :  { %v7216_v45 = vadd.f32 %v7029_v22, %v6388_v1  ;;  %v6241_v50 = vpop.permute.xlu0 %6240  ;;  %v16579_v1 = vld [vmem:[#allocation154_spill] sm:$0xff] }
0x141e   :  { %v6396_v25 = vmul.f32 %v6241_v50, %v14603_v27  ;;  %v16591_v50 = vld [vmem:[#allocation129_spill] sm:$0xff] }
0x141f   :  { %7354 = vst.msk [vmem:[%s14965_s4 + $0x3e8] sm:$0xff] %vm653_vm0, %v7216_v45 }
0x1421   :  { %v6106_v26 = vpop.permute.xlu1 %6105 }
0x1422   :  { %v6369_v30 = vmul.f32 %v6106_v26, %v16564_v23  ;;  %v16580_v26 = vld [vmem:[#allocation271_spill] sm:$0xff] }
0x1423   :  { %v16581_v23 = vld [vmem:[#allocation127_spill] sm:$0xff] }
0x1424   :  { %v7197_v61 = vadd.f32 %v16565_v48, %v6369_v30 }
0x1426   :  { %7335 = vst.msk [vmem:[%s14965_s4 + $0x350] sm:$0xff] %vm653_vm0, %v7197_v61  ;;  %v7039_v0 = vpop.permute.xlu1 %7038  ;;  %v16582_v61 = vld [vmem:[#allocation270_spill] sm:$0xff] }
0x1427   :  { %v7218_v6 = vadd.f32 %v7039_v0, %v6390_v33 }
0x1429   :  { %7356 = vst.msk [vmem:[%s14965_s4 + $0x3f8] sm:$0xff] %vm653_vm0, %v7218_v6 }
0x142b   :  { %v6116_v55 = vpop.permute.xlu1 %6115 }
0x142c   :  { %v6371_v9 = vmul.f32 %v6116_v55, %v16566_v7  ;;  %v16583_v55 = vld [vmem:[#allocation273_spill] sm:$0xff] }
0x142e   :  { %v7199_v53 = vadd.f32 %v16567_v59, %v6371_v9  ;;  %v16584_v59 = vld [vmem:[#allocation272_spill] sm:$0xff] }
0x1430   :  { %7337 = vst.msk [vmem:[%s14965_s4 + $0x360] sm:$0xff] %vm653_vm0, %v7199_v53  ;;  %v7049_v46 = vpop.permute.xlu1 %7048 }
0x1431   :  { %v7220_v16 = vadd.f32 %v7049_v46, %v6392_v14  ;;  %v16585_v14 = vld [vmem:[#allocation12_spill] sm:$0xff] }
0x1433   :  { %7358 = vst.msk [vmem:[%s14965_s4 + $0x408] sm:$0xff] %vm653_vm0, %v7220_v16  ;;  %v16586_v16 = vld [vmem:[#allocation275_spill] sm:$0xff] }
0x1435   :  { %v6126_v36 = vpop.permute.xlu1 %6125 }
0x1436   :  { %v6373_v41 = vmul.f32 %v6126_v36, %v16568_v51 }
0x1438   :  { %v7201_v10 = vadd.f32 %v16569_v58, %v6373_v41  ;;  %v16588_v41 = vld [vmem:[#allocation274_spill] sm:$0xff] }
0x143a   :  { %7339 = vst.msk [vmem:[%s14965_s4 + $0x370] sm:$0xff] %vm653_vm0, %v7201_v10  ;;  %v7059_v18 = vpop.permute.xlu1 %7058  ;;  %v16589_v10 = vld [vmem:[#allocation164_spill] sm:$0xff] }
0x143b   :  { %v7222_v62 = vadd.f32 %v7059_v18, %v6394_v15 }
0x143d   :  { %7360 = vst.msk [vmem:[%s14965_s4 + $0x418] sm:$0xff] %vm653_vm0, %v7222_v62  ;;  %v16590_v62 = vld [vmem:[#allocation277_spill] sm:$0xff] }
0x143f   :  { %v6136_v60 = vpop.permute.xlu1 %6135 }
0x1440   :  { %v6375_v24 = vmul.f32 %v6136_v60, %v16570_v63 }
0x1442   :  { %v7203_v38 = vadd.f32 %v16571_v4, %v6375_v24 }
0x1444   :  { %7341 = vst.msk [vmem:[%s14965_s4 + $0x380] sm:$0xff] %vm653_vm0, %v7203_v38  ;;  %v7069_v35 = vpop.permute.xlu1 %7068 }
0x1445   :  { %v7224_v31 = vadd.f32 %v7069_v35, %v6396_v25 }
0x1447   :  { %7362 = vst.msk [vmem:[%s14965_s4 + $0x428] sm:$0xff] %vm653_vm0, %v7224_v31  ;;  %v16592_v31 = vld [vmem:[#allocation276_spill] sm:$0xff] }
0x1449   :  { %v6146_v42 = vpop.permute.xlu1 %6145 }
0x144a   :  { %v6377_v52 = vmul.f32 %v6146_v42, %v16572_v28 }
0x144c   :  { %v7205_v57 = vadd.f32 %v16573_v40, %v6377_v52 }
0x144e   :  { %7343 = vst.msk [vmem:[%s14965_s4 + $0x390] sm:$0xff] %vm653_vm0, %v7205_v57  ;;  %v7079_v27 = vpop.permute.xlu1 %7078 }
0x1452   :  { %v6251_v3 = vpop.permute.xlu0 %6250 }
0x1453   :  { %v6398_v47 = vmul.f32 %v6251_v3, %v14626_v8  ;;  %v6156_v49 = vpop.permute.xlu1 %6155  ;;  %v16577_v8 = vld [vmem:[#allocation102_spill] sm:$0xff] }
0x1454   :  { %v6379_v17 = vmul.f32 %v6156_v49, %v16574_v29 }
0x1455   :  { %v7226_v20 = vadd.f32 %v7079_v27, %v6398_v47 }
0x1456   :  { %v7207_v44 = vadd.f32 %v16575_v2, %v6379_v17 }
0x1457   :  { %7364 = vst.msk [vmem:[%s14965_s4 + $0x438] sm:$0xff] %vm653_vm0, %v7226_v20  ;;  %v6166_v39 = vpop.permute.xlu1 %6165 }
0x1458   :  { %7345 = vst.msk [vmem:[%s14965_s4 + $0x3a0] sm:$0xff] %vm653_vm0, %v7207_v44  ;;  %v6381_v12 = vmul.f32 %v6166_v39, %v16576_v19 }
0x145a   :  { %v7209_v56 = vadd.f32 %v16577_v8, %v6381_v12 }
0x145b   :  { %v6176_v13 = vpop.permute.xlu1 %6175 }
0x145c   :  { %7347 = vst.msk [vmem:[%s14965_s4 + $0x3b0] sm:$0xff] %vm653_vm0, %v7209_v56  ;;  %v6383_v43 = vmul.f32 %v6176_v13, %v16578_v37 }
0x145e   :  { %v7211_v22 = vadd.f32 %v16579_v1, %v6383_v43 }
0x145f   :  { %v6186_v45 = vpop.permute.xlu1 %6185 }
0x1460   :  { %7349 = vst.msk [vmem:[%s14965_s4 + $0x3c0] sm:$0xff] %vm653_vm0, %v7211_v22  ;;  %v6385_v54 = vmul.f32 %v6186_v45, %v16580_v26 }
0x1462   :  { %v7213_v30 = vadd.f32 %v16581_v23, %v6385_v54 }
0x1463   :  { %v6196_v48 = vpop.permute.xlu1 %6195 }
0x1464   :  { %7351 = vst.msk [vmem:[%s14965_s4 + $0x3d0] sm:$0xff] %vm653_vm0, %v7213_v30  ;;  %v6387_v33 = vmul.f32 %v6196_v48, %v16582_v61 }
0x1466   :  { %v7215_v0 = vadd.f32 %v13917_v21, %v6387_v33 }
0x1467   :  { %v6206_v6 = vpop.permute.xlu1 %6205 }
0x1468   :  { %7353 = vst.msk [vmem:[%s14965_s4 + $0x3e0] sm:$0xff] %vm653_vm0, %v7215_v0  ;;  %v6389_v5 = vmul.f32 %v6206_v6, %v16583_v55 }
0x146a   :  { %v7217_v7 = vadd.f32 %v13932_v32, %v6389_v5 }
0x146b   :  { %v6216_v9 = vpop.permute.xlu1 %6215 }
0x146c   :  { %7355 = vst.msk [vmem:[%s14965_s4 + $0x3f0] sm:$0xff] %vm653_vm0, %v7217_v7  ;;  %v6391_v53 = vmul.f32 %v6216_v9, %v16584_v59 }
0x146e   :  { %v7219_v21 = vadd.f32 %v16585_v14, %v6391_v53 }
0x146f   :  { %v6226_v46 = vpop.permute.xlu1 %6225 }
0x1470   :  { %7357 = vst.msk [vmem:[%s14965_s4 + $0x400] sm:$0xff] %vm653_vm0, %v7219_v21  ;;  %v6393_v36 = vmul.f32 %v6226_v46, %v16586_v16 }
0x1472   :  { %v7221_v32 = vadd.f32 %v16587_v11, %v6393_v36 }
0x1473   :  { %v6236_v51 = vpop.permute.xlu1 %6235 }
0x1474   :  { %7359 = vst.msk [vmem:[%s14965_s4 + $0x410] sm:$0xff] %vm653_vm0, %v7221_v32  ;;  %v6395_v58 = vmul.f32 %v6236_v51, %v16588_v41 }
0x1476   :  { %v7223_v15 = vadd.f32 %v16589_v10, %v6395_v58 }
0x1477   :  { %v6246_v18 = vpop.permute.xlu1 %6245 }
0x1478   :  { %7361 = vst.msk [vmem:[%s14965_s4 + $0x420] sm:$0xff] %vm653_vm0, %v7223_v15  ;;  %v6397_v60 = vmul.f32 %v6246_v18, %v16590_v62 }
0x147a   :  { %v7225_v63 = vadd.f32 %v16591_v50, %v6397_v60 }
0x147b   :  { %v6256_v24 = vpop.permute.xlu1 %6255 }
0x147c   :  { %7363 = vst.msk [vmem:[%s14965_s4 + $0x430] sm:$0xff] %vm653_vm0, %v7225_v63  ;;  %v6399_v42 = vmul.f32 %v6256_v24, %v16592_v31 }
0x1480   :  { %v7089_v38 = vpop.permute.xlu1 %7088 }
0x1487   :  { %v6261_v4 = vpop.permute.xlu0 %6260 }
0x1488   :  { %v6400_v25 = vmul.f32 %v6261_v4, %v14649_v34 }
0x148a   :  { %v7228_v35 = vadd.f32 %v7089_v38, %v6400_v25 }
0x148c   :  { %7366 = vst.msk [vmem:[%s14965_s4 + $0x448] sm:$0xff] %vm653_vm0, %v7228_v35  ;;  %v7084_v28 = vpop.permute.xlu0 %7083 }
0x148d   :  { %v7227_v52 = vadd.f32 %v7084_v28, %v6399_v42 }
0x148f   :  { %7365 = vst.msk [vmem:[%s14965_s4 + $0x440] sm:$0xff] %vm653_vm0, %v7227_v52 }
0x1490   :  { %7371 = vsyncmov [#allocation3] }
0x1493   :  { %s7372_s23 = vpop.sfrf %7371 }
0x1494   :  { %p7661_p0 = scmp.ne.s32.totalorder %s7372_s23, 0 }
0x1496   :  { %7376 = shalt.err (%p7661_p0)  }

</bundles_post_ra>
